<compile_context>
chip_gen: v7x
topology: tpu7x:2x2x1
jax: 0.10.0
libtpu: 0.0.40
codegen_flags: <defaults>
</compile_context>

<pallas_src>
import jax
import jax.numpy as jnp
import numpy as np
from jax.experimental import pallas as pl
from jax.experimental.pallas import tpu as pltpu


def tempcnn_kernel(c1_ref, w1_ref, s1_ref, w2_ref, s2_ref, w3_ref, s3_ref,
                   o_ref, hp_ref):
    BB, T, D1 = c1_ref.shape          # D1 = K*Cin padded up to a multiple of 128
    K, H, _ = w2_ref.shape
    pad = K // 2

    # TODO(synk): nn.Dropout is identity in eval mode; training-mode dropout not modeled.

    # Zero the time halo of the scratch each step (cheap, and safe no matter
    # how the grid is sharded across cores); the interior is overwritten below.
    halo = jnp.zeros((BB, pad, H), jnp.bfloat16)
    hp_ref[:, :pad, :] = halo
    hp_ref[:, pad + T:pad + T + pad, :] = halo

    # Layer 1: wrapper-side im2col with the contraction dim zero-padded to 128
    # -> one deep lane-dense MXU matmul; f32 add-shift + ReLU epilogue
    # (BN scale folded into the weights, so no per-element mul).
    c1 = c1_ref[...].reshape(BB * T, D1)
    y = jnp.dot(c1, w1_ref[...], preferred_element_type=jnp.float32)
    h = jnp.maximum(y + s1_ref[...], 0.0)                     # (BB*T, H) f32

    # Layers 2 & 3: store the activation once into the zero-haloed scratch
    # (taps never leak across batch elements), then K accumulating
    # (BB*T, H) @ (H, H) matmuls -- no im2col cols buffer, no concat chain.
    for w_ref, s_ref in ((w2_ref, s2_ref), (w3_ref, s3_ref)):
        hp_ref[:, pad:pad + T, :] = h.astype(jnp.bfloat16).reshape(BB, T, H)
        y = jnp.zeros((BB * T, H), jnp.float32)
        for k in range(K):                                     # static unroll
            tap = hp_ref[:, k:k + T, :].reshape(BB * T, H)     # bf16 LHS
            y = y + jnp.dot(tap, w_ref[k], preferred_element_type=jnp.float32)
        h = jnp.maximum(y + s_ref[...], 0.0)

    # AdaptiveAvgPool1d(1) == mean over time; lane-dense (BB, H=128) store.
    o_ref[...] = jnp.mean(h.reshape(BB, T, H), axis=1)


def tempcnn_forward(x, params, kernel_size, *, block_b=None):
    """x: (B, T, C_in) float32. params: 3 tuples (w_kio_f32, shift_f32).
    Returns (B, H, 1) float32 like the PyTorch TempCNN (eval mode)."""
    B, T, Cin = x.shape
    (w1_kio, s1), (w2_kio, s2), (w3_kio, s3) = params
    K = kernel_size
    H = w1_kio.shape[2]
    pad = K // 2

    # Grid sizing: fold the whole (small) batch into one step so M = BB*T fills
    # the 256-wide MXU and there is no per-step pipeline overhead (v5e/v6e).
    # For large B keep BB*T >= 256 per step; on v7x pick block_b so each core
    # gets >= 2 iterations.
    if block_b is None:
        block_b = B if B * T <= 2048 else max(1, pl.cdiv(256, T))
    BB = block_b
    nb = pl.cdiv(B, BB)
    Bpad = nb * BB

    # Layer-1 im2col in the wrapper; contraction dim K*Cin zero-padded to D1
    # (multiple of 128) for lane-dense loads and a clean 128-deep contraction.
    # NOTE: wrapper-side cols1 duplicates the layer-1 input stream ~K x in HBM;
    # irrelevant at small B, move the tap gather in-kernel if B becomes large.
    D1 = ((K * Cin + 127) // 128) * 128
    xpad = jnp.pad(x, ((0, Bpad - B), (pad, pad), (0, 0)))
    cols1 = jnp.concatenate([xpad[:, k:k + T, :] for k in range(K)], axis=-1)
    cols1 = jnp.pad(cols1, ((0, 0), (0, 0), (0, D1 - K * Cin))).astype(jnp.bfloat16)

    # Weight layouts: layer 1 -> (D1, H) im2col matrix (rows zero-padded to
    # match cols1); layers 2/3 -> per-tap (K, H, H) stacks for the accumulating
    # matmul form.  BN scale is already folded in; cast to bf16 for the MXU.
    w1 = jnp.pad(w1_kio.reshape(K * Cin, H),
                 ((0, D1 - K * Cin), (0, 0))).astype(jnp.bfloat16)
    w2 = w2_kio.astype(jnp.bfloat16)
    w3 = w3_kio.astype(jnp.bfloat16)

    flops = 2 * Bpad * T * (D1 * H + 2 * K * H * H)
    bytes_accessed = int(cols1.size * 2 + (w1.size + w2.size + w3.size) * 2
                         + (s1.size + s2.size + s3.size) * 4 + Bpad * H * 4)

    full = lambda a: pl.BlockSpec(a.shape, lambda i: (0,) * a.ndim)

    out = pl.pallas_call(
        tempcnn_kernel,
        out_shape=jax.ShapeDtypeStruct((Bpad, H), jnp.float32),
        grid_spec=pltpu.PrefetchScalarGridSpec(
            num_scalar_prefetch=0,
            grid=(nb,),
            in_specs=[
                pl.BlockSpec((BB, T, D1), lambda i: (i, 0, 0)),
                full(w1), full(s1),
                full(w2), full(s2),
                full(w3), full(s3),
            ],
            out_specs=pl.BlockSpec((BB, H), lambda i: (i, 0)),
            scratch_shapes=[pltpu.VMEM((BB, T + 2 * pad, H), jnp.bfloat16)],
        ),
        compiler_params=pltpu.CompilerParams(
            dimension_semantics=("parallel",)),
        cost_estimate=pl.CostEstimate(flops=flops, transcendentals=0,
                                      bytes_accessed=bytes_accessed),
    )(cols1, w1, s1, w2, s2, w3, s3)

    return out[:B].reshape(B, H, 1)


def make_layer_params(key, cin, cout, K, eps=1e-5):
    """Deterministic synthetic Conv1d + BatchNorm1d (eval) params.

    Folds BN scale into the conv weights and conv-bias + BN shift into a single
    additive term:  y = conv(x, w*scale) + ((bias - mean)*scale + beta).
    Returns folded (w_kio (K, Cin, Cout) f32, shift (1, Cout) f32) and the raw
    torch-style params for the reference.
    """
    ks = jax.random.split(key, 6)
    w_torch = 0.1 * jax.random.normal(ks[0], (cout, cin, K), jnp.float32)  # (O, I, K)
    bias = 0.1 * jax.random.normal(ks[1], (cout,), jnp.float32)
    gamma = 1.0 + 0.1 * jax.random.normal(ks[2], (cout,), jnp.float32)
    beta = 0.1 * jax.random.normal(ks[3], (cout,), jnp.float32)
    mean = 0.1 * jax.random.normal(ks[4], (cout,), jnp.float32)
    var = jax.random.uniform(ks[5], (cout,), jnp.float32, 0.5, 1.5)

    scale = gamma / jnp.sqrt(var + eps)
    shift = (bias - mean) * scale + beta
    w_kio = jnp.transpose(w_torch, (2, 1, 0)) * scale[None, None, :]  # (K, Cin, Cout)
    folded = (w_kio, shift.reshape(1, cout).astype(jnp.float32))
    raw = (w_torch, bias, gamma, beta, mean, var)
    return folded, raw


def ref_forward(x, torch_params, K, eps=1e-5):
    """Plain-JAX f32 reference mirroring the PyTorch forward (eval mode)."""
    h = jnp.transpose(x, (0, 2, 1))                       # (B, C, T)
    pad = K // 2
    for (w, bias, gamma, beta, mean, var) in torch_params:
        h = jax.lax.conv_general_dilated(
            h, w, window_strides=(1,), padding=[(pad, pad)],
            dimension_numbers=("NCH", "OIH", "NCH"))
        h = h + bias[None, :, None]
        h = (h - mean[None, :, None]) / jnp.sqrt(var[None, :, None] + eps)
        h = h * gamma[None, :, None] + beta[None, :, None]
        h = jnp.maximum(h, 0.0)
    return jnp.mean(h, axis=2, keepdims=True)             # (B, H, 1)


if __name__ == "__main__":
    # TempCNN defaults: input_dim=10, kernel_size=7, hidden_dims=128.
    B, T, Cin, H, K = 16, 16, 10, 128, 7

    key = jax.random.PRNGKey(0)
    kx, k1, k2, k3 = jax.random.split(key, 4)
    x = jax.random.normal(kx, (B, T, Cin), jnp.float32)

    (p1, t1) = make_layer_params(k1, Cin, H, K)
    (p2, t2) = make_layer_params(k2, H, H, K)
    (p3, t3) = make_layer_params(k3, H, H, K)

    out = tempcnn_forward(x, (p1, p2, p3), K)
    out = jax.block_until_ready(out)
    assert out.shape == (B, H, 1)

    ref = jax.block_until_ready(ref_forward(x, (t1, t2, t3), K))
    np.testing.assert_allclose(np.asarray(out), np.asarray(ref),
                               atol=5e-2, rtol=5e-2)

    print("KERNEL_OK")
</pallas_src>

<mosaic_0001>
module attributes {stable_mosaic.version = 11 : i64} {
  func.func @tempcnn_kernel(%arg0: i32, %arg1: memref<16x16x128xbf16, #tpu.memory_space<vmem>>, %arg2: memref<128x128xbf16, #tpu.memory_space<vmem>>, %arg3: memref<1x128xf32, #tpu.memory_space<vmem>>, %arg4: memref<7x128x128xbf16, #tpu.memory_space<vmem>>, %arg5: memref<1x128xf32, #tpu.memory_space<vmem>>, %arg6: memref<7x128x128xbf16, #tpu.memory_space<vmem>>, %arg7: memref<1x128xf32, #tpu.memory_space<vmem>>, %arg8: memref<16x128xf32, #tpu.memory_space<vmem>>, %arg9: memref<16x22x128xbf16, #tpu.memory_space<vmem>>) attributes {dimension_semantics = [#tpu.dimension_semantics<parallel>], iteration_bounds = array<i64: 1>, scalar_prefetch = 0 : i64, scratch_operands = 1 : i64, tpu.core_type = #tpu.core_type<tc>, window_params = [{transform_indices = @transform_0, window_bounds = array<i64: 16, 16, 128>}, {pipeline_mode = #tpu.pipeline_mode<synchronous>, transform_indices = @transform_1, window_bounds = array<i64: 128, 128>}, {pipeline_mode = #tpu.pipeline_mode<synchronous>, transform_indices = @transform_2, window_bounds = array<i64: 1, 128>}, {pipeline_mode = #tpu.pipeline_mode<synchronous>, transform_indices = @transform_3, window_bounds = array<i64: 7, 128, 128>}, {pipeline_mode = #tpu.pipeline_mode<synchronous>, transform_indices = @transform_4, window_bounds = array<i64: 1, 128>}, {pipeline_mode = #tpu.pipeline_mode<synchronous>, transform_indices = @transform_5, window_bounds = array<i64: 7, 128, 128>}, {pipeline_mode = #tpu.pipeline_mode<synchronous>, transform_indices = @transform_6, window_bounds = array<i64: 1, 128>}, {transform_indices = @transform_7, window_bounds = array<i64: 16, 128>}]} {
    %cst = arith.constant 0.000000e+00 : bf16
    %0 = vector.broadcast %cst : bf16 to vector<16x3x128xbf16>
    %c0 = arith.constant 0 : index
    %c0_0 = arith.constant 0 : index
    %c0_1 = arith.constant 0 : index
    %1 = vector.load %arg9[%c0, %c0_0, %c0_1] : memref<16x22x128xbf16, #tpu.memory_space<vmem>>, vector<16x3x128xbf16>
    tpu.vector_store %arg9[%c0, %c0_0, %c0_1], %0 {strides = array<i32>} : memref<16x22x128xbf16, #tpu.memory_space<vmem>>, vector<16x3x128xbf16>,
    %c0_2 = arith.constant 0 : index
    %c19 = arith.constant 19 : index
    %c0_3 = arith.constant 0 : index
    %2 = vector.load %arg9[%c0_2, %c19, %c0_3] : memref<16x22x128xbf16, #tpu.memory_space<vmem>>, vector<16x3x128xbf16>
    tpu.vector_store %arg9[%c0_2, %c19, %c0_3], %0 {strides = array<i32>} : memref<16x22x128xbf16, #tpu.memory_space<vmem>>, vector<16x3x128xbf16>,
    %c0_4 = arith.constant 0 : index
    %c0_5 = arith.constant 0 : index
    %c0_6 = arith.constant 0 : index
    %3 = vector.load %arg1[%c0_4, %c0_5, %c0_6] : memref<16x16x128xbf16, #tpu.memory_space<vmem>>, vector<16x16x128xbf16>
    %4 = vector.shape_cast %3 : vector<16x16x128xbf16> to vector<256x128xbf16>
    %c0_7 = arith.constant 0 : index
    %c0_8 = arith.constant 0 : index
    %5 = vector.load %arg2[%c0_7, %c0_8] : memref<128x128xbf16, #tpu.memory_space<vmem>>, vector<128x128xbf16>
    %cst_9 = arith.constant dense<0.000000e+00> : vector<256x128xf32>
    %6 = tpu.matmul %4, %5, %cst_9 {dimension_numbers = #tpu.dot_dimension_numbers<[1], [0], [0], [1], [0, 0, 1, 1], [], []>} : vector<256x128xbf16>, vector<128x128xbf16>, vector<256x128xf32> -> vector<256x128xf32>
    %c0_10 = arith.constant 0 : index
    %c0_11 = arith.constant 0 : index
    %7 = vector.load %arg3[%c0_10, %c0_11] : memref<1x128xf32, #tpu.memory_space<vmem>>, vector<1x128xf32>
    %8 = vector.broadcast %7 : vector<1x128xf32> to vector<256x128xf32>
    %9 = arith.addf %6, %8 : vector<256x128xf32>
    %cst_12 = arith.constant 0.000000e+00 : f32
    %10 = vector.broadcast %cst_12 : f32 to vector<256x128xf32>
    %11 = arith.maximumf %9, %10 : vector<256x128xf32>
    %12 = arith.truncf %11 : vector<256x128xf32> to vector<256x128xbf16>
    %13 = vector.shape_cast %12 : vector<256x128xbf16> to vector<16x16x128xbf16>
    %c0_13 = arith.constant 0 : index
    %c3 = arith.constant 3 : index
    %c0_14 = arith.constant 0 : index
    %14 = vector.load %arg9[%c0_13, %c3, %c0_14] : memref<16x22x128xbf16, #tpu.memory_space<vmem>>, vector<16x16x128xbf16>
    tpu.vector_store %arg9[%c0_13, %c3, %c0_14], %13 {strides = array<i32>} : memref<16x22x128xbf16, #tpu.memory_space<vmem>>, vector<16x16x128xbf16>,
    %cst_15 = arith.constant 0.000000e+00 : f32
    %15 = vector.broadcast %cst_15 : f32 to vector<256x128xf32>
    %c0_16 = arith.constant 0 : index
    %c0_17 = arith.constant 0 : index
    %c0_18 = arith.constant 0 : index
    %16 = vector.load %arg9[%c0_16, %c0_17, %c0_18] : memref<16x22x128xbf16, #tpu.memory_space<vmem>>, vector<16x16x128xbf16>
    %17 = vector.shape_cast %16 : vector<16x16x128xbf16> to vector<256x128xbf16>
    %c0_19 = arith.constant 0 : index
    %c0_20 = arith.constant 0 : index
    %c0_21 = arith.constant 0 : index
    %18 = vector.load %arg4[%c0_19, %c0_20, %c0_21] : memref<7x128x128xbf16, #tpu.memory_space<vmem>>, vector<1x128x128xbf16>
    %19 = vector.shape_cast %18 : vector<1x128x128xbf16> to vector<128x128xbf16>
    %cst_22 = arith.constant dense<0.000000e+00> : vector<256x128xf32>
    %20 = tpu.matmul %17, %19, %cst_22 {dimension_numbers = #tpu.dot_dimension_numbers<[1], [0], [0], [1], [0, 0, 1, 1], [], []>} : vector<256x128xbf16>, vector<128x128xbf16>, vector<256x128xf32> -> vector<256x128xf32>
    %21 = arith.addf %15, %20 : vector<256x128xf32>
    %c0_23 = arith.constant 0 : index
    %c1 = arith.constant 1 : index
    %c0_24 = arith.constant 0 : index
    %22 = vector.load %arg9[%c0_23, %c1, %c0_24] : memref<16x22x128xbf16, #tpu.memory_space<vmem>>, vector<16x16x128xbf16>
    %23 = vector.shape_cast %22 : vector<16x16x128xbf16> to vector<256x128xbf16>
    %c1_25 = arith.constant 1 : index
    %c0_26 = arith.constant 0 : index
    %c0_27 = arith.constant 0 : index
    %24 = vector.load %arg4[%c1_25, %c0_26, %c0_27] : memref<7x128x128xbf16, #tpu.memory_space<vmem>>, vector<1x128x128xbf16>
    %25 = vector.shape_cast %24 : vector<1x128x128xbf16> to vector<128x128xbf16>
    %cst_28 = arith.constant dense<0.000000e+00> : vector<256x128xf32>
    %26 = tpu.matmul %23, %25, %cst_28 {dimension_numbers = #tpu.dot_dimension_numbers<[1], [0], [0], [1], [0, 0, 1, 1], [], []>} : vector<256x128xbf16>, vector<128x128xbf16>, vector<256x128xf32> -> vector<256x128xf32>
    %27 = arith.addf %21, %26 : vector<256x128xf32>
    %c0_29 = arith.constant 0 : index
    %c2 = arith.constant 2 : index
    %c0_30 = arith.constant 0 : index
    %28 = vector.load %arg9[%c0_29, %c2, %c0_30] : memref<16x22x128xbf16, #tpu.memory_space<vmem>>, vector<16x16x128xbf16>
    %29 = vector.shape_cast %28 : vector<16x16x128xbf16> to vector<256x128xbf16>
    %c2_31 = arith.constant 2 : index
    %c0_32 = arith.constant 0 : index
    %c0_33 = arith.constant 0 : index
    %30 = vector.load %arg4[%c2_31, %c0_32, %c0_33] : memref<7x128x128xbf16, #tpu.memory_space<vmem>>, vector<1x128x128xbf16>
    %31 = vector.shape_cast %30 : vector<1x128x128xbf16> to vector<128x128xbf16>
    %cst_34 = arith.constant dense<0.000000e+00> : vector<256x128xf32>
    %32 = tpu.matmul %29, %31, %cst_34 {dimension_numbers = #tpu.dot_dimension_numbers<[1], [0], [0], [1], [0, 0, 1, 1], [], []>} : vector<256x128xbf16>, vector<128x128xbf16>, vector<256x128xf32> -> vector<256x128xf32>
    %33 = arith.addf %27, %32 : vector<256x128xf32>
    %c0_35 = arith.constant 0 : index
    %c3_36 = arith.constant 3 : index
    %c0_37 = arith.constant 0 : index
    %34 = vector.load %arg9[%c0_35, %c3_36, %c0_37] : memref<16x22x128xbf16, #tpu.memory_space<vmem>>, vector<16x16x128xbf16>
    %35 = vector.shape_cast %34 : vector<16x16x128xbf16> to vector<256x128xbf16>
    %c3_38 = arith.constant 3 : index
    %c0_39 = arith.constant 0 : index
    %c0_40 = arith.constant 0 : index
    %36 = vector.load %arg4[%c3_38, %c0_39, %c0_40] : memref<7x128x128xbf16, #tpu.memory_space<vmem>>, vector<1x128x128xbf16>
    %37 = vector.shape_cast %36 : vector<1x128x128xbf16> to vector<128x128xbf16>
    %cst_41 = arith.constant dense<0.000000e+00> : vector<256x128xf32>
    %38 = tpu.matmul %35, %37, %cst_41 {dimension_numbers = #tpu.dot_dimension_numbers<[1], [0], [0], [1], [0, 0, 1, 1], [], []>} : vector<256x128xbf16>, vector<128x128xbf16>, vector<256x128xf32> -> vector<256x128xf32>
    %39 = arith.addf %33, %38 : vector<256x128xf32>
    %c0_42 = arith.constant 0 : index
    %c4 = arith.constant 4 : index
    %c0_43 = arith.constant 0 : index
    %40 = vector.load %arg9[%c0_42, %c4, %c0_43] : memref<16x22x128xbf16, #tpu.memory_space<vmem>>, vector<16x16x128xbf16>
    %41 = vector.shape_cast %40 : vector<16x16x128xbf16> to vector<256x128xbf16>
    %c4_44 = arith.constant 4 : index
    %c0_45 = arith.constant 0 : index
    %c0_46 = arith.constant 0 : index
    %42 = vector.load %arg4[%c4_44, %c0_45, %c0_46] : memref<7x128x128xbf16, #tpu.memory_space<vmem>>, vector<1x128x128xbf16>
    %43 = vector.shape_cast %42 : vector<1x128x128xbf16> to vector<128x128xbf16>
    %cst_47 = arith.constant dense<0.000000e+00> : vector<256x128xf32>
    %44 = tpu.matmul %41, %43, %cst_47 {dimension_numbers = #tpu.dot_dimension_numbers<[1], [0], [0], [1], [0, 0, 1, 1], [], []>} : vector<256x128xbf16>, vector<128x128xbf16>, vector<256x128xf32> -> vector<256x128xf32>
    %45 = arith.addf %39, %44 : vector<256x128xf32>
    %c0_48 = arith.constant 0 : index
    %c5 = arith.constant 5 : index
    %c0_49 = arith.constant 0 : index
    %46 = vector.load %arg9[%c0_48, %c5, %c0_49] : memref<16x22x128xbf16, #tpu.memory_space<vmem>>, vector<16x16x128xbf16>
    %47 = vector.shape_cast %46 : vector<16x16x128xbf16> to vector<256x128xbf16>
    %c5_50 = arith.constant 5 : index
    %c0_51 = arith.constant 0 : index
    %c0_52 = arith.constant 0 : index
    %48 = vector.load %arg4[%c5_50, %c0_51, %c0_52] : memref<7x128x128xbf16, #tpu.memory_space<vmem>>, vector<1x128x128xbf16>
    %49 = vector.shape_cast %48 : vector<1x128x128xbf16> to vector<128x128xbf16>
    %cst_53 = arith.constant dense<0.000000e+00> : vector<256x128xf32>
    %50 = tpu.matmul %47, %49, %cst_53 {dimension_numbers = #tpu.dot_dimension_numbers<[1], [0], [0], [1], [0, 0, 1, 1], [], []>} : vector<256x128xbf16>, vector<128x128xbf16>, vector<256x128xf32> -> vector<256x128xf32>
    %51 = arith.addf %45, %50 : vector<256x128xf32>
    %c0_54 = arith.constant 0 : index
    %c6 = arith.constant 6 : index
    %c0_55 = arith.constant 0 : index
    %52 = vector.load %arg9[%c0_54, %c6, %c0_55] : memref<16x22x128xbf16, #tpu.memory_space<vmem>>, vector<16x16x128xbf16>
    %53 = vector.shape_cast %52 : vector<16x16x128xbf16> to vector<256x128xbf16>
    %c6_56 = arith.constant 6 : index
    %c0_57 = arith.constant 0 : index
    %c0_58 = arith.constant 0 : index
    %54 = vector.load %arg4[%c6_56, %c0_57, %c0_58] : memref<7x128x128xbf16, #tpu.memory_space<vmem>>, vector<1x128x128xbf16>
    %55 = vector.shape_cast %54 : vector<1x128x128xbf16> to vector<128x128xbf16>
    %cst_59 = arith.constant dense<0.000000e+00> : vector<256x128xf32>
    %56 = tpu.matmul %53, %55, %cst_59 {dimension_numbers = #tpu.dot_dimension_numbers<[1], [0], [0], [1], [0, 0, 1, 1], [], []>} : vector<256x128xbf16>, vector<128x128xbf16>, vector<256x128xf32> -> vector<256x128xf32>
    %57 = arith.addf %51, %56 : vector<256x128xf32>
    %c0_60 = arith.constant 0 : index
    %c0_61 = arith.constant 0 : index
    %58 = vector.load %arg5[%c0_60, %c0_61] : memref<1x128xf32, #tpu.memory_space<vmem>>, vector<1x128xf32>
    %59 = vector.broadcast %58 : vector<1x128xf32> to vector<256x128xf32>
    %60 = arith.addf %57, %59 : vector<256x128xf32>
    %cst_62 = arith.constant 0.000000e+00 : f32
    %61 = vector.broadcast %cst_62 : f32 to vector<256x128xf32>
    %62 = arith.maximumf %60, %61 : vector<256x128xf32>
    %63 = arith.truncf %62 : vector<256x128xf32> to vector<256x128xbf16>
    %64 = vector.shape_cast %63 : vector<256x128xbf16> to vector<16x16x128xbf16>
    %c0_63 = arith.constant 0 : index
    %c3_64 = arith.constant 3 : index
    %c0_65 = arith.constant 0 : index
    %65 = vector.load %arg9[%c0_63, %c3_64, %c0_65] : memref<16x22x128xbf16, #tpu.memory_space<vmem>>, vector<16x16x128xbf16>
    tpu.vector_store %arg9[%c0_63, %c3_64, %c0_65], %64 {strides = array<i32>} : memref<16x22x128xbf16, #tpu.memory_space<vmem>>, vector<16x16x128xbf16>,
    %cst_66 = arith.constant 0.000000e+00 : f32
    %66 = vector.broadcast %cst_66 : f32 to vector<256x128xf32>
    %c0_67 = arith.constant 0 : index
    %c0_68 = arith.constant 0 : index
    %c0_69 = arith.constant 0 : index
    %67 = vector.load %arg9[%c0_67, %c0_68, %c0_69] : memref<16x22x128xbf16, #tpu.memory_space<vmem>>, vector<16x16x128xbf16>
    %68 = vector.shape_cast %67 : vector<16x16x128xbf16> to vector<256x128xbf16>
    %c0_70 = arith.constant 0 : index
    %c0_71 = arith.constant 0 : index
    %c0_72 = arith.constant 0 : index
    %69 = vector.load %arg6[%c0_70, %c0_71, %c0_72] : memref<7x128x128xbf16, #tpu.memory_space<vmem>>, vector<1x128x128xbf16>
    %70 = vector.shape_cast %69 : vector<1x128x128xbf16> to vector<128x128xbf16>
    %cst_73 = arith.constant dense<0.000000e+00> : vector<256x128xf32>
    %71 = tpu.matmul %68, %70, %cst_73 {dimension_numbers = #tpu.dot_dimension_numbers<[1], [0], [0], [1], [0, 0, 1, 1], [], []>} : vector<256x128xbf16>, vector<128x128xbf16>, vector<256x128xf32> -> vector<256x128xf32>
    %72 = arith.addf %66, %71 : vector<256x128xf32>
    %c0_74 = arith.constant 0 : index
    %c1_75 = arith.constant 1 : index
    %c0_76 = arith.constant 0 : index
    %73 = vector.load %arg9[%c0_74, %c1_75, %c0_76] : memref<16x22x128xbf16, #tpu.memory_space<vmem>>, vector<16x16x128xbf16>
    %74 = vector.shape_cast %73 : vector<16x16x128xbf16> to vector<256x128xbf16>
    %c1_77 = arith.constant 1 : index
    %c0_78 = arith.constant 0 : index
    %c0_79 = arith.constant 0 : index
    %75 = vector.load %arg6[%c1_77, %c0_78, %c0_79] : memref<7x128x128xbf16, #tpu.memory_space<vmem>>, vector<1x128x128xbf16>
    %76 = vector.shape_cast %75 : vector<1x128x128xbf16> to vector<128x128xbf16>
    %cst_80 = arith.constant dense<0.000000e+00> : vector<256x128xf32>
    %77 = tpu.matmul %74, %76, %cst_80 {dimension_numbers = #tpu.dot_dimension_numbers<[1], [0], [0], [1], [0, 0, 1, 1], [], []>} : vector<256x128xbf16>, vector<128x128xbf16>, vector<256x128xf32> -> vector<256x128xf32>
    %78 = arith.addf %72, %77 : vector<256x128xf32>
    %c0_81 = arith.constant 0 : index
    %c2_82 = arith.constant 2 : index
    %c0_83 = arith.constant 0 : index
    %79 = vector.load %arg9[%c0_81, %c2_82, %c0_83] : memref<16x22x128xbf16, #tpu.memory_space<vmem>>, vector<16x16x128xbf16>
    %80 = vector.shape_cast %79 : vector<16x16x128xbf16> to vector<256x128xbf16>
    %c2_84 = arith.constant 2 : index
    %c0_85 = arith.constant 0 : index
    %c0_86 = arith.constant 0 : index
    %81 = vector.load %arg6[%c2_84, %c0_85, %c0_86] : memref<7x128x128xbf16, #tpu.memory_space<vmem>>, vector<1x128x128xbf16>
    %82 = vector.shape_cast %81 : vector<1x128x128xbf16> to vector<128x128xbf16>
    %cst_87 = arith.constant dense<0.000000e+00> : vector<256x128xf32>
    %83 = tpu.matmul %80, %82, %cst_87 {dimension_numbers = #tpu.dot_dimension_numbers<[1], [0], [0], [1], [0, 0, 1, 1], [], []>} : vector<256x128xbf16>, vector<128x128xbf16>, vector<256x128xf32> -> vector<256x128xf32>
    %84 = arith.addf %78, %83 : vector<256x128xf32>
    %c0_88 = arith.constant 0 : index
    %c3_89 = arith.constant 3 : index
    %c0_90 = arith.constant 0 : index
    %85 = vector.load %arg9[%c0_88, %c3_89, %c0_90] : memref<16x22x128xbf16, #tpu.memory_space<vmem>>, vector<16x16x128xbf16>
    %86 = vector.shape_cast %85 : vector<16x16x128xbf16> to vector<256x128xbf16>
    %c3_91 = arith.constant 3 : index
    %c0_92 = arith.constant 0 : index
    %c0_93 = arith.constant 0 : index
    %87 = vector.load %arg6[%c3_91, %c0_92, %c0_93] : memref<7x128x128xbf16, #tpu.memory_space<vmem>>, vector<1x128x128xbf16>
    %88 = vector.shape_cast %87 : vector<1x128x128xbf16> to vector<128x128xbf16>
    %cst_94 = arith.constant dense<0.000000e+00> : vector<256x128xf32>
    %89 = tpu.matmul %86, %88, %cst_94 {dimension_numbers = #tpu.dot_dimension_numbers<[1], [0], [0], [1], [0, 0, 1, 1], [], []>} : vector<256x128xbf16>, vector<128x128xbf16>, vector<256x128xf32> -> vector<256x128xf32>
    %90 = arith.addf %84, %89 : vector<256x128xf32>
    %c0_95 = arith.constant 0 : index
    %c4_96 = arith.constant 4 : index
    %c0_97 = arith.constant 0 : index
    %91 = vector.load %arg9[%c0_95, %c4_96, %c0_97] : memref<16x22x128xbf16, #tpu.memory_space<vmem>>, vector<16x16x128xbf16>
    %92 = vector.shape_cast %91 : vector<16x16x128xbf16> to vector<256x128xbf16>
    %c4_98 = arith.constant 4 : index
    %c0_99 = arith.constant 0 : index
    %c0_100 = arith.constant 0 : index
    %93 = vector.load %arg6[%c4_98, %c0_99, %c0_100] : memref<7x128x128xbf16, #tpu.memory_space<vmem>>, vector<1x128x128xbf16>
    %94 = vector.shape_cast %93 : vector<1x128x128xbf16> to vector<128x128xbf16>
    %cst_101 = arith.constant dense<0.000000e+00> : vector<256x128xf32>
    %95 = tpu.matmul %92, %94, %cst_101 {dimension_numbers = #tpu.dot_dimension_numbers<[1], [0], [0], [1], [0, 0, 1, 1], [], []>} : vector<256x128xbf16>, vector<128x128xbf16>, vector<256x128xf32> -> vector<256x128xf32>
    %96 = arith.addf %90, %95 : vector<256x128xf32>
    %c0_102 = arith.constant 0 : index
    %c5_103 = arith.constant 5 : index
    %c0_104 = arith.constant 0 : index
    %97 = vector.load %arg9[%c0_102, %c5_103, %c0_104] : memref<16x22x128xbf16, #tpu.memory_space<vmem>>, vector<16x16x128xbf16>
    %98 = vector.shape_cast %97 : vector<16x16x128xbf16> to vector<256x128xbf16>
    %c5_105 = arith.constant 5 : index
    %c0_106 = arith.constant 0 : index
    %c0_107 = arith.constant 0 : index
    %99 = vector.load %arg6[%c5_105, %c0_106, %c0_107] : memref<7x128x128xbf16, #tpu.memory_space<vmem>>, vector<1x128x128xbf16>
    %100 = vector.shape_cast %99 : vector<1x128x128xbf16> to vector<128x128xbf16>
    %cst_108 = arith.constant dense<0.000000e+00> : vector<256x128xf32>
    %101 = tpu.matmul %98, %100, %cst_108 {dimension_numbers = #tpu.dot_dimension_numbers<[1], [0], [0], [1], [0, 0, 1, 1], [], []>} : vector<256x128xbf16>, vector<128x128xbf16>, vector<256x128xf32> -> vector<256x128xf32>
    %102 = arith.addf %96, %101 : vector<256x128xf32>
    %c0_109 = arith.constant 0 : index
    %c6_110 = arith.constant 6 : index
    %c0_111 = arith.constant 0 : index
    %103 = vector.load %arg9[%c0_109, %c6_110, %c0_111] : memref<16x22x128xbf16, #tpu.memory_space<vmem>>, vector<16x16x128xbf16>
    %104 = vector.shape_cast %103 : vector<16x16x128xbf16> to vector<256x128xbf16>
    %c6_112 = arith.constant 6 : index
    %c0_113 = arith.constant 0 : index
    %c0_114 = arith.constant 0 : index
    %105 = vector.load %arg6[%c6_112, %c0_113, %c0_114] : memref<7x128x128xbf16, #tpu.memory_space<vmem>>, vector<1x128x128xbf16>
    %106 = vector.shape_cast %105 : vector<1x128x128xbf16> to vector<128x128xbf16>
    %cst_115 = arith.constant dense<0.000000e+00> : vector<256x128xf32>
    %107 = tpu.matmul %104, %106, %cst_115 {dimension_numbers = #tpu.dot_dimension_numbers<[1], [0], [0], [1], [0, 0, 1, 1], [], []>} : vector<256x128xbf16>, vector<128x128xbf16>, vector<256x128xf32> -> vector<256x128xf32>
    %108 = arith.addf %102, %107 : vector<256x128xf32>
    %c0_116 = arith.constant 0 : index
    %c0_117 = arith.constant 0 : index
    %109 = vector.load %arg7[%c0_116, %c0_117] : memref<1x128xf32, #tpu.memory_space<vmem>>, vector<1x128xf32>
    %110 = vector.broadcast %109 : vector<1x128xf32> to vector<256x128xf32>
    %111 = arith.addf %108, %110 : vector<256x128xf32>
    %cst_118 = arith.constant 0.000000e+00 : f32
    %112 = vector.broadcast %cst_118 : f32 to vector<256x128xf32>
    %113 = arith.maximumf %111, %112 : vector<256x128xf32>
    %114 = vector.shape_cast %113 : vector<256x128xf32> to vector<16x16x128xf32>
    %cst_119 = arith.constant dense<0.000000e+00> : vector<16x128xf32>
    %115 = vector.multi_reduction <add>, %114, %cst_119 [1] : vector<16x16x128xf32> to vector<16x128xf32>
    %cst_120 = arith.constant 1.600000e+01 : f32
    %116 = vector.broadcast %cst_120 : f32 to vector<16x128xf32>
    %117 = arith.divf %115, %116 : vector<16x128xf32>
    %c0_121 = arith.constant 0 : index
    %c0_122 = arith.constant 0 : index
    %118 = vector.load %arg8[%c0_121, %c0_122] : memref<16x128xf32, #tpu.memory_space<vmem>>, vector<16x128xf32>
    tpu.vector_store %arg8[%c0_121, %c0_122], %117 {strides = array<i32>} : memref<16x128xf32, #tpu.memory_space<vmem>>, vector<16x128xf32>,
    return
  }
  func.func @transform_0(%arg0: i32) -> (i32, i32, i32) {
    %c0_i32 = arith.constant 0 : i32
    %c0_i32_0 = arith.constant 0 : i32
    %c0_i32_1 = arith.constant 0 : i32
    return %arg0, %c0_i32, %c0_i32_0 : i32, i32, i32
  }
  func.func @transform_1(%arg0: i32) -> (i32, i32) {
    %c0_i32 = arith.constant 0 : i32
    %c0_i32_0 = arith.constant 0 : i32
    %c0_i32_1 = arith.constant 0 : i32
    return %c0_i32, %c0_i32_0 : i32, i32
  }
  func.func @transform_2(%arg0: i32) -> (i32, i32) {
    %c0_i32 = arith.constant 0 : i32
    %c0_i32_0 = arith.constant 0 : i32
    %c0_i32_1 = arith.constant 0 : i32
    return %c0_i32, %c0_i32_0 : i32, i32
  }
  func.func @transform_3(%arg0: i32) -> (i32, i32, i32) {
    %c0_i32 = arith.constant 0 : i32
    %c0_i32_0 = arith.constant 0 : i32
    %c0_i32_1 = arith.constant 0 : i32
    %c0_i32_2 = arith.constant 0 : i32
    return %c0_i32, %c0_i32_0, %c0_i32_1 : i32, i32, i32
  }
  func.func @transform_4(%arg0: i32) -> (i32, i32) {
    %c0_i32 = arith.constant 0 : i32
    %c0_i32_0 = arith.constant 0 : i32
    %c0_i32_1 = arith.constant 0 : i32
    return %c0_i32, %c0_i32_0 : i32, i32
  }
  func.func @transform_5(%arg0: i32) -> (i32, i32, i32) {
    %c0_i32 = arith.constant 0 : i32
    %c0_i32_0 = arith.constant 0 : i32
    %c0_i32_1 = arith.constant 0 : i32
    %c0_i32_2 = arith.constant 0 : i32
    return %c0_i32, %c0_i32_0, %c0_i32_1 : i32, i32, i32
  }
  func.func @transform_6(%arg0: i32) -> (i32, i32) {
    %c0_i32 = arith.constant 0 : i32
    %c0_i32_0 = arith.constant 0 : i32
    %c0_i32_1 = arith.constant 0 : i32
    return %c0_i32, %c0_i32_0 : i32, i32
  }
  func.func @transform_7(%arg0: i32) -> (i32, i32) {
    %c0_i32 = arith.constant 0 : i32
    %c0_i32_0 = arith.constant 0 : i32
    return %arg0, %c0_i32 : i32, i32
  }
}

</mosaic_0001>

<bundles_post_ra>
// kernel: tpu_custom_call.1
= control target key start
LH: loop header
LB: loop body
LE: loop exit
PB: predicated region body
PF: predicated region fallthrough
CT: control target
= control target key end

     0   :  { %12 = vsyncpa [#allocation4], 0  ;;  %s15456_s0 = inlined_call_operand.hbm [shape: bf16[16,16,128], index: 0, kind: input, shape index: {}]   ;;  %s15457_s1 = inlined_call_operand.hbm [shape: bf16[128,128], index: 1, kind: input, shape index: {}]   ;;  %s15458_s2 = inlined_call_operand.vmem [shape: f32[1,128], index: 2, kind: input, shape index: {}]   ;;  %s15459_s3 = inlined_call_operand.hbm [shape: bf16[7,128,128], index: 3, kind: input, shape index: {}]   ;;  %s15460_s4 = inlined_call_operand.vmem [shape: f32[1,128], index: 4, kind: input, shape index: {}]   ;;  %s15461_s5 = inlined_call_operand.hbm [shape: bf16[7,128,128], index: 5, kind: input, shape index: {}]   ;;  %s15462_s6 = inlined_call_operand.vmem [shape: f32[1,128], index: 6, kind: input, shape index: {}]   ;;  %s15463_s7 = inlined_call_operand.hbm [shape: f32[16,128], index: 7, kind: output, shape index: {}]  }
   0x1   :  { %13 = vsyncpa [#allocation7], 0 }
   0x2   :  { %14 = vsyncpa [#allocation10], 0 }
   0x3   :  { %15 = vsyncpa [#allocation5], 0  ;;  %s12259_s24 = smov [#allocation6]   ;;  %s12260_s26 = smov [#allocation3]  }
   0x4   :  { %s33_s25 = sshll.u32 %s12259_s24, 4  ;;  %s21_s27 = sshll.u32 %s12260_s26, 4  ;;  %s34_s25 = int_to_ptr.vmem [resolvable:$true] %s33_s25  ;;  %s12308_s27 = int_to_ptr.vmem [resolvable:$true] %s21_s27 }
   0x5   :  { %s12141_s30 = scalar_lea.hbm %s15457_s1, 1024 }
   0x6   :  { %p12142_p0 = scmp.ne.s32.totalorder %s15457_s1, %s12141_s30  ;;  %p12145_p1 = scmp.lt.u32.totalorder %s12141_s30, %s15457_s1 }
   0x8   :  { %p12147_p2 = pnand %p12145_p1, %p12142_p0 }
   0xa   :  { %12150 = shalt.err (!%p12147_p2)
}
   0xb   :  { %s12151_s12 = scalar_lea.vmem %s34_s25, 1024  ;;  %p12156_p4 = scmp.lt.s32.totalorder %s34_s25, %s34_s25 }
   0xc   :  { %p12152_p3 = scmp.ne.s32.totalorder %s34_s25, %s12151_s12  ;;  %p12157_p5 = scmp.lt.s32.totalorder %s12151_s12, %s12151_s12 }
   0xe   :  { %p12158_p6 = por %p12157_p5, %p12156_p4 }
  0x10   :  { %p12159_p7 = pnand %p12158_p6, %p12152_p3 }
  0x12   :  { %12162 = shalt.err (!%p12159_p7)
}
  0x13   :  { %s12261_s13 = smov 64   ;;  %s12262_s14 = smov 4  }
  0x14   :  { %39 = dma.hbm_to_vmem [thread:$0]  %s15457_s1, 1024, %s34_s25, [#allocation7], %s12261_s13, %s12261_s13, %s12262_s14  }
  0x15   :  { %s12163_s19 = scalar_lea.hbm %s15456_s0, 2048 }
  0x16   :  { %p12164_p8 = scmp.ne.s32.totalorder %s15456_s0, %s12163_s19  ;;  %p12167_p9 = scmp.lt.u32.totalorder %s12163_s19, %s15456_s0 }
  0x18   :  { %p12169_p10 = pnand %p12167_p9, %p12164_p8 }
  0x1a   :  { %12172 = shalt.err (!%p12169_p10)
}
  0x1b   :  { %s12173_s24 = scalar_lea.vmem %s12308_s27, 2048  ;;  %p12178_p12 = scmp.lt.s32.totalorder %s12308_s27, %s12308_s27 }
  0x1c   :  { %p12174_p11 = scmp.ne.s32.totalorder %s12308_s27, %s12173_s24  ;;  %p12179_p13 = scmp.lt.s32.totalorder %s12173_s24, %s12173_s24 }
  0x1e   :  { %p12180_p0 = por %p12179_p13, %p12178_p12 }
  0x20   :  { %p12181_p1 = pnand %p12180_p0, %p12174_p11 }
  0x22   :  { %12184 = shalt.err (!%p12181_p1)
}
  0x23   :  { %27 = dma.hbm_to_vmem [thread:$0]  %s15456_s0, 2048, %s12308_s27, [#allocation4], %s12261_s13, %s12261_s13, %s12262_s14  }
  0x24   :  { %s12263_s26 = smov [#allocation8]   ;;  %s12264_s29 = smov [#allocation9]  }
  0x25   :  { %s47_s28 = sshll.u32 %s12263_s26, 4  ;;  %s61_s30 = sshll.u32 %s12264_s29, 4  ;;  %s48_s28 = int_to_ptr.vmem [resolvable:$true] %s47_s28  ;;  %s12345_s30 = int_to_ptr.vmem [resolvable:$true] %s61_s30 }
  0x26   :  { %s12185_s10 = scalar_lea.hbm %s15459_s3, 7168 }
  0x27   :  { %p12186_p2 = scmp.ne.s32.totalorder %s15459_s3, %s12185_s10  ;;  %p12189_p3 = scmp.lt.u32.totalorder %s12185_s10, %s15459_s3 }
  0x29   :  { %p12191_p4 = pnand %p12189_p3, %p12186_p2 }
  0x2b   :  { %12194 = shalt.err (!%p12191_p4)
}
  0x2c   :  { %s12195_s0 = scalar_lea.vmem %s48_s28, 7168  ;;  %p12200_p6 = scmp.lt.s32.totalorder %s48_s28, %s48_s28 }
  0x2d   :  { %p12196_p5 = scmp.ne.s32.totalorder %s48_s28, %s12195_s0  ;;  %p12201_p7 = scmp.lt.s32.totalorder %s12195_s0, %s12195_s0 }
  0x2f   :  { %p12202_p8 = por %p12201_p7, %p12200_p6 }
  0x31   :  { %p12203_p9 = pnand %p12202_p8, %p12196_p5 }
  0x33   :  { %12206 = shalt.err (!%p12203_p9)
}
  0x34   :  { %53 = dma.hbm_to_vmem [thread:$0]  %s15459_s3, 7168, %s48_s28, [#allocation7], %s12261_s13, %s12261_s13, %s12262_s14  }
  0x35   :  { %s12207_s20 = scalar_lea.hbm %s15461_s5, 7168 }
  0x36   :  { %p12208_p10 = scmp.ne.s32.totalorder %s15461_s5, %s12207_s20  ;;  %p12211_p11 = scmp.lt.u32.totalorder %s12207_s20, %s15461_s5 }
  0x38   :  { %p12213_p12 = pnand %p12211_p11, %p12208_p10 }
  0x3a   :  { %12216 = shalt.err (!%p12213_p12)
}
  0x3b   :  { %s12217_s1 = scalar_lea.vmem %s12345_s30, 7168  ;;  %p12222_p0 = scmp.lt.s32.totalorder %s12345_s30, %s12345_s30 }
  0x3c   :  { %p12218_p13 = scmp.ne.s32.totalorder %s12345_s30, %s12217_s1  ;;  %p12223_p1 = scmp.lt.s32.totalorder %s12217_s1, %s12217_s1 }
  0x3e   :  { %p12224_p2 = por %p12223_p1, %p12222_p0 }
  0x40   :  { %p12225_p3 = pnand %p12224_p2, %p12218_p13 }
  0x42   :  { %12228 = shalt.err (!%p12225_p3)
}
  0x43   :  { %67 = dma.hbm_to_vmem [thread:$0]  %s15461_s5, 7168, %s12345_s30, [#allocation10], %s12261_s13, %s12261_s13, %s12262_s14  }
  0x44   :  { %12251 = dma.done.wait [#allocation4], 2048  }
  0x45   :  { %12252 = vsyncadd [#allocation4], 4294965248 }
  0x46   :  { %12253 = dma.done.wait [#allocation7], 8192  }
  0x47   :  { %12254 = vsyncadd [#allocation7], 4294959104 }
  0x48   :  { %12255 = dma.done.wait [#allocation10], 7168  }
  0x49   :  { %12256 = vsyncadd [#allocation10], 4294960128  ;;  %v11923_v0 = vld [vmem:[#allocation6] sm:$0xff]   ;;  %v11924_v1 = vld [vmem:[#allocation6 + $0x8] sm:$0xff]   ;;  %vm83_vm0 = vcmask 1041408   ;;  %v15643_v9 = vmov 0 }
  0x4a   :  { %10794 = vmatprep.subr.bf16.mxu0 %v11923_v0  ;;  %11514 = vmatprep.subr.bf16.mxu1 %v11923_v0  ;;  %v11925_v2 = vld [vmem:[#allocation6 + $0x10] sm:$0xff]   ;;  %v11926_v3 = vld [vmem:[#allocation6 + $0x18] sm:$0xff]   ;;  %v11931_v4 = vld [vmem:[#allocation3] sm:$0xff]   ;;  %vm84_vm1 = vsmask.f32 1280  ;;  %vm134_vm4 = vcmask 1042433  }
  0x4b   :  { %10795 = vmatpush3.bf16.msra.mxu0 %v11923_v0  ;;  %11522 = vmatpush3.bf16.msra.mxu1 %v11923_v0  ;;  %v11927_v5 = vld [vmem:[#allocation6 + $0x20] sm:$0xff]   ;;  %v11928_v6 = vld [vmem:[#allocation6 + $0x28] sm:$0xff]   ;;  %v11929_v8 = vld [vmem:[#allocation6 + $0x30] sm:$0xff]   ;;  %vm135_vm3 = vsmask.f32 7942  ;;  %vm1027_vm6 = vcmask 1043457  }
  0x4c   :  { %10796 = vmatprep.subr.bf16.mxu0 %v11924_v1  ;;  %11515 = vmatprep.subr.bf16.mxu1 %v11924_v1  ;;  %v11939_v7 = vld [vmem:[#allocation3 + $0x40] sm:$0xff]   ;;  %vm12384_vm2 = vmand %vm83_vm0, %vm84_vm1  ;;  %v11930_v10 = vld [vmem:[#allocation6 + $0x38] sm:$0xff]   ;;  %vm673_vm7 = vsmask.f32 5392  ;;  %vm1205_vm10 = vsmask.f32 3328 }
  0x4d   :  { %10810 = vmatprep.mubr.bf16.mxu0 %v11931_v4  ;;  %10826 = vmatprep.mubr.bf16.mxu1 %v11939_v7  ;;  %v15644_v9 = vsel %vm12384_vm2, 4294967295, %v15643_v9  ;;  %v89_v11 = vld [vmem:[#allocation2 + $0xc] sm:$0x3]  ;;  %v11933_v15 = vld [vmem:[#allocation3 + $0x10] sm:$0xff]   ;;  %v11934_v17 = vld [vmem:[#allocation3 + $0x18] sm:$0xff]   ;;  %vm2235_vm13 = vcmask 1042432  }
  0x4e   :  { %15645 = vst [vmem:[#allocation16_spill] sm:$0xff] %v15644_v9  ;;  %v90_v12 = vsel %vm12384_vm2, 0, %v89_v11  ;;  %v11932_v13 = vld [vmem:[#allocation3 + $0x8] sm:$0xff]   ;;  %v11941_v16 = vld [vmem:[#allocation3 + $0x50] sm:$0xff]   ;;  %v11942_v18 = vld [vmem:[#allocation3 + $0x58] sm:$0xff]   ;;  %vm2236_vm14 = vcmask 1046532  }
  0x4f   :  { %10797 = vmatpush3.bf16.msra.mxu0 %v11924_v1  ;;  %11523 = vmatpush3.bf16.msra.mxu1 %v11924_v1  ;;  %91 = vst [vmem:[#allocation2 + $0xc] sm:$0x3] %v90_v12  ;;  %v11940_v14 = vld [vmem:[#allocation3 + $0x48] sm:$0xff]   ;;  %v11935_v19 = vld [vmem:[#allocation3 + $0x20] sm:$0xff]   ;;  %v11937_v23 = vld [vmem:[#allocation3 + $0x30] sm:$0xff]  }
  0x50   :  { %10798 = vmatprep.subr.bf16.mxu0 %v11925_v2  ;;  %11516 = vmatprep.subr.bf16.mxu1 %v11925_v2  ;;  %v11943_v20 = vld [vmem:[#allocation3 + $0x60] sm:$0xff]   ;;  %v11936_v21 = vld [vmem:[#allocation3 + $0x28] sm:$0xff]   ;;  %v11945_v24 = vld [vmem:[#allocation3 + $0x70] sm:$0xff]   ;;  %vm1206_vm11 = vsmask.f32 7440 }
  0x51   :  { %v11944_v22 = vld [vmem:[#allocation3 + $0x68] sm:$0xff]   ;;  %v11938_v25 = vld [vmem:[#allocation3 + $0x38] sm:$0xff]   ;;  %v11947_v27 = vld [vmem:[#allocation8 + $0x40] sm:$0xff]  }
  0x52   :  { %v11946_v26 = vld [vmem:[#allocation3 + $0x78] sm:$0xff]   ;;  %v86_v28 = vld [vmem:[#allocation2] sm:$0x3]  ;;  %vm12393_vm5 = vmand %vm134_vm4, %vm135_vm3 }
  0x53   :  { %10799 = vmatpush3.bf16.msra.mxu0 %v11925_v2  ;;  %11524 = vmatpush3.bf16.msra.mxu1 %v11925_v2  ;;  %v87_v29 = vsel %vm12384_vm2, 0, %v86_v28  ;;  %v140_v31 = vld [vmem:[#allocation2 + $0x14] sm:$0x6]  ;;  %v137_v33 = vld [vmem:[#allocation2 + $0x8] sm:$0x6]  ;;  %v11950_v43 = vld [vmem:[#allocation8 + $0x58] sm:$0xff]  }
  0x54   :  { %10800 = vmatprep.subr.bf16.mxu0 %v11926_v3  ;;  %11517 = vmatprep.subr.bf16.mxu1 %v11926_v3  ;;  %88 = vst [vmem:[#allocation2] sm:$0x3] %v87_v29  ;;  %v141_v32 = vsel %vm12393_vm5, 0, %v140_v31  ;;  %v138_v34 = vsel %vm12393_vm5, 0, %v137_v33  ;;  %v11948_v35 = vld [vmem:[#allocation8 + $0x48] sm:$0xff]   ;;  %v11949_v40 = vld [vmem:[#allocation8 + $0x50] sm:$0xff]   ;;  %vm12491_vm8 = vmand %vm1027_vm6, %vm135_vm3 }
  0x55   :  { %142 = vst [vmem:[#allocation2 + $0x14] sm:$0x6] %v141_v32  ;;  %139 = vst [vmem:[#allocation2 + $0x8] sm:$0x6] %v138_v34  ;;  %v95_v36 = vld [vmem:[#allocation2 + $0x24] sm:$0x3] }
  0x56   :  { %v96_v37 = vsel %vm12384_vm2, 0, %v95_v36  ;;  %v92_v38 = vld [vmem:[#allocation2 + $0x18] sm:$0x3]  ;;  %v146_v41 = vld [vmem:[#allocation2 + $0x2c] sm:$0x6]  ;;  %v11951_v51 = vld [vmem:[#allocation8 + $0x60] sm:$0xff]  }
  0x57   :  { %10801 = vmatpush3.bf16.msra.mxu0 %v11926_v3  ;;  %11525 = vmatpush3.bf16.msra.mxu1 %v11926_v3  ;;  %97 = vst [vmem:[#allocation2 + $0x24] sm:$0x3] %v96_v37  ;;  %v93_v39 = vsel %vm12384_vm2, 0, %v92_v38  ;;  %v147_v42 = vsel %vm12393_vm5, 0, %v146_v41  ;;  %v143_v44 = vld [vmem:[#allocation2 + $0x20] sm:$0x6]  ;;  %vm12502_vm9 = vmor %vm84_vm1, %vm673_vm7 }
  0x58   :  { %10802 = vmatprep.subr.bf16.mxu0 %v11927_v5  ;;  %11518 = vmatprep.subr.bf16.mxu1 %v11927_v5  ;;  %94 = vst [vmem:[#allocation2 + $0x18] sm:$0x3] %v93_v39  ;;  %148 = vst [vmem:[#allocation2 + $0x2c] sm:$0x6] %v147_v42  ;;  %v144_v45 = vsel %vm12393_vm5, 0, %v143_v44  ;;  %v11952_v53 = vld [vmem:[#allocation8 + $0x68] sm:$0xff]  }
  0x59   :  { %145 = vst [vmem:[#allocation2 + $0x20] sm:$0x6] %v144_v45  ;;  %v101_v46 = vld [vmem:[#allocation2 + $0x3c] sm:$0x3]  ;;  %v98_v48 = vld [vmem:[#allocation2 + $0x30] sm:$0x3]  ;;  %vm12638_vm12 = vmor %vm1205_vm10, %vm1206_vm11 }
  0x5a   :  { %v102_v47 = vsel %vm12384_vm2, 0, %v101_v46  ;;  %v99_v49 = vsel %vm12384_vm2, 0, %v98_v48  ;;  %v152_v50 = vld [vmem:[#allocation2 + $0x44] sm:$0x6]  ;;  %v149_v54 = vld [vmem:[#allocation2 + $0x38] sm:$0x6]  ;;  %vm13042_vm15 = vmor %vm2235_vm13, %vm2236_vm14 }
  0x5b   :  { %10803 = vmatpush3.bf16.msra.mxu0 %v11927_v5  ;;  %11526 = vmatpush3.bf16.msra.mxu1 %v11927_v5  ;;  %103 = vst [vmem:[#allocation2 + $0x3c] sm:$0x3] %v102_v47  ;;  %100 = vst [vmem:[#allocation2 + $0x30] sm:$0x3] %v99_v49  ;;  %v153_v52 = vsel %vm12393_vm5, 0, %v152_v50  ;;  %v150_v55 = vsel %vm12393_vm5, 0, %v149_v54 }
  0x5c   :  { %10804 = vmatprep.subr.bf16.mxu0 %v11928_v6  ;;  %11519 = vmatprep.subr.bf16.mxu1 %v11928_v6  ;;  %154 = vst [vmem:[#allocation2 + $0x44] sm:$0x6] %v153_v52  ;;  %151 = vst [vmem:[#allocation2 + $0x38] sm:$0x6] %v150_v55  ;;  %v107_v56 = vld [vmem:[#allocation2 + $0x54] sm:$0x3] }
  0x5d   :  { %v108_v57 = vsel %vm12384_vm2, 0, %v107_v56  ;;  %v104_v58 = vld [vmem:[#allocation2 + $0x48] sm:$0x3]  ;;  %v113_v60 = vld [vmem:[#allocation2 + $0x6c] sm:$0x3]  ;;  %v11953_v0 = vld [vmem:[#allocation8 + $0x70] sm:$0xff]  }
  0x5e   :  { %109 = vst [vmem:[#allocation2 + $0x54] sm:$0x3] %v108_v57  ;;  %v105_v59 = vsel %vm12384_vm2, 0, %v104_v58  ;;  %v158_v61 = vld [vmem:[#allocation2 + $0x5c] sm:$0x6]  ;;  %v114_v62 = vsel %vm12384_vm2, 0, %v113_v60 }
  0x5f   :  { %10805 = vmatpush3.bf16.msra.mxu0 %v11928_v6  ;;  %11527 = vmatpush3.bf16.msra.mxu1 %v11928_v6  ;;  %106 = vst [vmem:[#allocation2 + $0x48] sm:$0x3] %v105_v59  ;;  %v159_v63 = vsel %vm12393_vm5, 0, %v158_v61  ;;  %115 = vst [vmem:[#allocation2 + $0x6c] sm:$0x3] %v114_v62  ;;  %v11954_v5 = vld [vmem:[#allocation8 + $0x78] sm:$0xff]  }
  0x60   :  { %10806 = vmatprep.subr.bf16.mxu0 %v11929_v8  ;;  %11520 = vmatprep.subr.bf16.mxu1 %v11929_v8  ;;  %160 = vst [vmem:[#allocation2 + $0x5c] sm:$0x6] %v159_v63  ;;  %v110_v1 = vld [vmem:[#allocation2 + $0x60] sm:$0x3]  ;;  %v155_v3 = vld [vmem:[#allocation2 + $0x50] sm:$0x6] }
  0x61   :  { %v111_v2 = vsel %vm12384_vm2, 0, %v110_v1  ;;  %v156_v4 = vsel %vm12393_vm5, 0, %v155_v3  ;;  %v164_v6 = vld [vmem:[#allocation2 + $0x74] sm:$0x6]  ;;  %v161_v7 = vld [vmem:[#allocation2 + $0x68] sm:$0x6] }
  0x62   :  { %112 = vst [vmem:[#allocation2 + $0x60] sm:$0x3] %v111_v2  ;;  %157 = vst [vmem:[#allocation2 + $0x50] sm:$0x6] %v156_v4  ;;  %v119_v11 = vld [vmem:[#allocation2 + $0x84] sm:$0x3] }
  0x63   :  { %10807 = vmatpush3.bf16.msra.mxu0 %v11929_v8  ;;  %11528 = vmatpush3.bf16.msra.mxu1 %v11929_v8  ;;  %v165_v8 = vsel %vm12393_vm5, 0, %v164_v6  ;;  %v116_v12 = vld [vmem:[#allocation2 + $0x78] sm:$0x3]  ;;  %v131_v28 = vld [vmem:[#allocation2 + $0xb4] sm:$0x3]  ;;  %vm4620_vm7 = vcmask 1044484  }
  0x64   :  { %10808 = vmatprep.subr.bf16.mxu0 %v11930_v10  ;;  %11521 = vmatprep.subr.bf16.mxu1 %v11930_v10  ;;  %166 = vst [vmem:[#allocation2 + $0x74] sm:$0x6] %v165_v8  ;;  %v132_v29 = vsel %vm12384_vm2, 0, %v131_v28  ;;  %v128_v31 = vld [vmem:[#allocation2 + $0xa8] sm:$0x3]  ;;  %vm9811_vm11 = vcmask 1045509  }
  0x65   :  { %133 = vst [vmem:[#allocation2 + $0xb4] sm:$0x3] %v132_v29  ;;  %v129_v32 = vsel %vm12384_vm2, 0, %v128_v31  ;;  %v182_v33 = vld [vmem:[#allocation2 + $0xbc] sm:$0x6]  ;;  %vm9815_vm13 = vcmask 1047559  }
  0x66   :  { %130 = vst [vmem:[#allocation2 + $0xa8] sm:$0x3] %v129_v32  ;;  %v183_v34 = vsel %vm12393_vm5, 0, %v182_v33  ;;  %v12463_v37 = vld [vmem:[%s15458_s2] ss:$0 sm:$0xff] }
  0x67   :  { %10809 = vmatpush3.bf16.msra.mxu0 %v11930_v10  ;;  %11529 = vmatpush3.bf16.msra.mxu1 %v11930_v10  ;;  %v162_v10 = vsel %vm12393_vm5, 0, %v161_v7  ;;  %184 = vst [vmem:[#allocation2 + $0xbc] sm:$0x6] %v183_v34  ;;  %v1029_v28 = vld [vmem:[#allocation2] sm:$0xe] }
  0x68   :  { %10842 = vmatprep.subr.bf16.mxu1 %v11947_v27  ;;  %163 = vst [vmem:[#allocation2 + $0x68] sm:$0x6] %v162_v10  ;;  %vm2688_vm1 = vsmask.f32 2304  ;;  %vm2689_vm3 = vsmask.f32 6416 }
  0x69   :  { %vm13217_vm4 = vmor %vm2688_vm1, %vm2689_vm3 }
  0x6a   :  { %10811 = vmatmul.mubr.bf16.vlgmr.msra.gmra.mrb[0].mxu0 %v11932_v13  ;;  %10827 = vmatmul.mubr.bf16.vlgmr.msra.gmra.mrb[0].mxu1 %v11940_v14  ;;  %v120_v13 = vsel %vm12384_vm2, 0, %v119_v11  ;;  %v117_v14 = vsel %vm12384_vm2, 0, %v116_v12 }
  0x6b   :  { %10814 = vmatprep.mubr.bf16.mxu0 %v11933_v15  ;;  %10830 = vmatprep.mubr.bf16.mxu1 %v11941_v16  ;;  %121 = vst [vmem:[#allocation2 + $0x84] sm:$0x3] %v120_v13  ;;  %118 = vst [vmem:[#allocation2 + $0x78] sm:$0x3] %v117_v14  ;;  %v170_v15 = vld [vmem:[#allocation2 + $0x8c] sm:$0x6] }
  0x6c   :  { %10843 = vmatpush3.bf16.msra.mxu1 %v11947_v27  ;;  %v171_v16 = vsel %vm12393_vm5, 0, %v170_v15 }
  0x6d   :  { %10844 = vmatprep.subr.bf16.mxu1 %v11948_v35  ;;  %172 = vst [vmem:[#allocation2 + $0x8c] sm:$0x6] %v171_v16 }
  0x70   :  { %10845 = vmatpush3.bf16.msra.mxu1 %v11948_v35  ;;  %v179_v35 = vld [vmem:[#allocation2 + $0xb0] sm:$0x6] }
  0x71   :  { %10846 = vmatprep.subr.bf16.mxu1 %v11949_v40  ;;  %v180_v36 = vsel %vm12393_vm5, 0, %v179_v35 }
  0x72   :  { %10815 = vmatmul.mubr.bf16.gmra.mrb[4].mxu0 %v11934_v17  ;;  %10831 = vmatmul.mubr.bf16.gmra.mrb[4].mxu1 %v11942_v18  ;;  %v167_v17 = vld [vmem:[#allocation2 + $0x80] sm:$0x6]  ;;  %181 = vst [vmem:[#allocation2 + $0xb0] sm:$0x6] %v180_v36  ;;  %v15651_v36 = vmov 0 }
  0x73   :  { %10818 = vmatprep.mubr.bf16.mxu0 %v11935_v19  ;;  %10834 = vmatprep.mubr.bf16.mxu1 %v11943_v20  ;;  %v168_v18 = vsel %vm12393_vm5, 0, %v167_v17  ;;  %v12441_v19 = vld [vmem:[#allocation8] sm:$0xff]   ;;  %v125_v20 = vld [vmem:[#allocation2 + $0x9c] sm:$0x3]  ;;  %v15652_v36 = vsel %vm12502_vm9, 4294967295, %v15651_v36 }
  0x74   :  { %10847 = vmatpush3.bf16.msra.mxu1 %v11949_v40  ;;  %169 = vst [vmem:[#allocation2 + $0x80] sm:$0x6] %v168_v18  ;;  %15653 = vst [vmem:[#allocation18_spill] sm:$0xff] %v15652_v36 }
  0x75   :  { %10848 = vmatprep.subr.bf16.mxu1 %v11950_v43 }
  0x78   :  { %10849 = vmatpush3.bf16.msra.mxu1 %v11950_v43 }
  0x79   :  { %10850 = vmatprep.subr.bf16.mxu1 %v11951_v51 }
  0x7a   :  { %10819 = vmatmul.mubr.bf16.gmra.mrb[8].mxu0 %v11936_v21  ;;  %10835 = vmatmul.mubr.bf16.gmra.mrb[8].mxu1 %v11944_v22  ;;  %v126_v21 = vsel %vm12384_vm2, 0, %v125_v20  ;;  %v122_v22 = vld [vmem:[#allocation2 + $0x90] sm:$0x3]  ;;  %v15648_v20 = vmov 0 }
  0x7b   :  { %10822 = vmatprep.mubr.bf16.mxu0 %v11937_v23  ;;  %10838 = vmatprep.mubr.bf16.mxu1 %v11945_v24  ;;  %127 = vst [vmem:[#allocation2 + $0x9c] sm:$0x3] %v126_v21  ;;  %v123_v23 = vsel %vm12384_vm2, 0, %v122_v22  ;;  %v176_v24 = vld [vmem:[#allocation2 + $0xa4] sm:$0x6]  ;;  %v15649_v20 = vsel %vm12491_vm8, 4294967295, %v15648_v20 }
  0x7c   :  { %10851 = vmatpush3.bf16.msra.mxu1 %v11951_v51  ;;  %124 = vst [vmem:[#allocation2 + $0x90] sm:$0x3] %v123_v23  ;;  %15650 = vst [vmem:[#allocation17_spill] sm:$0xff] %v15649_v20 }
  0x7d   :  { %10852 = vmatprep.subr.bf16.mxu1 %v11952_v53 }
  0x80   :  { %10853 = vmatpush3.bf16.msra.mxu1 %v11952_v53 }
  0x81   :  { %10854 = vmatprep.subr.bf16.mxu1 %v11953_v0 }
  0x82   :  { %10823 = vmatmul.mubr.bf16.gmra.mrb[12].mxu0 %v11938_v25  ;;  %10839 = vmatmul.mubr.bf16.gmra.mrb[12].mxu1 %v11946_v26  ;;  %v177_v25 = vsel %vm12393_vm5, 0, %v176_v24  ;;  %v173_v26 = vld [vmem:[#allocation2 + $0x98] sm:$0x6] }
  0x83   :  { %178 = vst [vmem:[#allocation2 + $0xa4] sm:$0x6] %v177_v25  ;;  %v174_v27 = vsel %vm12393_vm5, 0, %v173_v26  ;;  %vm3429_vm5 = vcmask 1045508  }
  0x84   :  { %10855 = vmatpush3.bf16.msra.mxu1 %v11953_v0  ;;  %175 = vst [vmem:[#allocation2 + $0x98] sm:$0x6] %v174_v27  ;;  %vm13448_vm6 = vmor %vm83_vm0, %vm3429_vm5  ;;  %vm4619_vm0 = vcmask 1040384  }
  0x85   :  { %10856 = vmatprep.subr.bf16.mxu1 %v11954_v5  ;;  %vm13869_vm10 = vmor %vm4619_vm0, %vm4620_vm7 }
  0x88   :  { %10857 = vmatpush3.bf16.msra.mxu1 %v11954_v5  ;;  %v1036_v5 = vld [vmem:[#allocation2 + $0xc] sm:$0xe] }
  0x89   :  { %10890 = vmatprep.subr.bf16.mxu1 %v12441_v19 }
 0x13d   :  { %v10812_v38 = vpop.f32.mrb[0].mxu0  ;;  %v10828_v39 = vpop.f32.mrb[0].mxu1 }
 0x13e   :  { %v427_v40 = vadd.f32 %v10812_v38, %v12463_v37  ;;  %v418_v41 = vpop.f32.mrb[1].mxu0  ;;  %v491_v42 = vadd.f32 %v10828_v39, %v12463_v37  ;;  %v482_v43 = vpop.f32.mrb[1].mxu1 }
 0x13f   :  { %v419_v44 = vadd.f32 %v12463_v37, %v418_v41  ;;  %v10813_v45 = vpop.f32.mrb[2].mxu0  ;;  %v483_v30 = vadd.f32 %v12463_v37, %v482_v43  ;;  %v10829_v46 = vpop.f32.mrb[2].mxu1 }
 0x140   :  { %v547_v47 = vmax.f32 %v427_v40, 0.0  ;;  %v430_v48 = vadd.f32 %v10813_v45, %v12463_v37  ;;  %v421_v49 = vpop.f32.mrb[3].mxu0  ;;  %v563_v50 = vmax.f32 %v491_v42, 0.0  ;;  %v12471_v51 = vadd.f32 %v10829_v46, %v12463_v37  ;;  %v485_v52 = vpop.f32.mrb[3].mxu1  ;;  %v1040_v46 = vld [vmem:[#allocation2 + $0x14] sm:$0x3] }
 0x141   :  { %v545_v53 = vmax.f32 %v419_v44, 0.0  ;;  %v422_v54 = vadd.f32 %v12463_v37, %v421_v49  ;;  %v561_v55 = vmax.f32 %v483_v30, 0.0  ;;  %v12475_v56 = vadd.f32 %v12463_v37, %v485_v52  ;;  %v1033_v52 = vld [vmem:[#allocation2 + $0x8] sm:$0x3] }
 0x142   :  { %v10372_v57 = vpack.c.bf16 %v547_v47, %v547_v47  ;;  %v548_v58 = vmax.f32 %v430_v48, 0.0  ;;  %v12477_v59 = vpack.c.bf16 %v563_v50, %v563_v50  ;;  %v564_v60 = vmax.f32 %v12471_v51, 0.0 }
 0x143   :  { %v10370_v61 = vpack.c.bf16 %v545_v53, %v545_v53  ;;  %v546_v62 = vmax.f32 %v422_v54, 0.0  ;;  %v12480_v63 = vpack.c.bf16 %v561_v55, %v561_v55  ;;  %v562_v0 = vmax.f32 %v12475_v56, 0.0 }
 0x144   :  { %v695_v1 = vshrl.u32 %v10372_v57, 16  ;;  %v698_v2 = vshll.u32 %v10372_v57, 16  ;;  %v10373_v3 = vpack.c.bf16 %v548_v58, %v548_v58  ;;  %v847_v4 = vshrl.u32 %v12477_v59, 16 }
 0x145   :  { %v676_v6 = vshrl.u32 %v10370_v61, 16  ;;  %v679_v7 = vshll.u32 %v10370_v61, 16  ;;  %v10371_v8 = vpack.c.bf16 %v546_v62, %v546_v62  ;;  %v10816_v10 = vpop.f32.mrb[4].mxu0  ;;  %v850_v11 = vshll.u32 %v12477_v59, 16  ;;  %v12485_v12 = vpop.f32.mrb[4].mxu1 }
 0x146   :  { %v697_v13 = vrot.slane %v695_v1, 6  ;;  %v700_v14 = vrot.slane %v698_v2, 7  ;;  %v704_v15 = vshrl.u32 %v10373_v3, 16  ;;  %v707_v16 = vshll.u32 %v10373_v3, 16  ;;  %v434_v17 = vpop.f32.mrb[5].mxu0  ;;  %v12487_v18 = vpop.f32.mrb[5].mxu1 }
 0x147   :  { %v678_v21 = vrot.slane %v676_v6, 6  ;;  %v681_v22 = vrot.slane %v679_v7, 7  ;;  %v685_v23 = vshrl.u32 %v10371_v8, 16  ;;  %v688_v24 = vshll.u32 %v10371_v8, 16  ;;  %v10817_v25 = vpop.f32.mrb[6].mxu0  ;;  %v12495_v26 = vpop.f32.mrb[6].mxu1 }
 0x148   :  { %v701_v27 = vor.u32 %v700_v14, %v697_v13  ;;  %v706_v29 = vrot.slane %v704_v15, 6  ;;  %v709_v31 = vrot.slane %v707_v16, 7  ;;  %v443_v32 = vadd.f32 %v10816_v10, %v12463_v37  ;;  %v437_v33 = vpop.f32.mrb[7].mxu0  ;;  %v12498_v34 = vpop.f32.mrb[7].mxu1  ;;  %v1092_v59 = vld [vmem:[#allocation2 + $0x6c] sm:$0xe] }
 0x149   :  { %v682_v35 = vor.u32 %v681_v22, %v678_v21  ;;  %v687_v38 = vrot.slane %v685_v23, 6  ;;  %v690_v39 = vrot.slane %v688_v24, 7  ;;  %v435_v40 = vadd.f32 %v12463_v37, %v434_v17 }
 0x14a   :  { %v702_v41 = vrot.slane %v701_v27, 4  ;;  %v1037_v42 = vsel %vm12491_vm8, %v701_v27, %v1036_v5  ;;  %v710_v43 = vor.u32 %v709_v31, %v706_v29  ;;  %v551_v44 = vmax.f32 %v443_v32, 0.0 }
 0x14b   :  { %1038 = vst [vmem:[#allocation2 + $0xc] sm:$0xe] %v1037_v42  ;;  %v683_v45 = vrot.slane %v682_v35, 4  ;;  %v1030_v30 = vsel %vm12491_vm8, %v682_v35, %v1029_v28  ;;  %v691_v47 = vor.u32 %v690_v39, %v687_v38  ;;  %v549_v48 = vmax.f32 %v435_v40, 0.0  ;;  %v1050_v28 = vld [vmem:[#allocation2 + $0x24] sm:$0xe] }
 0x14c   :  { %1031 = vst [vmem:[#allocation2] sm:$0xe] %v1030_v30  ;;  %v711_v49 = vsel %vm12502_vm9, %v702_v41, %v710_v43  ;;  %v712_v50 = vrot.slane %v710_v43, 4  ;;  %v10376_v53 = vpack.c.bf16 %v551_v44, %v551_v44  ;;  %v446_v54 = vadd.f32 %v10817_v25, %v12463_v37  ;;  %v1043_v38 = vld [vmem:[#allocation2 + $0x18] sm:$0xe] }
 0x14d   :  { %1039 = vst [vmem:[#allocation2 + $0x10] sm:$0xf] %v711_v49  ;;  %v692_v55 = vsel %vm12502_vm9, %v683_v45, %v691_v47  ;;  %v693_v57 = vrot.slane %v691_v47, 4  ;;  %v10374_v58 = vpack.c.bf16 %v549_v48, %v549_v48  ;;  %v438_v61 = vadd.f32 %v12463_v37, %v437_v33  ;;  %v10820_v62 = vpop.f32.mrb[8].mxu0  ;;  %v12517_v1 = vpop.f32.mrb[8].mxu1 }
 0x14e   :  { %v1041_v2 = vsel %vm12384_vm2, %v712_v50, %v1040_v46  ;;  %1032 = vst [vmem:[#allocation2 + $0x4] sm:$0xf] %v692_v55  ;;  %v733_v3 = vshrl.u32 %v10376_v53, 16  ;;  %v736_v5 = vshll.u32 %v10376_v53, 16  ;;  %v552_v6 = vmax.f32 %v446_v54, 0.0  ;;  %v450_v7 = vpop.f32.mrb[9].mxu0 }
 0x14f   :  { %v12521_v8 = vpop.f32.mrb[9].mxu1  ;;  %1042 = vst [vmem:[#allocation2 + $0x14] sm:$0x3] %v1041_v2  ;;  %v1034_v10 = vsel %vm12384_vm2, %v693_v57, %v1033_v52  ;;  %v714_v13 = vshrl.u32 %v10374_v58, 16  ;;  %v717_v14 = vshll.u32 %v10374_v58, 16  ;;  %v550_v15 = vmax.f32 %v438_v61, 0.0 }
 0x150   :  { %v10821_v16 = vpop.f32.mrb[10].mxu0  ;;  %v12525_v17 = vpop.f32.mrb[10].mxu1  ;;  %1035 = vst [vmem:[#allocation2 + $0x8] sm:$0x3] %v1034_v10  ;;  %v735_v21 = vrot.slane %v733_v3, 6  ;;  %v738_v22 = vrot.slane %v736_v5, 7  ;;  %v10377_v23 = vpack.c.bf16 %v552_v6, %v552_v6  ;;  %v459_v24 = vadd.f32 %v10820_v62, %v12463_v37 }
 0x151   :  { %v453_v25 = vpop.f32.mrb[11].mxu0  ;;  %v12528_v27 = vpop.f32.mrb[11].mxu1  ;;  %v716_v29 = vrot.slane %v714_v13, 6  ;;  %v719_v31 = vrot.slane %v717_v14, 7  ;;  %v10375_v32 = vpack.c.bf16 %v550_v15, %v550_v15  ;;  %v451_v33 = vadd.f32 %v12463_v37, %v450_v7  ;;  %v1054_v3 = vld [vmem:[#allocation2 + $0x2c] sm:$0x3] }
 0x152   :  { %v739_v35 = vor.u32 %v738_v22, %v735_v21  ;;  %v742_v39 = vshrl.u32 %v10377_v23, 16  ;;  %v745_v40 = vshll.u32 %v10377_v23, 16  ;;  %v555_v41 = vmax.f32 %v459_v24, 0.0  ;;  %v1047_v6 = vld [vmem:[#allocation2 + $0x20] sm:$0x3] }
 0x153   :  { %v720_v42 = vor.u32 %v719_v31, %v716_v29  ;;  %v723_v43 = vshrl.u32 %v10375_v32, 16  ;;  %v726_v44 = vshll.u32 %v10375_v32, 16  ;;  %v553_v45 = vmax.f32 %v451_v33, 0.0 }
 0x154   :  { %v740_v30 = vrot.slane %v739_v35, 4  ;;  %v1051_v46 = vsel %vm12491_vm8, %v739_v35, %v1050_v28  ;;  %v744_v47 = vrot.slane %v742_v39, 6  ;;  %v747_v48 = vrot.slane %v745_v40, 7 }
 0x155   :  { %1052 = vst [vmem:[#allocation2 + $0x24] sm:$0xe] %v1051_v46  ;;  %v721_v49 = vrot.slane %v720_v42, 4  ;;  %v1044_v50 = vsel %vm12491_vm8, %v720_v42, %v1043_v38  ;;  %v725_v52 = vrot.slane %v723_v43, 6  ;;  %v728_v53 = vrot.slane %v726_v44, 7  ;;  %v10824_v54 = vpop.f32.mrb[12].mxu0 }
 0x156   :  { %1045 = vst [vmem:[#allocation2 + $0x18] sm:$0xe] %v1044_v50  ;;  %v748_v55 = vor.u32 %v747_v48, %v744_v47  ;;  %v10380_v57 = vpack.c.bf16 %v555_v41, %v555_v41  ;;  %v10378_v58 = vpack.c.bf16 %v553_v45, %v553_v45  ;;  %v462_v61 = vadd.f32 %v10821_v16, %v12463_v37  ;;  %v466_v62 = vpop.f32.mrb[13].mxu0  ;;  %v12536_v2 = vpop.f32.mrb[12].mxu1  ;;  %v1064_v42 = vld [vmem:[#allocation2 + $0x3c] sm:$0xe] }
 0x157   :  { %v729_v5 = vor.u32 %v728_v53, %v725_v52  ;;  %v454_v7 = vadd.f32 %v12463_v37, %v453_v25  ;;  %v475_v10 = vadd.f32 %v10824_v54, %v12463_v37  ;;  %v467_v13 = vadd.f32 %v12463_v37, %v466_v62  ;;  %v10825_v14 = vpop.f32.mrb[14].mxu0  ;;  %v12541_v15 = vpop.f32.mrb[13].mxu1  ;;  %v1057_v46 = vld [vmem:[#allocation2 + $0x30] sm:$0xe] }
 0x158   :  { %v749_v21 = vsel %vm12502_vm9, %v740_v30, %v748_v55  ;;  %v750_v22 = vrot.slane %v748_v55, 4  ;;  %v771_v16 = vshrl.u32 %v10380_v57, 16  ;;  %v774_v23 = vshll.u32 %v10380_v57, 16  ;;  %v12545_v24 = vpop.f32.mrb[15].mxu0  ;;  %v12547_v28 = vpop.f32.mrb[14].mxu1 }
 0x159   :  { %1053 = vst [vmem:[#allocation2 + $0x28] sm:$0xf] %v749_v21  ;;  %v730_v25 = vsel %vm12502_vm9, %v721_v49, %v729_v5  ;;  %v731_v29 = vrot.slane %v729_v5, 4  ;;  %v752_v31 = vshrl.u32 %v10378_v58, 16  ;;  %v755_v32 = vshll.u32 %v10378_v58, 16  ;;  %v12551_v33 = vpop.f32.mrb[15].mxu1 }
 0x15a   :  { %v1055_v35 = vsel %vm12384_vm2, %v750_v22, %v1054_v3  ;;  %1046 = vst [vmem:[#allocation2 + $0x1c] sm:$0xf] %v730_v25  ;;  %v773_v38 = vrot.slane %v771_v16, 6  ;;  %v776_v39 = vrot.slane %v774_v23, 7  ;;  %v556_v40 = vmax.f32 %v462_v61, 0.0 }
 0x15b   :  { %1056 = vst [vmem:[#allocation2 + $0x2c] sm:$0x3] %v1055_v35  ;;  %v1048_v41 = vsel %vm12384_vm2, %v731_v29, %v1047_v6  ;;  %v754_v43 = vrot.slane %v752_v31, 6  ;;  %v757_v44 = vrot.slane %v755_v32, 7  ;;  %v554_v45 = vmax.f32 %v454_v7, 0.0 }
 0x15c   :  { %1049 = vst [vmem:[#allocation2 + $0x20] sm:$0x3] %v1048_v41  ;;  %v777_v30 = vor.u32 %v776_v39, %v773_v38  ;;  %v10381_v47 = vpack.c.bf16 %v556_v40, %v556_v40  ;;  %v559_v48 = vmax.f32 %v475_v10, 0.0  ;;  %v557_v49 = vmax.f32 %v467_v13, 0.0  ;;  %v1068_v32 = vld [vmem:[#allocation2 + $0x44] sm:$0x3] }
 0x15d   :  { %v758_v50 = vor.u32 %v757_v44, %v754_v43  ;;  %v10379_v52 = vpack.c.bf16 %v554_v45, %v554_v45  ;;  %v849_v53 = vrot.slane %v847_v4, 6  ;;  %v852_v54 = vrot.slane %v850_v11, 7  ;;  %v1061_v43 = vld [vmem:[#allocation2 + $0x38] sm:$0x3] }
 0x15e   :  { %v778_v55 = vrot.slane %v777_v30, 4  ;;  %v1065_v57 = vsel %vm12491_vm8, %v777_v30, %v1064_v42  ;;  %v780_v58 = vshrl.u32 %v10381_v47, 16  ;;  %v783_v61 = vshll.u32 %v10381_v47, 16 }
 0x15f   :  { %1066 = vst [vmem:[#allocation2 + $0x3c] sm:$0xe] %v1065_v57  ;;  %v759_v62 = vrot.slane %v758_v50, 4  ;;  %v1058_v3 = vsel %vm12491_vm8, %v758_v50, %v1057_v46  ;;  %v761_v5 = vshrl.u32 %v10379_v52, 16  ;;  %v764_v6 = vshll.u32 %v10379_v52, 16 }
 0x160   :  { %1059 = vst [vmem:[#allocation2 + $0x30] sm:$0xe] %v1058_v3  ;;  %v782_v7 = vrot.slane %v780_v58, 6  ;;  %v785_v10 = vrot.slane %v783_v61, 7  ;;  %v10384_v4 = vpack.c.bf16 %v559_v48, %v559_v48  ;;  %v10382_v13 = vpack.c.bf16 %v557_v49, %v557_v49  ;;  %v1078_v46 = vld [vmem:[#allocation2 + $0x54] sm:$0xe] }
 0x161   :  { %v763_v11 = vrot.slane %v761_v5, 6  ;;  %v766_v21 = vrot.slane %v764_v6, 7  ;;  %v12565_v22 = vor.u32 %v852_v54, %v849_v53  ;;  %v478_v16 = vadd.f32 %v10825_v14, %v12463_v37  ;;  %v1071_v52 = vld [vmem:[#allocation2 + $0x48] sm:$0xe] }
 0x162   :  { %v786_v23 = vor.u32 %v785_v10, %v782_v7  ;;  %v809_v25 = vshrl.u32 %v10384_v4, 16  ;;  %v812_v29 = vshll.u32 %v10384_v4, 16  ;;  %v790_v31 = vshrl.u32 %v10382_v13, 16 }
 0x163   :  { %v767_v35 = vor.u32 %v766_v21, %v763_v11  ;;  %v793_v38 = vshll.u32 %v10382_v13, 16  ;;  %v854_v39 = vrot.slane %v12565_v22, 4  ;;  %v1093_v40 = vsel %vm12491_vm8, %v12565_v22, %v1092_v59  ;;  %v1085_v11 = vld [vmem:[#allocation2 + $0x60] sm:$0xe] }
 0x164   :  { %v787_v41 = vsel %vm12502_vm9, %v778_v55, %v786_v23  ;;  %v788_v42 = vrot.slane %v786_v23, 4  ;;  %v811_v44 = vrot.slane %v809_v25, 6  ;;  %v814_v14 = vrot.slane %v812_v29, 7  ;;  %1094 = vst [vmem:[#allocation2 + $0x6c] sm:$0xe] %v1093_v40 }
 0x165   :  { %1067 = vst [vmem:[#allocation2 + $0x40] sm:$0xf] %v787_v41  ;;  %v768_v45 = vsel %vm12502_vm9, %v759_v62, %v767_v35  ;;  %v769_v30 = vrot.slane %v767_v35, 4  ;;  %v792_v47 = vrot.slane %v790_v31, 6  ;;  %v795_v48 = vrot.slane %v793_v38, 7 }
 0x166   :  { %v1069_v49 = vsel %vm12384_vm2, %v788_v42, %v1068_v32  ;;  %1060 = vst [vmem:[#allocation2 + $0x34] sm:$0xf] %v768_v45  ;;  %v815_v50 = vor.u32 %v814_v14, %v811_v44  ;;  %v560_v53 = vmax.f32 %v478_v16, 0.0  ;;  %v828_v54 = vshrl.u32 %v12480_v63, 16  ;;  %v1082_v44 = vld [vmem:[#allocation2 + $0x5c] sm:$0x3] }
 0x167   :  { %1070 = vst [vmem:[#allocation2 + $0x44] sm:$0x3] %v1069_v49  ;;  %v1062_v55 = vsel %vm12384_vm2, %v769_v30, %v1061_v43  ;;  %v796_v57 = vor.u32 %v795_v48, %v792_v47  ;;  %v831_v58 = vshll.u32 %v12480_v63, 16  ;;  %v470_v61 = vadd.f32 %v12463_v37, %v12545_v24 }
 0x168   :  { %1063 = vst [vmem:[#allocation2 + $0x38] sm:$0x3] %v1062_v55  ;;  %v816_v62 = vrot.slane %v815_v50, 4  ;;  %v1079_v3 = vsel %vm12491_vm8, %v815_v50, %v1078_v46  ;;  %v10385_v5 = vpack.c.bf16 %v560_v53, %v560_v53  ;;  %v830_v6 = vrot.slane %v828_v54, 6  ;;  %v1096_v50 = vld [vmem:[#allocation2 + $0x74] sm:$0x3] }
 0x169   :  { %1080 = vst [vmem:[#allocation2 + $0x54] sm:$0xe] %v1079_v3  ;;  %v797_v7 = vrot.slane %v796_v57, 4  ;;  %v1072_v10 = vsel %vm12491_vm8, %v796_v57, %v1071_v52  ;;  %v833_v4 = vrot.slane %v831_v58, 7  ;;  %v558_v13 = vmax.f32 %v470_v61, 0.0 }
 0x16a   :  { %1073 = vst [vmem:[#allocation2 + $0x48] sm:$0xe] %v1072_v10  ;;  %v818_v59 = vshrl.u32 %v10385_v5, 16  ;;  %v821_v63 = vshll.u32 %v10385_v5, 16  ;;  %v10389_v24 = vpack.c.bf16 %v564_v60, %v564_v60  ;;  %v10387_v21 = vpack.c.bf16 %v562_v0, %v562_v0  ;;  %v1075_v57 = vld [vmem:[#allocation2 + $0x50] sm:$0x3] }
 0x16b   :  { %v834_v16 = vor.u32 %v833_v4, %v830_v6  ;;  %v10383_v23 = vpack.c.bf16 %v558_v13, %v558_v13  ;;  %v507_v25 = vadd.f32 %v12485_v12, %v12463_v37  ;;  %v499_v29 = vadd.f32 %v12463_v37, %v12487_v18  ;;  %v1089_v4 = vld [vmem:[#allocation2 + $0x68] sm:$0x3] }
 0x16c   :  { %v820_v31 = vrot.slane %v818_v59, 6  ;;  %v823_v32 = vrot.slane %v821_v63, 7  ;;  %v856_v35 = vshrl.u32 %v10389_v24, 16  ;;  %v859_v38 = vshll.u32 %v10389_v24, 16  ;;  %v1141_v63 = vld [vmem:[#allocation2] sm:$0xf] }
 0x16d   :  { %v835_v40 = vrot.slane %v834_v16, 4  ;;  %v1086_v51 = vsel %vm12491_vm8, %v834_v16, %v1085_v11  ;;  %v799_v60 = vshrl.u32 %v10383_v23, 16  ;;  %v802_v56 = vshll.u32 %v10383_v23, 16 }
 0x16e   :  { %v824_v41 = vor.u32 %v823_v32, %v820_v31  ;;  %1087 = vst [vmem:[#allocation2 + $0x60] sm:$0xe] %v1086_v51  ;;  %v858_v0 = vrot.slane %v856_v35, 6  ;;  %v861_v42 = vrot.slane %v859_v38, 7  ;;  %v837_v43 = vshrl.u32 %v10387_v21, 16 }
 0x16f   :  { %v801_v12 = vrot.slane %v799_v60, 6  ;;  %v804_v14 = vrot.slane %v802_v56, 7  ;;  %v840_v45 = vshll.u32 %v10387_v21, 16  ;;  %v567_v18 = vmax.f32 %v507_v25, 0.0  ;;  %v1106_v31 = vld [vmem:[#allocation2 + $0x84] sm:$0xe] }
 0x170   :  { %v825_v30 = vsel %vm12502_vm9, %v816_v62, %v824_v41  ;;  %v826_v46 = vrot.slane %v824_v41, 4  ;;  %v862_v47 = vor.u32 %v861_v42, %v858_v0  ;;  %v839_v48 = vrot.slane %v837_v43, 6  ;;  %v1099_v32 = vld [vmem:[#allocation2 + $0x78] sm:$0xe]  ;;  %v12622_v0 = vld [vmem:[#allocation2 + $0x4] sm:$0xf] }
 0x171   :  { %1081 = vst [vmem:[#allocation2 + $0x58] sm:$0xf] %v825_v30  ;;  %v805_v49 = vor.u32 %v804_v14, %v801_v12  ;;  %v842_v52 = vrot.slane %v840_v45, 7  ;;  %v10392_v53 = vpack.c.bf16 %v567_v18, %v567_v18  ;;  %v565_v54 = vmax.f32 %v499_v29, 0.0 }
 0x172   :  { %v1083_v55 = vsel %vm12384_vm2, %v826_v46, %v1082_v44  ;;  %v863_v58 = vsel %vm12502_vm9, %v854_v39, %v862_v47  ;;  %v864_v61 = vrot.slane %v862_v47, 4  ;;  %v510_v62 = vadd.f32 %v12495_v26, %v12463_v37  ;;  %v1189_v44 = vld [vmem:[#allocation2 + $0x8] sm:$0x1] }
 0x173   :  { %1084 = vst [vmem:[#allocation2 + $0x5c] sm:$0x3] %v1083_v55  ;;  %v806_v3 = vsel %vm12502_vm9, %v797_v7, %v805_v49  ;;  %v807_v5 = vrot.slane %v805_v49, 4  ;;  %1095 = vst [vmem:[#allocation2 + $0x70] sm:$0xf] %v863_v58  ;;  %v843_v6 = vor.u32 %v842_v52, %v839_v48  ;;  %v885_v10 = vshrl.u32 %v10392_v53, 16 }
 0x174   :  { %1074 = vst [vmem:[#allocation2 + $0x4c] sm:$0xf] %v806_v3  ;;  %v1097_v22 = vsel %vm12384_vm2, %v864_v61, %v1096_v50  ;;  %v888_v39 = vshll.u32 %v10392_v53, 16  ;;  %v10390_v13 = vpack.c.bf16 %v565_v54, %v565_v54  ;;  %v568_v59 = vmax.f32 %v510_v62, 0.0  ;;  %v12629_v50 = vld [vmem:[#allocation2 + $0xc] sm:$0xf] }
 0x175   :  { %v1076_v26 = vsel %vm12384_vm2, %v807_v5, %v1075_v57  ;;  %1098 = vst [vmem:[#allocation2 + $0x74] sm:$0x3] %v1097_v22  ;;  %v844_v7 = vsel %vm12502_vm9, %v835_v40, %v843_v6  ;;  %v845_v11 = vrot.slane %v843_v6, 4  ;;  %v887_v24 = vrot.slane %v885_v10, 6  ;;  %v1110_v58 = vld [vmem:[#allocation2 + $0x8c] sm:$0x3] }
 0x176   :  { %1077 = vst [vmem:[#allocation2 + $0x50] sm:$0x3] %v1076_v26  ;;  %1088 = vst [vmem:[#allocation2 + $0x64] sm:$0xf] %v844_v7  ;;  %v890_v21 = vrot.slane %v888_v39, 7  ;;  %v866_v16 = vshrl.u32 %v10390_v13, 16  ;;  %v10393_v25 = vpack.c.bf16 %v568_v59, %v568_v59  ;;  %v502_v35 = vadd.f32 %v12463_v37, %v12498_v34 }
 0x177   :  { %v869_v23 = vshll.u32 %v10390_v13, 16  ;;  %v1090_v29 = vsel %vm12384_vm2, %v845_v11, %v1089_v4  ;;  %v1209_v38 = vshrl.u32 %v1141_v63, 16  ;;  %v1212_v51 = vshll.u32 %v1141_v63, 16  ;;  %v12644_v4 = vld [vmem:[#allocation2 + $0x10] sm:$0xf] }
 0x178   :  { %1091 = vst [vmem:[#allocation2 + $0x68] sm:$0x3] %v1090_v29  ;;  %v891_v40 = vor.u32 %v890_v21, %v887_v24  ;;  %v868_v60 = vrot.slane %v866_v16, 6  ;;  %v894_v41 = vshrl.u32 %v10393_v25, 16  ;;  %v897_v42 = vshll.u32 %v10393_v25, 16 }
 0x179   :  { %v871_v56 = vrot.slane %v869_v23, 7  ;;  %v566_v43 = vmax.f32 %v502_v35, 0.0  ;;  %v1211_v12 = vrot.slane %v1209_v38, 4  ;;  %v1214_v14 = vrot.slane %v1212_v51, 5  ;;  %v1190_v7 = vld [vmem:[#allocation2 + $0x14] sm:$0x1] }
 0x17a   :  { %v892_v45 = vrot.slane %v891_v40, 4  ;;  %v1107_v18 = vsel %vm12491_vm8, %v891_v40, %v1106_v31  ;;  %v896_v34 = vrot.slane %v894_v41, 6  ;;  %v899_v46 = vrot.slane %v897_v42, 7 }
 0x17b   :  { %v872_v30 = vor.u32 %v871_v56, %v868_v60  ;;  %1108 = vst [vmem:[#allocation2 + $0x84] sm:$0xe] %v1107_v18  ;;  %v10391_v47 = vpack.c.bf16 %v566_v43, %v566_v43  ;;  %v1215_v48 = vor.u32 %v1214_v14, %v1211_v12  ;;  %v12627_v49 = vshll.u32 %v12622_v0, 16 }
 0x17c   :  { %v12634_v54 = vshrl.u32 %v12622_v0, 16  ;;  %v1228_v55 = vshll.u32 %v1189_v44, 16  ;;  %v900_v57 = vor.u32 %v899_v46, %v896_v34  ;;  %v15656_v3 = vmov 0 }
 0x17d   :  { %15654 = vst [vmem:[#allocation19_spill] sm:$0xff] %v12627_v49  ;;  %v873_v52 = vrot.slane %v872_v30, 4  ;;  %v1100_v53 = vsel %vm12491_vm8, %v872_v30, %v1099_v32  ;;  %v875_v61 = vshrl.u32 %v10391_v47, 16  ;;  %v878_v62 = vshll.u32 %v10391_v47, 16  ;;  %v1103_v32 = vld [vmem:[#allocation2 + $0x80] sm:$0x3] }
 0x17e   :  { %15655 = vst [vmem:[#allocation20_spill] sm:$0xff] %v12634_v54  ;;  %1101 = vst [vmem:[#allocation2 + $0x78] sm:$0xe] %v1100_v53  ;;  %v15657_v3 = vsel %vm12638_vm12, 4294967295, %v15656_v3  ;;  %v1216_v5 = vrot.slane %v1215_v48, 4  ;;  %v1220_v6 = vrot.slane %v12627_v49, 5  ;;  %v901_v13 = vsel %vm12502_vm9, %v892_v45, %v900_v57 }
 0x17f   :  { %15658 = vst [vmem:[#allocation21_spill] sm:$0xff] %v15657_v3  ;;  %v1224_v10 = vrot.slane %v12634_v54, 4  ;;  %v1230_v22 = vrot.slane %v1228_v55, 5  ;;  %v1233_v39 = vshrl.u32 %v12629_v50, 16  ;;  %v902_v59 = vrot.slane %v900_v57, 4 }
 0x180   :  { %v877_v63 = vrot.slane %v875_v61, 6  ;;  %v880_v26 = vrot.slane %v878_v62, 7  ;;  %1109 = vst [vmem:[#allocation2 + $0x88] sm:$0xf] %v901_v13  ;;  %v1221_v11 = vsel %vm12638_vm12, %v1216_v5, %v1220_v6  ;;  %v1236_v16 = vshll.u32 %v12629_v50, 16 }
 0x181   :  { %v1225_v24 = vor.u32 %v1224_v10, %v1220_v6  ;;  %v1235_v21 = vrot.slane %v1233_v39, 4  ;;  %v1111_v23 = vsel %vm12384_vm2, %v902_v59, %v1110_v58  ;;  %v12655_v29 = vshll.u32 %v12644_v4, 16  ;;  %v12668_v45 = vld [vmem:[#allocation2 + $0x18] sm:$0xf] }
 0x182   :  { %v881_v25 = vor.u32 %v880_v26, %v877_v63  ;;  %v12658_v31 = vshrl.u32 %v12644_v4, 16  ;;  %1112 = vst [vmem:[#allocation2 + $0x8c] sm:$0x3] %v1111_v23  ;;  %v1238_v38 = vrot.slane %v1236_v16, 5  ;;  %v1252_v51 = vshll.u32 %v1190_v7, 16  ;;  %v11956_v26 = vld [vmem:[#allocation8 + $0x8] sm:$0xff]  }
 0x183   :  { %15659 = vst [vmem:[#allocation22_spill] sm:$0xff] %v12655_v29  ;;  %v1226_v35 = vrot.slane %v1225_v24, 4  ;;  %v523_v40 = vadd.f32 %v12517_v1, %v12463_v37  ;;  %v1244_v41 = vrot.slane %v12655_v29, 5  ;;  %v515_v34 = vadd.f32 %v12463_v37, %v12521_v8  ;;  %v1120_v7 = vld [vmem:[#allocation2 + $0x9c] sm:$0xe] }
 0x184   :  { %15660 = vst [vmem:[#allocation23_spill] sm:$0xff] %v12658_v31  ;;  %v882_v60 = vsel %vm12502_vm9, %v873_v52, %v881_v25  ;;  %v883_v56 = vrot.slane %v881_v25, 4  ;;  %v1248_v42 = vrot.slane %v12658_v31, 4  ;;  %v1239_v44 = vor.u32 %v1238_v38, %v1235_v21 }
 0x185   :  { %1102 = vst [vmem:[#allocation2 + $0x7c] sm:$0xf] %v882_v60  ;;  %v1231_v43 = vsel %vm12638_vm12, %v1226_v35, %v1230_v22  ;;  %v1254_v12 = vrot.slane %v1252_v51, 5  ;;  %v571_v14 = vmax.f32 %v523_v40, 0.0  ;;  %v526_v48 = vadd.f32 %v12525_v17, %v12463_v37  ;;  %v12684_v22 = vld [vmem:[#allocation2 + $0x1c] sm:$0xf] }
 0x186   :  { %v1104_v1 = vsel %vm12384_vm2, %v883_v56, %v1103_v32  ;;  %v9904_v18 = vcombine.low %v1221_v11, %v1231_v43  ;;  %v1249_v30 = vor.u32 %v1248_v42, %v1244_v41  ;;  %v1240_v46 = vrot.slane %v1239_v44, 4  ;;  %v12690_v56 = vld [vmem:[#allocation2 + $0x20] sm:$0x1]  ;;  %v1113_v43 = vld [vmem:[#allocation2 + $0x90] sm:$0xe] }
 0x187   :  { %1105 = vst [vmem:[#allocation2 + $0x80] sm:$0x3] %v1104_v1  ;;  %v10396_v47 = vpack.c.bf16 %v571_v14, %v571_v14  ;;  %v518_v52 = vadd.f32 %v12463_v37, %v12528_v27  ;;  %v569_v55 = vmax.f32 %v515_v34, 0.0  ;;  %v1257_v57 = vshrl.u32 %v12668_v45, 16  ;;  %v11957_v14 = vld [vmem:[#allocation8 + $0x10] sm:$0xff]  }
 0x188   :  { %10858 = vmatprep.mubr.bf16.mxu1 %v9904_v18  ;;  %v1250_v53 = vrot.slane %v1249_v30, 4  ;;  %v1260_v58 = vshll.u32 %v12668_v45, 16  ;;  %v1245_v61 = vsel %vm12638_vm12, %v1240_v46, %v1244_v41  ;;  %v572_v5 = vmax.f32 %v526_v48, 0.0  ;;  %v1124_v18 = vld [vmem:[#allocation2 + $0xa4] sm:$0x3] }
 0x189   :  { %v923_v8 = vshrl.u32 %v10396_v47, 16  ;;  %v926_v62 = vshll.u32 %v10396_v47, 16  ;;  %v10394_v17 = vpack.c.bf16 %v569_v55, %v569_v55  ;;  %v570_v10 = vmax.f32 %v518_v52, 0.0 }
 0x18a   :  { %v1255_v6 = vsel %vm12638_vm12, %v1250_v53, %v1254_v12  ;;  %v1259_v27 = vrot.slane %v1257_v57, 4  ;;  %v10397_v63 = vpack.c.bf16 %v572_v5, %v572_v5  ;;  %v1262_v16 = vrot.slane %v1260_v58, 5  ;;  %v12699_v53 = vld [vmem:[#allocation2 + $0x24] sm:$0xf] }
 0x18b   :  { %v9905_v39 = vcombine.low %v1245_v61, %v1255_v6  ;;  %v925_v13 = vrot.slane %v923_v8, 6  ;;  %v928_v59 = vrot.slane %v926_v62, 7  ;;  %v904_v11 = vshrl.u32 %v10394_v17, 16  ;;  %v1117_v61 = vld [vmem:[#allocation2 + $0x98] sm:$0x3] }
 0x18c   :  { %v907_v24 = vshll.u32 %v10394_v17, 16  ;;  %v10395_v21 = vpack.c.bf16 %v570_v10, %v570_v10  ;;  %v932_v25 = vshrl.u32 %v10397_v63, 16  ;;  %v935_v32 = vshll.u32 %v10397_v63, 16  ;;  %v12703_v62 = vld [vmem:[#allocation2 + $0x28] sm:$0xf] }
 0x18d   :  { %10859 = vmatmul.mubr.bf16.vlgmr.msra.gmra.mrb[16].mxu1 %v9905_v39  ;;  %v929_v23 = vor.u32 %v928_v59, %v925_v13  ;;  %v12687_v35 = vshll.u32 %v12684_v22, 16  ;;  %v906_v38 = vrot.slane %v904_v11, 6  ;;  %v1263_v34 = vor.u32 %v1262_v16, %v1259_v27  ;;  %v12708_v27 = vld [vmem:[#allocation2 + $0x2c] sm:$0x1]  ;;  %v11958_v39 = vld [vmem:[#allocation8 + $0x18] sm:$0xff]  }
 0x18e   :  { %10891 = vmatpush3.bf16.msra.mxu1 %v12441_v19  ;;  %v909_v51 = vrot.slane %v907_v24, 7  ;;  %v913_v40 = vshrl.u32 %v10395_v21, 16  ;;  %v916_v60 = vshll.u32 %v10395_v21, 16  ;;  %v934_v44 = vrot.slane %v932_v25, 6 }
 0x18f   :  { %15661 = vst [vmem:[#allocation24_spill] sm:$0xff] %v12687_v35  ;;  %v930_v41 = vrot.slane %v929_v23, 4  ;;  %v1121_v42 = vsel %vm12491_vm8, %v929_v23, %v1120_v7  ;;  %v937_v12 = vrot.slane %v935_v32, 7  ;;  %10892 = vmatprep.subr.bf16.mxu1 %v11956_v26  ;;  %v1268_v47 = vrot.slane %v12687_v35, 5 }
 0x190   :  { %1122 = vst [vmem:[#allocation2 + $0x9c] sm:$0xe] %v1121_v42  ;;  %v910_v1 = vor.u32 %v909_v51, %v906_v38  ;;  %v915_v30 = vrot.slane %v913_v40, 6  ;;  %v918_v19 = vrot.slane %v916_v60, 7  ;;  %v12696_v48 = vshrl.u32 %v12684_v22, 16 }
 0x191   :  { %v938_v46 = vor.u32 %v937_v12, %v934_v44  ;;  %v1276_v52 = vshll.u32 %v12690_v56, 16  ;;  %v1264_v8 = vrot.slane %v1263_v34, 4  ;;  %v1284_v24 = vshll.u32 %v12699_v53, 16 }
 0x192   :  { %15662 = vst [vmem:[#allocation25_spill] sm:$0xff] %v12696_v48  ;;  %v911_v55 = vrot.slane %v910_v1, 4  ;;  %v1114_v57 = vsel %vm12491_vm8, %v910_v1, %v1113_v43  ;;  %v919_v58 = vor.u32 %v918_v19, %v915_v30  ;;  %10893 = vmatpush3.bf16.msra.mxu1 %v11956_v26  ;;  %v1272_v17 = vrot.slane %v12696_v48, 4 }
 0x193   :  { %1115 = vst [vmem:[#allocation2 + $0x90] sm:$0xe] %v1114_v57  ;;  %v939_v5 = vsel %vm12502_vm9, %v930_v41, %v938_v46  ;;  %v940_v6 = vrot.slane %v938_v46, 4  ;;  %v1278_v10 = vrot.slane %v1276_v52, 5  ;;  %10894 = vmatprep.subr.bf16.mxu1 %v11957_v14  ;;  %v1269_v63 = vsel %vm12638_vm12, %v1264_v8, %v1268_v47  ;;  %v11959_v41 = vld [vmem:[#allocation8 + $0x20] sm:$0xff]   ;;  %v11960_v57 = vld [vmem:[#allocation8 + $0x28] sm:$0xff]  }
 0x194   :  { %1123 = vst [vmem:[#allocation2 + $0xa0] sm:$0xf] %v939_v5  ;;  %v920_v13 = vsel %vm12502_vm9, %v911_v55, %v919_v58  ;;  %v921_v59 = vrot.slane %v919_v58, 4  ;;  %v1281_v26 = vshrl.u32 %v12699_v53, 16  ;;  %v1273_v11 = vor.u32 %v1272_v17, %v1268_v47 }
 0x195   :  { %v1125_v7 = vsel %vm12384_vm2, %v940_v6, %v1124_v18  ;;  %1116 = vst [vmem:[#allocation2 + $0x94] sm:$0xf] %v920_v13  ;;  %v12719_v21 = vshll.u32 %v12703_v62, 16  ;;  %v12724_v25 = vshrl.u32 %v12703_v62, 16  ;;  %v1300_v32 = vshll.u32 %v12708_v27, 16 }
 0x196   :  { %1126 = vst [vmem:[#allocation2 + $0xa4] sm:$0x3] %v1125_v7  ;;  %v1118_v16 = vsel %vm12384_vm2, %v921_v59, %v1117_v61  ;;  %v1283_v23 = vrot.slane %v1281_v26, 4  ;;  %10895 = vmatpush3.bf16.msra.mxu1 %v11957_v14  ;;  %v1274_v38 = vrot.slane %v1273_v11, 4  ;;  %v1286_v51 = vrot.slane %v1284_v24, 5 }
 0x197   :  { %15663 = vst [vmem:[#allocation26_spill] sm:$0xff] %v12719_v21  ;;  %15664 = vst [vmem:[#allocation27_spill] sm:$0xff] %v12724_v25  ;;  %v1292_v40 = vrot.slane %v12719_v21, 5  ;;  %v539_v60 = vadd.f32 %v12536_v2, %v12463_v37  ;;  %10896 = vmatprep.subr.bf16.mxu1 %v11958_v39  ;;  %v1296_v42 = vrot.slane %v12724_v25, 4  ;;  %v1302_v43 = vrot.slane %v1300_v32, 5 }
 0x198   :  { %1119 = vst [vmem:[#allocation2 + $0x98] sm:$0x3] %v1118_v16  ;;  %v531_v44 = vadd.f32 %v12463_v37, %v12541_v15  ;;  %v542_v12 = vadd.f32 %v12547_v28, %v12463_v37  ;;  %v12735_v14 = vld [vmem:[#allocation2 + $0x30] sm:$0xf]  ;;  %v1279_v1 = vsel %vm12638_vm12, %v1274_v38, %v1278_v10  ;;  %v1287_v18 = vor.u32 %v1286_v51, %v1283_v23  ;;  %v12747_v24 = vld [vmem:[#allocation2 + $0x34] sm:$0xf] }
 0x199   :  { %v575_v30 = vmax.f32 %v539_v60, 0.0  ;;  %v534_v2 = vadd.f32 %v12463_v37, %v12551_v33  ;;  %v9906_v19 = vcombine.low %v1269_v63, %v1279_v1  ;;  %v1297_v34 = vor.u32 %v1296_v42, %v1292_v40  ;;  %v11961_v16 = vld [vmem:[#allocation8 + $0x30] sm:$0xff]   ;;  %v1127_v42 = vld [vmem:[#allocation2 + $0xa8] sm:$0xe] }
 0x19a   :  { %v573_v46 = vmax.f32 %v531_v44, 0.0  ;;  %v576_v47 = vmax.f32 %v542_v12, 0.0  ;;  %10897 = vmatpush3.bf16.msra.mxu1 %v11958_v39  ;;  %v1288_v52 = vrot.slane %v1287_v18, 4  ;;  %v1305_v28 = vshrl.u32 %v12735_v14, 16  ;;  %v1134_v23 = vld [vmem:[#allocation2 + $0xb4] sm:$0xe] }
 0x19b   :  { %v10400_v15 = vpack.c.bf16 %v575_v30, %v575_v30  ;;  %v574_v55 = vmax.f32 %v534_v2, 0.0  ;;  %10898 = vmatprep.subr.bf16.mxu1 %v11959_v41  ;;  %10862 = vmatprep.mubr.bf16.mxu1 %v9906_v19  ;;  %v1298_v58 = vrot.slane %v1297_v34, 4  ;;  %v1308_v5 = vshll.u32 %v12735_v14, 16  ;;  %v11962_v2 = vld [vmem:[#allocation8 + $0x38] sm:$0xff]  }
 0x19c   :  { %v10398_v61 = vpack.c.bf16 %v573_v46, %v573_v46  ;;  %v10401_v8 = vpack.c.bf16 %v576_v47, %v576_v47  ;;  %v1293_v37 = vsel %vm12638_vm12, %v1288_v52, %v1292_v40  ;;  %v1307_v12 = vrot.slane %v1305_v28, 4  ;;  %v12754_v52 = vld [vmem:[#allocation2 + $0x38] sm:$0x1] }
 0x19d   :  { %v961_v33 = vshrl.u32 %v10400_v15, 16  ;;  %v964_v6 = vshll.u32 %v10400_v15, 16  ;;  %v10399_v17 = vpack.c.bf16 %v574_v55, %v574_v55  ;;  %v1303_v10 = vsel %vm12638_vm12, %v1298_v58, %v1302_v43  ;;  %v12756_v15 = vld [vmem:[#allocation2 + $0x3c] sm:$0xf]  ;;  %v12945_v31 = vld [vmem:[#allocation2 + $0xa4] sm:$0x1] }
 0x19e   :  { %v942_v39 = vshrl.u32 %v10398_v61, 16  ;;  %v945_v13 = vshll.u32 %v10398_v61, 16  ;;  %v970_v59 = vshrl.u32 %v10401_v8, 16  ;;  %10899 = vmatpush3.bf16.msra.mxu1 %v11959_v41  ;;  %v9907_v63 = vcombine.low %v1293_v37, %v1303_v10  ;;  %v1138_v58 = vld [vmem:[#allocation2 + $0xbc] sm:$0x3]  ;;  %15686 = vst [vmem:[#allocation49_spill] sm:$0xff] %v12945_v31 }
 0x19f   :  { %v963_v26 = vrot.slane %v961_v33, 6  ;;  %v966_v7 = vrot.slane %v964_v6, 7  ;;  %v973_v11 = vshll.u32 %v10401_v8, 16  ;;  %10900 = vmatprep.subr.bf16.mxu1 %v11960_v57  ;;  %v951_v40 = vshrl.u32 %v10399_v17, 16  ;;  %v1131_v33 = vld [vmem:[#allocation2 + $0xb0] sm:$0x3] }
 0x1a0   :  { %v944_v32 = vrot.slane %v942_v39, 6  ;;  %v947_v38 = vrot.slane %v945_v13, 7  ;;  %v972_v51 = vrot.slane %v970_v59, 6  ;;  %10863 = vmatmul.mubr.bf16.gmra.mrb[20].mxu1 %v9907_v63  ;;  %v954_v44 = vshll.u32 %v10399_v17, 16  ;;  %v12766_v17 = vld [vmem:[#allocation8 + $0x80] sm:$0xff]  }
 0x1a1   :  { %v967_v60 = vor.u32 %v966_v7, %v963_v26  ;;  %v975_v43 = vrot.slane %v973_v11, 7  ;;  %v953_v1 = vrot.slane %v951_v40, 6  ;;  %v1310_v18 = vrot.slane %v1308_v5, 5  ;;  %v12769_v13 = vld [vmem:[#allocation2 + $0x40] sm:$0xf] }
 0x1a2   :  { %v948_v41 = vor.u32 %v947_v38, %v944_v32  ;;  %v12750_v30 = vshll.u32 %v12747_v24, 16  ;;  %10901 = vmatpush3.bf16.msra.mxu1 %v11960_v57  ;;  %v956_v47 = vrot.slane %v954_v44, 7  ;;  %v12764_v6 = vshrl.u32 %v12747_v24, 16  ;;  %v12778_v32 = vld [vmem:[#allocation2 + $0x44] sm:$0x1] }
 0x1a3   :  { %v968_v19 = vrot.slane %v967_v60, 4  ;;  %v1135_v34 = vsel %vm12491_vm8, %v967_v60, %v1134_v23  ;;  %v976_v46 = vor.u32 %v975_v43, %v972_v51  ;;  %10902 = vmatprep.subr.bf16.mxu1 %v11961_v16  ;;  %v1311_v61 = vor.u32 %v1310_v18, %v1307_v12  ;;  %v12780_v38 = vld [vmem:[#allocation2 + $0x48] sm:$0xf]  ;;  %v12924_v25 = vld [vmem:[#allocation2 + $0x98] sm:$0x1] }
 0x1a4   :  { %15665 = vst [vmem:[#allocation28_spill] sm:$0xff] %v12750_v30  ;;  %1136 = vst [vmem:[#allocation2 + $0xb4] sm:$0xe] %v1135_v34  ;;  %v949_v55 = vrot.slane %v948_v41, 4  ;;  %v1128_v28 = vsel %vm12491_vm8, %v948_v41, %v1127_v42  ;;  %v1316_v57 = vrot.slane %v12750_v30, 5  ;;  %v957_v37 = vor.u32 %v956_v47, %v953_v1 }
 0x1a5   :  { %1129 = vst [vmem:[#allocation2 + $0xa8] sm:$0xe] %v1128_v28  ;;  %v977_v8 = vsel %vm12502_vm9, %v968_v19, %v976_v46  ;;  %v978_v5 = vrot.slane %v976_v46, 4  ;;  %15666 = vst [vmem:[#allocation29_spill] sm:$0xff] %v12764_v6  ;;  %v1312_v10 = vrot.slane %v1311_v61, 4  ;;  %v1324_v39 = vshll.u32 %v12754_v52, 16 }
 0x1a6   :  { %1137 = vst [vmem:[#allocation2 + $0xb8] sm:$0xf] %v977_v8  ;;  %v1329_v59 = vshrl.u32 %v12756_v15, 16  ;;  %v1332_v63 = vshll.u32 %v12756_v15, 16  ;;  %10903 = vmatpush3.bf16.msra.mxu1 %v11961_v16  ;;  %v958_v7 = vsel %vm12502_vm9, %v949_v55, %v957_v37  ;;  %v959_v11 = vrot.slane %v957_v37, 4  ;;  %15683 = vst [vmem:[#allocation46_spill] sm:$0xff] %v12924_v25 }
 0x1a7   :  { %v1139_v26 = vsel %vm12384_vm2, %v978_v5, %v1138_v58  ;;  %v1320_v23 = vrot.slane %v12764_v6, 4  ;;  %10904 = vmatprep.subr.bf16.mxu1 %v11962_v2  ;;  %1130 = vst [vmem:[#allocation2 + $0xac] sm:$0xf] %v958_v7  ;;  %v1317_v51 = vsel %vm12638_vm12, %v1312_v10, %v1316_v57  ;;  %v1326_v16 = vrot.slane %v1324_v39, 5  ;;  %v12784_v42 = vld [vmem:[#allocation2 + $0x4c] sm:$0xf] }
 0x1a8   :  { %1140 = vst [vmem:[#allocation2 + $0xbc] sm:$0x3] %v1139_v26  ;;  %v1331_v40 = vrot.slane %v1329_v59, 4  ;;  %v1334_v60 = vrot.slane %v1332_v63, 5  ;;  %v1132_v43 = vsel %vm12384_vm2, %v959_v11, %v1131_v33  ;;  %v12789_v12 = vshll.u32 %v12769_v13, 16 }
 0x1a9   :  { %v1321_v44 = vor.u32 %v1320_v23, %v1316_v57  ;;  %v12792_v41 = vshrl.u32 %v12769_v13, 16  ;;  %1133 = vst [vmem:[#allocation2 + $0xb0] sm:$0x3] %v1132_v43  ;;  %v1348_v18 = vshll.u32 %v12778_v32, 16  ;;  %v1353_v19 = vshrl.u32 %v12780_v38, 16 }
 0x1aa   :  { %15667 = vst [vmem:[#allocation30_spill] sm:$0xff] %v12789_v12  ;;  %v1335_v1 = vor.u32 %v1334_v60, %v1331_v40  ;;  %v1356_v34 = vshll.u32 %v12780_v38, 16  ;;  %10905 = vmatpush3.bf16.msra.mxu1 %v11962_v2  ;;  %v1340_v47 = vrot.slane %v12789_v12, 5  ;;  %v12799_v28 = vld [vmem:[#allocation2 + $0x50] sm:$0x1]  ;;  %v12802_v58 = vshll.u32 %v12784_v42, 16 }
 0x1ab   :  { %15668 = vst [vmem:[#allocation31_spill] sm:$0xff] %v12792_v41  ;;  %v1322_v46 = vrot.slane %v1321_v44, 4  ;;  %v1344_v55 = vrot.slane %v12792_v41, 4  ;;  %10938 = vmatprep.subr.bf16.mxu1 %v12766_v17  ;;  %v1350_v57 = vrot.slane %v1348_v18, 5  ;;  %v1355_v8 = vrot.slane %v1353_v19, 4 }
 0x1ac   :  { %15669 = vst [vmem:[#allocation32_spill] sm:$0xff] %v12802_v58  ;;  %v1336_v61 = vrot.slane %v1335_v1, 4  ;;  %v1358_v5 = vrot.slane %v1356_v34, 5  ;;  %v12805_v37 = vld [vmem:[#allocation2 + $0x54] sm:$0xf]  ;;  %v1364_v10 = vrot.slane %v12802_v58, 5 }
 0x1ad   :  { %v1327_v2 = vsel %vm12638_vm12, %v1322_v46, %v1326_v16  ;;  %v1345_v33 = vor.u32 %v1344_v55, %v1340_v47  ;;  %v12811_v39 = vshrl.u32 %v12784_v42, 16  ;;  %v12813_v59 = vld [vmem:[#allocation2 + $0x58] sm:$0xf]  ;;  %v1372_v11 = vshll.u32 %v12799_v28, 16  ;;  %v12821_v43 = vld [vmem:[#allocation2 + $0x60] sm:$0xf] }
 0x1ae   :  { %v9908_v63 = vcombine.low %v1317_v51, %v1327_v2  ;;  %v1341_v26 = vsel %vm12638_vm12, %v1336_v61, %v1340_v47  ;;  %v1359_v7 = vor.u32 %v1358_v5, %v1355_v8  ;;  %v1377_v16 = vshrl.u32 %v12805_v37, 16  ;;  %v12823_v18 = vld [vmem:[#allocation2 + $0x5c] sm:$0x1]  ;;  %v12833_v61 = vld [vmem:[#allocation2 + $0x64] sm:$0xf] }
 0x1af   :  { %15670 = vst [vmem:[#allocation33_spill] sm:$0xff] %v12811_v39  ;;  %v1346_v23 = vrot.slane %v1345_v33, 4  ;;  %v1368_v40 = vrot.slane %v12811_v39, 4  ;;  %v1380_v60 = vshll.u32 %v12805_v37, 16  ;;  %v1374_v1 = vrot.slane %v1372_v11, 5 }
 0x1b0   :  { %10866 = vmatprep.mubr.bf16.mxu1 %v9908_v63  ;;  %v1360_v44 = vrot.slane %v1359_v7, 4  ;;  %v12826_v51 = vshll.u32 %v12813_v59, 16  ;;  %v12829_v19 = vshrl.u32 %v12813_v59, 16  ;;  %v1379_v47 = vrot.slane %v1377_v16, 4 }
 0x1b1   :  { %v1351_v34 = vsel %vm12638_vm12, %v1346_v23, %v1350_v57  ;;  %v1369_v46 = vor.u32 %v1368_v40, %v1364_v10  ;;  %v1382_v55 = vrot.slane %v1380_v60, 5  ;;  %v1396_v11 = vshll.u32 %v12823_v18, 16  ;;  %v12841_v57 = vld [vmem:[#allocation2 + $0x6c] sm:$0xf]  ;;  %v12843_v40 = vld [vmem:[#allocation2 + $0x68] sm:$0x1] }
 0x1b2   :  { %15671 = vst [vmem:[#allocation34_spill] sm:$0xff] %v12826_v51  ;;  %15672 = vst [vmem:[#allocation35_spill] sm:$0xff] %v12829_v19  ;;  %v9909_v8 = vcombine.low %v1341_v26, %v1351_v34  ;;  %v1365_v5 = vsel %vm12638_vm12, %v1360_v44, %v1364_v10  ;;  %v1388_v2 = vrot.slane %v12826_v51, 5  ;;  %v1392_v33 = vrot.slane %v12829_v19, 4 }
 0x1b3   :  { %v1370_v63 = vrot.slane %v1369_v46, 4  ;;  %v1383_v7 = vor.u32 %v1382_v55, %v1379_v47  ;;  %v1401_v9 = vshrl.u32 %v12821_v43, 16  ;;  %v1404_v26 = vshll.u32 %v12821_v43, 16  ;;  %v12854_v47 = vld [vmem:[#allocation2 + $0x70] sm:$0xf] }
 0x1b4   :  { %10867 = vmatmul.mubr.bf16.gmra.mrb[24].mxu1 %v9909_v8  ;;  %v1393_v23 = vor.u32 %v1392_v33, %v1388_v2  ;;  %v12847_v10 = vshll.u32 %v12833_v61, 16  ;;  %v12850_v16 = vshrl.u32 %v12833_v61, 16  ;;  %v1398_v34 = vrot.slane %v1396_v11, 5  ;;  %v12870_v11 = vld [vmem:[#allocation2 + $0x78] sm:$0xf] }
 0x1b5   :  { %v1375_v60 = vsel %vm12638_vm12, %v1370_v63, %v1374_v1  ;;  %v1384_v44 = vrot.slane %v1383_v7, 4  ;;  %v1403_v46 = vrot.slane %v1401_v9, 4  ;;  %v1406_v33 = vrot.slane %v1404_v26, 5  ;;  %v12864_v63 = vld [vmem:[#allocation2 + $0x74] sm:$0x1] }
 0x1b6   :  { %15673 = vst [vmem:[#allocation36_spill] sm:$0xff] %v12847_v10  ;;  %15674 = vst [vmem:[#allocation37_spill] sm:$0xff] %v12850_v16  ;;  %v9910_v55 = vcombine.low %v1365_v5, %v1375_v60  ;;  %v1394_v8 = vrot.slane %v1393_v23, 4  ;;  %v1412_v20 = vrot.slane %v12847_v10, 5  ;;  %v1416_v51 = vrot.slane %v12850_v16, 4 }
 0x1b7   :  { %v1389_v36 = vsel %vm12638_vm12, %v1384_v44, %v1388_v2  ;;  %v1420_v19 = vshll.u32 %v12843_v40, 16  ;;  %v1425_v58 = vshrl.u32 %v12841_v57, 16  ;;  %v1407_v1 = vor.u32 %v1406_v33, %v1403_v46  ;;  %v12872_v44 = vld [vmem:[#allocation2 + $0x7c] sm:$0xf] }
 0x1b8   :  { %10870 = vmatprep.mubr.bf16.mxu1 %v9910_v55  ;;  %v1399_v9 = vsel %vm12638_vm12, %v1394_v8, %v1398_v34  ;;  %v1428_v5 = vshll.u32 %v12841_v57, 16  ;;  %v12868_v7 = vshll.u32 %v12854_v47, 16  ;;  %v1417_v23 = vor.u32 %v1416_v51, %v1412_v20 }
 0x1b9   :  { %v9911_v2 = vcombine.low %v1389_v36, %v1399_v9  ;;  %v1422_v26 = vrot.slane %v1420_v19, 5  ;;  %v1427_v60 = vrot.slane %v1425_v58, 4  ;;  %v1408_v55 = vrot.slane %v1407_v1, 4  ;;  %v12884_v19 = vld [vmem:[#allocation2 + $0x80] sm:$0x1] }
 0x1ba   :  { %15675 = vst [vmem:[#allocation38_spill] sm:$0xff] %v12868_v7  ;;  %v1430_v10 = vrot.slane %v1428_v5, 5  ;;  %v1436_v34 = vrot.slane %v12868_v7, 5  ;;  %v12876_v46 = vshrl.u32 %v12854_v47, 16  ;;  %v1418_v8 = vrot.slane %v1417_v23, 4  ;;  %15677 = vst [vmem:[#allocation40_spill] sm:$0xff] %v12884_v19 }
 0x1bb   :  { %v1444_v33 = vshll.u32 %v12864_v63, 16  ;;  %v1449_v16 = vshrl.u32 %v12870_v11, 16  ;;  %v1452_v39 = vshll.u32 %v12870_v11, 16  ;;  %v1413_v36 = vsel %vm12638_vm12, %v1408_v55, %v1412_v20  ;;  %v12889_v1 = vld [vmem:[#allocation2 + $0x84] sm:$0xf] }
 0x1bc   :  { %15676 = vst [vmem:[#allocation39_spill] sm:$0xff] %v12876_v46  ;;  %10871 = vmatmul.mubr.bf16.gmra.mrb[28].mxu1 %v9911_v2  ;;  %v1431_v58 = vor.u32 %v1430_v10, %v1427_v60  ;;  %v1440_v51 = vrot.slane %v12876_v46, 4  ;;  %v12887_v9 = vshll.u32 %v12872_v44, 16  ;;  %v1423_v5 = vsel %vm12638_vm12, %v1418_v8, %v1422_v26  ;;  %v12893_v2 = vld [vmem:[#allocation2 + $0x88] sm:$0xf] }
 0x1bd   :  { %v1446_v23 = vrot.slane %v1444_v33, 5  ;;  %v1451_v7 = vrot.slane %v1449_v16, 4  ;;  %v1454_v12 = vrot.slane %v1452_v39, 5  ;;  %v9912_v41 = vcombine.low %v1413_v36, %v1423_v5  ;;  %v12903_v26 = vld [vmem:[#allocation2 + $0x8c] sm:$0x1] }
 0x1be   :  { %15678 = vst [vmem:[#allocation41_spill] sm:$0xff] %v12887_v9  ;;  %v1432_v20 = vrot.slane %v1431_v58, 4  ;;  %v1441_v10 = vor.u32 %v1440_v51, %v1436_v34  ;;  %v1460_v60 = vrot.slane %v12887_v9, 5  ;;  %v12897_v46 = vshrl.u32 %v12872_v44, 16  ;;  %15680 = vst [vmem:[#allocation43_spill] sm:$0xff] %v12903_v26 }
 0x1bf   :  { %v1455_v55 = vor.u32 %v1454_v12, %v1451_v7  ;;  %v1468_v30 = vshll.u32 %v12884_v19, 16  ;;  %v1473_v6 = vshrl.u32 %v12889_v1, 16  ;;  %10874 = vmatprep.mubr.bf16.mxu1 %v9912_v41  ;;  %v1476_v8 = vshll.u32 %v12889_v1, 16  ;;  %v12910_v51 = vld [vmem:[#allocation2 + $0x90] sm:$0xf] }
 0x1c0   :  { %15679 = vst [vmem:[#allocation42_spill] sm:$0xff] %v12897_v46  ;;  %v1437_v16 = vsel %vm12638_vm12, %v1432_v20, %v1436_v34  ;;  %v1442_v39 = vrot.slane %v1441_v10, 4  ;;  %v12907_v33 = vshll.u32 %v12893_v2, 16  ;;  %v1464_v7 = vrot.slane %v12897_v46, 4  ;;  %v12918_v10 = vld [vmem:[#allocation2 + $0x94] sm:$0xf] }
 0x1c1   :  { %v1456_v12 = vrot.slane %v1455_v55, 4  ;;  %v1470_v36 = vrot.slane %v1468_v30, 5  ;;  %v1475_v58 = vrot.slane %v1473_v6, 4  ;;  %v1478_v5 = vrot.slane %v1476_v8, 5 }
 0x1c2   :  { %15681 = vst [vmem:[#allocation44_spill] sm:$0xff] %v12907_v33  ;;  %v1447_v41 = vsel %vm12638_vm12, %v1442_v39, %v1446_v23  ;;  %v1484_v34 = vrot.slane %v12907_v33, 5  ;;  %v12916_v20 = vshrl.u32 %v12893_v2, 16  ;;  %v1465_v46 = vor.u32 %v1464_v7, %v1460_v60 }
 0x1c3   :  { %v9913_v9 = vcombine.low %v1437_v16, %v1447_v41  ;;  %v1461_v55 = vsel %vm12638_vm12, %v1456_v12, %v1460_v60  ;;  %v1492_v30 = vshll.u32 %v12903_v26, 16  ;;  %v1479_v6 = vor.u32 %v1478_v5, %v1475_v58  ;;  %v12934_v5 = vld [vmem:[#allocation2 + $0x9c] sm:$0xf] }
 0x1c4   :  { %15682 = vst [vmem:[#allocation45_spill] sm:$0xff] %v12916_v20  ;;  %v1488_v21 = vrot.slane %v12916_v20, 4  ;;  %v1497_v23 = vshrl.u32 %v12910_v51, 16  ;;  %v1500_v39 = vshll.u32 %v12910_v51, 16  ;;  %v1466_v8 = vrot.slane %v1465_v46, 4 }
 0x1c5   :  { %10875 = vmatmul.mubr.bf16.gmra.mrb[32].mxu1 %v9913_v9  ;;  %v1494_v33 = vrot.slane %v1492_v30, 5  ;;  %v12929_v16 = vshll.u32 %v12918_v10, 16  ;;  %v12932_v12 = vshrl.u32 %v12918_v10, 16  ;;  %v1480_v60 = vrot.slane %v1479_v6, 4  ;;  %v12941_v30 = vld [vmem:[#allocation2 + $0xa0] sm:$0xf] }
 0x1c6   :  { %v1489_v7 = vor.u32 %v1488_v21, %v1484_v34  ;;  %v1499_v58 = vrot.slane %v1497_v23, 4  ;;  %v1502_v41 = vrot.slane %v1500_v39, 5  ;;  %v1471_v20 = vsel %vm12638_vm12, %v1466_v8, %v1470_v36 }
 0x1c7   :  { %15684 = vst [vmem:[#allocation47_spill] sm:$0xff] %v12929_v16  ;;  %15685 = vst [vmem:[#allocation48_spill] sm:$0xff] %v12932_v12  ;;  %v1508_v35 = vrot.slane %v12929_v16, 5  ;;  %v1512_v46 = vrot.slane %v12932_v12, 4  ;;  %v1516_v9 = vshll.u32 %v12924_v25, 16  ;;  %v9914_v48 = vcombine.low %v1461_v55, %v1471_v20 }
 0x1c8   :  { %v1485_v6 = vsel %vm12638_vm12, %v1480_v60, %v1484_v34  ;;  %v1490_v21 = vrot.slane %v1489_v7, 4  ;;  %v1503_v23 = vor.u32 %v1502_v41, %v1499_v58  ;;  %v1521_v36 = vshrl.u32 %v12934_v5, 16  ;;  %v12957_v55 = vld [vmem:[#allocation2 + $0xa8] sm:$0xf] }
 0x1c9   :  { %v1513_v39 = vor.u32 %v1512_v46, %v1508_v35  ;;  %v1518_v29 = vrot.slane %v1516_v9, 5  ;;  %v1524_v8 = vshll.u32 %v12934_v5, 16  ;;  %10878 = vmatprep.mubr.bf16.mxu1 %v9914_v48  ;;  %v12952_v20 = vshll.u32 %v12941_v30, 16  ;;  %v12959_v46 = vld [vmem:[#allocation2 + $0xac] sm:$0xf] }
 0x1ca   :  { %v1495_v16 = vsel %vm12638_vm12, %v1490_v21, %v1494_v33  ;;  %v1504_v12 = vrot.slane %v1503_v23, 4  ;;  %v12955_v34 = vshrl.u32 %v12941_v30, 16  ;;  %v1523_v58 = vrot.slane %v1521_v36, 4  ;;  %v12972_v36 = vld [vmem:[#allocation2 + $0xb4] sm:$0xf] }
 0x1cb   :  { %15687 = vst [vmem:[#allocation50_spill] sm:$0xff] %v12952_v20  ;;  %v9915_v60 = vcombine.low %v1485_v6, %v1495_v16  ;;  %v1514_v7 = vrot.slane %v1513_v39, 4  ;;  %v1526_v41 = vrot.slane %v1524_v8, 5  ;;  %v1532_v33 = vrot.slane %v12952_v20, 5  ;;  %v12968_v16 = vld [vmem:[#allocation2 + $0xb0] sm:$0x1] }
 0x1cc   :  { %15688 = vst [vmem:[#allocation51_spill] sm:$0xff] %v12955_v34  ;;  %v1509_v48 = vsel %vm12638_vm12, %v1504_v12, %v1508_v35  ;;  %v1536_v9 = vrot.slane %v12955_v34, 4  ;;  %v1540_v21 = vshll.u32 %v12945_v31, 16  ;;  %15689 = vst [vmem:[#allocation52_spill] sm:$0xff] %v12968_v16  ;;  %v1545_v6 = vshrl.u32 %v12957_v55, 16 }
 0x1cd   :  { %10879 = vmatmul.mubr.bf16.gmra.mrb[36].mxu1 %v9915_v60  ;;  %v1519_v23 = vsel %vm12638_vm12, %v1514_v7, %v1518_v29  ;;  %v1527_v49 = vor.u32 %v1526_v41, %v1523_v58  ;;  %v1548_v39 = vshll.u32 %v12957_v55, 16  ;;  %v12975_v20 = vshll.u32 %v12959_v46, 16  ;;  %v12980_v7 = vld [vmem:[#allocation2 + $0xb8] sm:$0xf] }
 0x1ce   :  { %v9916_v35 = vcombine.low %v1509_v48, %v1519_v23  ;;  %v1537_v12 = vor.u32 %v1536_v9, %v1532_v33  ;;  %v1542_v8 = vrot.slane %v1540_v21, 5  ;;  %v1547_v60 = vrot.slane %v1545_v6, 4  ;;  %v12988_v23 = vld [vmem:[#allocation2 + $0xbc] sm:$0x1] }
 0x1cf   :  { %15690 = vst [vmem:[#allocation53_spill] sm:$0xff] %v12975_v20  ;;  %v1528_v34 = vrot.slane %v1527_v49, 4  ;;  %v1550_v31 = vrot.slane %v1548_v39, 5  ;;  %v12978_v29 = vshrl.u32 %v12959_v46, 16  ;;  %v1556_v41 = vrot.slane %v12975_v20, 5 }
 0x1d0   :  { %10882 = vmatprep.mubr.bf16.mxu1 %v9916_v35  ;;  %v1538_v58 = vrot.slane %v1537_v12, 4  ;;  %v1564_v54 = vshll.u32 %v12968_v16, 16  ;;  %v1569_v48 = vshrl.u32 %v12972_v36, 16  ;;  %v1572_v6 = vshll.u32 %v12972_v36, 16 }
 0x1d1   :  { %v1533_v9 = vsel %vm12638_vm12, %v1528_v34, %v1532_v33  ;;  %v1551_v21 = vor.u32 %v1550_v31, %v1547_v60  ;;  %v1560_v49 = vrot.slane %v12978_v29, 4  ;;  %v12994_v20 = vshll.u32 %v12980_v7, 16 }
 0x1d2   :  { %v1543_v39 = vsel %vm12638_vm12, %v1538_v58, %v1542_v8  ;;  %v1566_v35 = vrot.slane %v1564_v54, 5  ;;  %v1571_v12 = vrot.slane %v1569_v48, 4  ;;  %v1574_v19 = vrot.slane %v1572_v6, 5 }
 0x1d3   :  { %15691 = vst [vmem:[#allocation54_spill] sm:$0xff] %v12994_v20  ;;  %v9917_v16 = vcombine.low %v1533_v9, %v1543_v39  ;;  %v1552_v25 = vrot.slane %v1551_v21, 4  ;;  %v1561_v26 = vor.u32 %v1560_v49, %v1556_v41  ;;  %v1580_v31 = vrot.slane %v12994_v20, 5 }
 0x1d4   :  { %v12998_v34 = vshrl.u32 %v12980_v7, 16  ;;  %v1588_v33 = vshll.u32 %v12988_v23, 16  ;;  %v1575_v60 = vor.u32 %v1574_v19, %v1571_v12  ;;  %v9930_v12 = vcombine.low %v12668_v45, %v12684_v22  ;;  %v11979_v45 = vld [vmem:[#allocation8 + $0xa8] sm:$0xff]  }
 0x1d5   :  { %10883 = vmatmul.mubr.bf16.gmra.mrb[40].mxu1 %v9917_v16  ;;  %v1557_v8 = vsel %vm12638_vm12, %v1552_v25, %v1556_v41  ;;  %v1562_v54 = vrot.slane %v1561_v26, 4  ;;  %v12091_v26 = vld [vmem:[#allocation2] sm:$0xf]  ;;  %v9929_v41 = vcombine.low %v12629_v50, %v12644_v4  ;;  %v9933_v4 = vcombine.low %v12756_v15, %v12769_v13 }
 0x1d6   :  { %15692 = vst [vmem:[#allocation55_spill] sm:$0xff] %v12998_v34  ;;  %v1584_v58 = vrot.slane %v12998_v34, 4  ;;  %v1576_v9 = vrot.slane %v1575_v60, 4  ;;  %v1590_v6 = vrot.slane %v1588_v33, 5  ;;  %v9928_v19 = vcombine.low %v12091_v26, %v12622_v0  ;;  %v11973_v0 = vld [vmem:[#allocation8 + $0x98] sm:$0xff]   ;;  %v11976_v50 = vld [vmem:[#allocation8 + $0xa0] sm:$0xff]  }
 0x1d7   :  { %v1567_v48 = vsel %vm12638_vm12, %v1562_v54, %v1566_v35  ;;  %v11967_v35 = vld [vmem:[#allocation8 + $0x88] sm:$0xff]   ;;  %v9932_v33 = vcombine.low %v12735_v14, %v12747_v24  ;;  %v9935_v14 = vcombine.low %v12805_v37, %v12813_v59  ;;  %v9936_v54 = vcombine.low %v12821_v43, %v12833_v61  ;;  %v11987_v15 = vld [vmem:[#allocation8 + $0xc0] sm:$0xff]  }
 0x1d8   :  { %v9918_v21 = vcombine.low %v1557_v8, %v1567_v48  ;;  %v1585_v49 = vor.u32 %v1584_v58, %v1580_v31  ;;  %v1581_v39 = vsel %vm12638_vm12, %v1576_v9, %v1580_v31  ;;  %v11970_v31 = vld [vmem:[#allocation8 + $0x90] sm:$0xff]   ;;  %v11985_v8 = vld [vmem:[#allocation8 + $0xb8] sm:$0xff]   ;;  %v9938_v60 = vcombine.low %v12870_v11, %v12872_v44  ;;  %v12092_v58 = vld [vmem:[#allocation2 + $0x4] sm:$0xf] }
 0x1d9   :  { %v9939_v37 = vcombine.low %v12889_v1, %v12893_v2  ;;  %v9940_v43 = vcombine.low %v12910_v51, %v12918_v10  ;;  %v2240_v48 = vrot.slane %v12092_v58, 5  ;;  %v9941_v9 = vcombine.low %v12934_v5, %v12941_v30  ;;  %v13040_v1 = vld [vmem:[#allocation2] sm:$0xe]  ;;  %v11989_v58 = vld [vmem:[#allocation8 + $0xd0] sm:$0xff]  }
 0x1da   :  { %10886 = vmatprep.mubr.bf16.mxu1 %v9918_v21  ;;  %v1586_v20 = vrot.slane %v1585_v49, 4  ;;  %v12093_v21 = vld [vmem:[#allocation2 + $0x8] sm:$0x1]  ;;  %v15693_v51 = vmov 0  ;;  %v9952_v5 = vrot.slane %v13040_v1, 9 }
 0x1db   :  { %v2242_v11 = vrot.slane %v2240_v48, 4  ;;  %v2243_v49 = vrot.slane %v12093_v21, 5  ;;  %v15694_v51 = vsel %vm13042_vm15, 4294967295, %v15693_v51 }
 0x1dc   :  { %v1591_v16 = vsel %vm12638_vm12, %v1586_v20, %v1590_v6  ;;  %v9931_v20 = vcombine.low %v12699_v53, %v12703_v62  ;;  %v11982_v53 = vld [vmem:[#allocation8 + $0xb0] sm:$0xff]   ;;  %15695 = vst [vmem:[#allocation56_spill] sm:$0xff] %v15694_v51  ;;  %v2241_v26 = vsel %vm13042_vm15, %v9952_v5, %v2240_v48 }
 0x1dd   :  { %v9919_v25 = vcombine.low %v1581_v39, %v1591_v16  ;;  %v12094_v6 = vld [vmem:[#allocation2 + $0x10] sm:$0xf]  ;;  %v2254_v16 = vrot.slane %v12684_v22, 5 }
 0x1de   :  { %v2247_v39 = vrot.slane %v12094_v6, 5  ;;  %v11990_v6 = vld [vmem:[#allocation8 + $0xd8] sm:$0xff]  }
 0x1df   :  { %10887 = vmatmul.mubr.bf16.gmra.mrb[44].mxu1 %v9919_v25  ;;  %v9943_v25 = vcombine.low %v12972_v36, %v12980_v7 }
 0x1e0   :  { %10906 = vmatprep.mubr.bf16.mxu1 %v9928_v19 }
 0x1e7   :  { %10907 = vmatmul.mubr.bf16.vlgmr.msra.gmra.mrb[16].mxu1 %v9929_v41  ;;  %v2249_v41 = vrot.slane %v2247_v39, 4 }
 0x1e8   :  { %10939 = vmatpush3.bf16.msra.mxu1 %v12766_v17  ;;  %10910 = vmatprep.mubr.bf16.mxu1 %v9930_v12  ;;  %v9934_v17 = vcombine.low %v12780_v38, %v12784_v42  ;;  %v9937_v38 = vcombine.low %v12841_v57, %v12854_v47  ;;  %v9942_v57 = vcombine.low %v12957_v55, %v12959_v46 }
 0x1e9   :  { %10940 = vmatprep.subr.bf16.mxu1 %v11967_v35  ;;  %v2244_v55 = vsel %vm13042_vm15, %v2242_v11, %v2243_v49 }
 0x1ea   :  { %v9968_v19 = vcombine.low %v2241_v26, %v2244_v55  ;;  %v13090_v55 = vld [vmem:[#allocation2 + $0x3c] sm:$0xe]  ;;  %v11991_v26 = vld [vmem:[#allocation8 + $0xe0] sm:$0xff]  }
 0x1ec   :  { %10941 = vmatpush3.bf16.msra.mxu1 %v11967_v35  ;;  %v12095_v35 = vld [vmem:[#allocation2 + $0x14] sm:$0x1] }
 0x1ed   :  { %10942 = vmatprep.subr.bf16.mxu1 %v11970_v31  ;;  %v2250_v12 = vrot.slane %v12095_v35, 5  ;;  %v2289_v35 = vrot.slane %v12813_v59, 5 }
 0x1ef   :  { %10911 = vmatmul.mubr.bf16.gmra.mrb[20].mxu1 %v9931_v20  ;;  %v2256_v20 = vrot.slane %v2254_v16, 4  ;;  %v2251_v36 = vsel %vm13042_vm15, %v2249_v41, %v2250_v12  ;;  %v2291_v59 = vrot.slane %v2289_v35, 4 }
 0x1f0   :  { %10914 = vmatprep.mubr.bf16.mxu1 %v9932_v33  ;;  %10943 = vmatpush3.bf16.msra.mxu1 %v11970_v31  ;;  %v13054_v31 = vld [vmem:[#allocation2 + $0xc] sm:$0xe]  ;;  %v13057_v33 = vld [vmem:[#allocation2 + $0x18] sm:$0xe] }
 0x1f1   :  { %10944 = vmatprep.subr.bf16.mxu1 %v11973_v0  ;;  %v9953_v22 = vrot.slane %v13054_v31, 9 }
 0x1f4   :  { %10945 = vmatpush3.bf16.msra.mxu1 %v11973_v0  ;;  %v2257_v0 = vrot.slane %v12690_v56, 5  ;;  %v2248_v56 = vsel %vm13042_vm15, %v9953_v22, %v2247_v39 }
 0x1f5   :  { %10946 = vmatprep.subr.bf16.mxu1 %v11976_v50 }
 0x1f7   :  { %10915 = vmatmul.mubr.bf16.gmra.mrb[24].mxu1 %v9933_v4  ;;  %v9954_v4 = vrot.slane %v13057_v33, 9 }
 0x1f8   :  { %10918 = vmatprep.mubr.bf16.mxu1 %v9934_v17  ;;  %10947 = vmatpush3.bf16.msra.mxu1 %v11976_v50  ;;  %v2261_v50 = vrot.slane %v12703_v62, 5  ;;  %v2268_v17 = vrot.slane %v12747_v24, 5  ;;  %v13072_v62 = vld [vmem:[#allocation2 + $0x24] sm:$0xe]  ;;  %v13075_v24 = vld [vmem:[#allocation2 + $0x30] sm:$0xe] }
 0x1f9   :  { %10948 = vmatprep.subr.bf16.mxu1 %v11979_v45  ;;  %v9955_v48 = vrot.slane %v13072_v62, 9 }
 0x1fc   :  { %10949 = vmatpush3.bf16.msra.mxu1 %v11979_v45  ;;  %v2258_v45 = vsel %vm13042_vm15, %v2256_v20, %v2257_v0 }
 0x1fd   :  { %10950 = vmatprep.subr.bf16.mxu1 %v11982_v53 }
 0x1ff   :  { %10919 = vmatmul.mubr.bf16.gmra.mrb[28].mxu1 %v9935_v14  ;;  %v2255_v14 = vsel %vm13042_vm15, %v9954_v4, %v2254_v16  ;;  %v13107_v4 = vld [vmem:[#allocation2 + $0x54] sm:$0xe] }
 0x200   :  { %10922 = vmatprep.mubr.bf16.mxu1 %v9936_v54  ;;  %10951 = vmatpush3.bf16.msra.mxu1 %v11982_v53  ;;  %v9969_v53 = vcombine.low %v2248_v56, %v2251_v36  ;;  %v9970_v54 = vcombine.low %v2255_v14, %v2258_v45  ;;  %v11992_v36 = vld [vmem:[#allocation8 + $0xe8] sm:$0xff]   ;;  %v2292_v45 = vrot.slane %v12823_v18, 5  ;;  %v2303_v14 = vrot.slane %v12854_v47, 5  ;;  %v11993_v18 = vld [vmem:[#allocation8 + $0xf0] sm:$0xff]  }
 0x201   :  { %10952 = vmatprep.subr.bf16.mxu1 %v11985_v8 }
 0x204   :  { %10953 = vmatpush3.bf16.msra.mxu1 %v11985_v8  ;;  %v11988_v8 = vld [vmem:[#allocation8 + $0xc8] sm:$0xff]  }
 0x205   :  { %10986 = vmatprep.subr.bf16.mxu1 %v11987_v15 }
 0x207   :  { %10923 = vmatmul.mubr.bf16.gmra.mrb[32].mxu1 %v9937_v38  ;;  %v2263_v38 = vrot.slane %v2261_v50, 4 }
 0x208   :  { %10926 = vmatprep.mubr.bf16.mxu1 %v9938_v60  ;;  %v2264_v60 = vrot.slane %v12708_v27, 5  ;;  %v9956_v27 = vrot.slane %v13075_v24, 9 }
 0x20a   :  { %v2269_v49 = vsel %vm13042_vm15, %v9956_v27, %v2268_v17 }
 0x20f   :  { %10927 = vmatmul.mubr.bf16.gmra.mrb[36].mxu1 %v9939_v37  ;;  %v2270_v37 = vrot.slane %v2268_v17, 4  ;;  %v13110_v17 = vld [vmem:[#allocation2 + $0x60] sm:$0xe] }
 0x210   :  { %10930 = vmatprep.mubr.bf16.mxu1 %v9940_v43  ;;  %v2271_v43 = vrot.slane %v12754_v52, 5  ;;  %v2282_v52 = vrot.slane %v12784_v42, 5  ;;  %v2285_v42 = vrot.slane %v12799_v28, 5  ;;  %v2296_v28 = vrot.slane %v12833_v61, 5 }
 0x211   :  { %v9960_v61 = vrot.slane %v13110_v17, 9 }
 0x212   :  { %v2272_v11 = vsel %vm13042_vm15, %v2270_v37, %v2271_v43  ;;  %v2284_v16 = vrot.slane %v2282_v52, 4  ;;  %v2298_v56 = vrot.slane %v2296_v28, 4  ;;  %v2293_v37 = vsel %vm13042_vm15, %v2291_v59, %v2292_v45 }
 0x213   :  { %v9972_v39 = vcombine.low %v2269_v49, %v2272_v11  ;;  %v15696_v11 = vld [vmem:[#allocation40_spill] sm:$0xff]  ;;  %v11994_v49 = vld [vmem:[#allocation8 + $0xf8] sm:$0xff]   ;;  %v2331_v45 = vrot.slane %v12941_v30, 5 }
 0x214   :  { %v2286_v12 = vsel %vm13042_vm15, %v2284_v16, %v2285_v42  ;;  %v15699_v30 = vld [vmem:[#allocation20_spill] sm:$0xff] }
 0x217   :  { %10931 = vmatmul.mubr.bf16.gmra.mrb[40].mxu1 %v9941_v9  ;;  %v2265_v9 = vsel %vm13042_vm15, %v2263_v38, %v2264_v60  ;;  %v13117_v38 = vld [vmem:[#allocation2 + $0x6c] sm:$0xe]  ;;  %v13119_v60 = vld [vmem:[#allocation2 + $0x78] sm:$0xe] }
 0x218   :  { %10934 = vmatprep.mubr.bf16.mxu1 %v9942_v57  ;;  %v2275_v57 = vrot.slane %v12769_v13, 5  ;;  %v2278_v13 = vrot.slane %v12778_v32, 5  ;;  %v9961_v43 = vrot.slane %v13117_v38, 9  ;;  %v9962_v47 = vrot.slane %v13119_v60, 9 }
 0x21a   :  { %v2277_v5 = vrot.slane %v2275_v57, 4 }
 0x21c   :  { %v2279_v41 = vsel %vm13042_vm15, %v2277_v5, %v2278_v13 }
 0x21f   :  { %10935 = vmatmul.mubr.bf16.gmra.mrb[44].mxu1 %v9943_v25  ;;  %v13093_v25 = vld [vmem:[#allocation2 + $0x48] sm:$0xe] }
 0x220   :  { %10954 = vmatprep.mubr.bf16.mxu1 %v9968_v19  ;;  %v9957_v19 = vrot.slane %v13090_v55, 9  ;;  %v9958_v32 = vrot.slane %v13093_v25, 9 }
 0x222   :  { %v2276_v20 = vsel %vm13042_vm15, %v9957_v19, %v2275_v57  ;;  %v2283_v22 = vsel %vm13042_vm15, %v9958_v32, %v2282_v52  ;;  %v2313_v52 = vrot.slane %v15696_v11, 5  ;;  %v15698_v32 = vld [vmem:[#allocation46_spill] sm:$0xff] }
 0x223   :  { %v9973_v0 = vcombine.low %v2276_v20, %v2279_v41  ;;  %v2692_v20 = vshrl.u32 %v13040_v1, 16 }
 0x227   :  { %10955 = vmatmul.mubr.bf16.vlgmr.msra.gmra.mrb[16].mxu1 %v9969_v53  ;;  %v2299_v53 = vrot.slane %v12843_v40, 5  ;;  %v2306_v40 = vrot.slane %v12864_v63, 5  ;;  %v2324_v63 = vrot.slane %v12918_v10, 5  ;;  %v15697_v10 = vld [vmem:[#allocation43_spill] sm:$0xff] }
 0x228   :  { %10987 = vmatpush3.bf16.msra.mxu1 %v11987_v15  ;;  %10958 = vmatprep.mubr.bf16.mxu1 %v9970_v54  ;;  %v2262_v15 = vsel %vm13042_vm15, %v9955_v48, %v2261_v50  ;;  %v9974_v50 = vcombine.low %v2283_v22, %v2286_v12  ;;  %v9959_v54 = vrot.slane %v13107_v4, 9  ;;  %v2305_v48 = vrot.slane %v2303_v14, 4  ;;  %v13155_v22 = vld [vmem:[#allocation8 + $0x100] sm:$0xff]  }
 0x229   :  { %10988 = vmatprep.subr.bf16.mxu1 %v11988_v8  ;;  %v9971_v21 = vcombine.low %v2262_v15, %v2265_v9  ;;  %v2317_v9 = vrot.slane %v12893_v2, 5  ;;  %v2320_v42 = vrot.slane %v15697_v10, 5  ;;  %v2327_v12 = vrot.slane %v15698_v32, 5  ;;  %v13199_v32 = vld [vmem:[#allocation2 + $0x14] sm:$0x3] }
 0x22a   :  { %v2290_v57 = vsel %vm13042_vm15, %v9959_v54, %v2289_v35  ;;  %v2307_v5 = vsel %vm13042_vm15, %v2305_v48, %v2306_v40  ;;  %v2326_v35 = vrot.slane %v2324_v63, 4 }
 0x22b   :  { %v9975_v15 = vcombine.low %v2290_v57, %v2293_v37  ;;  %v2319_v16 = vrot.slane %v2317_v9, 4  ;;  %v2700_v37 = vrot.slane %v15699_v30, 5  ;;  %v2333_v57 = vrot.slane %v2331_v45, 4 }
 0x22c   :  { %10989 = vmatpush3.bf16.msra.mxu1 %v11988_v8  ;;  %v2310_v8 = vrot.slane %v12872_v44, 5  ;;  %v2297_v44 = vsel %vm13042_vm15, %v9960_v61, %v2296_v28  ;;  %v13151_v28 = vld [vmem:[#allocation2 + $0x9c] sm:$0xe]  ;;  %v13161_v61 = vld [vmem:[#allocation2 + $0xa8] sm:$0xe] }
 0x22d   :  { %10990 = vmatprep.subr.bf16.mxu1 %v11989_v58  ;;  %v9965_v59 = vrot.slane %v13151_v28, 9 }
 0x22e   :  { %v2312_v27 = vrot.slane %v2310_v8, 4  ;;  %v2311_v13 = vsel %vm13042_vm15, %v9962_v47, %v2310_v8  ;;  %v2338_v8 = vrot.slane %v12959_v46, 5  ;;  %v2694_v47 = vrot.slane %v2692_v20, 5 }
 0x22f   :  { %10959 = vmatmul.mubr.bf16.gmra.mrb[20].mxu1 %v9971_v21  ;;  %v13135_v21 = vld [vmem:[#allocation2 + $0x84] sm:$0xe]  ;;  %v2741_v20 = vshll.u32 %v13057_v33, 16 }
 0x230   :  { %10962 = vmatprep.mubr.bf16.mxu1 %v9972_v39  ;;  %10991 = vmatpush3.bf16.msra.mxu1 %v11989_v58  ;;  %v2300_v58 = vsel %vm13042_vm15, %v2298_v56, %v2299_v53  ;;  %v2304_v39 = vsel %vm13042_vm15, %v9961_v43, %v2303_v14  ;;  %v9963_v2 = vrot.slane %v13135_v21, 9  ;;  %v2314_v19 = vsel %vm13042_vm15, %v2312_v27, %v2313_v52  ;;  %v13163_v56 = vld [vmem:[#allocation2 + $0x8] sm:$0x3]  ;;  %v15701_v27 = vld [vmem:[#allocation49_spill] sm:$0xff]  ;;  %v13183_v52 = vld [vmem:[#allocation2 + $0xb4] sm:$0xe] }
 0x231   :  { %10992 = vmatprep.subr.bf16.mxu1 %v11990_v6  ;;  %v9978_v53 = vcombine.low %v2311_v13, %v2314_v19  ;;  %v2321_v14 = vsel %vm13042_vm15, %v2319_v16, %v2320_v42  ;;  %v15700_v43 = vld [vmem:[#allocation19_spill] sm:$0xff]  ;;  %v2709_v48 = vshll.u32 %v13163_v56, 16  ;;  %v2334_v11 = vrot.slane %v15701_v27, 5 }
 0x232   :  { %v2701_v40 = vrot.slane %v15700_v43, 6  ;;  %v2715_v16 = vshrl.u32 %v13054_v31, 16 }
 0x233   :  { %v2711_v19 = vrot.slane %v2709_v48, 6  ;;  %v15709_v48 = vld [vmem:[#allocation24_spill] sm:$0xff] }
 0x234   :  { %10993 = vmatpush3.bf16.msra.mxu1 %v11990_v6  ;;  %v9976_v6 = vcombine.low %v2297_v44, %v2300_v58  ;;  %v2706_v58 = vshrl.u32 %v13163_v56, 16  ;;  %v13192_v13 = vor.u32 %v2701_v40, %v2700_v37  ;;  %v2743_v40 = vrot.slane %v2741_v20, 6 }
 0x235   :  { %10994 = vmatprep.subr.bf16.mxu1 %v11991_v26 }
 0x236   :  { %v2708_v42 = vrot.slane %v2706_v58, 5  ;;  %v15706_v58 = vmov 0 }
 0x237   :  { %10963 = vmatmul.mubr.bf16.gmra.mrb[24].mxu1 %v9973_v0  ;;  %v2695_v0 = vshll.u32 %v13040_v1, 16  ;;  %v9966_v1 = vrot.slane %v13161_v61, 9  ;;  %v15707_v58 = vsel %vm13217_vm4, 4294967295, %v15706_v58 }
 0x238   :  { %10966 = vmatprep.mubr.bf16.mxu1 %v9974_v50  ;;  %10995 = vmatpush3.bf16.msra.mxu1 %v11991_v26  ;;  %v13145_v26 = vld [vmem:[#allocation2 + $0x90] sm:$0xe]  ;;  %v2318_v50 = vsel %vm13042_vm15, %v9963_v2, %v2317_v9  ;;  %v13180_v9 = vsel %vm13042_vm15, %v9965_v59, %v2331_v45  ;;  %v15703_v59 = vld [vmem:[#allocation23_spill] sm:$0xff]  ;;  %15708 = vst [vmem:[#allocation40_spill] sm:$0xff] %v15707_v58  ;;  %v13572_v58 = vld [vmem:[#allocation8 + $0x180] sm:$0xff]  }
 0x239   :  { %10996 = vmatprep.subr.bf16.mxu1 %v11992_v36  ;;  %v9964_v41 = vrot.slane %v13145_v26, 9  ;;  %v2697_v44 = vrot.slane %v2695_v0, 6  ;;  %v9979_v46 = vcombine.low %v2318_v50, %v2321_v14  ;;  %v2704_v50 = vrot.slane %v13192_v13, 4 }
 0x23a   :  { %v2723_v45 = vrot.slane %v15703_v59, 5 }
 0x23b   :  { %v2325_v54 = vsel %vm13042_vm15, %v9964_v41, %v2324_v63  ;;  %v2340_v63 = vrot.slane %v2338_v8, 4  ;;  %v2698_v10 = vor.u32 %v2697_v44, %v2694_v47  ;;  %v2718_v41 = vshll.u32 %v13054_v31, 16  ;;  %v15705_v47 = vld [vmem:[#allocation25_spill] sm:$0xff] }
 0x23c   :  { %10997 = vmatpush3.bf16.msra.mxu1 %v11992_v36  ;;  %v9977_v36 = vcombine.low %v2304_v39, %v2307_v5  ;;  %v2345_v39 = vrot.slane %v12980_v7, 5  ;;  %v13190_v5 = vsel %vm13042_vm15, %v9966_v1, %v2338_v8  ;;  %v2348_v7 = vrot.slane %v12988_v23, 5  ;;  %v13208_v23 = vld [vmem:[#allocation2 + $0x20] sm:$0x3] }
 0x23d   :  { %10998 = vmatprep.subr.bf16.mxu1 %v11993_v18  ;;  %v2717_v31 = vrot.slane %v2715_v16, 5  ;;  %v13210_v1 = vrot.slane %v2698_v10, 4  ;;  %v2712_v8 = vor.u32 %v2711_v19, %v2708_v42  ;;  %v2746_v44 = vrot.slane %v15705_v47, 5 }
 0x23e   :  { %v2752_v27 = vshrl.u32 %v13208_v23, 16  ;;  %v2764_v16 = vshll.u32 %v13072_v62, 16 }
 0x23f   :  { %10967 = vmatmul.mubr.bf16.gmra.mrb[28].mxu1 %v9975_v15  ;;  %v15702_v15 = vld [vmem:[#allocation52_spill] sm:$0xff] }
 0x240   :  { %10970 = vmatprep.mubr.bf16.mxu1 %v9976_v6  ;;  %10999 = vmatpush3.bf16.msra.mxu1 %v11993_v18  ;;  %v2328_v18 = vsel %vm13042_vm15, %v2326_v35, %v2327_v12  ;;  %v9967_v6 = vrot.slane %v13183_v52, 9  ;;  %v2335_v35 = vsel %vm13042_vm15, %v2333_v57, %v2334_v11  ;;  %v2738_v12 = vshrl.u32 %v13057_v33, 16 }
 0x241   :  { %11000 = vmatprep.subr.bf16.mxu1 %v11994_v49  ;;  %v9980_v2 = vcombine.low %v2325_v54, %v2328_v18  ;;  %v2720_v54 = vrot.slane %v2718_v41, 6  ;;  %v2729_v33 = vshrl.u32 %v13199_v32, 16  ;;  %v2732_v18 = vshll.u32 %v13199_v32, 16 }
 0x242   :  { %v2740_v37 = vrot.slane %v2738_v12, 5  ;;  %v2747_v57 = vrot.slane %v15709_v48, 6  ;;  %v2755_v11 = vshll.u32 %v13208_v23, 16  ;;  %v13234_v12 = vld [vmem:[#allocation2 + $0x2c] sm:$0x3] }
 0x243   :  { %v2721_v42 = vor.u32 %v2720_v54, %v2717_v31  ;;  %v2731_v41 = vrot.slane %v2729_v33, 5  ;;  %v2775_v54 = vshrl.u32 %v13234_v12, 16 }
 0x244   :  { %11001 = vmatpush3.bf16.msra.mxu1 %v11994_v49  ;;  %v2341_v49 = vrot.slane %v15702_v15, 5  ;;  %v9981_v15 = vcombine.low %v13180_v9, %v2335_v35  ;;  %v2703_v9 = vsel %vm13217_vm4, %v13210_v1, %v13192_v13  ;;  %v2757_v35 = vrot.slane %v2755_v11, 6 }
 0x245   :  { %11034 = vmatprep.subr.bf16.mxu1 %v13155_v22  ;;  %v2778_v13 = vshll.u32 %v13234_v12, 16  ;;  %v2787_v1 = vshll.u32 %v13075_v24, 16 }
 0x246   :  { %v2342_v0 = vsel %vm13042_vm15, %v2340_v63, %v2341_v49  ;;  %v2761_v63 = vshrl.u32 %v13072_v62, 16  ;;  %v2754_v62 = vrot.slane %v2752_v27, 5  ;;  %v2722_v27 = vrot.slane %v2721_v42, 4 }
 0x247   :  { %10971 = vmatmul.mubr.bf16.gmra.mrb[32].mxu1 %v9977_v36  ;;  %v2347_v36 = vrot.slane %v2345_v39, 4  ;;  %v9982_v49 = vcombine.low %v13190_v5, %v2342_v0  ;;  %v2748_v5 = vor.u32 %v2747_v57, %v2746_v44  ;;  %v2766_v0 = vrot.slane %v2764_v16, 6 }
 0x248   :  { %10974 = vmatprep.mubr.bf16.mxu1 %v9978_v53  ;;  %v15704_v53 = vld [vmem:[#allocation22_spill] sm:$0xff]  ;;  %v2763_v20 = vrot.slane %v2761_v63, 5  ;;  %v2758_v51 = vor.u32 %v2757_v35, %v2754_v62 }
 0x249   :  { %v2724_v14 = vrot.slane %v15704_v53, 6  ;;  %v2349_v10 = vsel %vm13042_vm15, %v2347_v36, %v2348_v7  ;;  %v13242_v7 = vld [vmem:[#allocation2 + $0x38] sm:$0x3]  ;;  %v15710_v36 = vld [vmem:[#allocation27_spill] sm:$0xff]  ;;  %v2750_v16 = vrot.slane %v2748_v5, 4 }
 0x24a   :  { %v2769_v31 = vrot.slane %v15710_v36, 5  ;;  %v2798_v44 = vshrl.u32 %v13242_v7, 16  ;;  %v2801_v57 = vshll.u32 %v13242_v7, 16  ;;  %v2767_v3 = vor.u32 %v2766_v0, %v2763_v20  ;;  %v13269_v35 = vld [vmem:[#allocation2 + $0x44] sm:$0x3]  ;;  %v15714_v20 = vld [vmem:[#allocation31_spill] sm:$0xff] }
 0x24b   :  { %v2725_v19 = vor.u32 %v2724_v14, %v2723_v45  ;;  %v15711_v45 = vld [vmem:[#allocation26_spill] sm:$0xff]  ;;  %v2777_v36 = vrot.slane %v2775_v54, 5  ;;  %v2815_v0 = vrot.slane %v15714_v20, 5 }
 0x24c   :  { %v2770_v14 = vrot.slane %v15711_v45, 6  ;;  %v2800_v53 = vrot.slane %v2798_v44, 5  ;;  %v2803_v59 = vrot.slane %v2801_v57, 6  ;;  %v13267_v62 = vrot.slane %v2767_v3, 4 }
 0x24d   :  { %v2727_v33 = vrot.slane %v2725_v19, 4 }
 0x24e   :  { %v13254_v45 = vor.u32 %v2770_v14, %v2769_v31  ;;  %v15715_v31 = vld [vmem:[#allocation30_spill] sm:$0xff]  ;;  %v2804_v14 = vor.u32 %v2803_v59, %v2800_v53  ;;  %v2830_v53 = vshrl.u32 %v13093_v25, 16 }
 0x24f   :  { %10975 = vmatmul.mubr.bf16.gmra.mrb[36].mxu1 %v9979_v46  ;;  %v13229_v46 = vsel %vm13042_vm15, %v9967_v6, %v2345_v39  ;;  %v2734_v6 = vrot.slane %v2732_v18, 6  ;;  %v2744_v39 = vor.u32 %v2743_v40, %v2740_v37  ;;  %v15713_v37 = vld [vmem:[#allocation28_spill] sm:$0xff] }
 0x250   :  { %10978 = vmatprep.mubr.bf16.mxu1 %v9980_v2  ;;  %v2713_v2 = vsel %vm13217_vm4, %v2704_v50, %v2712_v8  ;;  %v2784_v50 = vshrl.u32 %v13075_v24, 16  ;;  %v15712_v8 = vld [vmem:[#allocation29_spill] sm:$0xff]  ;;  %v2793_v40 = vrot.slane %v15713_v37, 6  ;;  %v2780_v24 = vrot.slane %v2778_v13, 6 }
 0x251   :  { %v2792_v18 = vrot.slane %v15712_v8, 5  ;;  %v2735_v11 = vor.u32 %v2734_v6, %v2731_v41  ;;  %v2745_v63 = vrot.slane %v2744_v39, 4  ;;  %v2789_v8 = vrot.slane %v2787_v1, 6  ;;  %v15716_v1 = vld [vmem:[#allocation33_spill] sm:$0xff] }
 0x252   :  { %v2786_v48 = vrot.slane %v2784_v50, 5  ;;  %v2807_v37 = vshrl.u32 %v13090_v55, 16  ;;  %v9983_v42 = vcombine.low %v13229_v46, %v2349_v10  ;;  %v9992_v41 = vcombine.low %v2703_v9, %v2713_v2 }
 0x253   :  { %v13257_v47 = vor.u32 %v2793_v40, %v2792_v18  ;;  %v2736_v6 = vsel %vm13217_vm4, %v2727_v33, %v2735_v11  ;;  %v2759_v39 = vsel %vm13217_vm4, %v2750_v16, %v2758_v51  ;;  %v2749_v46 = vsel %vm13217_vm4, %v2745_v63, %v2748_v5  ;;  %v13281_v51 = vld [vmem:[#allocation2 + $0x50] sm:$0x3]  ;;  %v13303_v16 = vld [vmem:[#allocation2 + $0x5c] sm:$0x3] }
 0x254   :  { %v2773_v10 = vrot.slane %v13254_v45, 4  ;;  %v2790_v9 = vor.u32 %v2789_v8, %v2786_v48  ;;  %v13277_v54 = vrot.slane %v2807_v37, 5  ;;  %v9994_v13 = vcombine.low %v2749_v46, %v2759_v39  ;;  %v15717_v18 = vld [vmem:[#allocation32_spill] sm:$0xff]  ;;  %v11996_v39 = vld [vmem:[#allocation8 + $0x108] sm:$0xff]  }
 0x255   :  { %v2796_v2 = vrot.slane %v13257_v47, 4  ;;  %v2821_v50 = vshrl.u32 %v13269_v35, 16  ;;  %v2824_v5 = vshll.u32 %v13269_v35, 16  ;;  %v2772_v48 = vsel %vm13217_vm4, %v13267_v62, %v13254_v45 }
 0x256   :  { %v2838_v8 = vrot.slane %v15716_v1, 5  ;;  %v2839_v37 = vrot.slane %v15717_v18, 6  ;;  %v2844_v40 = vshrl.u32 %v13281_v51, 16  ;;  %v2847_v44 = vshll.u32 %v13281_v51, 16 }
 0x257   :  { %10979 = vmatmul.mubr.bf16.gmra.mrb[40].mxu1 %v9981_v15  ;;  %v2810_v15 = vshll.u32 %v13090_v55, 16  ;;  %v2816_v55 = vrot.slane %v15715_v31, 6  ;;  %v2805_v45 = vsel %vm13217_vm4, %v2796_v2, %v2804_v14  ;;  %v2823_v63 = vrot.slane %v2821_v50, 5  ;;  %v15719_v2 = vld [vmem:[#allocation34_spill] sm:$0xff] }
 0x258   :  { %10982 = vmatprep.mubr.bf16.mxu1 %v9982_v49  ;;  %v2726_v49 = vsel %vm13217_vm4, %v2722_v27, %v2725_v19  ;;  %v2781_v19 = vor.u32 %v2780_v24, %v2777_v36  ;;  %v2833_v36 = vshll.u32 %v13093_v25, 16  ;;  %v2791_v27 = vrot.slane %v2790_v9, 4 }
 0x259   :  { %v13279_v3 = vrot.slane %v2810_v15, 6  ;;  %v9993_v33 = vcombine.low %v2726_v49, %v2736_v6  ;;  %v13289_v59 = vor.u32 %v2816_v55, %v2815_v0  ;;  %v2826_v25 = vrot.slane %v2824_v5, 6  ;;  %v15720_v5 = vld [vmem:[#allocation37_spill] sm:$0xff] }
 0x25a   :  { %v2782_v57 = vsel %vm13217_vm4, %v2773_v10, %v2781_v19  ;;  %v2876_v24 = vshrl.u32 %v13110_v17, 16  ;;  %v2879_v15 = vshll.u32 %v13110_v17, 16  ;;  %v2835_v49 = vrot.slane %v2833_v36, 6  ;;  %v13312_v10 = vld [vmem:[#allocation2 + $0x68] sm:$0x3]  ;;  %v15721_v36 = vld [vmem:[#allocation36_spill] sm:$0xff] }
 0x25b   :  { %v2813_v11 = vor.u32 %v13279_v3, %v13277_v54  ;;  %v2853_v6 = vshrl.u32 %v13107_v4, 16  ;;  %v13309_v62 = vor.u32 %v2839_v37, %v2838_v8  ;;  %v2846_v0 = vrot.slane %v2844_v40, 5  ;;  %v15718_v19 = vld [vmem:[#allocation35_spill] sm:$0xff] }
 0x25c   :  { %v2849_v55 = vrot.slane %v2847_v44, 6  ;;  %v2856_v46 = vshll.u32 %v13107_v4, 16  ;;  %v2861_v9 = vrot.slane %v15718_v19, 5  ;;  %v2862_v14 = vrot.slane %v15719_v2, 6  ;;  %v11997_v2 = vld [vmem:[#allocation8 + $0x110] sm:$0xff]  }
 0x25d   :  { %v2867_v17 = vshrl.u32 %v13303_v16, 16  ;;  %v2870_v54 = vshll.u32 %v13303_v16, 16  ;;  %v2878_v3 = vrot.slane %v2876_v24, 5  ;;  %v2881_v50 = vrot.slane %v2879_v15, 6 }
 0x25e   :  { %v2885_v8 = vrot.slane %v15721_v36, 6  ;;  %v2827_v4 = vor.u32 %v2826_v25, %v2823_v63  ;;  %v2890_v40 = vshrl.u32 %v13312_v10, 16  ;;  %v2893_v44 = vshll.u32 %v13312_v10, 16 }
 0x25f   :  { %10983 = vmatmul.mubr.bf16.gmra.mrb[44].mxu1 %v9983_v42  ;;  %v2819_v42 = vrot.slane %v13289_v59, 4  ;;  %v2842_v19 = vrot.slane %v13309_v62, 4  ;;  %v2855_v24 = vrot.slane %v2853_v6, 5  ;;  %v2858_v15 = vrot.slane %v2856_v46, 6 }
 0x260   :  { %11002 = vmatprep.mubr.bf16.mxu1 %v9992_v41  ;;  %v2832_v41 = vrot.slane %v2830_v53, 5  ;;  %v2884_v53 = vrot.slane %v15720_v5, 5  ;;  %v13324_v18 = vor.u32 %v2862_v14, %v2861_v9  ;;  %v2869_v5 = vrot.slane %v2867_v17, 5  ;;  %v13335_v17 = vld [vmem:[#allocation2 + $0x74] sm:$0x3] }
 0x261   :  { %v2872_v36 = vrot.slane %v2870_v54, 6  ;;  %v2882_v63 = vor.u32 %v2881_v50, %v2878_v3  ;;  %v2892_v6 = vrot.slane %v2890_v40, 5  ;;  %v2828_v9 = vsel %vm13217_vm4, %v2819_v42, %v2827_v4  ;;  %v15722_v3 = vld [vmem:[#allocation39_spill] sm:$0xff] }
 0x262   :  { %v2836_v37 = vor.u32 %v2835_v49, %v2832_v41  ;;  %v13327_v25 = vor.u32 %v2885_v8, %v2884_v53  ;;  %v2902_v41 = vshll.u32 %v13117_v38, 16  ;;  %v2795_v49 = vsel %vm13217_vm4, %v2791_v27, %v13257_v47  ;;  %v15723_v53 = vld [vmem:[#allocation38_spill] sm:$0xff] }
 0x263   :  { %v9996_v46 = vcombine.low %v2795_v49, %v2805_v45  ;;  %v2873_v54 = vor.u32 %v2872_v36, %v2869_v5  ;;  %v2883_v27 = vrot.slane %v2882_v63, 4  ;;  %v2907_v50 = vrot.slane %v15722_v3, 5 }
 0x264   :  { %v2837_v14 = vrot.slane %v2836_v37, 4  ;;  %v2888_v45 = vrot.slane %v13327_v25, 4  ;;  %v2908_v8 = vrot.slane %v15723_v53, 6  ;;  %v2913_v4 = vshrl.u32 %v13335_v17, 16  ;;  %v11999_v37 = vld [vmem:[#allocation8 + $0x120] sm:$0xff]  }
 0x265   :  { %v2922_v40 = vshrl.u32 %v13119_v60, 16 }
 0x266   :  { %v2841_v36 = vsel %vm13217_vm4, %v2837_v14, %v13309_v62  ;;  %v13362_v63 = vor.u32 %v2908_v8, %v2907_v50  ;;  %v12000_v14 = vld [vmem:[#allocation8 + $0x128] sm:$0xff]   ;;  %v2971_v50 = vshll.u32 %v13145_v26, 16 }
 0x267   :  { %11003 = vmatmul.mubr.bf16.vlgmr.msra.gmra.mrb[16].mxu1 %v9993_v33  ;;  %v2850_v33 = vor.u32 %v2849_v55, %v2846_v0  ;;  %v2814_v0 = vrot.slane %v2813_v11, 4  ;;  %v2895_v55 = vrot.slane %v2893_v44, 6  ;;  %v2904_v11 = vrot.slane %v2902_v41, 6 }
 0x268   :  { %11035 = vmatpush3.bf16.msra.mxu1 %v13155_v22  ;;  %11006 = vmatprep.mubr.bf16.mxu1 %v9994_v13  ;;  %v2899_v22 = vshrl.u32 %v13117_v38, 16  ;;  %v9995_v13 = vcombine.low %v2772_v48, %v2782_v57  ;;  %v11998_v48 = vld [vmem:[#allocation8 + $0x118] sm:$0xff]   ;;  %v2859_v57 = vor.u32 %v2858_v15, %v2855_v24  ;;  %v2924_v49 = vrot.slane %v2922_v40, 5 }
 0x269   :  { %11036 = vmatprep.subr.bf16.mxu1 %v11996_v39  ;;  %v2851_v38 = vsel %vm13217_vm4, %v2842_v19, %v2850_v33  ;;  %v2896_v42 = vor.u32 %v2895_v55, %v2892_v6  ;;  %v2916_v19 = vshll.u32 %v13335_v17, 16  ;;  %v2818_v5 = vsel %vm13217_vm4, %v2814_v0, %v13289_v59  ;;  %v15724_v6 = vld [vmem:[#allocation42_spill] sm:$0xff] }
 0x26a   :  { %v2901_v47 = vrot.slane %v2899_v22, 5  ;;  %v9997_v44 = vcombine.low %v2818_v5, %v2828_v9  ;;  %v9998_v33 = vcombine.low %v2841_v36, %v2851_v38  ;;  %v2860_v24 = vrot.slane %v2859_v57, 4 }
 0x26b   :  { %v2887_v59 = vsel %vm13217_vm4, %v2883_v27, %v13327_v25  ;;  %v2897_v62 = vsel %vm13217_vm4, %v2888_v45, %v2896_v42  ;;  %v2918_v41 = vrot.slane %v2916_v19, 6  ;;  %v2930_v55 = vrot.slane %v15724_v6, 5  ;;  %v13374_v45 = vld [vmem:[#allocation2 + $0x8c] sm:$0x3]  ;;  %v12001_v19 = vld [vmem:[#allocation8 + $0x130] sm:$0xff]  }
 0x26c   :  { %11037 = vmatpush3.bf16.msra.mxu1 %v11996_v39  ;;  %v2865_v39 = vrot.slane %v13324_v18, 4  ;;  %v2905_v22 = vor.u32 %v2904_v11, %v2901_v47  ;;  %v2948_v38 = vshll.u32 %v13135_v21, 16  ;;  %v2911_v47 = vrot.slane %v13362_v63, 4 }
 0x26d   :  { %11038 = vmatprep.subr.bf16.mxu1 %v11997_v2  ;;  %v2968_v11 = vshrl.u32 %v13145_v26, 16  ;;  %v10000_v8 = vcombine.low %v2887_v59, %v2897_v62  ;;  %v2962_v26 = vshll.u32 %v13374_v45, 16 }
 0x26e   :  { %v2874_v15 = vsel %vm13217_vm4, %v2865_v39, %v2873_v54  ;;  %v2864_v39 = vsel %vm13217_vm4, %v2860_v24, %v13324_v18  ;;  %v2906_v54 = vrot.slane %v2905_v22, 4  ;;  %v2950_v40 = vrot.slane %v2948_v38, 6 }
 0x26f   :  { %11007 = vmatmul.mubr.bf16.gmra.mrb[20].mxu1 %v9995_v13  ;;  %v13358_v13 = vld [vmem:[#allocation2 + $0x80] sm:$0x3]  ;;  %v9999_v42 = vcombine.low %v2864_v39, %v2874_v15  ;;  %v2959_v22 = vshrl.u32 %v13374_v45, 16  ;;  %v2970_v62 = vrot.slane %v2968_v11, 5 }
 0x270   :  { %11010 = vmatprep.mubr.bf16.mxu1 %v9996_v46  ;;  %11039 = vmatpush3.bf16.msra.mxu1 %v11997_v2  ;;  %v2925_v2 = vshll.u32 %v13119_v60, 16  ;;  %v2915_v60 = vrot.slane %v2913_v4, 5  ;;  %v15725_v46 = vld [vmem:[#allocation41_spill] sm:$0xff]  ;;  %v2936_v25 = vshrl.u32 %v13358_v13, 16  ;;  %v2939_v57 = vshll.u32 %v13358_v13, 16 }
 0x271   :  { %11040 = vmatprep.subr.bf16.mxu1 %v11998_v48  ;;  %v2931_v9 = vrot.slane %v15725_v46, 6  ;;  %v2910_v15 = vsel %vm13217_vm4, %v2906_v54, %v13362_v63 }
 0x272   :  { %v2927_v0 = vrot.slane %v2925_v2, 6  ;;  %v2919_v27 = vor.u32 %v2918_v41, %v2915_v60  ;;  %v2938_v18 = vrot.slane %v2936_v25, 5  ;;  %v2941_v5 = vrot.slane %v2939_v57, 6  ;;  %v13380_v2 = vld [vmem:[#allocation2 + $0x98] sm:$0x3]  ;;  %v15728_v41 = vld [vmem:[#allocation48_spill] sm:$0xff] }
 0x273   :  { %v13378_v4 = vor.u32 %v2931_v9, %v2930_v55  ;;  %v2973_v60 = vrot.slane %v2971_v50, 6  ;;  %v2982_v9 = vshrl.u32 %v13380_v2, 16  ;;  %v2985_v25 = vshll.u32 %v13380_v2, 16  ;;  %v12002_v57 = vld [vmem:[#allocation8 + $0x138] sm:$0xff]  }
 0x274   :  { %11041 = vmatpush3.bf16.msra.mxu1 %v11998_v48  ;;  %v2945_v48 = vshrl.u32 %v13135_v21, 16  ;;  %v2928_v21 = vor.u32 %v2927_v0, %v2924_v49  ;;  %v2920_v59 = vsel %vm13217_vm4, %v2911_v47, %v2919_v27  ;;  %v2976_v49 = vrot.slane %v15728_v41, 5  ;;  %v15729_v0 = vld [vmem:[#allocation47_spill] sm:$0xff] }
 0x275   :  { %11042 = vmatprep.subr.bf16.mxu1 %v11999_v37  ;;  %v2977_v55 = vrot.slane %v15729_v0, 6  ;;  %v2934_v38 = vrot.slane %v13378_v4, 4  ;;  %v2942_v63 = vor.u32 %v2941_v5, %v2938_v18  ;;  %v2964_v47 = vrot.slane %v2962_v26, 6  ;;  %v13403_v5 = vld [vmem:[#allocation2 + $0xa4] sm:$0x3]  ;;  %v15730_v26 = vld [vmem:[#allocation51_spill] sm:$0xff] }
 0x276   :  { %v2947_v36 = vrot.slane %v2945_v48, 5  ;;  %v2929_v48 = vrot.slane %v2928_v21, 4  ;;  %v2991_v27 = vshrl.u32 %v13151_v28, 16  ;;  %v2974_v11 = vor.u32 %v2973_v60, %v2970_v62  ;;  %v13398_v21 = vld [vmem:[#allocation8 + $0x140] sm:$0xff]  }
 0x277   :  { %11011 = vmatmul.mubr.bf16.gmra.mrb[24].mxu1 %v9997_v44  ;;  %v2994_v50 = vshll.u32 %v13151_v28, 16  ;;  %v10001_v0 = vcombine.low %v2910_v15, %v2920_v59  ;;  %v2978_v41 = vor.u32 %v2977_v55, %v2976_v49  ;;  %v2943_v28 = vsel %vm13217_vm4, %v2934_v38, %v2942_v63  ;;  %v15731_v59 = vld [vmem:[#allocation50_spill] sm:$0xff] }
 0x278   :  { %11014 = vmatprep.mubr.bf16.mxu1 %v9998_v33  ;;  %11043 = vmatpush3.bf16.msra.mxu1 %v11999_v37  ;;  %v15726_v37 = vld [vmem:[#allocation45_spill] sm:$0xff]  ;;  %v15727_v33 = vld [vmem:[#allocation44_spill] sm:$0xff]  ;;  %v2951_v39 = vor.u32 %v2950_v40, %v2947_v36  ;;  %v3017_v36 = vshll.u32 %v13161_v61, 16  ;;  %v2999_v15 = vrot.slane %v15730_v26, 5  ;;  %v3000_v62 = vrot.slane %v15731_v59, 6 }
 0x279   :  { %11044 = vmatprep.subr.bf16.mxu1 %v12000_v14  ;;  %v2953_v44 = vrot.slane %v15726_v37, 5  ;;  %v2954_v24 = vrot.slane %v15727_v33, 6  ;;  %v2984_v33 = vrot.slane %v2982_v9, 5  ;;  %v2987_v37 = vrot.slane %v2985_v25, 6 }
 0x27a   :  { %v2952_v18 = vrot.slane %v2951_v39, 4  ;;  %v2980_v60 = vrot.slane %v2978_v41, 4  ;;  %v3005_v55 = vshrl.u32 %v13403_v5, 16  ;;  %v3019_v38 = vrot.slane %v3017_v36, 6  ;;  %v15732_v39 = vld [vmem:[#allocation53_spill] sm:$0xff] }
 0x27b   :  { %v2955_v54 = vor.u32 %v2954_v24, %v2953_v44  ;;  %v2993_v44 = vrot.slane %v2991_v27, 5  ;;  %v2975_v24 = vrot.slane %v2974_v11, 4  ;;  %v2988_v49 = vor.u32 %v2987_v37, %v2984_v33 }
 0x27c   :  { %11045 = vmatpush3.bf16.msra.mxu1 %v12000_v14  ;;  %v2961_v14 = vrot.slane %v2959_v22, 5  ;;  %v2996_v22 = vrot.slane %v2994_v50, 6  ;;  %v3022_v63 = vrot.slane %v12978_v29, 5  ;;  %v3007_v11 = vrot.slane %v3005_v55, 5 }
 0x27d   :  { %11046 = vmatprep.subr.bf16.mxu1 %v12001_v19  ;;  %v2956_v25 = vsel %vm13217_vm4, %v2952_v18, %v2955_v54  ;;  %v3040_v18 = vshll.u32 %v13183_v52, 16 }
 0x27e   :  { %v2965_v40 = vor.u32 %v2964_v47, %v2961_v14  ;;  %v3023_v14 = vrot.slane %v15732_v39, 6  ;;  %v2979_v47 = vsel %vm13217_vm4, %v2975_v24, %v2978_v41  ;;  %v2997_v27 = vor.u32 %v2996_v22, %v2993_v44  ;;  %v13430_v39 = vld [vmem:[#allocation2 + $0xbc] sm:$0x3] }
 0x27f   :  { %11015 = vmatmul.mubr.bf16.gmra.mrb[28].mxu1 %v9999_v42  ;;  %v2933_v42 = vsel %vm13217_vm4, %v2929_v48, %v13378_v4  ;;  %v13411_v4 = vld [vmem:[#allocation2 + $0xb0] sm:$0x3]  ;;  %v3051_v55 = vshrl.u32 %v13430_v39, 16 }
 0x280   :  { %11018 = vmatprep.mubr.bf16.mxu1 %v10000_v8  ;;  %11047 = vmatpush3.bf16.msra.mxu1 %v12001_v19  ;;  %v3014_v8 = vshrl.u32 %v13161_v61, 16  ;;  %v2957_v19 = vrot.slane %v2955_v54, 4  ;;  %v3008_v61 = vshll.u32 %v13403_v5, 16  ;;  %v10002_v9 = vcombine.low %v2933_v42, %v2943_v28 }
 0x281   :  { %11048 = vmatprep.subr.bf16.mxu1 %v12002_v57  ;;  %v3031_v37 = vshll.u32 %v13411_v4, 16  ;;  %v3001_v54 = vor.u32 %v3000_v62, %v2999_v15  ;;  %v3037_v42 = vshrl.u32 %v13183_v52, 16  ;;  %v3024_v36 = vor.u32 %v3023_v14, %v3022_v63 }
 0x282   :  { %v3016_v48 = vrot.slane %v3014_v8, 5  ;;  %v2966_v33 = vsel %vm13217_vm4, %v2957_v19, %v2965_v40  ;;  %v3010_v50 = vrot.slane %v3008_v61, 6  ;;  %v2998_v41 = vrot.slane %v2997_v27, 4 }
 0x283   :  { %v10003_v19 = vcombine.low %v2956_v25, %v2966_v33  ;;  %v3003_v44 = vrot.slane %v3001_v54, 4  ;;  %v3039_v22 = vrot.slane %v3037_v42, 5  ;;  %v3045_v15 = vrot.slane %v12998_v34, 5 }
 0x284   :  { %11049 = vmatpush3.bf16.msra.mxu1 %v12002_v57  ;;  %v3028_v57 = vshrl.u32 %v13411_v4, 16  ;;  %v3020_v8 = vor.u32 %v3019_v38, %v3016_v48  ;;  %v3011_v24 = vor.u32 %v3010_v50, %v3007_v11  ;;  %v3042_v62 = vrot.slane %v3040_v18, 6 }
 0x285   :  { %11082 = vmatprep.subr.bf16.mxu1 %v13398_v21  ;;  %v3054_v52 = vshll.u32 %v13430_v39, 16  ;;  %v3026_v48 = vrot.slane %v3024_v36, 4  ;;  %v3002_v25 = vsel %vm13217_vm4, %v2998_v41, %v3001_v54 }
 0x286   :  { %v3030_v28 = vrot.slane %v3028_v57, 5  ;;  %v3021_v61 = vrot.slane %v3020_v8, 4  ;;  %v3012_v63 = vsel %vm13217_vm4, %v3003_v44, %v3011_v24  ;;  %v3043_v14 = vor.u32 %v3042_v62, %v3039_v22  ;;  %v12097_v44 = vld [vmem:[#allocation2 + $0x10] sm:$0xf] }
 0x287   :  { %11019 = vmatmul.mubr.bf16.gmra.mrb[32].mxu1 %v10001_v0  ;;  %v2989_v0 = vsel %vm13217_vm4, %v2980_v60, %v2988_v49  ;;  %v15733_v60 = vld [vmem:[#allocation54_spill] sm:$0xff]  ;;  %v3056_v33 = vrot.slane %v3054_v52, 6  ;;  %v10005_v50 = vcombine.low %v3002_v25, %v3012_v63  ;;  %v3440_v24 = vrot.slane %v12097_v44, 6  ;;  %v13482_v44 = vld [vmem:[#allocation2 + $0x30] sm:$0xc] }
 0x288   :  { %11022 = vmatprep.mubr.bf16.mxu1 %v10002_v9  ;;  %v3033_v9 = vrot.slane %v3031_v37, 6  ;;  %v10004_v40 = vcombine.low %v2979_v47, %v2989_v0  ;;  %v3046_v49 = vrot.slane %v15733_v60, 6  ;;  %v3053_v37 = vrot.slane %v3051_v55, 5  ;;  %v12096_v0 = vld [vmem:[#allocation2 + $0x4] sm:$0xf] }
 0x289   :  { %v3025_v47 = vsel %vm13217_vm4, %v3021_v61, %v3024_v36  ;;  %v3433_v11 = vrot.slane %v12096_v0, 6  ;;  %v3044_v18 = vrot.slane %v3043_v14, 4  ;;  %v15734_v36 = vmov 0  ;;  %v13465_v14 = vld [vmem:[#allocation2 + $0x18] sm:$0xc] }
 0x28a   :  { %v3034_v38 = vor.u32 %v3033_v9, %v3030_v28  ;;  %v3047_v57 = vor.u32 %v3046_v49, %v3045_v15  ;;  %v3057_v54 = vor.u32 %v3056_v33, %v3053_v37  ;;  %v3436_v9 = vrot.slane %v13163_v56, 6  ;;  %v12098_v15 = vld [vmem:[#allocation2 + $0x1c] sm:$0xf]  ;;  %v12099_v33 = vld [vmem:[#allocation2 + $0x28] sm:$0xf] }
 0x28b   :  { %v3435_v28 = vrot.slane %v3433_v11, 4  ;;  %v15735_v36 = vsel %vm13448_vm6, 4294967295, %v15734_v36  ;;  %v3447_v62 = vrot.slane %v12098_v15, 6  ;;  %v3442_v61 = vrot.slane %v3440_v24, 4  ;;  %v12100_v0 = vld [vmem:[#allocation2 + $0x34] sm:$0xf] }
 0x28c   :  { %v3035_v27 = vsel %vm13217_vm4, %v3026_v48, %v3034_v38  ;;  %v3049_v8 = vrot.slane %v3047_v57, 4  ;;  %15736 = vst [vmem:[#allocation43_spill] sm:$0xff] %v15735_v36  ;;  %v3443_v48 = vrot.slane %v13199_v32, 6  ;;  %v13462_v38 = vld [vmem:[#allocation2 + $0xc] sm:$0xc]  ;;  %v3450_v63 = vrot.slane %v13208_v23, 6 }
 0x28d   :  { %v10006_v42 = vcombine.low %v3025_v47, %v3035_v27  ;;  %v3437_v56 = vsel %vm13448_vm6, %v3435_v28, %v3436_v9  ;;  %v3449_v25 = vrot.slane %v3447_v62, 4  ;;  %v3454_v47 = vrot.slane %v12099_v33, 6  ;;  %v13478_v9 = vld [vmem:[#allocation2 + $0x24] sm:$0xc]  ;;  %v13487_v15 = vld [vmem:[#allocation2 + $0x40] sm:$0xf] }
 0x28e   :  { %v3058_v41 = vsel %vm13217_vm4, %v3049_v8, %v3057_v54  ;;  %v3444_v37 = vsel %vm13448_vm6, %v3442_v61, %v3443_v48  ;;  %v10018_v27 = vrot.slane %v13465_v14, 10  ;;  %v3457_v28 = vrot.slane %v13234_v12, 6  ;;  %15737 = vst [vmem:[#allocation46_spill] sm:$0xff] %v13487_v15  ;;  %v12006_v48 = vld [vmem:[#allocation8 + $0x158] sm:$0xff]  }
 0x28f   :  { %11023 = vmatmul.mubr.bf16.gmra.mrb[36].mxu1 %v10003_v19  ;;  %v13445_v19 = vld [vmem:[#allocation2] sm:$0xc]  ;;  %v3451_v32 = vsel %vm13448_vm6, %v3449_v25, %v3450_v63  ;;  %v3456_v54 = vrot.slane %v3454_v47, 4  ;;  %v3468_v12 = vrot.slane %v13487_v15, 6 }
 0x290   :  { %11026 = vmatprep.mubr.bf16.mxu1 %v10004_v40  ;;  %v3048_v40 = vsel %vm13217_vm4, %v3044_v18, %v3047_v57  ;;  %v10016_v22 = vrot.slane %v13445_v19, 10  ;;  %v10017_v57 = vrot.slane %v13462_v38, 10  ;;  %v12004_v18 = vld [vmem:[#allocation8 + $0x148] sm:$0xff]  }
 0x291   :  { %v10007_v49 = vcombine.low %v3048_v40, %v3058_v41  ;;  %v3464_v41 = vrot.slane %v13242_v7, 6  ;;  %v3470_v63 = vrot.slane %v3468_v12, 4 }
 0x292   :  { %v3434_v55 = vsel %vm13448_vm6, %v10016_v22, %v3433_v11  ;;  %v3461_v11 = vrot.slane %v12100_v0, 6  ;;  %v3441_v23 = vsel %vm13448_vm6, %v10017_v57, %v3440_v24  ;;  %v12005_v24 = vld [vmem:[#allocation8 + $0x150] sm:$0xff]   ;;  %v10019_v22 = vrot.slane %v13478_v9, 10 }
 0x293   :  { %v10032_v52 = vcombine.low %v3434_v55, %v3437_v56  ;;  %v3458_v56 = vsel %vm13448_vm6, %v3456_v54, %v3457_v28  ;;  %v3471_v57 = vrot.slane %v13269_v35, 6 }
 0x294   :  { %v3463_v40 = vrot.slane %v3461_v11, 4  ;;  %v3455_v55 = vsel %vm13448_vm6, %v10019_v22, %v3454_v47  ;;  %v13504_v47 = vld [vmem:[#allocation2 + $0x48] sm:$0xc]  ;;  %v13524_v22 = vld [vmem:[#allocation2 + $0x54] sm:$0xc] }
 0x296   :  { %v3465_v7 = vsel %vm13448_vm6, %v3463_v40, %v3464_v41  ;;  %v13522_v40 = vld [vmem:[#allocation2 + $0x60] sm:$0xc]  ;;  %v12008_v41 = vld [vmem:[#allocation8 + $0x168] sm:$0xff]  }
 0x297   :  { %11027 = vmatmul.mubr.bf16.gmra.mrb[40].mxu1 %v10005_v50  ;;  %v10033_v50 = vcombine.low %v3441_v23, %v3444_v37  ;;  %v13501_v37 = vld [vmem:[#allocation2 + $0x3c] sm:$0xc]  ;;  %v13509_v23 = vld [vmem:[#allocation2 + $0x58] sm:$0xf] }
 0x298   :  { %11030 = vmatprep.mubr.bf16.mxu1 %v10006_v42  ;;  %v3448_v42 = vsel %vm13448_vm6, %v10018_v27, %v3447_v62  ;;  %v10020_v62 = vrot.slane %v13482_v44, 10  ;;  %v3478_v27 = vrot.slane %v13281_v51, 6  ;;  %v10021_v0 = vrot.slane %v13501_v37, 10  ;;  %15739 = vst [vmem:[#allocation19_spill] sm:$0xff] %v13509_v23 }
 0x299   :  { %v10034_v8 = vcombine.low %v3448_v42, %v3451_v32  ;;  %v12007_v32 = vld [vmem:[#allocation8 + $0x160] sm:$0xff]   ;;  %v3482_v35 = vrot.slane %v13509_v23, 6 }
 0x29a   :  { %v3462_v61 = vsel %vm13448_vm6, %v10020_v62, %v3461_v11  ;;  %v3472_v11 = vsel %vm13448_vm6, %v3470_v63, %v3471_v57  ;;  %v13515_v42 = vld [vmem:[#allocation2 + $0x64] sm:$0xf]  ;;  %v3485_v62 = vrot.slane %v13303_v16, 6  ;;  %v13540_v57 = vld [vmem:[#allocation2 + $0x7c] sm:$0xf] }
 0x29b   :  { %v10036_v25 = vcombine.low %v3462_v61, %v3465_v7  ;;  %15740 = vst [vmem:[#allocation49_spill] sm:$0xff] %v13515_v42  ;;  %v10024_v7 = vrot.slane %v13522_v40, 10  ;;  %v10023_v61 = vrot.slane %v13524_v22, 10  ;;  %15742 = vst [vmem:[#allocation31_spill] sm:$0xff] %v13540_v57 }
 0x29f   :  { %11031 = vmatmul.mubr.bf16.gmra.mrb[44].mxu1 %v10007_v49 }
 0x2a0   :  { %11050 = vmatprep.mubr.bf16.mxu1 %v10032_v52  ;;  %v10035_v52 = vcombine.low %v3455_v55, %v3458_v56  ;;  %v3484_v56 = vrot.slane %v3482_v35, 4 }
 0x2a2   :  { %v3486_v16 = vsel %vm13448_vm6, %v3484_v56, %v3485_v62  ;;  %v13557_v56 = vld [vmem:[#allocation2 + $0x94] sm:$0xf]  ;;  %v12010_v62 = vld [vmem:[#allocation8 + $0x178] sm:$0xff]  }
 0x2a3   :  { %15744 = vst [vmem:[#allocation33_spill] sm:$0xff] %v13557_v56 }
 0x2a7   :  { %11051 = vmatmul.mubr.bf16.vlgmr.msra.gmra.mrb[16].mxu1 %v10033_v50  ;;  %v10022_v50 = vrot.slane %v13504_v47, 10 }
 0x2a8   :  { %11083 = vmatpush3.bf16.msra.mxu1 %v13398_v21  ;;  %11054 = vmatprep.mubr.bf16.mxu1 %v10034_v8  ;;  %v13493_v21 = vld [vmem:[#allocation2 + $0x4c] sm:$0xf]  ;;  %v3469_v8 = vsel %vm13448_vm6, %v10021_v0, %v3468_v12  ;;  %v3492_v12 = vrot.slane %v13312_v10, 6  ;;  %v3499_v0 = vrot.slane %v13335_v17, 6  ;;  %v3517_v17 = vrot.slane %v13557_v56, 6 }
 0x2a9   :  { %11084 = vmatprep.subr.bf16.mxu1 %v12004_v18  ;;  %15738 = vst [vmem:[#allocation20_spill] sm:$0xff] %v13493_v21  ;;  %v3475_v49 = vrot.slane %v13493_v21, 6  ;;  %v10037_v54 = vcombine.low %v3469_v8, %v3472_v11  ;;  %v13546_v11 = vld [vmem:[#allocation2 + $0x88] sm:$0xf]  ;;  %v15754_v21 = vld [vmem:[#allocation24_spill] sm:$0xff] }
 0x2aa   :  { %15743 = vst [vmem:[#allocation30_spill] sm:$0xff] %v13546_v11  ;;  %v3937_v15 = vrot.slane %v15754_v21, 7 }
 0x2ab   :  { %v3477_v33 = vrot.slane %v3475_v49, 4  ;;  %v3476_v28 = vsel %vm13448_vm6, %v10022_v50, %v3475_v49  ;;  %v3510_v50 = vrot.slane %v13546_v11, 6 }
 0x2ac   :  { %11085 = vmatpush3.bf16.msra.mxu1 %v12004_v18  ;;  %v3489_v18 = vrot.slane %v13515_v42, 6  ;;  %v15752_v42 = vld [vmem:[#allocation22_spill] sm:$0xff] }
 0x2ad   :  { %11086 = vmatprep.subr.bf16.mxu1 %v12005_v24  ;;  %v3479_v51 = vsel %vm13448_vm6, %v3477_v33, %v3478_v27  ;;  %v3503_v33 = vrot.slane %v13540_v57, 6  ;;  %v3914_v23 = vrot.slane %v15752_v42, 7 }
 0x2ae   :  { %v3491_v55 = vrot.slane %v3489_v18, 4  ;;  %v3490_v63 = vsel %vm13448_vm6, %v10024_v7, %v3489_v18  ;;  %v13551_v18 = vld [vmem:[#allocation2 + $0x78] sm:$0xc] }
 0x2af   :  { %11055 = vmatmul.mubr.bf16.gmra.mrb[20].mxu1 %v10035_v52  ;;  %v13529_v52 = vld [vmem:[#allocation2 + $0x70] sm:$0xf] }
 0x2b0   :  { %11058 = vmatprep.mubr.bf16.mxu1 %v10036_v25  ;;  %11087 = vmatpush3.bf16.msra.mxu1 %v12005_v24  ;;  %v10038_v24 = vcombine.low %v3476_v28, %v3479_v51  ;;  %15741 = vst [vmem:[#allocation52_spill] sm:$0xff] %v13529_v52  ;;  %v3496_v49 = vrot.slane %v13529_v52, 6  ;;  %v12009_v25 = vld [vmem:[#allocation8 + $0x170] sm:$0xff]   ;;  %v3493_v27 = vsel %vm13448_vm6, %v3491_v55, %v3492_v12  ;;  %v3506_v28 = vrot.slane %v13358_v13, 6 }
 0x2b1   :  { %11088 = vmatprep.subr.bf16.mxu1 %v12006_v48  ;;  %v3483_v51 = vsel %vm13448_vm6, %v10023_v61, %v3482_v35  ;;  %v10040_v7 = vcombine.low %v3490_v63, %v3493_v27  ;;  %v3505_v55 = vrot.slane %v3503_v33, 4  ;;  %v13563_v12 = vld [vmem:[#allocation2 + $0x90] sm:$0xc]  ;;  %v3512_v61 = vrot.slane %v3510_v50, 4 }
 0x2b2   :  { %v10039_v8 = vcombine.low %v3483_v51, %v3486_v16  ;;  %v3513_v16 = vrot.slane %v13374_v45, 6  ;;  %v10028_v51 = vrot.slane %v13563_v12, 10  ;;  %v3882_v63 = vshrl.u32 %v13445_v19, 16 }
 0x2b3   :  { %v3520_v27 = vrot.slane %v13380_v2, 6  ;;  %v3507_v45 = vsel %vm13448_vm6, %v3505_v55, %v3506_v28  ;;  %v13594_v28 = vld [vmem:[#allocation2 + $0x9c] sm:$0xc] }
 0x2b4   :  { %11089 = vmatpush3.bf16.msra.mxu1 %v12006_v48  ;;  %v13533_v48 = vld [vmem:[#allocation2 + $0x6c] sm:$0xc]  ;;  %v13586_v2 = vsel %vm13448_vm6, %v10028_v51, %v3517_v17 }
 0x2b5   :  { %11090 = vmatprep.subr.bf16.mxu1 %v12007_v32  ;;  %v10025_v10 = vrot.slane %v13533_v48, 10 }
 0x2b7   :  { %11059 = vmatmul.mubr.bf16.gmra.mrb[24].mxu1 %v10037_v54  ;;  %v10026_v54 = vrot.slane %v13551_v18, 10  ;;  %v3497_v35 = vsel %vm13448_vm6, %v10025_v10, %v3496_v49  ;;  %v3519_v10 = vrot.slane %v3517_v17, 4 }
 0x2b8   :  { %11062 = vmatprep.mubr.bf16.mxu1 %v10038_v24  ;;  %11091 = vmatpush3.bf16.msra.mxu1 %v12007_v32  ;;  %v3498_v32 = vrot.slane %v3496_v49, 4  ;;  %v13555_v24 = vld [vmem:[#allocation2 + $0x84] sm:$0xc]  ;;  %v3885_v49 = vshll.u32 %v13445_v19, 16  ;;  %v3514_v19 = vsel %vm13448_vm6, %v3512_v61, %v3513_v16  ;;  %v10029_v61 = vrot.slane %v13594_v28, 10 }
 0x2b9   :  { %11092 = vmatprep.subr.bf16.mxu1 %v12008_v41  ;;  %v3521_v17 = vsel %vm13448_vm6, %v3519_v10, %v3520_v27  ;;  %v13601_v16 = vld [vmem:[#allocation2 + $0xa8] sm:$0xc]  ;;  %v3534_v10 = vrot.slane %v13411_v4, 6  ;;  %v13609_v27 = vld [vmem:[#allocation2 + $0xb8] sm:$0xf] }
 0x2ba   :  { %v3500_v13 = vsel %vm13448_vm6, %v3498_v32, %v3499_v0  ;;  %v3504_v32 = vsel %vm13448_vm6, %v10026_v54, %v3503_v33  ;;  %v13580_v0 = vld [vmem:[#allocation2 + $0x8] sm:$0x7]  ;;  %v13591_v33 = vld [vmem:[#allocation2 + $0xac] sm:$0xf]  ;;  %v3887_v55 = vrot.slane %v3885_v49, 7  ;;  %v3527_v49 = vrot.slane %v13403_v5, 6 }
 0x2bb   :  { %15745 = vst [vmem:[#allocation39_spill] sm:$0xff] %v13580_v0  ;;  %15747 = vst [vmem:[#allocation42_spill] sm:$0xff] %v13591_v33  ;;  %v3531_v54 = vrot.slane %v13591_v33, 6  ;;  %v3896_v51 = vshrl.u32 %v13580_v0, 16  ;;  %v3899_v33 = vshll.u32 %v13580_v0, 16  ;;  %v3538_v56 = vrot.slane %v13609_v27, 6 }
 0x2bc   :  { %11093 = vmatpush3.bf16.msra.mxu1 %v12008_v41  ;;  %v10027_v41 = vrot.slane %v13555_v24, 10  ;;  %15748 = vst [vmem:[#allocation41_spill] sm:$0xff] %v13609_v27  ;;  %v10044_v11 = vcombine.low %v13586_v2, %v3521_v17 }
 0x2bd   :  { %11094 = vmatprep.subr.bf16.mxu1 %v12009_v25  ;;  %v3901_v4 = vrot.slane %v3899_v33, 7 }
 0x2bf   :  { %11063 = vmatmul.mubr.bf16.gmra.mrb[28].mxu1 %v10039_v8  ;;  %v10041_v8 = vcombine.low %v3497_v35, %v3500_v13  ;;  %v3891_v13 = vrot.slane %v15700_v43, 7 }
 0x2c0   :  { %11066 = vmatprep.mubr.bf16.mxu1 %v10040_v7  ;;  %11095 = vmatpush3.bf16.msra.mxu1 %v12009_v25  ;;  %v3511_v25 = vsel %vm13448_vm6, %v10027_v41, %v3510_v50  ;;  %v13588_v7 = vld [vmem:[#allocation2 + $0xa0] sm:$0xf]  ;;  %v3884_v50 = vrot.slane %v3882_v63, 6  ;;  %v3890_v41 = vrot.slane %v15699_v30, 6  ;;  %v10030_v30 = vrot.slane %v13601_v16, 10 }
 0x2c1   :  { %11096 = vmatprep.subr.bf16.mxu1 %v12010_v62  ;;  %15746 = vst [vmem:[#allocation38_spill] sm:$0xff] %v13588_v7  ;;  %v3524_v35 = vrot.slane %v13588_v7, 6  ;;  %v10043_v63 = vcombine.low %v3511_v25, %v3514_v19  ;;  %v3533_v7 = vrot.slane %v3531_v54, 4  ;;  %v3908_v25 = vshll.u32 %v13462_v38, 16 }
 0x2c2   :  { %v3888_v57 = vor.u32 %v3887_v55, %v3884_v50  ;;  %v13613_v52 = vor.u32 %v3891_v13, %v3890_v41  ;;  %v13625_v19 = vsel %vm13448_vm6, %v10030_v30, %v3531_v54  ;;  %v13628_v50 = vld [vmem:[#allocation2 + $0x14] sm:$0x7]  ;;  %v3928_v55 = vshrl.u32 %v13465_v14, 16  ;;  %v13641_v30 = vld [vmem:[#allocation2 + $0x20] sm:$0x7] }
 0x2c3   :  { %v3526_v43 = vrot.slane %v3524_v35, 4  ;;  %v13618_v5 = vsel %vm13448_vm6, %v10029_v61, %v3524_v35  ;;  %15749 = vst [vmem:[#allocation51_spill] sm:$0xff] %v13628_v50  ;;  %v3931_v41 = vshll.u32 %v13465_v14, 16  ;;  %v3535_v33 = vsel %vm13448_vm6, %v3533_v7, %v3534_v10  ;;  %15751 = vst [vmem:[#allocation50_spill] sm:$0xff] %v13641_v30 }
 0x2c4   :  { %11097 = vmatpush3.bf16.msra.mxu1 %v12010_v62  ;;  %v10042_v62 = vcombine.low %v3504_v32, %v3507_v45  ;;  %v3905_v32 = vshrl.u32 %v13462_v38, 16  ;;  %v3898_v45 = vrot.slane %v3896_v51, 6  ;;  %v3540_v13 = vrot.slane %v3538_v56, 4  ;;  %v15750_v51 = vld [vmem:[#allocation23_spill] sm:$0xff] }
 0x2c5   :  { %11130 = vmatprep.subr.bf16.mxu1 %v13572_v58  ;;  %v3528_v35 = vsel %vm13448_vm6, %v3526_v43, %v3527_v49  ;;  %v3541_v38 = vrot.slane %v13430_v39, 6  ;;  %v13637_v17 = vrot.slane %v3888_v57, 4  ;;  %v3894_v54 = vrot.slane %v13613_v52, 4  ;;  %v15753_v39 = vld [vmem:[#allocation25_spill] sm:$0xff] }
 0x2c6   :  { %v3907_v61 = vrot.slane %v3905_v32, 6  ;;  %v3902_v27 = vor.u32 %v3901_v4, %v3898_v45  ;;  %v3910_v14 = vrot.slane %v3908_v25, 7  ;;  %v3919_v49 = vshrl.u32 %v13628_v50, 16 }
 0x2c7   :  { %11067 = vmatmul.mubr.bf16.gmra.mrb[32].mxu1 %v10041_v8  ;;  %v13620_v8 = vld [vmem:[#allocation2 + $0xb4] sm:$0xc]  ;;  %v3922_v7 = vshll.u32 %v13628_v50, 16  ;;  %v3930_v43 = vrot.slane %v3928_v55, 6  ;;  %v3933_v10 = vrot.slane %v3931_v41, 7  ;;  %v3936_v57 = vrot.slane %v15753_v39, 6 }
 0x2c8   :  { %11070 = vmatprep.mubr.bf16.mxu1 %v10042_v62  ;;  %v10031_v2 = vrot.slane %v13620_v8, 10  ;;  %v3913_v62 = vrot.slane %v15750_v51, 6  ;;  %v3942_v32 = vshrl.u32 %v13641_v30, 16  ;;  %v3945_v51 = vshll.u32 %v13641_v30, 16  ;;  %v13664_v30 = vld [vmem:[#allocation2 + $0x2c] sm:$0x7] }
 0x2c9   :  { %v3951_v45 = vshrl.u32 %v13478_v9, 16  ;;  %v10045_v42 = vcombine.low %v13618_v5, %v3528_v35  ;;  %v10046_v4 = vcombine.low %v13625_v19, %v3535_v33  ;;  %v3954_v55 = vshll.u32 %v13478_v9, 16  ;;  %15756 = vst [vmem:[#allocation23_spill] sm:$0xff] %v13664_v30  ;;  %v15758_v50 = vld [vmem:[#allocation27_spill] sm:$0xff] }
 0x2ca   :  { %v13655_v25 = vsel %vm13448_vm6, %v10031_v2, %v3538_v56  ;;  %v3542_v21 = vsel %vm13448_vm6, %v3540_v13, %v3541_v38  ;;  %v3893_v41 = vsel %vm12502_vm9, %v13637_v17, %v13613_v52  ;;  %v3911_v39 = vor.u32 %v3910_v14, %v3907_v61  ;;  %v13668_v13 = vld [vmem:[#allocation2 + $0x38] sm:$0x7]  ;;  %v15759_v52 = vld [vmem:[#allocation26_spill] sm:$0xff] }
 0x2cb   :  { %v3903_v5 = vsel %vm12502_vm9, %v3894_v54, %v3902_v27  ;;  %v3921_v19 = vrot.slane %v3919_v49, 6  ;;  %v3924_v56 = vrot.slane %v3922_v7, 7  ;;  %v3934_v2 = vor.u32 %v3933_v10, %v3930_v43  ;;  %15757 = vst [vmem:[#allocation22_spill] sm:$0xff] %v13668_v13  ;;  %v15761_v49 = vld [vmem:[#allocation28_spill] sm:$0xff] }
 0x2cc   :  { %v3938_v35 = vor.u32 %v3937_v15, %v3936_v57  ;;  %v3944_v9 = vrot.slane %v3942_v32, 6  ;;  %v3947_v33 = vrot.slane %v3945_v51, 7  ;;  %v3953_v36 = vrot.slane %v3951_v45, 6  ;;  %v15760_v15 = vld [vmem:[#allocation29_spill] sm:$0xff] }
 0x2cd   :  { %v3956_v38 = vrot.slane %v3954_v55, 7  ;;  %v3959_v0 = vrot.slane %v15758_v50, 6  ;;  %v3960_v17 = vrot.slane %v15759_v52, 7  ;;  %v3912_v61 = vrot.slane %v3911_v39, 4 }
 0x2ce   :  { %v3974_v27 = vshrl.u32 %v13482_v44, 16  ;;  %v3977_v54 = vshll.u32 %v13482_v44, 16  ;;  %v3982_v14 = vrot.slane %v15760_v15, 6  ;;  %v3983_v7 = vrot.slane %v15761_v49, 7 }
 0x2cf   :  { %11071 = vmatmul.mubr.bf16.gmra.mrb[36].mxu1 %v10043_v63  ;;  %v3988_v43 = vshrl.u32 %v13668_v13, 16  ;;  %v3991_v10 = vshll.u32 %v13668_v13, 16  ;;  %v3925_v57 = vor.u32 %v3924_v56, %v3921_v19  ;;  %v3935_v32 = vrot.slane %v3934_v2, 4 }
 0x2d0   :  { %11074 = vmatprep.mubr.bf16.mxu1 %v10044_v11  ;;  %v3915_v11 = vor.u32 %v3914_v23, %v3913_v62  ;;  %v3965_v23 = vshrl.u32 %v13664_v30, 16  ;;  %v3968_v62 = vshll.u32 %v13664_v30, 16  ;;  %v3940_v51 = vrot.slane %v3938_v35, 4 }
 0x2d1   :  { %v3948_v45 = vor.u32 %v3947_v33, %v3944_v9  ;;  %v3957_v55 = vor.u32 %v3956_v38, %v3953_v36  ;;  %v13680_v39 = vor.u32 %v3960_v17, %v3959_v0  ;;  %v3976_v30 = vrot.slane %v3974_v27, 6  ;;  %v13695_v9 = vld [vmem:[#allocation2 + $0x44] sm:$0x7] }
 0x2d2   :  { %v3917_v50 = vrot.slane %v3915_v11, 4  ;;  %v3967_v52 = vrot.slane %v3965_v23, 6  ;;  %v3970_v44 = vrot.slane %v3968_v62, 7  ;;  %v3979_v15 = vrot.slane %v3977_v54, 7 }
 0x2d3   :  { %v3997_v49 = vshrl.u32 %v13501_v37, 16  ;;  %v13683_v60 = vor.u32 %v3983_v7, %v3982_v14  ;;  %v3990_v34 = vrot.slane %v3988_v43, 6  ;;  %v3993_v13 = vrot.slane %v3991_v10, 7  ;;  %v15762_v14 = vld [vmem:[#allocation32_spill] sm:$0xff] }
 0x2d4   :  { %v10047_v19 = vcombine.low %v13655_v25, %v3542_v21  ;;  %v10056_v56 = vcombine.low %v3893_v41, %v3903_v5  ;;  %v3916_v36 = vsel %vm12502_vm9, %v3912_v61, %v3915_v11  ;;  %v3926_v0 = vsel %vm12502_vm9, %v3917_v50, %v3925_v57  ;;  %v13707_v61 = vld [vmem:[#allocation2 + $0x50] sm:$0x7] }
 0x2d5   :  { %v13693_v2 = vrot.slane %v3957_v55, 4  ;;  %v4005_v33 = vrot.slane %v15714_v20, 6  ;;  %v3939_v25 = vsel %vm12502_vm9, %v3935_v32, %v3938_v35  ;;  %v3963_v21 = vrot.slane %v13680_v39, 4  ;;  %v13729_v55 = vld [vmem:[#allocation2 + $0x5c] sm:$0x7] }
 0x2d6   :  { %v3971_v41 = vor.u32 %v3970_v44, %v3967_v52  ;;  %v3980_v11 = vor.u32 %v3979_v15, %v3976_v30  ;;  %v3986_v5 = vrot.slane %v13683_v60, 4  ;;  %v3994_v38 = vor.u32 %v3993_v13, %v3990_v34 }
 0x2d7   :  { %11075 = vmatmul.mubr.bf16.gmra.mrb[40].mxu1 %v10045_v42  ;;  %v4000_v42 = vshll.u32 %v13501_v37, 16  ;;  %v4006_v37 = vrot.slane %v15715_v31, 7  ;;  %v13703_v17 = vrot.slane %v3997_v49, 6  ;;  %v10057_v20 = vcombine.low %v3916_v36, %v3926_v0 }
 0x2d8   :  { %11078 = vmatprep.mubr.bf16.mxu1 %v10046_v4  ;;  %v3949_v4 = vsel %vm12502_vm9, %v3940_v51, %v3948_v45  ;;  %v4011_v31 = vshrl.u32 %v13695_v9, 16  ;;  %v4014_v35 = vshll.u32 %v13695_v9, 16  ;;  %v3962_v30 = vsel %vm12502_vm9, %v13693_v2, %v13680_v39  ;;  %v15763_v2 = vld [vmem:[#allocation35_spill] sm:$0xff] }
 0x2d9   :  { %v13705_v23 = vrot.slane %v4000_v42, 7  ;;  %v10058_v62 = vcombine.low %v3939_v25, %v3949_v4  ;;  %v13715_v34 = vor.u32 %v4006_v37, %v4005_v33  ;;  %v4020_v13 = vshrl.u32 %v13504_v47, 16  ;;  %v12012_v42 = vld [vmem:[#allocation8 + $0x188] sm:$0xff]   ;;  %v15764_v37 = vld [vmem:[#allocation34_spill] sm:$0xff] }
 0x2da   :  { %v4023_v27 = vshll.u32 %v13504_v47, 16  ;;  %v4028_v54 = vrot.slane %v15716_v1, 6  ;;  %v4029_v7 = vrot.slane %v15762_v14, 7  ;;  %v4034_v43 = vshrl.u32 %v13707_v61, 16  ;;  %v13738_v4 = vld [vmem:[#allocation2 + $0x68] sm:$0x7] }
 0x2db   :  { %v4037_v10 = vshll.u32 %v13707_v61, 16  ;;  %v3972_v50 = vsel %vm12502_vm9, %v3963_v21, %v3971_v41  ;;  %v3981_v57 = vrot.slane %v3980_v11, 4  ;;  %v3995_v32 = vsel %vm12502_vm9, %v3986_v5, %v3994_v38  ;;  %v15765_v5 = vld [vmem:[#allocation37_spill] sm:$0xff] }
 0x2dc   :  { %v4003_v51 = vor.u32 %v13705_v23, %v13703_v17  ;;  %v4013_v45 = vrot.slane %v4011_v31, 6  ;;  %v4016_v47 = vrot.slane %v4014_v35, 7  ;;  %v4066_v1 = vshrl.u32 %v13522_v40, 16  ;;  %v15766_v17 = vld [vmem:[#allocation36_spill] sm:$0xff] }
 0x2dd   :  { %v4069_v39 = vshll.u32 %v13522_v40, 16  ;;  %v4009_v52 = vrot.slane %v13715_v34, 4  ;;  %v4022_v44 = vrot.slane %v4020_v13, 6  ;;  %v4025_v15 = vrot.slane %v4023_v27, 7  ;;  %v12013_v27 = vld [vmem:[#allocation8 + $0x190] sm:$0xff]  }
 0x2de   :  { %v4043_v49 = vshrl.u32 %v13524_v22, 16  ;;  %v4039_v36 = vrot.slane %v4037_v10, 7  ;;  %v4046_v0 = vshll.u32 %v13524_v22, 16  ;;  %v4051_v33 = vrot.slane %v15763_v2, 6 }
 0x2df   :  { %11079 = vmatmul.mubr.bf16.gmra.mrb[44].mxu1 %v10047_v19  ;;  %v13735_v19 = vor.u32 %v4029_v7, %v4028_v54  ;;  %v4052_v25 = vrot.slane %v15764_v37, 7  ;;  %v4057_v40 = vshrl.u32 %v13729_v55, 16  ;;  %v4060_v21 = vshll.u32 %v13729_v55, 16 }
 0x2e0   :  { %11098 = vmatprep.mubr.bf16.mxu1 %v10056_v56  ;;  %v4036_v56 = vrot.slane %v4034_v43, 6  ;;  %v4068_v41 = vrot.slane %v4066_v1, 6  ;;  %v4071_v11 = vrot.slane %v4069_v39, 7  ;;  %v4074_v38 = vrot.slane %v15765_v5, 6 }
 0x2e1   :  { %v4075_v23 = vrot.slane %v15766_v17, 7  ;;  %v4017_v22 = vor.u32 %v4016_v47, %v4013_v45  ;;  %v4026_v31 = vor.u32 %v4025_v15, %v4022_v44  ;;  %v4080_v35 = vshrl.u32 %v13738_v4, 16 }
 0x2e2   :  { %v4083_v13 = vshll.u32 %v13738_v4, 16  ;;  %v4032_v54 = vrot.slane %v13735_v19, 4  ;;  %v4045_v14 = vrot.slane %v4043_v49, 6  ;;  %v4048_v7 = vrot.slane %v4046_v0, 7 }
 0x2e3   :  { %v13750_v43 = vor.u32 %v4052_v25, %v4051_v33  ;;  %v4059_v10 = vrot.slane %v4057_v40, 6  ;;  %v4062_v1 = vrot.slane %v4060_v21, 7  ;;  %v4072_v45 = vor.u32 %v4071_v11, %v4068_v41  ;;  %v13761_v33 = vld [vmem:[#allocation2 + $0x74] sm:$0x7] }
 0x2e4   :  { %v13753_v47 = vor.u32 %v4075_v23, %v4074_v38  ;;  %v4092_v39 = vshll.u32 %v13533_v48, 16  ;;  %v3985_v44 = vsel %vm12502_vm9, %v3981_v57, %v13683_v60  ;;  %v4004_v15 = vrot.slane %v4003_v51, 4  ;;  %v12015_v38 = vld [vmem:[#allocation8 + $0x1a0] sm:$0xff]  }
 0x2e5   :  { %v4082_v49 = vrot.slane %v4080_v35, 6  ;;  %v4018_v0 = vsel %vm12502_vm9, %v4009_v52, %v4017_v22  ;;  %v4027_v2 = vrot.slane %v4026_v31, 4  ;;  %v4063_v37 = vor.u32 %v4062_v1, %v4059_v10  ;;  %v12016_v1 = vld [vmem:[#allocation8 + $0x1a8] sm:$0xff]  }
 0x2e6   :  { %v4073_v57 = vrot.slane %v4072_v45, 4  ;;  %v4094_v51 = vrot.slane %v4092_v39, 7  ;;  %v4097_v25 = vrot.slane %v15722_v3, 6  ;;  %v4098_v40 = vrot.slane %v15723_v53, 7 }
 0x2e7   :  { %11099 = vmatmul.mubr.bf16.vlgmr.msra.gmra.mrb[16].mxu1 %v10057_v20  ;;  %v4040_v20 = vor.u32 %v4039_v36, %v4036_v56  ;;  %v4085_v56 = vrot.slane %v4083_v13, 7  ;;  %v10060_v36 = vcombine.low %v3985_v44, %v3995_v32  ;;  %v4078_v32 = vrot.slane %v13753_v47, 4  ;;  %v13784_v13 = vld [vmem:[#allocation2 + $0x80] sm:$0x7] }
 0x2e8   :  { %11131 = vmatpush3.bf16.msra.mxu1 %v13572_v58  ;;  %11102 = vmatprep.mubr.bf16.mxu1 %v10058_v62  ;;  %v4089_v58 = vshrl.u32 %v13533_v48, 16  ;;  %v10059_v62 = vcombine.low %v3962_v30, %v3972_v50  ;;  %v12014_v30 = vld [vmem:[#allocation8 + $0x198] sm:$0xff]   ;;  %v4049_v50 = vor.u32 %v4048_v7, %v4045_v14  ;;  %v4103_v21 = vshrl.u32 %v13761_v33, 16 }
 0x2e9   :  { %11132 = vmatprep.subr.bf16.mxu1 %v12012_v42  ;;  %v4041_v48 = vsel %vm12502_vm9, %v4032_v54, %v4040_v20  ;;  %v4086_v52 = vor.u32 %v4085_v56, %v4082_v49  ;;  %v4106_v41 = vshll.u32 %v13761_v33, 16  ;;  %v4008_v11 = vsel %vm12502_vm9, %v4004_v15, %v13715_v34 }
 0x2ea   :  { %v4091_v60 = vrot.slane %v4089_v58, 6  ;;  %v4031_v5 = vsel %vm12502_vm9, %v4027_v2, %v13735_v19  ;;  %v4112_v3 = vshrl.u32 %v13551_v18, 16  ;;  %v4115_v17 = vshll.u32 %v13551_v18, 16 }
 0x2eb   :  { %v10061_v23 = vcombine.low %v4008_v11, %v4018_v0  ;;  %v10062_v53 = vcombine.low %v4031_v5, %v4041_v48  ;;  %v4050_v22 = vrot.slane %v4049_v50, 4  ;;  %v4077_v34 = vsel %vm12502_vm9, %v4073_v57, %v13753_v47  ;;  %v15769_v11 = vld [vmem:[#allocation48_spill] sm:$0xff] }
 0x2ec   :  { %11133 = vmatpush3.bf16.msra.mxu1 %v12012_v42  ;;  %v4055_v42 = vrot.slane %v13750_v43, 4  ;;  %v4095_v35 = vor.u32 %v4094_v51, %v4091_v60  ;;  %v4087_v19 = vsel %vm12502_vm9, %v4078_v32, %v4086_v52  ;;  %v4105_v18 = vrot.slane %v4103_v21, 6  ;;  %v15767_v60 = vld [vmem:[#allocation45_spill] sm:$0xff]  ;;  %v15768_v32 = vld [vmem:[#allocation44_spill] sm:$0xff] }
 0x2ed   :  { %11134 = vmatprep.subr.bf16.mxu1 %v12013_v27  ;;  %v4108_v54 = vrot.slane %v4106_v41, 7  ;;  %v4114_v20 = vrot.slane %v4112_v3, 6  ;;  %v4117_v14 = vrot.slane %v4115_v17, 7  ;;  %v4120_v7 = vrot.slane %v15724_v6, 6 }
 0x2ee   :  { %v4064_v31 = vsel %vm12502_vm9, %v4055_v42, %v4063_v37  ;;  %v4121_v10 = vrot.slane %v15725_v46, 7  ;;  %v4126_v58 = vshrl.u32 %v13784_v13, 16  ;;  %v4135_v45 = vshrl.u32 %v13555_v24, 16  ;;  %v13800_v46 = vld [vmem:[#allocation2 + $0x8c] sm:$0x7] }
 0x2ef   :  { %11103 = vmatmul.mubr.bf16.gmra.mrb[20].mxu1 %v10059_v62  ;;  %v4129_v62 = vshll.u32 %v13784_v13, 16  ;;  %v4138_v47 = vshll.u32 %v13555_v24, 16  ;;  %v4054_v39 = vsel %vm12502_vm9, %v4050_v22, %v13750_v43  ;;  %v4096_v44 = vrot.slane %v4095_v35, 4  ;;  %v13804_v37 = vld [vmem:[#allocation2 + $0x98] sm:$0x7] }
 0x2f0   :  { %11106 = vmatprep.mubr.bf16.mxu1 %v10060_v36  ;;  %11135 = vmatpush3.bf16.msra.mxu1 %v12013_v27  ;;  %v13788_v27 = vor.u32 %v4098_v40, %v4097_v25  ;;  %v4109_v15 = vor.u32 %v4108_v54, %v4105_v18  ;;  %v4158_v49 = vshrl.u32 %v13563_v12, 16  ;;  %v4161_v56 = vshll.u32 %v13563_v12, 16 }
 0x2f1   :  { %11136 = vmatprep.subr.bf16.mxu1 %v12014_v30  ;;  %v10063_v36 = vcombine.low %v4054_v39, %v4064_v31  ;;  %v10064_v0 = vcombine.low %v4077_v34, %v4087_v19  ;;  %v4118_v24 = vor.u32 %v4117_v14, %v4114_v20  ;;  %v4122_v2 = vor.u32 %v4121_v10, %v4120_v7 }
 0x2f2   :  { %v4101_v6 = vrot.slane %v13788_v27, 4  ;;  %v4128_v50 = vrot.slane %v4126_v58, 6  ;;  %v4131_v43 = vrot.slane %v4129_v62, 7  ;;  %v4137_v48 = vrot.slane %v4135_v45, 6 }
 0x2f3   :  { %v4140_v42 = vrot.slane %v4138_v47, 7  ;;  %v4143_v57 = vrot.slane %v15767_v60, 6  ;;  %v4144_v51 = vrot.slane %v15768_v32, 7  ;;  %v4149_v25 = vshrl.u32 %v13800_v46, 16  ;;  %v13823_v47 = vld [vmem:[#allocation2 + $0xa4] sm:$0x7] }
 0x2f4   :  { %11137 = vmatpush3.bf16.msra.mxu1 %v12014_v30  ;;  %v12017_v30 = vld [vmem:[#allocation8 + $0x1b0] sm:$0xff]   ;;  %v4152_v12 = vshll.u32 %v13800_v46, 16  ;;  %v4100_v52 = vsel %vm12502_vm9, %v4096_v44, %v13788_v27  ;;  %v4110_v40 = vsel %vm12502_vm9, %v4101_v6, %v4109_v15  ;;  %v4160_v21 = vrot.slane %v4158_v49, 6  ;;  %v15771_v32 = vld [vmem:[#allocation53_spill] sm:$0xff] }
 0x2f5   :  { %11138 = vmatprep.subr.bf16.mxu1 %v12015_v38  ;;  %v4163_v41 = vrot.slane %v4161_v56, 7  ;;  %v4166_v5 = vrot.slane %v15769_v11, 6  ;;  %v4172_v17 = vshrl.u32 %v13804_v37, 16  ;;  %v4119_v22 = vrot.slane %v4118_v24, 4 }
 0x2f6   :  { %v4124_v31 = vrot.slane %v4122_v2, 4  ;;  %v4132_v34 = vor.u32 %v4131_v43, %v4128_v50  ;;  %v4141_v35 = vor.u32 %v4140_v42, %v4137_v48  ;;  %v4145_v19 = vor.u32 %v4144_v51, %v4143_v57 }
 0x2f7   :  { %11107 = vmatmul.mubr.bf16.gmra.mrb[24].mxu1 %v10061_v23  ;;  %v4175_v23 = vshll.u32 %v13804_v37, 16  ;;  %v4151_v27 = vrot.slane %v4149_v25, 6  ;;  %v4154_v18 = vrot.slane %v4152_v12, 7  ;;  %v4181_v54 = vshrl.u32 %v13594_v28, 16 }
 0x2f8   :  { %11110 = vmatprep.mubr.bf16.mxu1 %v10062_v53  ;;  %11139 = vmatpush3.bf16.msra.mxu1 %v12015_v38  ;;  %v15770_v38 = vld [vmem:[#allocation47_spill] sm:$0xff]  ;;  %v12018_v53 = vld [vmem:[#allocation8 + $0x1b8] sm:$0xff]   ;;  %v4164_v20 = vor.u32 %v4163_v41, %v4160_v21  ;;  %v4184_v14 = vshll.u32 %v13594_v28, 16  ;;  %v10065_v7 = vcombine.low %v4100_v52, %v4110_v40  ;;  %v4123_v62 = vsel %vm12502_vm9, %v4119_v22, %v4122_v2  ;;  %v13831_v2 = vld [vmem:[#allocation2 + $0xb0] sm:$0x7] }
 0x2f9   :  { %11140 = vmatprep.subr.bf16.mxu1 %v12016_v1  ;;  %v4167_v3 = vrot.slane %v15770_v38, 7  ;;  %v4177_v58 = vrot.slane %v4175_v23, 7  ;;  %v4142_v45 = vrot.slane %v4141_v35, 4  ;;  %v4204_v39 = vshrl.u32 %v13601_v16, 16  ;;  %v13849_v22 = vld [vmem:[#allocation2 + $0xbc] sm:$0x7] }
 0x2fa   :  { %v4207_v44 = vshll.u32 %v13601_v16, 16  ;;  %v4133_v6 = vsel %vm12502_vm9, %v4124_v31, %v4132_v34  ;;  %v4147_v28 = vrot.slane %v4145_v19, 4  ;;  %v4155_v15 = vor.u32 %v4154_v18, %v4151_v27 }
 0x2fb   :  { %v4168_v10 = vor.u32 %v4167_v3, %v4166_v5  ;;  %v4183_v49 = vrot.slane %v4181_v54, 6  ;;  %v4165_v56 = vrot.slane %v4164_v20, 4  ;;  %v4190_v24 = vrot.slane %v15731_v59, 7  ;;  %v15772_v54 = vld [vmem:[#allocation55_spill] sm:$0xff] }
 0x2fc   :  { %11141 = vmatpush3.bf16.msra.mxu1 %v12016_v1  ;;  %v4174_v1 = vrot.slane %v4172_v17, 6  ;;  %v4195_v43 = vshrl.u32 %v13823_v47, 16  ;;  %v4198_v16 = vshll.u32 %v13823_v47, 16  ;;  %v10066_v48 = vcombine.low %v4123_v62, %v4133_v6 }
 0x2fd   :  { %11142 = vmatprep.subr.bf16.mxu1 %v12017_v30  ;;  %v4146_v42 = vsel %vm12502_vm9, %v4142_v45, %v4145_v19  ;;  %v4206_v60 = vrot.slane %v4204_v39, 6  ;;  %v4209_v57 = vrot.slane %v4207_v44, 7  ;;  %v4213_v59 = vrot.slane %v15771_v32, 7 }
 0x2fe   :  { %v4178_v50 = vor.u32 %v4177_v58, %v4174_v1  ;;  %v4218_v51 = vshrl.u32 %v13831_v2, 16  ;;  %v4221_v25 = vshll.u32 %v13831_v2, 16  ;;  %v4156_v12 = vsel %vm12502_vm9, %v4147_v28, %v4155_v15 }
 0x2ff   :  { %11111 = vmatmul.mubr.bf16.gmra.mrb[28].mxu1 %v10063_v36  ;;  %v4186_v36 = vrot.slane %v4184_v14, 7  ;;  %v4169_v52 = vsel %vm12502_vm9, %v4165_v56, %v4168_v10  ;;  %v4197_v11 = vrot.slane %v4195_v43, 6  ;;  %v4227_v5 = vshrl.u32 %v13620_v8, 16 }
 0x300   :  { %11114 = vmatprep.mubr.bf16.mxu1 %v10064_v0  ;;  %11143 = vmatpush3.bf16.msra.mxu1 %v12017_v30  ;;  %v4189_v0 = vrot.slane %v15730_v26, 6  ;;  %v4170_v30 = vrot.slane %v4168_v10, 4  ;;  %v4212_v26 = vrot.slane %v12978_v29, 6  ;;  %v4200_v29 = vrot.slane %v4198_v16, 7 }
 0x301   :  { %11144 = vmatprep.subr.bf16.mxu1 %v12018_v53  ;;  %v4187_v40 = vor.u32 %v4186_v36, %v4183_v49  ;;  %v4230_v38 = vshll.u32 %v13620_v8, 16  ;;  %v4210_v3 = vor.u32 %v4209_v57, %v4206_v60  ;;  %v4220_v23 = vrot.slane %v4218_v51, 6  ;;  %v15774_v60 = vld [vmem:[#allocation39_spill] sm:$0xff] }
 0x302   :  { %v4191_v21 = vor.u32 %v4190_v24, %v4189_v0  ;;  %v4179_v41 = vsel %vm12502_vm9, %v4170_v30, %v4178_v50  ;;  %v4214_v17 = vor.u32 %v4213_v59, %v4212_v26  ;;  %v10067_v31 = vcombine.low %v4146_v42, %v4156_v12  ;;  %v12112_v0 = vld [vmem:[#allocation2 + $0x4] sm:$0xf]  ;;  %v4571_v26 = vld [vmem:[#allocation2] sm:$0x8] }
 0x303   :  { %v10068_v34 = vcombine.low %v4169_v52, %v4179_v41  ;;  %v4188_v35 = vrot.slane %v4187_v40, 4  ;;  %v4201_v27 = vor.u32 %v4200_v29, %v4197_v11  ;;  %v4229_v18 = vrot.slane %v4227_v5, 6 }
 0x304   :  { %11145 = vmatpush3.bf16.msra.mxu1 %v12018_v53  ;;  %v4223_v53 = vrot.slane %v4221_v25, 7  ;;  %v4193_v19 = vrot.slane %v4191_v21, 4  ;;  %v4235_v20 = vrot.slane %v15772_v54, 6  ;;  %v4232_v14 = vrot.slane %v4230_v38, 7  ;;  %v12113_v25 = vld [vmem:[#allocation2 + $0x10] sm:$0xf] }
 0x305   :  { %v4241_v1 = vshrl.u32 %v13849_v22, 16  ;;  %v4244_v8 = vshll.u32 %v13849_v22, 16  ;;  %v4211_v58 = vrot.slane %v4210_v3, 4  ;;  %v4216_v62 = vrot.slane %v4214_v17, 4  ;;  %v15778_v3 = vld [vmem:[#allocation51_spill] sm:$0xff] }
 0x306   :  { %v4224_v45 = vor.u32 %v4223_v53, %v4220_v23  ;;  %v4192_v39 = vsel %vm12502_vm9, %v4188_v35, %v4191_v21  ;;  %v4202_v44 = vsel %vm12502_vm9, %v4193_v19, %v4201_v27  ;;  %v4233_v6 = vor.u32 %v4232_v14, %v4229_v18  ;;  %v12114_v21 = vld [vmem:[#allocation2 + $0x1c] sm:$0xf]  ;;  %v4572_v23 = vld [vmem:[#allocation2 + $0xc] sm:$0x8]  ;;  %v4573_v35 = vld [vmem:[#allocation2 + $0x18] sm:$0x8] }
 0x307   :  { %11115 = vmatmul.mubr.bf16.gmra.mrb[32].mxu1 %v10065_v7  ;;  %v15773_v7 = vld [vmem:[#allocation54_spill] sm:$0xff]  ;;  %v4243_v15 = vrot.slane %v4241_v1, 6  ;;  %v4246_v49 = vrot.slane %v4244_v8, 7  ;;  %v4215_v56 = vsel %vm12502_vm9, %v4211_v58, %v4214_v17  ;;  %v4624_v24 = vrot.slane %v12112_v0, 7  ;;  %v12115_v18 = vld [vmem:[#allocation2 + $0x28] sm:$0xf] }
 0x308   :  { %11118 = vmatprep.mubr.bf16.mxu1 %v10066_v48  ;;  %v4236_v10 = vrot.slane %v15773_v7, 7  ;;  %v4225_v36 = vsel %vm12502_vm9, %v4216_v62, %v4224_v45  ;;  %v10069_v30 = vcombine.low %v4192_v39, %v4202_v44  ;;  %v4234_v43 = vrot.slane %v4233_v6, 4  ;;  %v12116_v7 = vld [vmem:[#allocation2 + $0x34] sm:$0xf]  ;;  %v15780_v39 = vld [vmem:[#allocation23_spill] sm:$0xff] }
 0x309   :  { %v10070_v50 = vcombine.low %v4215_v56, %v4225_v36  ;;  %v4247_v48 = vor.u32 %v4246_v49, %v4243_v15  ;;  %v4626_v42 = vrot.slane %v4624_v24, 4  ;;  %v4627_v57 = vrot.slane %v15774_v60, 7  ;;  %v4574_v6 = vld [vmem:[#allocation2 + $0x24] sm:$0x8]  ;;  %v4575_v56 = vld [vmem:[#allocation2 + $0x30] sm:$0x8] }
 0x30a   :  { %v4237_v28 = vor.u32 %v4236_v10, %v4235_v20  ;;  %v15775_v51 = vmov 0  ;;  %v4631_v12 = vrot.slane %v12113_v25, 7  ;;  %v10080_v52 = vrot.slane %v4571_v26, 11  ;;  %v15781_v15 = vld [vmem:[#allocation22_spill] sm:$0xff]  ;;  %v4576_v25 = vld [vmem:[#allocation2 + $0x3c] sm:$0x8] }
 0x30b   :  { %v15776_v51 = vsel %vm13869_vm10, 4294967295, %v15775_v51  ;;  %v4628_v40 = vsel %vm13869_vm10, %v4626_v42, %v4627_v57  ;;  %v4638_v41 = vrot.slane %v12114_v21, 7  ;;  %v4634_v17 = vrot.slane %v15778_v3, 7  ;;  %v15785_v3 = vld [vmem:[#allocation49_spill] sm:$0xff] }
 0x30c   :  { %v4239_v16 = vrot.slane %v4237_v28, 4  ;;  %v4238_v32 = vsel %vm12502_vm9, %v4234_v43, %v4237_v28  ;;  %15777 = vst [vmem:[#allocation25_spill] sm:$0xff] %v15776_v51  ;;  %v4625_v29 = vsel %vm13869_vm10, %v10080_v52, %v4624_v24  ;;  %v4633_v38 = vrot.slane %v4631_v12, 4  ;;  %v15782_v24 = vld [vmem:[#allocation46_spill] sm:$0xff] }
 0x30d   :  { %v10096_v5 = vcombine.low %v4625_v29, %v4628_v40  ;;  %v4640_v53 = vrot.slane %v4638_v41, 4  ;;  %v10081_v19 = vrot.slane %v4572_v23, 11  ;;  %v4645_v54 = vrot.slane %v12115_v18, 7  ;;  %v4577_v40 = vld [vmem:[#allocation2 + $0x48] sm:$0x8] }
 0x30e   :  { %v4248_v59 = vsel %vm12502_vm9, %v4239_v16, %v4247_v48  ;;  %v4635_v27 = vsel %vm13869_vm10, %v4633_v38, %v4634_v17  ;;  %v10082_v20 = vrot.slane %v4573_v35, 11  ;;  %v4652_v10 = vrot.slane %v12116_v7, 7  ;;  %v15783_v16 = vld [vmem:[#allocation20_spill] sm:$0xff]  ;;  %v4579_v23 = vld [vmem:[#allocation2 + $0x60] sm:$0x8] }
 0x30f   :  { %11119 = vmatmul.mubr.bf16.gmra.mrb[36].mxu1 %v10067_v31  ;;  %v10071_v11 = vcombine.low %v4238_v32, %v4248_v59  ;;  %v15779_v31 = vld [vmem:[#allocation50_spill] sm:$0xff]  ;;  %v4632_v1 = vsel %vm13869_vm10, %v10081_v19, %v4631_v12  ;;  %v4647_v45 = vrot.slane %v4645_v54, 4  ;;  %v4648_v44 = vrot.slane %v15780_v39, 7  ;;  %v4578_v19 = vld [vmem:[#allocation2 + $0x54] sm:$0x8] }
 0x310   :  { %11122 = vmatprep.mubr.bf16.mxu1 %v10068_v34  ;;  %v4641_v34 = vrot.slane %v15779_v31, 7  ;;  %v10097_v8 = vcombine.low %v4632_v1, %v4635_v27  ;;  %v4639_v58 = vsel %vm13869_vm10, %v10082_v20, %v4638_v41  ;;  %v4654_v28 = vrot.slane %v4652_v10, 4  ;;  %v15786_v7 = vld [vmem:[#allocation52_spill] sm:$0xff] }
 0x311   :  { %v4655_v49 = vrot.slane %v15781_v15, 7  ;;  %v10083_v36 = vrot.slane %v4574_v6, 11  ;;  %v4649_v0 = vsel %vm13869_vm10, %v4647_v45, %v4648_v44  ;;  %v4666_v48 = vrot.slane %v15783_v16, 7  ;;  %v4582_v16 = vld [vmem:[#allocation2 + $0x84] sm:$0x8] }
 0x312   :  { %v4642_v14 = vsel %vm13869_vm10, %v4640_v53, %v4641_v34  ;;  %v4662_v59 = vrot.slane %v13695_v9, 7  ;;  %v4669_v52 = vrot.slane %v13707_v61, 7  ;;  %v10085_v21 = vrot.slane %v4576_v25, 11 }
 0x313   :  { %v10098_v62 = vcombine.low %v4639_v58, %v4642_v14  ;;  %v4656_v43 = vsel %vm13869_vm10, %v4654_v28, %v4655_v49  ;;  %v4646_v42 = vsel %vm13869_vm10, %v10083_v36, %v4645_v54  ;;  %v4668_v12 = vrot.slane %v4666_v48, 4  ;;  %v15787_v58 = vld [vmem:[#allocation31_spill] sm:$0xff] }
 0x314   :  { %v10099_v60 = vcombine.low %v4646_v42, %v4649_v0  ;;  %v4680_v17 = vrot.slane %v15785_v3, 7  ;;  %v4676_v35 = vrot.slane %v13729_v55, 7  ;;  %v10088_v27 = vrot.slane %v4579_v23, 11  ;;  %v4580_v55 = vld [vmem:[#allocation2 + $0x6c] sm:$0x8] }
 0x315   :  { %v4670_v38 = vsel %vm13869_vm10, %v4668_v12, %v4669_v52  ;;  %v4683_v54 = vrot.slane %v13738_v4, 7  ;;  %v10087_v20 = vrot.slane %v4578_v19, 11  ;;  %v4581_v4 = vld [vmem:[#allocation2 + $0x78] sm:$0x8]  ;;  %v10089_v6 = vrot.slane %v4580_v55, 11 }
 0x316   :  { %v4682_v18 = vrot.slane %v4680_v17, 4  ;;  %v4681_v1 = vsel %vm13869_vm10, %v10088_v27, %v4680_v17  ;;  %v4690_v15 = vrot.slane %v13761_v33, 7  ;;  %v10090_v49 = vrot.slane %v4581_v4, 11  ;;  %v4585_v17 = vld [vmem:[#allocation2 + $0xa8] sm:$0x8] }
 0x317   :  { %11123 = vmatmul.mubr.bf16.gmra.mrb[40].mxu1 %v10069_v30  ;;  %v4659_v30 = vrot.slane %v15782_v24, 7  ;;  %v4697_v36 = vrot.slane %v13784_v13, 7  ;;  %v4711_v52 = vrot.slane %v13804_v37, 7  ;;  %v12020_v4 = vld [vmem:[#allocation9 + $0x48] sm:$0xff]  }
 0x318   :  { %11126 = vmatprep.mubr.bf16.mxu1 %v10070_v50  ;;  %v10084_v50 = vrot.slane %v4575_v56, 11 }
 0x319   :  { %v4661_v32 = vrot.slane %v4659_v30, 4  ;;  %v4660_v9 = vsel %vm13869_vm10, %v10085_v21, %v4659_v30  ;;  %v15788_v30 = vld [vmem:[#allocation30_spill] sm:$0xff] }
 0x31a   :  { %v4653_v57 = vsel %vm13869_vm10, %v10084_v50, %v4652_v10  ;;  %v4687_v10 = vrot.slane %v15786_v7, 7  ;;  %v4701_v50 = vrot.slane %v15788_v30, 7 }
 0x31b   :  { %v10100_v26 = vcombine.low %v4653_v57, %v4656_v43  ;;  %v4663_v41 = vsel %vm13869_vm10, %v4661_v32, %v4662_v59  ;;  %v4704_v59 = vrot.slane %v13800_v46, 7 }
 0x31c   :  { %v10101_v53 = vcombine.low %v4660_v9, %v4663_v41  ;;  %v4689_v28 = vrot.slane %v4687_v10, 4  ;;  %v4688_v0 = vsel %vm13869_vm10, %v10089_v6, %v4687_v10  ;;  %v4703_v32 = vrot.slane %v4701_v50, 4  ;;  %v15790_v41 = vld [vmem:[#allocation38_spill] sm:$0xff]  ;;  %v12024_v6 = vld [vmem:[#allocation9 + $0x68] sm:$0xff]  }
 0x31e   :  { %v4691_v24 = vsel %vm13869_vm10, %v4689_v28, %v4690_v15  ;;  %v4705_v21 = vsel %vm13869_vm10, %v4703_v32, %v4704_v59  ;;  %v12025_v28 = vld [vmem:[#allocation9 + $0x70] sm:$0xff]   ;;  %v12026_v15 = vld [vmem:[#allocation9 + $0x78] sm:$0xff]  }
 0x31f   :  { %11127 = vmatmul.mubr.bf16.gmra.mrb[44].mxu1 %v10071_v11  ;;  %v15784_v11 = vld [vmem:[#allocation19_spill] sm:$0xff]  ;;  %v10105_v13 = vcombine.low %v4688_v0, %v4691_v24 }
 0x320   :  { %11146 = vmatprep.mubr.bf16.mxu1 %v10096_v5  ;;  %v4673_v29 = vrot.slane %v15784_v11, 7  ;;  %v10086_v5 = vrot.slane %v4577_v40, 11  ;;  %v4715_v11 = vrot.slane %v15790_v41, 7 }
 0x322   :  { %v4667_v61 = vsel %vm13869_vm10, %v10086_v5, %v4666_v48  ;;  %v4675_v34 = vrot.slane %v4673_v29, 4  ;;  %v4674_v45 = vsel %vm13869_vm10, %v10087_v20, %v4673_v29  ;;  %v15789_v48 = vld [vmem:[#allocation33_spill] sm:$0xff] }
 0x323   :  { %v10102_v31 = vcombine.low %v4667_v61, %v4670_v38  ;;  %v4708_v42 = vrot.slane %v15789_v48, 7  ;;  %v4584_v5 = vld [vmem:[#allocation2 + $0x9c] sm:$0x8]  ;;  %v15791_v38 = vld [vmem:[#allocation42_spill] sm:$0xff]  ;;  %v4718_v61 = vrot.slane %v13823_v47, 7 }
 0x324   :  { %v4677_v14 = vsel %vm13869_vm10, %v4675_v34, %v4676_v35  ;;  %v4722_v3 = vrot.slane %v15791_v38, 7  ;;  %v10093_v23 = vrot.slane %v4584_v5, 11  ;;  %v4725_v35 = vrot.slane %v13831_v2, 7 }
 0x325   :  { %v10103_v39 = vcombine.low %v4674_v45, %v4677_v14  ;;  %v4710_v12 = vrot.slane %v4708_v42, 4  ;;  %v4586_v14 = vld [vmem:[#allocation2 + $0xb4] sm:$0x8]  ;;  %v12019_v45 = vld [vmem:[#allocation9 + $0x40] sm:$0xff]  }
 0x326   :  { %v4724_v34 = vrot.slane %v4722_v3, 4  ;;  %v4716_v19 = vsel %vm13869_vm10, %v10093_v23, %v4715_v11  ;;  %11178 = vmatprep.subr.bf16.mxu0 %v12019_v45 }
 0x327   :  { %11147 = vmatmul.mubr.bf16.vlgmr.msra.gmra.mrb[16].mxu1 %v10097_v8  ;;  %v4684_v8 = vsel %vm13869_vm10, %v4682_v18, %v4683_v54  ;;  %v4712_v46 = vsel %vm13869_vm10, %v4710_v12, %v4711_v52  ;;  %v15792_v18 = vld [vmem:[#allocation41_spill] sm:$0xff]  ;;  %11179 = vmatpush3.bf16.msra.mxu0 %v12019_v45 }
 0x328   :  { %11150 = vmatprep.mubr.bf16.mxu1 %v10098_v62  ;;  %v4694_v62 = vrot.slane %v15787_v58, 7  ;;  %v10104_v44 = vcombine.low %v4681_v1, %v4684_v8  ;;  %v4729_v54 = vrot.slane %v15792_v18, 7  ;;  %v4726_v47 = vsel %vm13869_vm10, %v4724_v34, %v4725_v35  ;;  %11180 = vmatprep.subr.bf16.mxu0 %v12020_v4  ;;  %v5581_v35 = vld [vmem:[#allocation2 + $0xc] sm:$0xe] }
 0x329   :  { %v10095_v1 = vrot.slane %v4586_v14, 11  ;;  %v4732_v8 = vrot.slane %v13849_v22, 7  ;;  %v12022_v22 = vld [vmem:[#allocation9 + $0x58] sm:$0xff]  }
 0x32a   :  { %v4696_v56 = vrot.slane %v4694_v62, 4  ;;  %v4695_v43 = vsel %vm13869_vm10, %v10090_v49, %v4694_v62  ;;  %v4731_v2 = vrot.slane %v4729_v54, 4  ;;  %v13963_v49 = vld [vmem:[#allocation9] sm:$0xff]  }
 0x32b   :  { %v4730_v55 = vsel %vm13869_vm10, %v10095_v1, %v4729_v54  ;;  %11181 = vmatpush3.bf16.msra.mxu0 %v12020_v4 }
 0x32c   :  { %v4698_v33 = vsel %vm13869_vm10, %v4696_v56, %v4697_v36  ;;  %v4733_v58 = vsel %vm13869_vm10, %v4731_v2, %v4732_v8  ;;  %v13969_v56 = vld [vmem:[%s15460_s4] ss:$0 sm:$0xff]  ;;  %v12117_v2 = vld [vmem:[#allocation2] sm:$0xe] }
 0x32d   :  { %v10106_v57 = vcombine.low %v4695_v43, %v4698_v33  ;;  %v10111_v62 = vcombine.low %v4730_v55, %v4733_v58 }
 0x32f   :  { %11151 = vmatmul.mubr.bf16.gmra.mrb[20].mxu1 %v10099_v60  ;;  %v4583_v60 = vld [vmem:[#allocation2 + $0x90] sm:$0x8] }
 0x330   :  { %11154 = vmatprep.mubr.bf16.mxu1 %v10100_v26  ;;  %v10091_v26 = vrot.slane %v4582_v16, 11  ;;  %v10092_v25 = vrot.slane %v4583_v60, 11 }
 0x332   :  { %v4702_v40 = vsel %vm13869_vm10, %v10091_v26, %v4701_v50  ;;  %v4709_v29 = vsel %vm13869_vm10, %v10092_v25, %v4708_v42 }
 0x333   :  { %v10107_v37 = vcombine.low %v4702_v40, %v4705_v21  ;;  %v10108_v9 = vcombine.low %v4709_v29, %v4712_v46 }
 0x337   :  { %11155 = vmatmul.mubr.bf16.gmra.mrb[24].mxu1 %v10101_v53  ;;  %v4717_v53 = vrot.slane %v4715_v11, 4 }
 0x338   :  { %11158 = vmatprep.mubr.bf16.mxu1 %v10102_v31  ;;  %v10094_v31 = vrot.slane %v4585_v17, 11 }
 0x339   :  { %v4719_v27 = vsel %vm13869_vm10, %v4717_v53, %v4718_v61 }
 0x33a   :  { %v4723_v20 = vsel %vm13869_vm10, %v10094_v31, %v4722_v3  ;;  %v10109_v7 = vcombine.low %v4716_v19, %v4719_v27 }
 0x33b   :  { %v10110_v10 = vcombine.low %v4723_v20, %v4726_v47 }
 0x33f   :  { %11159 = vmatmul.mubr.bf16.gmra.mrb[28].mxu1 %v10103_v39  ;;  %v12021_v39 = vld [vmem:[#allocation9 + $0x50] sm:$0xff]  }
 0x340   :  { %11162 = vmatprep.mubr.bf16.mxu1 %v10104_v44  ;;  %11182 = vmatprep.subr.bf16.mxu0 %v12021_v39  ;;  %v12023_v44 = vld [vmem:[#allocation9 + $0x60] sm:$0xff]  }
 0x341   :  { %11183 = vmatpush3.bf16.msra.mxu0 %v12021_v39 }
 0x342   :  { %11184 = vmatprep.subr.bf16.mxu0 %v12022_v22 }
 0x345   :  { %11185 = vmatpush3.bf16.msra.mxu0 %v12022_v22  ;;  %v5585_v22 = vld [vmem:[#allocation2 + $0x14] sm:$0x3] }
 0x346   :  { %11186 = vmatprep.subr.bf16.mxu0 %v12023_v44 }
 0x347   :  { %11163 = vmatmul.mubr.bf16.gmra.mrb[32].mxu1 %v10105_v13 }
 0x348   :  { %11166 = vmatprep.mubr.bf16.mxu1 %v10106_v57 }
 0x349   :  { %11187 = vmatpush3.bf16.msra.mxu0 %v12023_v44 }
 0x34a   :  { %11188 = vmatprep.subr.bf16.mxu0 %v12024_v6 }
 0x34d   :  { %11189 = vmatpush3.bf16.msra.mxu0 %v12024_v6 }
 0x34e   :  { %11190 = vmatprep.subr.bf16.mxu0 %v12025_v28 }
 0x34f   :  { %11167 = vmatmul.mubr.bf16.gmra.mrb[36].mxu1 %v10107_v37 }
 0x350   :  { %11170 = vmatprep.mubr.bf16.mxu1 %v10108_v9 }
 0x351   :  { %11191 = vmatpush3.bf16.msra.mxu0 %v12025_v28 }
 0x352   :  { %11192 = vmatprep.subr.bf16.mxu0 %v12026_v15 }
 0x355   :  { %11193 = vmatpush3.bf16.msra.mxu0 %v12026_v15 }
 0x356   :  { %11226 = vmatprep.subr.bf16.mxu0 %v13963_v49 }
 0x357   :  { %11171 = vmatmul.mubr.bf16.gmra.mrb[40].mxu1 %v10109_v7 }
 0x358   :  { %11174 = vmatprep.mubr.bf16.mxu1 %v10110_v10 }
 0x35f   :  { %11175 = vmatmul.mubr.bf16.gmra.mrb[44].mxu1 %v10111_v62 }
 0x3fa   :  { %v11148_v36 = vpop.f32.mrb[16].mxu1 }
 0x3fb   :  { %v5065_v0 = vadd.f32 %v11148_v36, %v13969_v56  ;;  %v4897_v24 = vpop.f32.mrb[17].mxu1 }
 0x3fc   :  { %v5063_v30 = vadd.f32 %v13969_v56, %v4897_v24  ;;  %v11149_v50 = vpop.f32.mrb[18].mxu1 }
 0x3fd   :  { %v5097_v43 = vmax.f32 %v5065_v0, 0.0  ;;  %v5066_v33 = vadd.f32 %v11149_v50, %v13969_v56  ;;  %v4900_v16 = vpop.f32.mrb[19].mxu1 }
 0x3fe   :  { %v5095_v48 = vmax.f32 %v5063_v30, 0.0  ;;  %v5064_v42 = vadd.f32 %v13969_v56, %v4900_v16  ;;  %v5578_v30 = vld [vmem:[#allocation2 + $0x8] sm:$0x3] }
 0x3ff   :  { %v10404_v60 = vpack.c.bf16 %v5097_v43, %v5097_v43  ;;  %v5098_v13 = vmax.f32 %v5066_v33, 0.0 }
 0x400   :  { %v10402_v57 = vpack.c.bf16 %v5095_v48, %v5095_v48  ;;  %v5096_v26 = vmax.f32 %v5064_v42, 0.0 }
 0x401   :  { %v5243_v32 = vshrl.u32 %v10404_v60, 16  ;;  %v5246_v59 = vshll.u32 %v10404_v60, 16  ;;  %v10405_v25 = vpack.c.bf16 %v5098_v13, %v5098_v13 }
 0x402   :  { %v5224_v12 = vshrl.u32 %v10402_v57, 16  ;;  %v5227_v52 = vshll.u32 %v10402_v57, 16  ;;  %v10403_v40 = vpack.c.bf16 %v5096_v26, %v5096_v26  ;;  %v11152_v21 = vpop.f32.mrb[20].mxu1 }
 0x403   :  { %v5245_v41 = vrot.slane %v5243_v32, 6  ;;  %v5248_v11 = vrot.slane %v5246_v59, 7  ;;  %v5252_v29 = vshrl.u32 %v10405_v25, 16  ;;  %v5255_v46 = vshll.u32 %v10405_v25, 16  ;;  %v4913_v5 = vpop.f32.mrb[21].mxu1 }
 0x404   :  { %v5226_v38 = vrot.slane %v5224_v12, 6  ;;  %v5229_v3 = vrot.slane %v5227_v52, 7  ;;  %v5233_v17 = vshrl.u32 %v10403_v40, 16  ;;  %v5236_v37 = vshll.u32 %v10403_v40, 16  ;;  %v11153_v9 = vpop.f32.mrb[22].mxu1 }
 0x405   :  { %v5249_v23 = vor.u32 %v5248_v11, %v5245_v41  ;;  %v5254_v53 = vrot.slane %v5252_v29, 6  ;;  %v5257_v61 = vrot.slane %v5255_v46, 7  ;;  %v5069_v31 = vadd.f32 %v11152_v21, %v13969_v56  ;;  %v4916_v34 = vpop.f32.mrb[23].mxu1 }
 0x406   :  { %v5230_v19 = vor.u32 %v5229_v3, %v5226_v38  ;;  %v5235_v27 = vrot.slane %v5233_v17, 6  ;;  %v5238_v18 = vrot.slane %v5236_v37, 7  ;;  %v5067_v54 = vadd.f32 %v13969_v56, %v4913_v5  ;;  %v5595_v38 = vld [vmem:[#allocation2 + $0x24] sm:$0xe] }
 0x407   :  { %v5250_v20 = vrot.slane %v5249_v23, 4  ;;  %v5582_v14 = vsel %vm12491_vm8, %v5249_v23, %v5581_v35  ;;  %v5258_v7 = vor.u32 %v5257_v61, %v5254_v53  ;;  %v5101_v10 = vmax.f32 %v5069_v31, 0.0  ;;  %v5588_v61 = vld [vmem:[#allocation2 + $0x18] sm:$0xe] }
 0x408   :  { %5583 = vst [vmem:[#allocation2 + $0xc] sm:$0xe] %v5582_v14  ;;  %v5231_v1 = vrot.slane %v5230_v19, 4  ;;  %v5575_v8 = vsel %vm12491_vm8, %v5230_v19, %v12117_v2  ;;  %v5239_v55 = vor.u32 %v5238_v18, %v5235_v27  ;;  %v5099_v58 = vmax.f32 %v5067_v54, 0.0 }
 0x409   :  { %5576 = vst [vmem:[#allocation2] sm:$0xe] %v5575_v8  ;;  %v5259_v62 = vsel %vm12502_vm9, %v5250_v20, %v5258_v7  ;;  %v5260_v45 = vrot.slane %v5258_v7, 4  ;;  %v10408_v4 = vpack.c.bf16 %v5101_v10, %v5101_v10  ;;  %v5070_v39 = vadd.f32 %v11153_v9, %v13969_v56 }
 0x40a   :  { %5584 = vst [vmem:[#allocation2 + $0x10] sm:$0xf] %v5259_v62  ;;  %v5240_v44 = vsel %vm12502_vm9, %v5231_v1, %v5239_v55  ;;  %v5241_v6 = vrot.slane %v5239_v55, 4  ;;  %v10406_v28 = vpack.c.bf16 %v5099_v58, %v5099_v58  ;;  %v5068_v15 = vadd.f32 %v13969_v56, %v4916_v34  ;;  %v11156_v36 = vpop.f32.mrb[24].mxu1 }
 0x40b   :  { %v5586_v24 = vsel %vm12384_vm2, %v5260_v45, %v5585_v22  ;;  %5577 = vst [vmem:[#allocation2 + $0x4] sm:$0xf] %v5240_v44  ;;  %v5281_v50 = vshrl.u32 %v10408_v4, 16  ;;  %v5284_v43 = vshll.u32 %v10408_v4, 16  ;;  %v5102_v33 = vmax.f32 %v5070_v39, 0.0  ;;  %v4929_v16 = vpop.f32.mrb[25].mxu1 }
 0x40c   :  { %5587 = vst [vmem:[#allocation2 + $0x14] sm:$0x3] %v5586_v24  ;;  %v5579_v48 = vsel %vm12384_vm2, %v5241_v6, %v5578_v30  ;;  %v5262_v42 = vshrl.u32 %v10406_v28, 16  ;;  %v5265_v60 = vshll.u32 %v10406_v28, 16  ;;  %v5100_v13 = vmax.f32 %v5068_v15, 0.0  ;;  %v11157_v57 = vpop.f32.mrb[26].mxu1 }
 0x40d   :  { %5580 = vst [vmem:[#allocation2 + $0x8] sm:$0x3] %v5579_v48  ;;  %v5283_v26 = vrot.slane %v5281_v50, 6  ;;  %v5286_v32 = vrot.slane %v5284_v43, 7  ;;  %v10409_v59 = vpack.c.bf16 %v5102_v33, %v5102_v33  ;;  %v5073_v25 = vadd.f32 %v11156_v36, %v13969_v56  ;;  %v4932_v12 = vpop.f32.mrb[27].mxu1 }
 0x40e   :  { %v5264_v52 = vrot.slane %v5262_v42, 6  ;;  %v5267_v40 = vrot.slane %v5265_v60, 7  ;;  %v10407_v21 = vpack.c.bf16 %v5100_v13, %v5100_v13  ;;  %v5071_v41 = vadd.f32 %v13969_v56, %v4929_v16  ;;  %v5599_v6 = vld [vmem:[#allocation2 + $0x2c] sm:$0x3]  ;;  %v5592_v50 = vld [vmem:[#allocation2 + $0x20] sm:$0x3] }
 0x40f   :  { %v5287_v11 = vor.u32 %v5286_v32, %v5283_v26  ;;  %v5290_v29 = vshrl.u32 %v10409_v59, 16  ;;  %v5293_v46 = vshll.u32 %v10409_v59, 16  ;;  %v5105_v5 = vmax.f32 %v5073_v25, 0.0  ;;  %v5609_v25 = vld [vmem:[#allocation2 + $0x3c] sm:$0xe] }
 0x410   :  { %v5268_v3 = vor.u32 %v5267_v40, %v5264_v52  ;;  %v5271_v17 = vshrl.u32 %v10407_v21, 16  ;;  %v5274_v37 = vshll.u32 %v10407_v21, 16  ;;  %v5103_v9 = vmax.f32 %v5071_v41, 0.0 }
 0x411   :  { %v5288_v23 = vrot.slane %v5287_v11, 4  ;;  %v5596_v53 = vsel %vm12491_vm8, %v5287_v11, %v5595_v38  ;;  %v5292_v31 = vrot.slane %v5290_v29, 6  ;;  %v5295_v34 = vrot.slane %v5293_v46, 7  ;;  %v5602_v46 = vld [vmem:[#allocation2 + $0x30] sm:$0xe] }
 0x412   :  { %5597 = vst [vmem:[#allocation2 + $0x24] sm:$0xe] %v5596_v53  ;;  %v5269_v35 = vrot.slane %v5268_v3, 4  ;;  %v5589_v19 = vsel %vm12491_vm8, %v5268_v3, %v5588_v61  ;;  %v5273_v27 = vrot.slane %v5271_v17, 6  ;;  %v5276_v18 = vrot.slane %v5274_v37, 7  ;;  %v11160_v54 = vpop.f32.mrb[28].mxu1 }
 0x413   :  { %5590 = vst [vmem:[#allocation2 + $0x18] sm:$0xe] %v5589_v19  ;;  %v5296_v20 = vor.u32 %v5295_v34, %v5292_v31  ;;  %v10412_v14 = vpack.c.bf16 %v5105_v5, %v5105_v5  ;;  %v10410_v7 = vpack.c.bf16 %v5103_v9, %v5103_v9  ;;  %v5074_v10 = vadd.f32 %v11157_v57, %v13969_v56  ;;  %v4945_v1 = vpop.f32.mrb[29].mxu1 }
 0x414   :  { %v5277_v2 = vor.u32 %v5276_v18, %v5273_v27  ;;  %v5072_v8 = vadd.f32 %v13969_v56, %v4932_v12  ;;  %v5077_v55 = vadd.f32 %v11160_v54, %v13969_v56  ;;  %v5075_v58 = vadd.f32 %v13969_v56, %v4945_v1  ;;  %v11161_v62 = vpop.f32.mrb[30].mxu1 }
 0x415   :  { %v5297_v45 = vsel %vm12502_vm9, %v5288_v23, %v5296_v20  ;;  %v5298_v4 = vrot.slane %v5296_v20, 4  ;;  %v5319_v39 = vshrl.u32 %v10412_v14, 16  ;;  %v5322_v22 = vshll.u32 %v10412_v14, 16  ;;  %v4948_v44 = vpop.f32.mrb[31].mxu1 }
 0x416   :  { %5598 = vst [vmem:[#allocation2 + $0x28] sm:$0xf] %v5297_v45  ;;  %v5278_v28 = vsel %vm12502_vm9, %v5269_v35, %v5277_v2  ;;  %v5279_v15 = vrot.slane %v5277_v2, 4  ;;  %v5300_v36 = vshrl.u32 %v10410_v7, 16  ;;  %v5303_v24 = vshll.u32 %v10410_v7, 16 }
 0x417   :  { %v5600_v30 = vsel %vm12384_vm2, %v5298_v4, %v5599_v6  ;;  %5591 = vst [vmem:[#allocation2 + $0x1c] sm:$0xf] %v5278_v28  ;;  %v5321_v43 = vrot.slane %v5319_v39, 6  ;;  %v5324_v33 = vrot.slane %v5322_v22, 7  ;;  %v5106_v16 = vmax.f32 %v5074_v10, 0.0 }
 0x418   :  { %5601 = vst [vmem:[#allocation2 + $0x2c] sm:$0x3] %v5600_v30  ;;  %v5593_v48 = vsel %vm12384_vm2, %v5279_v15, %v5592_v50  ;;  %v5302_v42 = vrot.slane %v5300_v36, 6  ;;  %v5305_v60 = vrot.slane %v5303_v24, 7  ;;  %v5104_v13 = vmax.f32 %v5072_v8, 0.0 }
 0x419   :  { %5594 = vst [vmem:[#allocation2 + $0x20] sm:$0x3] %v5593_v48  ;;  %v5325_v57 = vor.u32 %v5324_v33, %v5321_v43  ;;  %v10413_v26 = vpack.c.bf16 %v5106_v16, %v5106_v16  ;;  %v5109_v32 = vmax.f32 %v5077_v55, 0.0  ;;  %v5107_v59 = vmax.f32 %v5075_v58, 0.0  ;;  %v5613_v4 = vld [vmem:[#allocation2 + $0x44] sm:$0x3] }
 0x41a   :  { %v5306_v12 = vor.u32 %v5305_v60, %v5302_v42  ;;  %v10411_v52 = vpack.c.bf16 %v5104_v13, %v5104_v13  ;;  %v5078_v40 = vadd.f32 %v11161_v62, %v13969_v56  ;;  %v5076_v21 = vadd.f32 %v13969_v56, %v4948_v44  ;;  %v14011_v41 = vpop.f32.mrb[32].mxu1  ;;  %v5606_v28 = vld [vmem:[#allocation2 + $0x38] sm:$0x3]  ;;  %v5623_v43 = vld [vmem:[#allocation2 + $0x54] sm:$0xe] }
 0x41b   :  { %v5326_v11 = vrot.slane %v5325_v57, 4  ;;  %v5610_v29 = vsel %vm12491_vm8, %v5325_v57, %v5609_v25  ;;  %v5328_v5 = vshrl.u32 %v10413_v26, 16  ;;  %v5331_v38 = vshll.u32 %v10413_v26, 16  ;;  %v14015_v3 = vpop.f32.mrb[33].mxu1  ;;  %v5616_v13 = vld [vmem:[#allocation2 + $0x48] sm:$0xe] }
 0x41c   :  { %5611 = vst [vmem:[#allocation2 + $0x3c] sm:$0xe] %v5610_v29  ;;  %v5307_v17 = vrot.slane %v5306_v12, 4  ;;  %v5603_v37 = vsel %vm12491_vm8, %v5306_v12, %v5602_v46  ;;  %v5309_v9 = vshrl.u32 %v10411_v52, 16  ;;  %v5312_v23 = vshll.u32 %v10411_v52, 16  ;;  %v11165_v53 = vpop.f32.mrb[34].mxu1 }
 0x41d   :  { %5604 = vst [vmem:[#allocation2 + $0x30] sm:$0xe] %v5603_v37  ;;  %v5330_v61 = vrot.slane %v5328_v5, 6  ;;  %v5333_v31 = vrot.slane %v5331_v38, 7  ;;  %v10416_v34 = vpack.c.bf16 %v5109_v32, %v5109_v32  ;;  %v10414_v35 = vpack.c.bf16 %v5107_v59, %v5107_v59  ;;  %v4964_v19 = vpop.f32.mrb[35].mxu1 }
 0x41e   :  { %v5311_v27 = vrot.slane %v5309_v9, 6  ;;  %v5314_v18 = vrot.slane %v5312_v23, 7  ;;  %v5110_v54 = vmax.f32 %v5078_v40, 0.0  ;;  %v5108_v20 = vmax.f32 %v5076_v21, 0.0  ;;  %v5686_v40 = vld [vmem:[#allocation2] sm:$0xf] }
 0x41f   :  { %v5334_v14 = vor.u32 %v5333_v31, %v5330_v61  ;;  %v5357_v7 = vshrl.u32 %v10416_v34, 16  ;;  %v5360_v10 = vshll.u32 %v10416_v34, 16  ;;  %v5338_v1 = vshrl.u32 %v10414_v35, 16 }
 0x420   :  { %v5315_v2 = vor.u32 %v5314_v18, %v5311_v27  ;;  %v5341_v8 = vshll.u32 %v10414_v35, 16  ;;  %v10417_v55 = vpack.c.bf16 %v5110_v54, %v5110_v54  ;;  %v10415_v58 = vpack.c.bf16 %v5108_v20, %v5108_v20  ;;  %v5627_v20 = vld [vmem:[#allocation2 + $0x5c] sm:$0x3] }
 0x421   :  { %v5335_v62 = vsel %vm12502_vm9, %v5326_v11, %v5334_v14  ;;  %v5336_v45 = vrot.slane %v5334_v14, 4  ;;  %v5359_v39 = vrot.slane %v5357_v7, 6  ;;  %v5362_v22 = vrot.slane %v5360_v10, 7  ;;  %v5620_v10 = vld [vmem:[#allocation2 + $0x50] sm:$0x3] }
 0x422   :  { %5612 = vst [vmem:[#allocation2 + $0x40] sm:$0xf] %v5335_v62  ;;  %v5316_v44 = vsel %vm12502_vm9, %v5307_v17, %v5315_v2  ;;  %v5317_v6 = vrot.slane %v5315_v2, 4  ;;  %v5340_v15 = vrot.slane %v5338_v1, 6  ;;  %v5343_v36 = vrot.slane %v5341_v8, 7  ;;  %v14023_v24 = vpop.f32.mrb[36].mxu1 }
 0x423   :  { %v5614_v30 = vsel %vm12384_vm2, %v5336_v45, %v5613_v4  ;;  %5605 = vst [vmem:[#allocation2 + $0x34] sm:$0xf] %v5316_v44  ;;  %v5363_v50 = vor.u32 %v5362_v22, %v5359_v39  ;;  %v5366_v33 = vshrl.u32 %v10417_v55, 16  ;;  %v5369_v16 = vshll.u32 %v10417_v55, 16  ;;  %v14027_v48 = vpop.f32.mrb[37].mxu1 }
 0x424   :  { %5615 = vst [vmem:[#allocation2 + $0x44] sm:$0x3] %v5614_v30  ;;  %v5607_v42 = vsel %vm12384_vm2, %v5317_v6, %v5606_v28  ;;  %v5344_v60 = vor.u32 %v5343_v36, %v5340_v15  ;;  %v5347_v57 = vshrl.u32 %v10415_v58, 16  ;;  %v5350_v26 = vshll.u32 %v10415_v58, 16  ;;  %v14031_v32 = vpop.f32.mrb[38].mxu1 }
 0x425   :  { %5608 = vst [vmem:[#allocation2 + $0x38] sm:$0x3] %v5607_v42  ;;  %v5364_v59 = vrot.slane %v5363_v50, 4  ;;  %v5624_v25 = vsel %vm12491_vm8, %v5363_v50, %v5623_v43  ;;  %v5368_v12 = vrot.slane %v5366_v33, 6  ;;  %v5371_v52 = vrot.slane %v5369_v16, 7  ;;  %v14035_v21 = vpop.f32.mrb[39].mxu1 }
 0x426   :  { %5625 = vst [vmem:[#allocation2 + $0x54] sm:$0xe] %v5624_v25  ;;  %v5345_v11 = vrot.slane %v5344_v60, 4  ;;  %v5617_v29 = vsel %vm12491_vm8, %v5344_v60, %v5616_v13  ;;  %v5349_v46 = vrot.slane %v5347_v57, 6  ;;  %v5352_v5 = vrot.slane %v5350_v26, 7 }
 0x427   :  { %5618 = vst [vmem:[#allocation2 + $0x48] sm:$0xe] %v5617_v29  ;;  %v5372_v38 = vor.u32 %v5371_v52, %v5368_v12  ;;  %v5081_v17 = vadd.f32 %v14011_v41, %v13969_v56  ;;  %v5079_v37 = vadd.f32 %v13969_v56, %v14015_v3  ;;  %v5082_v9 = vadd.f32 %v11165_v53, %v13969_v56  ;;  %v5687_v33 = vld [vmem:[#allocation2 + $0x4] sm:$0xf]  ;;  %v5734_v57 = vld [vmem:[#allocation2 + $0x8] sm:$0x1] }
 0x428   :  { %v5353_v23 = vor.u32 %v5352_v5, %v5349_v46  ;;  %v5080_v61 = vadd.f32 %v13969_v56, %v4964_v19  ;;  %v5751_v31 = vshrl.u32 %v5686_v40, 16  ;;  %v5754_v34 = vshll.u32 %v5686_v40, 16  ;;  %v5637_v40 = vld [vmem:[#allocation2 + $0x6c] sm:$0xe]  ;;  %v5630_v29 = vld [vmem:[#allocation2 + $0x60] sm:$0xe] }
 0x429   :  { %v5373_v35 = vsel %vm12502_vm9, %v5364_v59, %v5372_v38  ;;  %v5374_v27 = vrot.slane %v5372_v38, 4  ;;  %v5113_v18 = vmax.f32 %v5081_v17, 0.0  ;;  %v5111_v54 = vmax.f32 %v5079_v37, 0.0 }
 0x42a   :  { %5626 = vst [vmem:[#allocation2 + $0x58] sm:$0xf] %v5373_v35  ;;  %v5354_v41 = vsel %vm12502_vm9, %v5345_v11, %v5353_v23  ;;  %v5355_v14 = vrot.slane %v5353_v23, 4  ;;  %v5114_v3 = vmax.f32 %v5082_v9, 0.0  ;;  %v5112_v7 = vmax.f32 %v5080_v61, 0.0  ;;  %v14049_v53 = vpop.f32.mrb[40].mxu1 }
 0x42b   :  { %v5628_v19 = vsel %vm12384_vm2, %v5374_v27, %v5627_v20  ;;  %5619 = vst [vmem:[#allocation2 + $0x4c] sm:$0xf] %v5354_v41  ;;  %v10420_v1 = vpack.c.bf16 %v5113_v18, %v5113_v18  ;;  %v10418_v2 = vpack.c.bf16 %v5111_v54, %v5111_v54  ;;  %v5753_v8 = vrot.slane %v5751_v31, 4  ;;  %v14053_v55 = vpop.f32.mrb[41].mxu1  ;;  %v5688_v23 = vld [vmem:[#allocation2 + $0xc] sm:$0xf] }
 0x42c   :  { %5629 = vst [vmem:[#allocation2 + $0x5c] sm:$0x3] %v5628_v19  ;;  %v5621_v58 = vsel %vm12384_vm2, %v5355_v14, %v5620_v10  ;;  %v10421_v62 = vpack.c.bf16 %v5114_v3, %v5114_v3  ;;  %v10419_v45 = vpack.c.bf16 %v5112_v7, %v5112_v7  ;;  %v5756_v4 = vrot.slane %v5754_v34, 5  ;;  %v14057_v39 = vpop.f32.mrb[42].mxu1  ;;  %v5641_v18 = vld [vmem:[#allocation2 + $0x74] sm:$0x3] }
 0x42d   :  { %5622 = vst [vmem:[#allocation2 + $0x50] sm:$0x3] %v5621_v58  ;;  %v5395_v22 = vshrl.u32 %v10420_v1, 16  ;;  %v5398_v44 = vshll.u32 %v10420_v1, 16  ;;  %v5376_v6 = vshrl.u32 %v10418_v2, 16  ;;  %v5379_v28 = vshll.u32 %v10418_v2, 16 }
 0x42e   :  { %v14059_v15 = vpop.f32.mrb[43].mxu1  ;;  %v5404_v36 = vshrl.u32 %v10421_v62, 16  ;;  %v5407_v30 = vshll.u32 %v10421_v62, 16  ;;  %v5385_v50 = vshrl.u32 %v10419_v45, 16  ;;  %v5388_v43 = vshll.u32 %v10419_v45, 16 }
 0x42f   :  { %v5397_v16 = vrot.slane %v5395_v22, 6  ;;  %v5400_v42 = vrot.slane %v5398_v44, 7  ;;  %v5378_v60 = vrot.slane %v5376_v6, 6  ;;  %v5381_v13 = vrot.slane %v5379_v28, 7  ;;  %v5634_v54 = vld [vmem:[#allocation2 + $0x68] sm:$0x3] }
 0x430   :  { %v5406_v26 = vrot.slane %v5404_v36, 6  ;;  %v5409_v59 = vrot.slane %v5407_v30, 7  ;;  %v5387_v25 = vrot.slane %v5385_v50, 6  ;;  %v5390_v12 = vrot.slane %v5388_v43, 7  ;;  %v5689_v20 = vld [vmem:[#allocation2 + $0x10] sm:$0xf] }
 0x431   :  { %v5401_v52 = vor.u32 %v5400_v42, %v5397_v16  ;;  %v5382_v11 = vor.u32 %v5381_v13, %v5378_v60  ;;  %v5757_v46 = vor.u32 %v5756_v4, %v5753_v8  ;;  %v14061_v5 = vshll.u32 %v5687_v33, 16  ;;  %v5735_v62 = vld [vmem:[#allocation2 + $0x14] sm:$0x1] }
 0x432   :  { %v5410_v38 = vor.u32 %v5409_v59, %v5406_v26  ;;  %v5391_v17 = vor.u32 %v5390_v12, %v5387_v25  ;;  %v14063_v37 = vshrl.u32 %v5687_v33, 16  ;;  %v5770_v9 = vshll.u32 %v5734_v57, 16  ;;  %v14065_v61 = vpop.f32.mrb[44].mxu1  ;;  %v12042_v44 = vld [vmem:[#allocation9 + $0x90] sm:$0xff]  }
 0x433   :  { %15795 = vst [vmem:[#allocation24_spill] sm:$0xff] %v14061_v5  ;;  %v5402_v31 = vrot.slane %v5401_v52, 4  ;;  %v5638_v34 = vsel %vm12491_vm8, %v5401_v52, %v5637_v40  ;;  %v5383_v35 = vrot.slane %v5382_v11, 4  ;;  %v5631_v27 = vsel %vm12491_vm8, %v5382_v11, %v5630_v29  ;;  %v14071_v41 = vpop.f32.mrb[45].mxu1  ;;  %v14101_v11 = vld [vmem:[#allocation2 + $0x18] sm:$0xf] }
 0x434   :  { %15796 = vst [vmem:[#allocation27_spill] sm:$0xff] %v14063_v37  ;;  %5639 = vst [vmem:[#allocation2 + $0x6c] sm:$0xe] %v5638_v34  ;;  %v5412_v14 = vrot.slane %v5410_v38, 4  ;;  %v5393_v3 = vrot.slane %v5391_v17, 4  ;;  %v5758_v7 = vrot.slane %v5757_v46, 4  ;;  %v5085_v42 = vadd.f32 %v14023_v24, %v13969_v56 }
 0x435   :  { %5632 = vst [vmem:[#allocation2 + $0x60] sm:$0xe] %v5631_v27  ;;  %v5762_v19 = vrot.slane %v14061_v5, 5  ;;  %v14074_v10 = vpop.f32.mrb[46].mxu1  ;;  %v5411_v1 = vsel %vm12502_vm9, %v5402_v31, %v5410_v38  ;;  %v5392_v2 = vsel %vm12502_vm9, %v5383_v35, %v5391_v17  ;;  %v5766_v8 = vrot.slane %v14063_v37, 4 }
 0x436   :  { %v5772_v58 = vrot.slane %v5770_v9, 5  ;;  %v14081_v45 = vpop.f32.mrb[47].mxu1  ;;  %5640 = vst [vmem:[#allocation2 + $0x70] sm:$0xf] %v5411_v1  ;;  %v5642_v4 = vsel %vm12384_vm2, %v5412_v14, %v5641_v18  ;;  %5633 = vst [vmem:[#allocation2 + $0x64] sm:$0xf] %v5392_v2  ;;  %v5635_v22 = vsel %vm12384_vm2, %v5393_v3, %v5634_v54  ;;  %v5083_v60 = vadd.f32 %v13969_v56, %v14027_v48 }
 0x437   :  { %v5763_v6 = vsel %vm12638_vm12, %v5758_v7, %v5762_v19  ;;  %v5775_v28 = vshrl.u32 %v5688_v23, 16  ;;  %5643 = vst [vmem:[#allocation2 + $0x74] sm:$0x3] %v5642_v4  ;;  %5636 = vst [vmem:[#allocation2 + $0x68] sm:$0x3] %v5635_v22  ;;  %v5767_v36 = vor.u32 %v5766_v8, %v5762_v19  ;;  %v5778_v30 = vshll.u32 %v5688_v23, 16 }
 0x438   :  { %v14089_v50 = vshll.u32 %v5689_v20, 16  ;;  %v14091_v43 = vshrl.u32 %v5689_v20, 16  ;;  %v5794_v16 = vshll.u32 %v5735_v62, 16  ;;  %v5117_v12 = vmax.f32 %v5085_v42, 0.0  ;;  %v5651_v62 = vld [vmem:[#allocation2 + $0x84] sm:$0xe] }
 0x439   :  { %v5777_v33 = vrot.slane %v5775_v28, 4  ;;  %v5768_v13 = vrot.slane %v5767_v36, 4  ;;  %v5780_v57 = vrot.slane %v5778_v30, 5  ;;  %v5115_v52 = vmax.f32 %v5083_v60, 0.0  ;;  %v5644_v30 = vld [vmem:[#allocation2 + $0x78] sm:$0xe] }
 0x43a   :  { %15798 = vst [vmem:[#allocation26_spill] sm:$0xff] %v14089_v50  ;;  %15799 = vst [vmem:[#allocation29_spill] sm:$0xff] %v14091_v43  ;;  %v5786_v26 = vrot.slane %v14089_v50, 5  ;;  %v5790_v59 = vrot.slane %v14091_v43, 4  ;;  %v5796_v25 = vrot.slane %v5794_v16, 5  ;;  %v5086_v40 = vadd.f32 %v14031_v32, %v13969_v56 }
 0x43b   :  { %v5773_v24 = vsel %vm12638_vm12, %v5768_v13, %v5772_v58  ;;  %v5781_v29 = vor.u32 %v5780_v57, %v5777_v33  ;;  %v5084_v48 = vadd.f32 %v13969_v56, %v14035_v21  ;;  %v10424_v17 = vpack.c.bf16 %v5117_v12, %v5117_v12  ;;  %v12028_v58 = vld [vmem:[#allocation9 + $0x8] sm:$0xff]   ;;  %v14112_v16 = vld [vmem:[#allocation2 + $0x1c] sm:$0xf] }
 0x43c   :  { %v5791_v46 = vor.u32 %v5790_v59, %v5786_v26  ;;  %v10153_v38 = vcombine.low %v5763_v6, %v5773_v24  ;;  %v10422_v9 = vpack.c.bf16 %v5115_v52, %v5115_v52  ;;  %v5118_v23 = vmax.f32 %v5086_v40, 0.0 }
 0x43d   :  { %v5782_v31 = vrot.slane %v5781_v29, 4  ;;  %v5116_v35 = vmax.f32 %v5084_v48, 0.0  ;;  %v5799_v27 = vshrl.u32 %v14101_v11, 16  ;;  %v5433_v32 = vshrl.u32 %v10424_v17, 16  ;;  %v14120_v29 = vld [vmem:[#allocation2 + $0x24] sm:$0xf] }
 0x43e   :  { %v5792_v34 = vrot.slane %v5791_v46, 4  ;;  %11194 = vmatprep.mubr.bf16.mxu0 %v10153_v38  ;;  %v5436_v18 = vshll.u32 %v10424_v17, 16  ;;  %v5414_v54 = vshrl.u32 %v10422_v9, 16  ;;  %v5417_v20 = vshll.u32 %v10422_v9, 16  ;;  %v12029_v46 = vld [vmem:[#allocation9 + $0x10] sm:$0xff]  }
 0x43f   :  { %v5787_v14 = vsel %vm12638_vm12, %v5782_v31, %v5786_v26  ;;  %v10425_v3 = vpack.c.bf16 %v5118_v23, %v5118_v23  ;;  %v10423_v7 = vpack.c.bf16 %v5116_v35, %v5116_v35  ;;  %v5435_v1 = vrot.slane %v5433_v32, 6  ;;  %v5655_v9 = vld [vmem:[#allocation2 + $0x8c] sm:$0x3] }
 0x440   :  { %v5797_v21 = vsel %vm12638_vm12, %v5792_v34, %v5796_v25  ;;  %v5438_v2 = vrot.slane %v5436_v18, 7  ;;  %v5416_v8 = vrot.slane %v5414_v54, 6  ;;  %v5419_v4 = vrot.slane %v5417_v20, 7  ;;  %v14116_v25 = vld [vmem:[#allocation2 + $0x20] sm:$0x1] }
 0x441   :  { %v10154_v19 = vcombine.low %v5787_v14, %v5797_v21  ;;  %v5442_v22 = vshrl.u32 %v10425_v3, 16  ;;  %v5445_v6 = vshll.u32 %v10425_v3, 16  ;;  %v5423_v28 = vshrl.u32 %v10423_v7, 16  ;;  %v14134_v54 = vld [vmem:[#allocation2 + $0x28] sm:$0xf] }
 0x442   :  { %v5439_v36 = vor.u32 %v5438_v2, %v5435_v1  ;;  %v5426_v33 = vshll.u32 %v10423_v7, 16  ;;  %v5801_v42 = vrot.slane %v5799_v27, 4  ;;  %v5802_v60 = vshll.u32 %v14101_v11, 16  ;;  %v12030_v1 = vld [vmem:[#allocation9 + $0x18] sm:$0xff]  }
 0x443   :  { %11195 = vmatmul.mubr.bf16.vlgmr.msra.gmra.mrb[16].mxu0 %v10154_v19  ;;  %v5420_v13 = vor.u32 %v5419_v4, %v5416_v8  ;;  %v5444_v57 = vrot.slane %v5442_v22, 6  ;;  %v5447_v26 = vrot.slane %v5445_v6, 7  ;;  %v5425_v59 = vrot.slane %v5423_v28, 6  ;;  %v14140_v19 = vld [vmem:[#allocation2 + $0x2c] sm:$0x1] }
 0x444   :  { %11227 = vmatpush3.bf16.msra.mxu0 %v13963_v49  ;;  %v5440_v12 = vrot.slane %v5439_v36, 4  ;;  %v5652_v52 = vsel %vm12491_vm8, %v5439_v36, %v5651_v62  ;;  %v5428_v40 = vrot.slane %v5426_v33, 7  ;;  %v5804_v24 = vrot.slane %v5802_v60, 5  ;;  %v5648_v8 = vld [vmem:[#allocation2 + $0x80] sm:$0x3] }
 0x445   :  { %11228 = vmatprep.subr.bf16.mxu0 %v12028_v58  ;;  %5653 = vst [vmem:[#allocation2 + $0x84] sm:$0xe] %v5652_v52  ;;  %v5421_v48 = vrot.slane %v5420_v13, 4  ;;  %v5645_v49 = vsel %vm12491_vm8, %v5420_v13, %v5644_v30  ;;  %v5448_v38 = vor.u32 %v5447_v26, %v5444_v57  ;;  %v14125_v17 = vshll.u32 %v14112_v16, 16 }
 0x446   :  { %5646 = vst [vmem:[#allocation2 + $0x78] sm:$0xe] %v5645_v49  ;;  %v5429_v23 = vor.u32 %v5428_v40, %v5425_v59  ;;  %v5805_v31 = vor.u32 %v5804_v24, %v5801_v42  ;;  %v14128_v34 = vshrl.u32 %v14112_v16, 16  ;;  %v5818_v35 = vshll.u32 %v14116_v25, 16  ;;  %v14164_v49 = vld [vmem:[#allocation2 + $0x30] sm:$0xf] }
 0x447   :  { %15800 = vst [vmem:[#allocation28_spill] sm:$0xff] %v14125_v17  ;;  %v5449_v27 = vsel %vm12502_vm9, %v5440_v12, %v5448_v38  ;;  %v5450_v32 = vrot.slane %v5448_v38, 4  ;;  %v5810_v18 = vrot.slane %v14125_v17, 5  ;;  %v5823_v20 = vshrl.u32 %v14120_v29, 16  ;;  %v12031_v12 = vld [vmem:[#allocation9 + $0x20] sm:$0xff]  }
 0x448   :  { %15801 = vst [vmem:[#allocation32_spill] sm:$0xff] %v14128_v34  ;;  %11229 = vmatpush3.bf16.msra.mxu0 %v12028_v58  ;;  %5654 = vst [vmem:[#allocation2 + $0x88] sm:$0xf] %v5449_v27  ;;  %v5430_v14 = vsel %vm12502_vm9, %v5421_v48, %v5429_v23  ;;  %v5431_v21 = vrot.slane %v5429_v23, 4  ;;  %v5806_v3 = vrot.slane %v5805_v31, 4  ;;  %v5814_v7 = vrot.slane %v14128_v34, 4 }
 0x449   :  { %11230 = vmatprep.subr.bf16.mxu0 %v12029_v46  ;;  %v5656_v2 = vsel %vm12384_vm2, %v5450_v32, %v5655_v9  ;;  %5647 = vst [vmem:[#allocation2 + $0x7c] sm:$0xf] %v5430_v14  ;;  %v5820_v62 = vrot.slane %v5818_v35, 5  ;;  %v5825_v4 = vrot.slane %v5823_v20, 4  ;;  %v5826_v58 = vshll.u32 %v14120_v29, 16  ;;  %v12032_v20 = vld [vmem:[#allocation9 + $0x28] sm:$0xff]  }
 0x44a   :  { %5657 = vst [vmem:[#allocation2 + $0x8c] sm:$0x3] %v5656_v2  ;;  %v5649_v22 = vsel %vm12384_vm2, %v5431_v21, %v5648_v8  ;;  %v5811_v6 = vsel %vm12638_vm12, %v5806_v3, %v5810_v18  ;;  %v5815_v28 = vor.u32 %v5814_v7, %v5810_v18  ;;  %v14150_v36 = vshll.u32 %v14134_v54, 16 }
 0x44b   :  { %5650 = vst [vmem:[#allocation2 + $0x80] sm:$0x3] %v5649_v22  ;;  %v5828_v30 = vrot.slane %v5826_v58, 5  ;;  %v14153_v33 = vshrl.u32 %v14134_v54, 16  ;;  %v5842_v42 = vshll.u32 %v14140_v19, 16  ;;  %v5089_v60 = vadd.f32 %v14049_v53, %v13969_v56 }
 0x44c   :  { %15802 = vst [vmem:[#allocation35_spill] sm:$0xff] %v14150_v36  ;;  %11231 = vmatpush3.bf16.msra.mxu0 %v12029_v46  ;;  %v5816_v13 = vrot.slane %v5815_v28, 4  ;;  %v5834_v57 = vrot.slane %v14150_v36, 5  ;;  %v5087_v26 = vadd.f32 %v13969_v56, %v14053_v55  ;;  %v5090_v59 = vadd.f32 %v14057_v39, %v13969_v56  ;;  %v14175_v22 = vld [vmem:[#allocation2 + $0x34] sm:$0xf] }
 0x44d   :  { %15803 = vst [vmem:[#allocation34_spill] sm:$0xff] %v14153_v33  ;;  %11232 = vmatprep.subr.bf16.mxu0 %v12030_v1  ;;  %v5829_v52 = vor.u32 %v5828_v30, %v5825_v4  ;;  %v5838_v40 = vrot.slane %v14153_v33, 4  ;;  %v5844_v24 = vrot.slane %v5842_v42, 5  ;;  %v5121_v48 = vmax.f32 %v5089_v60, 0.0  ;;  %v12033_v60 = vld [vmem:[#allocation9 + $0x30] sm:$0xff]  }
 0x44e   :  { %v5821_v53 = vsel %vm12638_vm12, %v5816_v13, %v5820_v62  ;;  %v5119_v46 = vmax.f32 %v5087_v26, 0.0  ;;  %v5122_v38 = vmax.f32 %v5090_v59, 0.0  ;;  %v5088_v55 = vadd.f32 %v13969_v56, %v14059_v15 }
 0x44f   :  { %v10155_v9 = vcombine.low %v5811_v6, %v5821_v53  ;;  %v5830_v23 = vrot.slane %v5829_v52, 4  ;;  %v5839_v39 = vor.u32 %v5838_v40, %v5834_v57  ;;  %v10428_v31 = vpack.c.bf16 %v5121_v48, %v5121_v48 }
 0x450   :  { %11233 = vmatpush3.bf16.msra.mxu0 %v12030_v1  ;;  %v10426_v35 = vpack.c.bf16 %v5119_v46, %v5119_v46  ;;  %v10429_v27 = vpack.c.bf16 %v5122_v38, %v5122_v38  ;;  %v5120_v32 = vmax.f32 %v5088_v55, 0.0  ;;  %v5847_v18 = vshrl.u32 %v14164_v49, 16 }
 0x451   :  { %11234 = vmatprep.subr.bf16.mxu0 %v12031_v12  ;;  %11198 = vmatprep.mubr.bf16.mxu0 %v10155_v9  ;;  %v5835_v14 = vsel %vm12638_vm12, %v5830_v23, %v5834_v57  ;;  %v5840_v21 = vrot.slane %v5839_v39, 4  ;;  %v5471_v3 = vshrl.u32 %v10428_v31, 16  ;;  %v5474_v7 = vshll.u32 %v10428_v31, 16  ;;  %v5665_v57 = vld [vmem:[#allocation2 + $0x9c] sm:$0xe] }
 0x452   :  { %v5452_v56 = vshrl.u32 %v10426_v35, 16  ;;  %v5455_v15 = vshll.u32 %v10426_v35, 16  ;;  %v5480_v2 = vshrl.u32 %v10429_v27, 16  ;;  %v5483_v8 = vshll.u32 %v10429_v27, 16  ;;  %v14183_v23 = vld [vmem:[#allocation2 + $0x38] sm:$0x1] }
 0x453   :  { %v5845_v1 = vsel %vm12638_vm12, %v5840_v21, %v5844_v24  ;;  %v5473_v62 = vrot.slane %v5471_v3, 6  ;;  %v5476_v4 = vrot.slane %v5474_v7, 7  ;;  %v10427_v58 = vpack.c.bf16 %v5120_v32, %v5120_v32  ;;  %v5658_v24 = vld [vmem:[#allocation2 + $0x90] sm:$0xe]  ;;  %v14185_v39 = vld [vmem:[#allocation2 + $0x3c] sm:$0xf] }
 0x454   :  { %11235 = vmatpush3.bf16.msra.mxu0 %v12031_v12  ;;  %v10156_v6 = vcombine.low %v5835_v14, %v5845_v1  ;;  %v5454_v28 = vrot.slane %v5452_v56, 6  ;;  %v5457_v30 = vrot.slane %v5455_v15, 7  ;;  %v5482_v42 = vrot.slane %v5480_v2, 6  ;;  %v12034_v14 = vld [vmem:[#allocation9 + $0x38] sm:$0xff]   ;;  %v5669_v56 = vld [vmem:[#allocation2 + $0xa4] sm:$0x3] }
 0x455   :  { %11236 = vmatprep.subr.bf16.mxu0 %v12032_v20  ;;  %v5477_v13 = vor.u32 %v5476_v4, %v5473_v62  ;;  %v5485_v26 = vrot.slane %v5483_v8, 7  ;;  %v5461_v59 = vshrl.u32 %v10427_v58, 16  ;;  %v5464_v52 = vshll.u32 %v10427_v58, 16  ;;  %v14202_v58 = vld [vmem:[#allocation2 + $0x44] sm:$0x1] }
 0x456   :  { %11199 = vmatmul.mubr.bf16.gmra.mrb[20].mxu0 %v10156_v6  ;;  %v5458_v40 = vor.u32 %v5457_v30, %v5454_v28  ;;  %v5849_v48 = vrot.slane %v5847_v18, 4  ;;  %v5850_v53 = vshll.u32 %v14164_v49, 16  ;;  %v14179_v46 = vshll.u32 %v14175_v22, 16  ;;  %v14189_v18 = vld [vmem:[#allocation2 + $0x40] sm:$0xf] }
 0x457   :  { %v5478_v12 = vrot.slane %v5477_v13, 4  ;;  %v5666_v38 = vsel %vm12491_vm8, %v5477_v13, %v5665_v57  ;;  %v5486_v55 = vor.u32 %v5485_v26, %v5482_v42  ;;  %v5463_v9 = vrot.slane %v5461_v59, 6  ;;  %v14210_v26 = vld [vmem:[#allocation9 + $0x80] sm:$0xff]   ;;  %v5662_v59 = vld [vmem:[#allocation2 + $0x98] sm:$0x3] }
 0x458   :  { %15804 = vst [vmem:[#allocation37_spill] sm:$0xff] %v14179_v46  ;;  %11237 = vmatpush3.bf16.msra.mxu0 %v12032_v20  ;;  %5667 = vst [vmem:[#allocation2 + $0x9c] sm:$0xe] %v5666_v38  ;;  %v5459_v31 = vrot.slane %v5458_v40, 4  ;;  %v5659_v35 = vsel %vm12491_vm8, %v5458_v40, %v5658_v24  ;;  %v5466_v27 = vrot.slane %v5464_v52, 7  ;;  %v5852_v32 = vrot.slane %v5850_v53, 5 }
 0x459   :  { %11238 = vmatprep.subr.bf16.mxu0 %v12033_v60  ;;  %5660 = vst [vmem:[#allocation2 + $0x90] sm:$0xe] %v5659_v35  ;;  %v5487_v21 = vsel %vm12502_vm9, %v5478_v12, %v5486_v55  ;;  %v5488_v3 = vrot.slane %v5486_v55, 4  ;;  %v5858_v7 = vrot.slane %v14179_v46, 5  ;;  %v14195_v20 = vshrl.u32 %v14175_v22, 16 }
 0x45a   :  { %5668 = vst [vmem:[#allocation2 + $0xa0] sm:$0xf] %v5487_v21  ;;  %v5467_v15 = vor.u32 %v5466_v27, %v5463_v9  ;;  %v5853_v2 = vor.u32 %v5852_v32, %v5849_v48  ;;  %v5866_v8 = vshll.u32 %v14183_v23, 16  ;;  %v5871_v1 = vshrl.u32 %v14185_v39, 16 }
 0x45b   :  { %15805 = vst [vmem:[#allocation36_spill] sm:$0xff] %v14195_v20  ;;  %v5670_v62 = vsel %vm12384_vm2, %v5488_v3, %v5669_v56  ;;  %v5862_v4 = vrot.slane %v14195_v20, 4  ;;  %v5874_v6 = vshll.u32 %v14185_v39, 16  ;;  %v14206_v28 = vshll.u32 %v14189_v18, 16  ;;  %v14229_v56 = vld [vmem:[#allocation2 + $0x48] sm:$0xf] }
 0x45c   :  { %11239 = vmatpush3.bf16.msra.mxu0 %v12033_v60  ;;  %5671 = vst [vmem:[#allocation2 + $0xa4] sm:$0x3] %v5670_v62  ;;  %v5468_v30 = vsel %vm12502_vm9, %v5459_v31, %v5467_v15  ;;  %v5469_v42 = vrot.slane %v5467_v15, 4  ;;  %v5854_v13 = vrot.slane %v5853_v2, 4  ;;  %v5868_v57 = vrot.slane %v5866_v8, 5 }
 0x45d   :  { %15806 = vst [vmem:[#allocation45_spill] sm:$0xff] %v14206_v28  ;;  %11240 = vmatprep.subr.bf16.mxu0 %v12034_v14  ;;  %5661 = vst [vmem:[#allocation2 + $0x94] sm:$0xf] %v5468_v30  ;;  %v5863_v52 = vor.u32 %v5862_v4, %v5858_v7  ;;  %v5873_v40 = vrot.slane %v5871_v1, 4  ;;  %v5876_v24 = vrot.slane %v5874_v6, 5  ;;  %v5882_v48 = vrot.slane %v14206_v28, 5 }
 0x45e   :  { %v5663_v60 = vsel %vm12384_vm2, %v5469_v42, %v5662_v59  ;;  %v5859_v53 = vsel %vm12638_vm12, %v5854_v13, %v5858_v7  ;;  %v14218_v12 = vshrl.u32 %v14189_v18, 16  ;;  %v5890_v38 = vshll.u32 %v14202_v58, 16  ;;  %v12118_v31 = vld [vmem:[%s15460_s4] ss:$0 sm:$0xff] }
 0x45f   :  { %5664 = vst [vmem:[#allocation2 + $0x98] sm:$0x3] %v5663_v60  ;;  %v5864_v55 = vrot.slane %v5863_v52, 4  ;;  %v5877_v9 = vor.u32 %v5876_v24, %v5873_v40  ;;  %v5093_v35 = vadd.f32 %v12118_v31, %v14065_v61  ;;  %v5091_v27 = vadd.f32 %v12118_v31, %v14071_v41 }
 0x460   :  { %15807 = vst [vmem:[#allocation44_spill] sm:$0xff] %v14218_v12  ;;  %11241 = vmatpush3.bf16.msra.mxu0 %v12034_v14  ;;  %v5886_v32 = vrot.slane %v14218_v12, 4  ;;  %v5892_v21 = vrot.slane %v5890_v38, 5  ;;  %v5094_v3 = vadd.f32 %v12118_v31, %v14074_v10  ;;  %v5092_v7 = vadd.f32 %v12118_v31, %v14081_v45  ;;  %v14351_v12 = vld [vmem:[#allocation2 + $0x8c] sm:$0x1] }
 0x461   :  { %11274 = vmatprep.subr.bf16.mxu0 %v14210_v26  ;;  %v5869_v15 = vsel %vm12638_vm12, %v5864_v55, %v5868_v57  ;;  %v5878_v2 = vrot.slane %v5877_v9, 4  ;;  %v5125_v8 = vmax.f32 %v5093_v35, 0.0  ;;  %v5123_v61 = vmax.f32 %v5091_v27, 0.0  ;;  %v14240_v27 = vld [vmem:[#allocation2 + $0x4c] sm:$0xf] }
 0x462   :  { %v10157_v1 = vcombine.low %v5859_v53, %v5869_v15  ;;  %v5887_v41 = vor.u32 %v5886_v32, %v5882_v48  ;;  %v5126_v14 = vmax.f32 %v5094_v3, 0.0  ;;  %v5124_v62 = vmax.f32 %v5092_v7, 0.0  ;;  %v14386_v20 = vld [vmem:[#allocation2 + $0xa0] sm:$0xf] }
 0x463   :  { %v5883_v4 = vsel %vm12638_vm12, %v5878_v2, %v5882_v48  ;;  %v10432_v10 = vpack.c.bf16 %v5125_v8, %v5125_v8  ;;  %v10430_v6 = vpack.c.bf16 %v5123_v61, %v5123_v61  ;;  %v5895_v45 = vshrl.u32 %v14229_v56, 16 }
 0x464   :  { %11202 = vmatprep.mubr.bf16.mxu0 %v10157_v1  ;;  %v5888_v30 = vrot.slane %v5887_v41, 4  ;;  %v10433_v42 = vpack.c.bf16 %v5126_v14, %v5126_v14  ;;  %v10431_v13 = vpack.c.bf16 %v5124_v62, %v5124_v62  ;;  %v5898_v57 = vshll.u32 %v14229_v56, 16  ;;  %v5679_v41 = vld [vmem:[#allocation2 + $0xb4] sm:$0xe]  ;;  %v5672_v14 = vld [vmem:[#allocation2 + $0xa8] sm:$0xe] }
 0x465   :  { %v5509_v59 = vshrl.u32 %v10432_v10, 16  ;;  %v5512_v52 = vshll.u32 %v10432_v10, 16  ;;  %v5490_v40 = vshrl.u32 %v10430_v6, 16  ;;  %v5493_v24 = vshll.u32 %v10430_v6, 16 }
 0x466   :  { %v5893_v60 = vsel %vm12638_vm12, %v5888_v30, %v5892_v21  ;;  %v5518_v53 = vshrl.u32 %v10433_v42, 16  ;;  %v5521_v38 = vshll.u32 %v10433_v42, 16  ;;  %v5499_v48 = vshrl.u32 %v10431_v13, 16 }
 0x467   :  { %v10158_v55 = vcombine.low %v5883_v4, %v5893_v60  ;;  %v5511_v9 = vrot.slane %v5509_v59, 6  ;;  %v5514_v31 = vrot.slane %v5512_v52, 7  ;;  %v5492_v35 = vrot.slane %v5490_v40, 6  ;;  %v14250_v59 = vld [vmem:[#allocation2 + $0x50] sm:$0x1] }
 0x468   :  { %v5495_v32 = vrot.slane %v5493_v24, 7  ;;  %v5520_v3 = vrot.slane %v5518_v53, 6  ;;  %v5523_v7 = vrot.slane %v5521_v38, 7  ;;  %v5501_v15 = vrot.slane %v5499_v48, 6  ;;  %v5683_v53 = vld [vmem:[#allocation2 + $0xbc] sm:$0x3] }
 0x469   :  { %11203 = vmatmul.mubr.bf16.gmra.mrb[24].mxu0 %v10158_v55  ;;  %v5515_v2 = vor.u32 %v5514_v31, %v5511_v9  ;;  %v5502_v8 = vshll.u32 %v10431_v13, 16  ;;  %v5897_v61 = vrot.slane %v5895_v45, 4  ;;  %v5900_v1 = vrot.slane %v5898_v57, 5  ;;  %v14252_v45 = vld [vmem:[#allocation2 + $0x54] sm:$0xf] }
 0x46a   :  { %v5496_v21 = vor.u32 %v5495_v32, %v5492_v35  ;;  %v5524_v62 = vor.u32 %v5523_v7, %v5520_v3  ;;  %v14243_v4 = vshll.u32 %v14240_v27, 16  ;;  %v14246_v10 = vshrl.u32 %v14240_v27, 16  ;;  %v14260_v9 = vld [vmem:[#allocation2 + $0x58] sm:$0xf]  ;;  %v14265_v35 = vld [vmem:[#allocation2 + $0x5c] sm:$0x1] }
 0x46b   :  { %v5516_v6 = vrot.slane %v5515_v2, 4  ;;  %v5680_v30 = vsel %vm12491_vm8, %v5515_v2, %v5679_v41  ;;  %v5504_v42 = vrot.slane %v5502_v8, 7  ;;  %v5901_v13 = vor.u32 %v5900_v1, %v5897_v61  ;;  %v5676_v2 = vld [vmem:[#allocation2 + $0xb0] sm:$0x3]  ;;  %v14273_v1 = vld [vmem:[#allocation2 + $0x60] sm:$0xf] }
 0x46c   :  { %15808 = vst [vmem:[#allocation48_spill] sm:$0xff] %v14243_v4  ;;  %15809 = vst [vmem:[#allocation47_spill] sm:$0xff] %v14246_v10  ;;  %v5497_v57 = vrot.slane %v5496_v21, 4  ;;  %v5673_v52 = vsel %vm12491_vm8, %v5496_v21, %v5672_v14  ;;  %v5526_v40 = vrot.slane %v5524_v62, 4  ;;  %v5906_v24 = vrot.slane %v14243_v4, 5 }
 0x46d   :  { %5681 = vst [vmem:[#allocation2 + $0xb4] sm:$0xe] %v5680_v30  ;;  %5674 = vst [vmem:[#allocation2 + $0xa8] sm:$0xe] %v5673_v52  ;;  %v5525_v60 = vsel %vm12502_vm9, %v5516_v6, %v5524_v62  ;;  %v5505_v38 = vor.u32 %v5504_v42, %v5501_v15  ;;  %v5902_v48 = vrot.slane %v5901_v13, 4  ;;  %v5910_v55 = vrot.slane %v14246_v10, 4 }
 0x46e   :  { %5682 = vst [vmem:[#allocation2 + $0xb8] sm:$0xf] %v5525_v60  ;;  %v5684_v31 = vsel %vm12384_vm2, %v5526_v40, %v5683_v53  ;;  %v5914_v47 = vshll.u32 %v14250_v59, 16  ;;  %v5919_v32 = vshrl.u32 %v14252_v45, 16  ;;  %v5922_v3 = vshll.u32 %v14252_v45, 16 }
 0x46f   :  { %5685 = vst [vmem:[#allocation2 + $0xbc] sm:$0x3] %v5684_v31  ;;  %v5506_v7 = vsel %vm12502_vm9, %v5497_v57, %v5505_v38  ;;  %v5507_v15 = vrot.slane %v5505_v38, 4  ;;  %v5907_v8 = vsel %vm12638_vm12, %v5902_v48, %v5906_v24  ;;  %v5911_v61 = vor.u32 %v5910_v55, %v5906_v24  ;;  %v14278_v6 = vld [vmem:[#allocation2 + $0x64] sm:$0xf] }
 0x470   :  { %5675 = vst [vmem:[#allocation2 + $0xac] sm:$0xf] %v5506_v7  ;;  %v5916_v41 = vrot.slane %v5914_v47, 5  ;;  %v5921_v21 = vrot.slane %v5919_v32, 4  ;;  %v5924_v14 = vrot.slane %v5922_v3, 5  ;;  %v14276_v62 = vshll.u32 %v14260_v9, 16 }
 0x471   :  { %v5677_v30 = vsel %vm12384_vm2, %v5507_v15, %v5676_v2  ;;  %v5912_v42 = vrot.slane %v5911_v61, 4  ;;  %v14283_v13 = vshrl.u32 %v14260_v9, 16  ;;  %v5938_v57 = vshll.u32 %v14265_v35, 16  ;;  %v14287_v24 = vld [vmem:[#allocation2 + $0x68] sm:$0x1] }
 0x472   :  { %15810 = vst [vmem:[#allocation53_spill] sm:$0xff] %v14276_v62  ;;  %5678 = vst [vmem:[#allocation2 + $0xb0] sm:$0x3] %v5677_v30  ;;  %v5925_v52 = vor.u32 %v5924_v14, %v5921_v21  ;;  %v5930_v40 = vrot.slane %v14276_v62, 5  ;;  %v5943_v60 = vshrl.u32 %v14273_v1, 16  ;;  %v5946_v53 = vshll.u32 %v14273_v1, 16 }
 0x473   :  { %15811 = vst [vmem:[#allocation55_spill] sm:$0xff] %v14283_v13  ;;  %v5917_v0 = vsel %vm12638_vm12, %v5912_v42, %v5916_v41  ;;  %v5934_v38 = vrot.slane %v14283_v13, 4  ;;  %v5940_v48 = vrot.slane %v5938_v57, 5  ;;  %v14295_v55 = vshll.u32 %v14278_v6, 16  ;;  %v14297_v31 = vld [vmem:[#allocation2 + $0x6c] sm:$0xf] }
 0x474   :  { %v10159_v47 = vcombine.low %v5907_v8, %v5917_v0  ;;  %v5926_v32 = vrot.slane %v5925_v52, 4  ;;  %v5945_v3 = vrot.slane %v5943_v60, 4  ;;  %v5948_v7 = vrot.slane %v5946_v53, 5  ;;  %v14299_v15 = vld [vmem:[#allocation2 + $0x70] sm:$0xf] }
 0x475   :  { %15812 = vst [vmem:[#allocation54_spill] sm:$0xff] %v14295_v55  ;;  %v5935_v2 = vor.u32 %v5934_v38, %v5930_v40  ;;  %v5954_v61 = vrot.slane %v14295_v55, 5  ;;  %v14303_v21 = vshrl.u32 %v14278_v6, 16  ;;  %v5962_v41 = vshll.u32 %v14287_v24, 16  ;;  %v14308_v42 = vld [vmem:[#allocation2 + $0x74] sm:$0x1] }
 0x476   :  { %11206 = vmatprep.mubr.bf16.mxu0 %v10159_v47  ;;  %v5931_v14 = vsel %vm12638_vm12, %v5926_v32, %v5930_v40  ;;  %v5949_v30 = vor.u32 %v5948_v7, %v5945_v3  ;;  %v5967_v8 = vshrl.u32 %v14297_v31, 16  ;;  %v5970_v57 = vshll.u32 %v14297_v31, 16  ;;  %v14319_v40 = vld [vmem:[#allocation2 + $0x78] sm:$0xf]  ;;  %v14412_v50 = vld [vmem:[#allocation2 + $0xb4] sm:$0xf] }
 0x477   :  { %15813 = vst [vmem:[#allocation39_spill] sm:$0xff] %v14303_v21  ;;  %v5936_v52 = vrot.slane %v5935_v2, 4  ;;  %v5958_v60 = vrot.slane %v14303_v21, 4  ;;  %v5964_v53 = vrot.slane %v5962_v41, 5  ;;  %v14314_v0 = vshll.u32 %v14299_v15, 16 }
 0x478   :  { %v5950_v38 = vrot.slane %v5949_v30, 4  ;;  %v5969_v51 = vrot.slane %v5967_v8, 4  ;;  %v5972_v47 = vrot.slane %v5970_v57, 5  ;;  %v14317_v63 = vshrl.u32 %v14299_v15, 16  ;;  %v14325_v41 = vld [vmem:[#allocation2 + $0x7c] sm:$0xf] }
 0x479   :  { %15814 = vst [vmem:[#allocation51_spill] sm:$0xff] %v14314_v0  ;;  %v5941_v32 = vsel %vm12638_vm12, %v5936_v52, %v5940_v48  ;;  %v5959_v3 = vor.u32 %v5958_v60, %v5954_v61  ;;  %v5978_v7 = vrot.slane %v14314_v0, 5  ;;  %v5986_v2 = vshll.u32 %v14308_v42, 16  ;;  %v14330_v21 = vld [vmem:[#allocation2 + $0x80] sm:$0x1] }
 0x47a   :  { %15815 = vst [vmem:[#allocation50_spill] sm:$0xff] %v14317_v63  ;;  %v10160_v55 = vcombine.low %v5931_v14, %v5941_v32  ;;  %v5955_v30 = vsel %vm12638_vm12, %v5950_v38, %v5954_v61  ;;  %v5973_v8 = vor.u32 %v5972_v47, %v5969_v51  ;;  %v5982_v57 = vrot.slane %v14317_v63, 4  ;;  %v14340_v51 = vld [vmem:[#allocation2 + $0x84] sm:$0xf]  ;;  %v14428_v43 = vld [vmem:[#allocation2 + $0xb8] sm:$0xf] }
 0x47b   :  { %v5960_v62 = vrot.slane %v5959_v3, 4  ;;  %v5988_v13 = vrot.slane %v5986_v2, 5  ;;  %v5991_v48 = vshrl.u32 %v14319_v40, 16  ;;  %v5994_v52 = vshll.u32 %v14319_v40, 16  ;;  %v14345_v3 = vld [vmem:[#allocation2 + $0x88] sm:$0xf] }
 0x47c   :  { %11207 = vmatmul.mubr.bf16.gmra.mrb[28].mxu0 %v10160_v55  ;;  %v5974_v60 = vrot.slane %v5973_v8, 4  ;;  %v5983_v0 = vor.u32 %v5982_v57, %v5978_v7  ;;  %v14335_v4 = vshll.u32 %v14325_v41, 16  ;;  %v14338_v14 = vshrl.u32 %v14325_v41, 16 }
 0x47d   :  { %v5965_v61 = vsel %vm12638_vm12, %v5960_v62, %v5964_v53  ;;  %v5993_v38 = vrot.slane %v5991_v48, 4  ;;  %v5996_v47 = vrot.slane %v5994_v52, 5  ;;  %v6010_v32 = vshll.u32 %v14330_v21, 16 }
 0x47e   :  { %15816 = vst [vmem:[#allocation23_spill] sm:$0xff] %v14335_v4  ;;  %15817 = vst [vmem:[#allocation22_spill] sm:$0xff] %v14338_v14  ;;  %v10161_v55 = vcombine.low %v5955_v30, %v5965_v61  ;;  %v5979_v2 = vsel %vm12638_vm12, %v5974_v60, %v5978_v7  ;;  %v5984_v8 = vrot.slane %v5983_v0, 4  ;;  %v6002_v57 = vrot.slane %v14335_v4, 5  ;;  %v14363_v7 = vld [vmem:[#allocation2 + $0x90] sm:$0xf] }
 0x47f   :  { %v5997_v63 = vor.u32 %v5996_v47, %v5993_v38  ;;  %v6006_v10 = vrot.slane %v14338_v14, 4  ;;  %v6012_v28 = vrot.slane %v6010_v32, 5  ;;  %v6015_v62 = vshrl.u32 %v14340_v51, 16  ;;  %v14365_v47 = vld [vmem:[#allocation2 + $0x94] sm:$0xf] }
 0x480   :  { %11210 = vmatprep.mubr.bf16.mxu0 %v10161_v55  ;;  %v5989_v53 = vsel %vm12638_vm12, %v5984_v8, %v5988_v13  ;;  %v6018_v30 = vshll.u32 %v14340_v51, 16  ;;  %v14358_v48 = vshll.u32 %v14345_v3, 16  ;;  %v14361_v0 = vshrl.u32 %v14345_v3, 16 }
 0x481   :  { %v10162_v52 = vcombine.low %v5979_v2, %v5989_v53  ;;  %v5998_v60 = vrot.slane %v5997_v63, 4  ;;  %v6007_v61 = vor.u32 %v6006_v10, %v6002_v57  ;;  %v6017_v38 = vrot.slane %v6015_v62, 4  ;;  %v14374_v53 = vld [vmem:[#allocation2 + $0x98] sm:$0x1] }
 0x482   :  { %15818 = vst [vmem:[#allocation46_spill] sm:$0xff] %v14358_v48  ;;  %15819 = vst [vmem:[#allocation20_spill] sm:$0xff] %v14361_v0  ;;  %v6020_v32 = vrot.slane %v6018_v30, 5  ;;  %v6026_v55 = vrot.slane %v14358_v48, 5  ;;  %v6030_v13 = vrot.slane %v14361_v0, 4  ;;  %v6034_v8 = vshll.u32 %v14351_v12, 16 }
 0x483   :  { %v6003_v4 = vsel %vm12638_vm12, %v5998_v60, %v6002_v57  ;;  %v6008_v14 = vrot.slane %v6007_v61, 4  ;;  %v6039_v46 = vshrl.u32 %v14363_v7, 16  ;;  %v6042_v2 = vshll.u32 %v14363_v7, 16  ;;  %v14379_v48 = vld [vmem:[#allocation2 + $0x9c] sm:$0xf] }
 0x484   :  { %11211 = vmatmul.mubr.bf16.gmra.mrb[32].mxu0 %v10162_v52  ;;  %v6021_v63 = vor.u32 %v6020_v32, %v6017_v38  ;;  %v6031_v10 = vor.u32 %v6030_v13, %v6026_v55  ;;  %v6036_v62 = vrot.slane %v6034_v8, 5  ;;  %v14377_v30 = vshll.u32 %v14365_v47, 16 }
 0x485   :  { %v6013_v0 = vsel %vm12638_vm12, %v6008_v14, %v6012_v28  ;;  %v6041_v57 = vrot.slane %v6039_v46, 4  ;;  %v6044_v60 = vrot.slane %v6042_v2, 5  ;;  %v14384_v61 = vshrl.u32 %v14365_v47, 16  ;;  %v14396_v14 = vld [vmem:[#allocation2 + $0xa4] sm:$0x1] }
 0x486   :  { %15820 = vst [vmem:[#allocation19_spill] sm:$0xff] %v14377_v30  ;;  %v10163_v52 = vcombine.low %v6003_v4, %v6013_v0  ;;  %v6022_v38 = vrot.slane %v6021_v63, 4  ;;  %v6032_v32 = vrot.slane %v6031_v10, 4  ;;  %v6050_v13 = vrot.slane %v14377_v30, 5  ;;  %15822 = vst [vmem:[#allocation52_spill] sm:$0xff] %v14396_v14 }
 0x487   :  { %15821 = vst [vmem:[#allocation49_spill] sm:$0xff] %v14384_v61  ;;  %v6045_v8 = vor.u32 %v6044_v60, %v6041_v57  ;;  %v6054_v36 = vrot.slane %v14384_v61, 4  ;;  %v6058_v33 = vshll.u32 %v14374_v53, 16  ;;  %v6063_v17 = vshrl.u32 %v14379_v48, 16  ;;  %v14402_v2 = vld [vmem:[#allocation2 + $0xa8] sm:$0xf] }
 0x488   :  { %11214 = vmatprep.mubr.bf16.mxu0 %v10163_v52  ;;  %v6027_v46 = vsel %vm12638_vm12, %v6022_v38, %v6026_v55  ;;  %v6037_v28 = vsel %vm12638_vm12, %v6032_v32, %v6036_v62  ;;  %v6066_v4 = vshll.u32 %v14379_v48, 16  ;;  %v14400_v0 = vshll.u32 %v14386_v20, 16  ;;  %v14404_v60 = vld [vmem:[#allocation2 + $0xac] sm:$0xf] }
 0x489   :  { %v10164_v63 = vcombine.low %v6027_v46, %v6037_v28  ;;  %v6046_v10 = vrot.slane %v6045_v8, 4  ;;  %v6055_v57 = vor.u32 %v6054_v36, %v6050_v13  ;;  %v6065_v52 = vrot.slane %v6063_v17, 4  ;;  %v14415_v46 = vld [vmem:[#allocation2 + $0xb0] sm:$0x1] }
 0x48a   :  { %15823 = vst [vmem:[#allocation31_spill] sm:$0xff] %v14400_v0  ;;  %v6068_v30 = vrot.slane %v6066_v4, 5  ;;  %v6074_v55 = vrot.slane %v14400_v0, 5  ;;  %v14408_v62 = vshrl.u32 %v14386_v20, 16  ;;  %v6060_v32 = vrot.slane %v6058_v33, 5  ;;  %15825 = vst [vmem:[#allocation33_spill] sm:$0xff] %v14415_v46 }
 0x48b   :  { %v6056_v38 = vrot.slane %v6055_v57, 4  ;;  %v6082_v61 = vshll.u32 %v14396_v14, 16  ;;  %v6087_v34 = vshrl.u32 %v14402_v2, 16  ;;  %v6090_v17 = vshll.u32 %v14402_v2, 16 }
 0x48c   :  { %15824 = vst [vmem:[#allocation30_spill] sm:$0xff] %v14408_v62  ;;  %11215 = vmatmul.mubr.bf16.gmra.mrb[36].mxu0 %v10164_v63  ;;  %v6069_v8 = vor.u32 %v6068_v30, %v6065_v52  ;;  %v6078_v36 = vrot.slane %v14408_v62, 4  ;;  %v14419_v28 = vshll.u32 %v14404_v60, 16  ;;  %v6051_v33 = vsel %vm12638_vm12, %v6046_v10, %v6050_v13 }
 0x48d   :  { %v6061_v4 = vsel %vm12638_vm12, %v6056_v38, %v6060_v32  ;;  %v6089_v57 = vrot.slane %v6087_v34, 4  ;;  %v14426_v0 = vshrl.u32 %v14404_v60, 16  ;;  %v6092_v62 = vrot.slane %v6090_v17, 5  ;;  %v14437_v17 = vld [vmem:[#allocation2 + $0xbc] sm:$0x1] }
 0x48e   :  { %15826 = vst [vmem:[#allocation38_spill] sm:$0xff] %v14419_v28  ;;  %v10165_v30 = vcombine.low %v6051_v33, %v6061_v4  ;;  %v6070_v63 = vrot.slane %v6069_v8, 4  ;;  %v6079_v52 = vor.u32 %v6078_v36, %v6074_v55  ;;  %v6098_v5 = vrot.slane %v14419_v28, 5 }
 0x48f   :  { %15827 = vst [vmem:[#allocation42_spill] sm:$0xff] %v14426_v0  ;;  %v6102_v37 = vrot.slane %v14426_v0, 4  ;;  %v6106_v14 = vshll.u32 %v14415_v46, 16  ;;  %v6111_v13 = vshrl.u32 %v14412_v50, 16  ;;  %v6084_v34 = vrot.slane %v6082_v61, 5 }
 0x490   :  { %11218 = vmatprep.mubr.bf16.mxu0 %v10165_v30  ;;  %v6080_v10 = vrot.slane %v6079_v52, 4  ;;  %v6093_v38 = vor.u32 %v6092_v62, %v6089_v57  ;;  %v6114_v32 = vshll.u32 %v14412_v50, 16  ;;  %v6075_v8 = vsel %vm12638_vm12, %v6070_v63, %v6074_v55 }
 0x491   :  { %v6103_v36 = vor.u32 %v6102_v37, %v6098_v5  ;;  %v6113_v33 = vrot.slane %v6111_v13, 4  ;;  %v14440_v4 = vshll.u32 %v14428_v43, 16  ;;  %v14445_v61 = vshrl.u32 %v14428_v43, 16 }
 0x492   :  { %v6085_v28 = vsel %vm12638_vm12, %v6080_v10, %v6084_v34  ;;  %v6094_v0 = vrot.slane %v6093_v38, 4  ;;  %v6116_v30 = vrot.slane %v6114_v32, 5  ;;  %v6108_v52 = vrot.slane %v6106_v14, 5 }
 0x493   :  { %v10166_v62 = vcombine.low %v6075_v8, %v6085_v28  ;;  %v6104_v57 = vrot.slane %v6103_v36, 4  ;;  %v6122_v55 = vrot.slane %v14440_v4, 5  ;;  %v6126_v63 = vrot.slane %v14445_v61, 4 }
 0x494   :  { %v6117_v37 = vor.u32 %v6116_v30, %v6113_v33  ;;  %v6130_v13 = vshll.u32 %v14437_v17, 16  ;;  %v6099_v46 = vsel %vm12638_vm12, %v6094_v0, %v6098_v5  ;;  %v12119_v30 = vld [vmem:[#allocation2] sm:$0xf]  ;;  %v12121_v0 = vld [vmem:[#allocation2 + $0xc] sm:$0xf]  ;;  %vm9803_vm2 = vcmask 1041409  }
 0x495   :  { %11219 = vmatmul.mubr.bf16.gmra.mrb[40].mxu0 %v10166_v62  ;;  %v6109_v10 = vsel %vm12638_vm12, %v6104_v57, %v6108_v52  ;;  %v6127_v32 = vor.u32 %v6126_v63, %v6122_v55  ;;  %v14458_v62 = vld [vmem:[#allocation2 + $0x4] sm:$0xf]  ;;  %v12039_v52 = vld [vmem:[#allocation9 + $0x88] sm:$0xff]   ;;  %v12045_v63 = vld [vmem:[#allocation9 + $0x98] sm:$0xff]   ;;  %vm9805_vm8 = vcmask 1042434  }
 0x496   :  { %v10167_v34 = vcombine.low %v6099_v46, %v6109_v10  ;;  %v6118_v38 = vrot.slane %v6117_v37, 4  ;;  %v6132_v14 = vrot.slane %v6130_v13, 5  ;;  %v10177_v5 = vcombine.low %v12119_v30, %v14458_v62  ;;  %v14461_v46 = vld [vmem:[#allocation2 + $0x10] sm:$0xf]  ;;  %v12051_v10 = vld [vmem:[#allocation9 + $0xa8] sm:$0xff]  }
 0x497   :  { %v6128_v28 = vrot.slane %v6127_v32, 4  ;;  %v10178_v57 = vcombine.low %v12121_v0, %v14461_v46  ;;  %v10180_v37 = vcombine.low %v14120_v29, %v14134_v54  ;;  %v10181_v13 = vcombine.low %v14164_v49, %v14175_v22  ;;  %v12054_v29 = vld [vmem:[#allocation9 + $0xb0] sm:$0xff]   ;;  %v14492_v30 = vld [vmem:[#allocation2] sm:$0xe] }
 0x498   :  { %11222 = vmatprep.mubr.bf16.mxu0 %v10167_v34  ;;  %v6123_v8 = vsel %vm12638_vm12, %v6118_v38, %v6122_v55  ;;  %v10179_v55 = vcombine.low %v14101_v11, %v14112_v16  ;;  %v12048_v11 = vld [vmem:[#allocation9 + $0xa0] sm:$0xff]   ;;  %v10183_v34 = vcombine.low %v14229_v56, %v14240_v27  ;;  %v10184_v49 = vcombine.low %v14252_v45, %v14260_v9  ;;  %v12057_v38 = vld [vmem:[#allocation9 + $0xb8] sm:$0xff]  }
 0x499   :  { %v6133_v36 = vsel %vm12638_vm12, %v6128_v28, %v6132_v14  ;;  %v10185_v32 = vcombine.low %v14273_v1, %v14278_v6  ;;  %v10186_v56 = vcombine.low %v14297_v31, %v14299_v15  ;;  %v10187_v28 = vcombine.low %v14319_v40, %v14325_v41 }
 0x49a   :  { %v10168_v33 = vcombine.low %v6123_v8, %v6133_v36  ;;  %v10188_v45 = vcombine.low %v14340_v51, %v14345_v3  ;;  %v10189_v1 = vcombine.low %v14363_v7, %v14365_v47  ;;  %v6779_v14 = vrot.slane %v14458_v62, 5  ;;  %v12123_v36 = vld [vmem:[#allocation2 + $0x8] sm:$0x1] }
 0x49b   :  { %v10190_v8 = vcombine.low %v14379_v48, %v14386_v20  ;;  %v10191_v31 = vcombine.low %v14402_v2, %v14404_v60  ;;  %v6786_v51 = vrot.slane %v14461_v46, 5  ;;  %v10201_v7 = vrot.slane %v14492_v30, 9 }
 0x49c   :  { %v6781_v40 = vrot.slane %v6779_v14, 4  ;;  %v6793_v0 = vrot.slane %v14112_v16, 5  ;;  %v10192_v48 = vcombine.low %v14412_v50, %v14428_v43  ;;  %vm9813_vm12 = vcmask 1046534  }
 0x49d   :  { %11223 = vmatmul.mubr.bf16.gmra.mrb[44].mxu0 %v10168_v33  ;;  %v6782_v33 = vrot.slane %v12123_v36, 5  ;;  %v6780_v2 = vsel %vm13042_vm15, %v10201_v7, %v6779_v14  ;;  %v12061_v14 = vld [vmem:[#allocation9 + $0xd0] sm:$0xff]   ;;  %v12062_v7 = vld [vmem:[#allocation9 + $0xd8] sm:$0xff]  }
 0x49e   :  { %11242 = vmatprep.mubr.bf16.mxu0 %v10177_v5  ;;  %v6795_v46 = vrot.slane %v6793_v0, 4 }
 0x49f   :  { %v6783_v62 = vsel %vm13042_vm15, %v6781_v40, %v6782_v33  ;;  %v6814_v40 = vrot.slane %v14189_v18, 5 }
 0x4a5   :  { %11243 = vmatmul.mubr.bf16.vlgmr.msra.gmra.mrb[16].mxu0 %v10178_v57  ;;  %v10217_v57 = vcombine.low %v6780_v2, %v6783_v62 }
 0x4a6   :  { %11275 = vmatpush3.bf16.msra.mxu0 %v14210_v26  ;;  %11246 = vmatprep.mubr.bf16.mxu0 %v10179_v55  ;;  %v10182_v26 = vcombine.low %v14185_v39, %v14189_v18  ;;  %v12059_v39 = vld [vmem:[#allocation9 + $0xc0] sm:$0xff]   ;;  %v12124_v55 = vld [vmem:[#allocation2 + $0x14] sm:$0x1]  ;;  %v6817_v18 = vrot.slane %v14202_v58, 5 }
 0x4a7   :  { %11276 = vmatprep.subr.bf16.mxu0 %v12039_v52 }
 0x4aa   :  { %11277 = vmatpush3.bf16.msra.mxu0 %v12039_v52  ;;  %v6788_v52 = vrot.slane %v6786_v51, 4 }
 0x4ab   :  { %11278 = vmatprep.subr.bf16.mxu0 %v12042_v44 }
 0x4ad   :  { %11247 = vmatmul.mubr.bf16.gmra.mrb[20].mxu0 %v10180_v37  ;;  %v14503_v37 = vld [vmem:[#allocation2 + $0xc] sm:$0xe] }
 0x4ae   :  { %11250 = vmatprep.mubr.bf16.mxu0 %v10181_v13  ;;  %11279 = vmatpush3.bf16.msra.mxu0 %v12042_v44  ;;  %v6789_v44 = vrot.slane %v12124_v55, 5  ;;  %v14506_v13 = vld [vmem:[#allocation2 + $0x18] sm:$0xe]  ;;  %v10202_v16 = vrot.slane %v14503_v37, 9 }
 0x4af   :  { %11280 = vmatprep.subr.bf16.mxu0 %v12045_v63 }
 0x4b0   :  { %v6790_v50 = vsel %vm13042_vm15, %v6788_v52, %v6789_v44  ;;  %v12063_v52 = vld [vmem:[#allocation9 + $0xe0] sm:$0xff]  }
 0x4b2   :  { %11281 = vmatpush3.bf16.msra.mxu0 %v12045_v63  ;;  %v6796_v63 = vrot.slane %v14116_v25, 5  ;;  %v6787_v25 = vsel %vm13042_vm15, %v10202_v16, %v6786_v51 }
 0x4b3   :  { %11282 = vmatprep.subr.bf16.mxu0 %v12048_v11 }
 0x4b5   :  { %11251 = vmatmul.mubr.bf16.gmra.mrb[24].mxu0 %v10182_v26  ;;  %v10203_v26 = vrot.slane %v14506_v13, 9 }
 0x4b6   :  { %11254 = vmatprep.mubr.bf16.mxu0 %v10183_v34  ;;  %11283 = vmatpush3.bf16.msra.mxu0 %v12048_v11  ;;  %v6800_v11 = vrot.slane %v14134_v54, 5  ;;  %v6807_v34 = vrot.slane %v14175_v22, 5  ;;  %v14521_v54 = vld [vmem:[#allocation2 + $0x24] sm:$0xe]  ;;  %v14524_v22 = vld [vmem:[#allocation2 + $0x30] sm:$0xe] }
 0x4b7   :  { %11284 = vmatprep.subr.bf16.mxu0 %v12051_v10 }
 0x4ba   :  { %11285 = vmatpush3.bf16.msra.mxu0 %v12051_v10  ;;  %v6797_v10 = vsel %vm13042_vm15, %v6795_v46, %v6796_v63  ;;  %v6828_v46 = vrot.slane %v14260_v9, 5  ;;  %v6831_v9 = vrot.slane %v14265_v35, 5  ;;  %v6849_v35 = vrot.slane %v14325_v41, 5 }
 0x4bb   :  { %11286 = vmatprep.subr.bf16.mxu0 %v12054_v29 }
 0x4bd   :  { %11255 = vmatmul.mubr.bf16.gmra.mrb[28].mxu0 %v10184_v49  ;;  %v6794_v49 = vsel %vm13042_vm15, %v10203_v26, %v6793_v0  ;;  %v6816_v0 = vrot.slane %v6814_v40, 4  ;;  %v12064_v26 = vld [vmem:[#allocation9 + $0xe8] sm:$0xff]  }
 0x4be   :  { %11258 = vmatprep.mubr.bf16.mxu0 %v10185_v32  ;;  %11287 = vmatpush3.bf16.msra.mxu0 %v12054_v29  ;;  %v10218_v29 = vcombine.low %v6787_v25, %v6790_v50  ;;  %v10219_v32 = vcombine.low %v6794_v49, %v6797_v10  ;;  %v14557_v25 = vld [vmem:[#allocation2 + $0x54] sm:$0xe]  ;;  %v14560_v49 = vld [vmem:[#allocation2 + $0x60] sm:$0xe] }
 0x4bf   :  { %11288 = vmatprep.subr.bf16.mxu0 %v12057_v38  ;;  %v6818_v44 = vsel %vm13042_vm15, %v6816_v0, %v6817_v18  ;;  %v14586_v0 = vld [vmem:[#allocation2 + $0x90] sm:$0xe]  ;;  %v6866_v18 = vrot.slane %v14374_v53, 5 }
 0x4c0   :  { %v15829_v53 = vld [vmem:[#allocation52_spill] sm:$0xff] }
 0x4c2   :  { %11289 = vmatpush3.bf16.msra.mxu0 %v12057_v38  ;;  %v12060_v38 = vld [vmem:[#allocation9 + $0xc8] sm:$0xff]  }
 0x4c3   :  { %11322 = vmatprep.subr.bf16.mxu0 %v12059_v39 }
 0x4c5   :  { %11259 = vmatmul.mubr.bf16.gmra.mrb[32].mxu0 %v10186_v56  ;;  %v6802_v56 = vrot.slane %v6800_v11, 4 }
 0x4c6   :  { %11262 = vmatprep.mubr.bf16.mxu0 %v10187_v28  ;;  %v6803_v28 = vrot.slane %v14140_v19, 5  ;;  %v10205_v19 = vrot.slane %v14524_v22, 9 }
 0x4c8   :  { %v6808_v51 = vsel %vm13042_vm15, %v10205_v19, %v6807_v34  ;;  %v6845_v19 = vrot.slane %v14308_v42, 5 }
 0x4cd   :  { %11263 = vmatmul.mubr.bf16.gmra.mrb[36].mxu0 %v10188_v45  ;;  %v6809_v45 = vrot.slane %v6807_v34, 4  ;;  %v6830_v34 = vrot.slane %v6828_v46, 4 }
 0x4ce   :  { %11266 = vmatprep.mubr.bf16.mxu0 %v10189_v1  ;;  %v6810_v1 = vrot.slane %v14183_v23, 5  ;;  %v6821_v23 = vrot.slane %v14240_v27, 5  ;;  %v6824_v27 = vrot.slane %v14250_v59, 5  ;;  %v6835_v59 = vrot.slane %v14278_v6, 5 }
 0x4cf   :  { %v6838_v6 = vrot.slane %v14287_v24, 5 }
 0x4d0   :  { %v6811_v36 = vsel %vm13042_vm15, %v6809_v45, %v6810_v1  ;;  %v6823_v2 = vrot.slane %v6821_v23, 4  ;;  %v10209_v45 = vrot.slane %v14560_v49, 9 }
 0x4d1   :  { %v10221_v62 = vcombine.low %v6808_v51, %v6811_v36  ;;  %v14579_v36 = vld [vmem:[#allocation2 + $0x78] sm:$0xe]  ;;  %v6852_v51 = vrot.slane %v14330_v21, 5 }
 0x4d2   :  { %v6825_v63 = vsel %vm13042_vm15, %v6823_v2, %v6824_v27  ;;  %v10211_v27 = vrot.slane %v14579_v36, 9 }
 0x4d5   :  { %11267 = vmatmul.mubr.bf16.gmra.mrb[40].mxu0 %v10190_v8  ;;  %v10204_v8 = vrot.slane %v14521_v54, 9 }
 0x4d6   :  { %11270 = vmatprep.mubr.bf16.mxu0 %v10191_v31  ;;  %v6804_v31 = vsel %vm13042_vm15, %v6802_v56, %v6803_v28  ;;  %v10208_v56 = vrot.slane %v14557_v25, 9  ;;  %v6832_v28 = vsel %vm13042_vm15, %v6830_v34, %v6831_v9  ;;  %v14613_v34 = vld [vmem:[#allocation2 + $0xa8] sm:$0xe] }
 0x4d8   :  { %v6829_v1 = vsel %vm13042_vm15, %v10208_v56, %v6828_v46  ;;  %v6873_v46 = vrot.slane %v15829_v53, 5 }
 0x4dd   :  { %11271 = vmatmul.mubr.bf16.gmra.mrb[44].mxu0 %v10192_v48  ;;  %v14539_v48 = vld [vmem:[#allocation2 + $0x3c] sm:$0xe] }
 0x4de   :  { %11290 = vmatprep.mubr.bf16.mxu0 %v10217_v57  ;;  %v14542_v57 = vld [vmem:[#allocation2 + $0x48] sm:$0xe]  ;;  %v10206_v55 = vrot.slane %v14539_v48, 9 }
 0x4df   :  { %v10207_v58 = vrot.slane %v14542_v57, 9 }
 0x4e0   :  { %v6815_v16 = vsel %vm13042_vm15, %v10206_v55, %v6814_v40  ;;  %v6836_v40 = vsel %vm13042_vm15, %v10209_v45, %v6835_v59  ;;  %v14598_v55 = vld [vmem:[#allocation2 + $0x9c] sm:$0xe]  ;;  %v7228_v45 = vshrl.u32 %v14492_v30, 16 }
 0x4e1   :  { %v10222_v50 = vcombine.low %v6815_v16, %v6818_v44  ;;  %v10213_v16 = vrot.slane %v14586_v0, 9 }
 0x4e5   :  { %11291 = vmatmul.mubr.bf16.vlgmr.msra.gmra.mrb[16].mxu0 %v10218_v29  ;;  %v6837_v29 = vrot.slane %v6835_v59, 4  ;;  %v6850_v59 = vsel %vm13042_vm15, %v10211_v27, %v6849_v35 }
 0x4e6   :  { %11323 = vmatpush3.bf16.msra.mxu0 %v12059_v39  ;;  %11294 = vmatprep.mubr.bf16.mxu0 %v10219_v32  ;;  %v6801_v39 = vsel %vm13042_vm15, %v10204_v8, %v6800_v11  ;;  %v6822_v11 = vsel %vm13042_vm15, %v10207_v58, %v6821_v23  ;;  %v12065_v32 = vld [vmem:[#allocation9 + $0xf0] sm:$0xff]   ;;  %v6863_v8 = vrot.slane %v14365_v47, 5  ;;  %v12066_v23 = vld [vmem:[#allocation9 + $0xf8] sm:$0xff]   ;;  %v6877_v58 = vrot.slane %v14404_v60, 5 }
 0x4e7   :  { %11324 = vmatprep.subr.bf16.mxu0 %v12060_v38  ;;  %v10220_v33 = vcombine.low %v6801_v39, %v6804_v31  ;;  %v10223_v10 = vcombine.low %v6822_v11, %v6825_v63  ;;  %v6839_v24 = vsel %vm13042_vm15, %v6837_v29, %v6838_v6  ;;  %v10224_v31 = vcombine.low %v6829_v1, %v6832_v28  ;;  %v15830_v6 = vld [vmem:[#allocation33_spill] sm:$0xff] }
 0x4e8   :  { %v10225_v39 = vcombine.low %v6836_v40, %v6839_v24  ;;  %v6865_v42 = vrot.slane %v6863_v8, 4  ;;  %v6864_v9 = vsel %vm13042_vm15, %v10213_v16, %v6863_v8  ;;  %v10214_v29 = vrot.slane %v14598_v55, 9  ;;  %v14664_v16 = vld [vmem:[#allocation2 + $0x20] sm:$0x3] }
 0x4e9   :  { %v6879_v28 = vrot.slane %v6877_v58, 4  ;;  %v7231_v8 = vshll.u32 %v14492_v30, 16  ;;  %v6887_v30 = vrot.slane %v14437_v17, 5 }
 0x4ea   :  { %11325 = vmatpush3.bf16.msra.mxu0 %v12060_v38  ;;  %v6842_v38 = vrot.slane %v14299_v15, 5  ;;  %v6856_v15 = vrot.slane %v14345_v3, 5  ;;  %v6870_v3 = vrot.slane %v14386_v20, 5 }
 0x4eb   :  { %11326 = vmatprep.subr.bf16.mxu0 %v12061_v14 }
 0x4ec   :  { %v6844_v41 = vrot.slane %v6842_v38, 4  ;;  %v6858_v47 = vrot.slane %v6856_v15, 4  ;;  %v6872_v44 = vrot.slane %v6870_v3, 4 }
 0x4ed   :  { %11295 = vmatmul.mubr.bf16.gmra.mrb[20].mxu0 %v10220_v33  ;;  %v6851_v33 = vrot.slane %v6849_v35, 4  ;;  %v6884_v35 = vrot.slane %v14428_v43, 5  ;;  %v7251_v43 = vshrl.u32 %v14503_v37, 16 }
 0x4ee   :  { %11298 = vmatprep.mubr.bf16.mxu0 %v10221_v62  ;;  %11327 = vmatpush3.bf16.msra.mxu0 %v12061_v14  ;;  %v14572_v14 = vld [vmem:[#allocation2 + $0x6c] sm:$0xe]  ;;  %v6859_v62 = vrot.slane %v14351_v12, 5  ;;  %v6846_v21 = vsel %vm13042_vm15, %v6844_v41, %v6845_v19  ;;  %v14624_v56 = vsel %vm13042_vm15, %v6872_v44, %v6873_v46  ;;  %v14635_v41 = vld [vmem:[#allocation2 + $0x8] sm:$0x3]  ;;  %v7254_v19 = vshll.u32 %v14503_v37, 16 }
 0x4ef   :  { %11328 = vmatprep.subr.bf16.mxu0 %v12062_v7  ;;  %v10210_v2 = vrot.slane %v14572_v14, 9  ;;  %v6853_v12 = vsel %vm13042_vm15, %v6851_v33, %v6852_v51  ;;  %v15831_v33 = vld [vmem:[#allocation27_spill] sm:$0xff]  ;;  %v6886_v37 = vrot.slane %v6884_v35, 4  ;;  %v7242_v27 = vshrl.u32 %v14635_v41, 16  ;;  %v15833_v44 = vld [vmem:[#allocation29_spill] sm:$0xff]  ;;  %v15834_v46 = vld [vmem:[#allocation26_spill] sm:$0xff] }
 0x4f0   :  { %v10227_v60 = vcombine.low %v6850_v59, %v6853_v12  ;;  %v7236_v51 = vrot.slane %v15831_v33, 5  ;;  %v7245_v17 = vshll.u32 %v14635_v41, 16  ;;  %v7256_v12 = vrot.slane %v7254_v19, 6 }
 0x4f1   :  { %v6843_v63 = vsel %vm13042_vm15, %v10210_v2, %v6842_v38  ;;  %v6880_v38 = vrot.slane %v15830_v6, 5  ;;  %v15832_v2 = vld [vmem:[#allocation24_spill] sm:$0xff]  ;;  %v7259_v53 = vrot.slane %v15833_v44, 5  ;;  %v7300_v6 = vshll.u32 %v14521_v54, 16 }
 0x4f2   :  { %11329 = vmatpush3.bf16.msra.mxu0 %v12062_v7  ;;  %v14582_v7 = vld [vmem:[#allocation2 + $0x84] sm:$0xe] }
 0x4f3   :  { %11330 = vmatprep.subr.bf16.mxu0 %v12063_v52  ;;  %v10212_v20 = vrot.slane %v14582_v7, 9 }
 0x4f5   :  { %11299 = vmatmul.mubr.bf16.gmra.mrb[24].mxu0 %v10222_v50  ;;  %v10226_v50 = vcombine.low %v6843_v63, %v6846_v21  ;;  %v6857_v11 = vsel %vm13042_vm15, %v10212_v20, %v6856_v15  ;;  %v10215_v15 = vrot.slane %v14613_v34, 9  ;;  %v7237_v21 = vrot.slane %v15832_v2, 6 }
 0x4f6   :  { %11302 = vmatprep.mubr.bf16.mxu0 %v10223_v10  ;;  %11331 = vmatpush3.bf16.msra.mxu0 %v12063_v52  ;;  %v14594_v52 = vld [vmem:[#allocation9 + $0x100] sm:$0xff]   ;;  %v6867_v10 = vsel %vm13042_vm15, %v6865_v42, %v6866_v18  ;;  %v14655_v42 = vld [vmem:[#allocation2 + $0x14] sm:$0x3]  ;;  %v7233_v18 = vrot.slane %v7231_v8, 6  ;;  %v7253_v20 = vrot.slane %v7251_v43, 5  ;;  %v7291_v8 = vshll.u32 %v14664_v16, 16 }
 0x4f7   :  { %11332 = vmatprep.subr.bf16.mxu0 %v12064_v26  ;;  %v10229_v1 = vcombine.low %v6864_v9, %v6867_v10  ;;  %v7265_v63 = vshrl.u32 %v14655_v42, 16  ;;  %v7268_v59 = vshll.u32 %v14655_v42, 16 }
 0x4f9   :  { %v7267_v43 = vrot.slane %v7265_v63, 5 }
 0x4fa   :  { %11333 = vmatpush3.bf16.msra.mxu0 %v12064_v26  ;;  %v6860_v26 = vsel %vm13042_vm15, %v6858_v47, %v6859_v62  ;;  %v7230_v62 = vrot.slane %v7228_v45, 5  ;;  %v7247_v45 = vrot.slane %v7245_v17, 6 }
 0x4fb   :  { %11334 = vmatprep.subr.bf16.mxu0 %v12065_v32  ;;  %v10228_v24 = vcombine.low %v6857_v11, %v6860_v26  ;;  %v7277_v11 = vshll.u32 %v14506_v13, 16  ;;  %v15835_v26 = vld [vmem:[#allocation32_spill] sm:$0xff] }
 0x4fc   :  { %v7282_v10 = vrot.slane %v15835_v26, 5 }
 0x4fd   :  { %11303 = vmatmul.mubr.bf16.gmra.mrb[28].mxu0 %v10224_v31  ;;  %v14632_v31 = vsel %vm13042_vm15, %v10214_v29, %v6870_v3  ;;  %v14649_v3 = vsel %vm13042_vm15, %v6879_v28, %v6880_v38  ;;  %v7297_v29 = vshrl.u32 %v14521_v54, 16  ;;  %v14674_v28 = vor.u32 %v7237_v21, %v7236_v51  ;;  %v15837_v51 = vld [vmem:[#allocation34_spill] sm:$0xff] }
 0x4fe   :  { %11306 = vmatprep.mubr.bf16.mxu0 %v10225_v39  ;;  %11335 = vmatpush3.bf16.msra.mxu0 %v12065_v32  ;;  %v14619_v32 = vld [vmem:[#allocation2 + $0xb4] sm:$0xe]  ;;  %v14643_v39 = vsel %vm13042_vm15, %v10215_v15, %v6877_v58  ;;  %v7260_v58 = vrot.slane %v15834_v46, 6  ;;  %v7257_v15 = vor.u32 %v7256_v12, %v7253_v20  ;;  %v7270_v54 = vrot.slane %v7268_v59, 6  ;;  %v15840_v46 = vld [vmem:[#allocation37_spill] sm:$0xff] }
 0x4ff   :  { %11336 = vmatprep.subr.bf16.mxu0 %v12066_v23  ;;  %v10216_v40 = vrot.slane %v14619_v32, 9  ;;  %v10231_v38 = vcombine.low %v14643_v39, %v14649_v3  ;;  %v7279_v19 = vrot.slane %v7277_v11, 6  ;;  %v7299_v39 = vrot.slane %v7297_v29, 5 }
 0x500   :  { %v7302_v3 = vrot.slane %v7300_v6, 6  ;;  %v7293_v20 = vrot.slane %v7291_v8, 6  ;;  %v7320_v12 = vshrl.u32 %v14524_v22, 16  ;;  %v7240_v59 = vrot.slane %v14674_v28, 4  ;;  %v14689_v6 = vld [vmem:[#allocation2 + $0x38] sm:$0x3] }
 0x501   :  { %v14653_v47 = vsel %vm13042_vm15, %v10216_v40, %v6884_v35  ;;  %v7244_v35 = vrot.slane %v7242_v27, 5  ;;  %v7261_v40 = vor.u32 %v7260_v58, %v7259_v53  ;;  %v7323_v53 = vshll.u32 %v14524_v22, 16 }
 0x502   :  { %11337 = vmatpush3.bf16.msra.mxu0 %v12066_v23  ;;  %v10230_v23 = vcombine.low %v14632_v31, %v14624_v56  ;;  %v7234_v56 = vor.u32 %v7233_v18, %v7230_v62  ;;  %v14678_v31 = vld [vmem:[#allocation2 + $0x2c] sm:$0x3]  ;;  %v7305_v62 = vrot.slane %v15837_v51, 5  ;;  %v6888_v58 = vsel %vm13042_vm15, %v6886_v37, %v6887_v30  ;;  %v15839_v37 = vld [vmem:[#allocation36_spill] sm:$0xff] }
 0x503   :  { %11370 = vmatprep.subr.bf16.mxu0 %v14594_v52  ;;  %v15838_v18 = vld [vmem:[#allocation35_spill] sm:$0xff]  ;;  %v7311_v21 = vshrl.u32 %v14678_v31, 16  ;;  %v7314_v27 = vshll.u32 %v14678_v31, 16  ;;  %v7258_v11 = vrot.slane %v7257_v15, 4  ;;  %v7322_v5 = vrot.slane %v7320_v12, 5 }
 0x504   :  { %v7235_v63 = vrot.slane %v7234_v56, 4  ;;  %v7325_v30 = vrot.slane %v7323_v53, 6  ;;  %v7328_v56 = vrot.slane %v15839_v37, 5  ;;  %v7337_v15 = vshll.u32 %v14689_v6, 16 }
 0x505   :  { %11307 = vmatmul.mubr.bf16.gmra.mrb[32].mxu0 %v10226_v50  ;;  %v7274_v50 = vshrl.u32 %v14506_v13, 16  ;;  %v7288_v13 = vshrl.u32 %v14664_v16, 16  ;;  %v7316_v51 = vrot.slane %v7314_v27, 6  ;;  %v7346_v27 = vshll.u32 %v14539_v48, 16 }
 0x506   :  { %11310 = vmatprep.mubr.bf16.mxu0 %v10227_v60  ;;  %v15836_v60 = vld [vmem:[#allocation28_spill] sm:$0xff]  ;;  %v7339_v53 = vrot.slane %v7337_v15, 6 }
 0x507   :  { %v7283_v9 = vrot.slane %v15836_v60, 6  ;;  %v7290_v17 = vrot.slane %v7288_v13, 5  ;;  %v7303_v13 = vor.u32 %v7302_v3, %v7299_v39  ;;  %v15845_v15 = vld [vmem:[#allocation48_spill] sm:$0xff] }
 0x509   :  { %v7284_v60 = vor.u32 %v7283_v9, %v7282_v10  ;;  %v7263_v10 = vrot.slane %v7261_v40, 4  ;;  %v7271_v9 = vor.u32 %v7270_v54, %v7267_v43  ;;  %v7294_v26 = vor.u32 %v7293_v20, %v7290_v17 }
 0x50a   :  { %v10232_v43 = vcombine.low %v14653_v47, %v6888_v58  ;;  %v7326_v47 = vor.u32 %v7325_v30, %v7322_v5  ;;  %v7262_v17 = vsel %vm13217_vm4, %v7258_v11, %v7261_v40  ;;  %v15842_v11 = vld [vmem:[#allocation44_spill] sm:$0xff]  ;;  %v7366_v30 = vshrl.u32 %v14542_v57, 16 }
 0x50b   :  { %v7286_v22 = vrot.slane %v7284_v60, 4 }
 0x50d   :  { %11311 = vmatmul.mubr.bf16.gmra.mrb[36].mxu0 %v10228_v24  ;;  %v7276_v24 = vrot.slane %v7274_v50, 5  ;;  %v7248_v50 = vor.u32 %v7247_v45, %v7244_v35  ;;  %v7329_v35 = vrot.slane %v15840_v46, 6  ;;  %v7334_v45 = vshrl.u32 %v14689_v6, 16 }
 0x50e   :  { %11314 = vmatprep.mubr.bf16.mxu0 %v10229_v1  ;;  %v7306_v1 = vrot.slane %v15838_v18, 6  ;;  %v7313_v18 = vrot.slane %v7311_v21, 5  ;;  %v7295_v21 = vsel %vm13217_vm4, %v7286_v22, %v7294_v26 }
 0x50f   :  { %v7280_v29 = vor.u32 %v7279_v19, %v7276_v24  ;;  %v7249_v54 = vsel %vm13217_vm4, %v7240_v59, %v7248_v50  ;;  %v7304_v19 = vrot.slane %v7303_v13, 4  ;;  %v14709_v20 = vor.u32 %v7329_v35, %v7328_v56  ;;  %v14713_v59 = vld [vmem:[#allocation2 + $0x44] sm:$0x3]  ;;  %v15844_v35 = vld [vmem:[#allocation47_spill] sm:$0xff] }
 0x510   :  { %v7307_v8 = vor.u32 %v7306_v1, %v7305_v62  ;;  %v7317_v3 = vor.u32 %v7316_v51, %v7313_v18  ;;  %v7343_v62 = vshrl.u32 %v14539_v48, 16  ;;  %v7239_v1 = vsel %vm13217_vm4, %v7235_v63, %v14674_v28 }
 0x511   :  { %v7281_v24 = vrot.slane %v7280_v29, 4  ;;  %v7336_v12 = vrot.slane %v7334_v45, 5  ;;  %v10241_v51 = vcombine.low %v7239_v1, %v7249_v54  ;;  %v14721_v63 = vrot.slane %v7326_v47, 4  ;;  %v14725_v29 = vld [vmem:[#allocation2 + $0x50] sm:$0x3]  ;;  %v12068_v1 = vld [vmem:[#allocation9 + $0x108] sm:$0xff]  }
 0x512   :  { %v7309_v39 = vrot.slane %v7307_v8, 4  ;;  %v7308_v26 = vsel %vm13217_vm4, %v7304_v19, %v7307_v8  ;;  %v14719_v40 = vrot.slane %v7343_v62, 5  ;;  %v7348_v50 = vrot.slane %v7346_v27, 6  ;;  %v14747_v27 = vld [vmem:[#allocation2 + $0x5c] sm:$0x3] }
 0x513   :  { %v7285_v58 = vsel %vm13217_vm4, %v7281_v24, %v7284_v60  ;;  %v7332_v13 = vrot.slane %v14709_v20, 4  ;;  %v7340_v22 = vor.u32 %v7339_v53, %v7336_v12  ;;  %v7357_v8 = vshrl.u32 %v14713_v59, 16 }
 0x514   :  { %v10243_v28 = vcombine.low %v7285_v58, %v7295_v21  ;;  %v7318_v48 = vsel %vm13217_vm4, %v7309_v39, %v7317_v3  ;;  %v7360_v5 = vshll.u32 %v14713_v59, 16  ;;  %v7369_v56 = vshll.u32 %v14542_v57, 16 }
 0x515   :  { %11315 = vmatmul.mubr.bf16.gmra.mrb[40].mxu0 %v10230_v23  ;;  %v7374_v45 = vrot.slane %v15844_v35, 5  ;;  %v7380_v54 = vshrl.u32 %v14725_v29, 16  ;;  %v7389_v24 = vshrl.u32 %v14557_v25, 16  ;;  %v7392_v19 = vshll.u32 %v14557_v25, 16  ;;  %v12070_v35 = vld [vmem:[#allocation9 + $0x118] sm:$0xff]  }
 0x516   :  { %11318 = vmatprep.mubr.bf16.mxu0 %v10231_v38  ;;  %v7272_v38 = vsel %vm13217_vm4, %v7263_v10, %v7271_v9  ;;  %v7351_v10 = vrot.slane %v15842_v11, 5  ;;  %v15843_v9 = vld [vmem:[#allocation45_spill] sm:$0xff]  ;;  %v10244_v39 = vcombine.low %v7308_v26, %v7318_v48  ;;  %v7331_v3 = vsel %vm13217_vm4, %v14721_v63, %v14709_v20  ;;  %v14753_v63 = vld [vmem:[#allocation2 + $0x68] sm:$0x3] }
 0x517   :  { %v10242_v18 = vcombine.low %v7262_v17, %v7272_v38  ;;  %v7352_v60 = vrot.slane %v15843_v9, 6  ;;  %v7383_v38 = vshll.u32 %v14725_v29, 16  ;;  %v7349_v57 = vor.u32 %v7348_v50, %v14719_v40  ;;  %v15846_v50 = vld [vmem:[#allocation55_spill] sm:$0xff] }
 0x518   :  { %v7341_v21 = vsel %vm13217_vm4, %v7332_v13, %v7340_v22  ;;  %v7359_v47 = vrot.slane %v7357_v8, 5  ;;  %v7412_v17 = vshrl.u32 %v14560_v49, 16  ;;  %v7415_v25 = vshll.u32 %v14560_v49, 16  ;;  %v12069_v8 = vld [vmem:[#allocation9 + $0x110] sm:$0xff]  }
 0x519   :  { %v14743_v62 = vor.u32 %v7352_v60, %v7351_v10  ;;  %v7362_v12 = vrot.slane %v7360_v5, 6  ;;  %v7368_v53 = vrot.slane %v7366_v30, 5  ;;  %v7382_v20 = vrot.slane %v7380_v54, 5  ;;  %v15847_v60 = vld [vmem:[#allocation53_spill] sm:$0xff]  ;;  %v15848_v30 = vld [vmem:[#allocation39_spill] sm:$0xff] }
 0x51a   :  { %v7385_v26 = vrot.slane %v7383_v38, 6  ;;  %v7391_v48 = vrot.slane %v7389_v24, 5  ;;  %v7394_v40 = vrot.slane %v7392_v19, 6  ;;  %v7397_v10 = vrot.slane %v15846_v50, 5 }
 0x51b   :  { %v7398_v13 = vrot.slane %v15847_v60, 6  ;;  %v7403_v49 = vshrl.u32 %v14747_v27, 16  ;;  %v7406_v22 = vshll.u32 %v14747_v27, 16  ;;  %v7417_v5 = vrot.slane %v7415_v25, 6 }
 0x51c   :  { %v7355_v54 = vrot.slane %v14743_v62, 4  ;;  %v7429_v38 = vshll.u32 %v14753_v63, 16  ;;  %v7386_v60 = vor.u32 %v7385_v26, %v7382_v20  ;;  %v7395_v50 = vor.u32 %v7394_v40, %v7391_v48  ;;  %v14776_v40 = vld [vmem:[#allocation2 + $0x74] sm:$0x3] }
 0x51d   :  { %11319 = vmatmul.mubr.bf16.gmra.mrb[44].mxu0 %v10232_v43  ;;  %v7375_v43 = vrot.slane %v15845_v15, 6  ;;  %v14766_v15 = vor.u32 %v7398_v13, %v7397_v10  ;;  %v7408_v25 = vrot.slane %v7406_v22, 6  ;;  %v7438_v9 = vshll.u32 %v14572_v14, 16  ;;  %v12071_v13 = vld [vmem:[#allocation9 + $0x120] sm:$0xff]  }
 0x51e   :  { %11338 = vmatprep.mubr.bf16.mxu0 %v10241_v51  ;;  %v7371_v51 = vrot.slane %v7369_v56, 6  ;;  %v7420_v56 = vrot.slane %v15848_v30, 5  ;;  %v7435_v30 = vshrl.u32 %v14572_v14, 16  ;;  %v7461_v10 = vshll.u32 %v14579_v36, 16 }
 0x51f   :  { %v14751_v58 = vor.u32 %v7375_v43, %v7374_v45  ;;  %v15849_v45 = vld [vmem:[#allocation54_spill] sm:$0xff]  ;;  %v7396_v14 = vrot.slane %v7395_v50, 4  ;;  %v7452_v50 = vshll.u32 %v14776_v40, 16 }
 0x520   :  { %v7421_v43 = vrot.slane %v15849_v45, 6  ;;  %v7372_v24 = vor.u32 %v7371_v51, %v7368_v53  ;;  %v7350_v45 = vrot.slane %v7349_v57, 4  ;;  %v10245_v53 = vcombine.low %v7331_v3, %v7341_v21 }
 0x521   :  { %v7378_v19 = vrot.slane %v14751_v58, 4  ;;  %v7458_v57 = vshrl.u32 %v14579_v36, 16  ;;  %v7401_v3 = vrot.slane %v14766_v15, 4 }
 0x522   :  { %v7373_v26 = vrot.slane %v7372_v24, 4  ;;  %v15853_v24 = vld [vmem:[#allocation23_spill] sm:$0xff] }
 0x523   :  { %v7387_v48 = vsel %vm13217_vm4, %v7378_v19, %v7386_v60  ;;  %v15850_v60 = vld [vmem:[#allocation50_spill] sm:$0xff]  ;;  %v7467_v19 = vrot.slane %v15853_v24, 6 }
 0x525   :  { %11339 = vmatmul.mubr.bf16.vlgmr.msra.gmra.mrb[16].mxu0 %v10242_v18  ;;  %v7414_v18 = vrot.slane %v7412_v17, 5  ;;  %v7405_v17 = vrot.slane %v7403_v49, 5  ;;  %v7437_v49 = vrot.slane %v7435_v30, 5 }
 0x526   :  { %11371 = vmatpush3.bf16.msra.mxu0 %v14594_v52  ;;  %11342 = vmatprep.mubr.bf16.mxu0 %v10243_v28  ;;  %v7363_v52 = vor.u32 %v7362_v12, %v7359_v47  ;;  %v7426_v28 = vshrl.u32 %v14753_v63, 16  ;;  %v14769_v12 = vor.u32 %v7421_v43, %v7420_v56  ;;  %v14783_v56 = vld [vmem:[#allocation2 + $0x80] sm:$0x3] }
 0x527   :  { %11372 = vmatprep.subr.bf16.mxu0 %v12068_v1  ;;  %v7418_v47 = vor.u32 %v7417_v5, %v7414_v18  ;;  %v7409_v21 = vor.u32 %v7408_v25, %v7405_v17  ;;  %v7440_v18 = vrot.slane %v7438_v9, 6  ;;  %v7443_v5 = vrot.slane %v15850_v60, 5 }
 0x528   :  { %v7364_v51 = vsel %vm13217_vm4, %v7355_v54, %v7363_v52  ;;  %v7428_v20 = vrot.slane %v7426_v28, 5  ;;  %v7424_v22 = vrot.slane %v14769_v12, 4  ;;  %v15851_v54 = vld [vmem:[#allocation51_spill] sm:$0xff]  ;;  %v7460_v52 = vrot.slane %v7458_v57, 5 }
 0x529   :  { %v7444_v36 = vrot.slane %v15851_v54, 6  ;;  %v7463_v28 = vrot.slane %v7461_v10, 6  ;;  %v7354_v9 = vsel %vm13217_vm4, %v7350_v45, %v14743_v62  ;;  %v7377_v17 = vsel %vm13217_vm4, %v7373_v26, %v14751_v58  ;;  %v12072_v62 = vld [vmem:[#allocation9 + $0x128] sm:$0xff]  }
 0x52a   :  { %11373 = vmatpush3.bf16.msra.mxu0 %v12068_v1  ;;  %v7431_v1 = vrot.slane %v7429_v38, 6  ;;  %v15852_v38 = vld [vmem:[#allocation22_spill] sm:$0xff]  ;;  %v7472_v25 = vshrl.u32 %v14783_v56, 16  ;;  %v7410_v57 = vsel %vm13217_vm4, %v7401_v3, %v7409_v21  ;;  %v7441_v45 = vor.u32 %v7440_v18, %v7437_v49 }
 0x52b   :  { %11374 = vmatprep.subr.bf16.mxu0 %v12069_v8  ;;  %v7466_v30 = vrot.slane %v15852_v38, 5  ;;  %v7445_v26 = vor.u32 %v7444_v36, %v7443_v5  ;;  %v7454_v10 = vrot.slane %v7452_v50, 6  ;;  %v15855_v49 = vld [vmem:[#allocation46_spill] sm:$0xff]  ;;  %v12073_v36 = vld [vmem:[#allocation9 + $0x130] sm:$0xff]  }
 0x52c   :  { %v7432_v43 = vor.u32 %v7431_v1, %v7428_v20  ;;  %v10247_v20 = vcombine.low %v7377_v17, %v7387_v48  ;;  %v7400_v1 = vsel %vm13217_vm4, %v7396_v14, %v14766_v15  ;;  %v7464_v15 = vor.u32 %v7463_v28, %v7460_v52  ;;  %v14816_v17 = vld [vmem:[#allocation2 + $0x98] sm:$0x3] }
 0x52d   :  { %11343 = vmatmul.mubr.bf16.gmra.mrb[20].mxu0 %v10244_v39  ;;  %v7419_v39 = vrot.slane %v7418_v47, 4  ;;  %v7475_v47 = vshll.u32 %v14783_v56, 16  ;;  %v7468_v14 = vor.u32 %v7467_v19, %v7466_v30  ;;  %v7474_v3 = vrot.slane %v7472_v25, 5 }
 0x52e   :  { %11346 = vmatprep.mubr.bf16.mxu0 %v10245_v53  ;;  %11375 = vmatpush3.bf16.msra.mxu0 %v12069_v8  ;;  %v7449_v8 = vshrl.u32 %v14776_v40, 16  ;;  %v10246_v53 = vcombine.low %v7354_v9, %v7364_v51  ;;  %v14808_v51 = vld [vmem:[#allocation2 + $0x8c] sm:$0x3]  ;;  %v7481_v9 = vshrl.u32 %v14582_v7, 16  ;;  %v7490_v18 = vrot.slane %v15855_v49, 6 }
 0x52f   :  { %11376 = vmatprep.subr.bf16.mxu0 %v12070_v35  ;;  %v7423_v58 = vsel %vm13217_vm4, %v7419_v39, %v14769_v12  ;;  %v7477_v21 = vrot.slane %v7475_v47, 6  ;;  %v7484_v12 = vshll.u32 %v14582_v7, 16  ;;  %v15854_v39 = vld [vmem:[#allocation20_spill] sm:$0xff]  ;;  %v7495_v5 = vshrl.u32 %v14808_v51, 16 }
 0x530   :  { %v7451_v48 = vrot.slane %v7449_v8, 5  ;;  %v10248_v8 = vcombine.low %v7400_v1, %v7410_v57  ;;  %v7442_v52 = vrot.slane %v7441_v45, 4  ;;  %v7465_v30 = vrot.slane %v7464_v15, 4  ;;  %v12074_v1 = vld [vmem:[#allocation9 + $0x138] sm:$0xff]  }
 0x531   :  { %v7470_v19 = vrot.slane %v7468_v14, 4  ;;  %v7478_v7 = vor.u32 %v7477_v21, %v7474_v3  ;;  %v7483_v25 = vrot.slane %v7481_v9, 5  ;;  %v7504_v47 = vshrl.u32 %v14586_v0, 16  ;;  %v15856_v57 = vld [vmem:[#allocation49_spill] sm:$0xff] }
 0x532   :  { %11377 = vmatpush3.bf16.msra.mxu0 %v12070_v35  ;;  %v7433_v35 = vsel %vm13217_vm4, %v7424_v22, %v7432_v43  ;;  %v7489_v22 = vrot.slane %v15854_v39, 5  ;;  %v7498_v43 = vshll.u32 %v14808_v51, 16  ;;  %v7455_v28 = vor.u32 %v7454_v10, %v7451_v48 }
 0x533   :  { %11378 = vmatprep.subr.bf16.mxu0 %v12071_v13  ;;  %v10249_v50 = vcombine.low %v7423_v58, %v7433_v35  ;;  %v7497_v39 = vrot.slane %v7495_v5, 5  ;;  %v7512_v58 = vrot.slane %v15856_v57, 5  ;;  %v15857_v35 = vld [vmem:[#allocation19_spill] sm:$0xff]  ;;  %v7518_v48 = vshrl.u32 %v14816_v17, 16  ;;  %v14857_v57 = vld [vmem:[#allocation2 + $0xbc] sm:$0x3] }
 0x534   :  { %v7491_v49 = vor.u32 %v7490_v18, %v7489_v22  ;;  %v7500_v24 = vrot.slane %v7498_v43, 6  ;;  %v7513_v45 = vrot.slane %v15857_v35, 6  ;;  %v7521_v10 = vshll.u32 %v14816_v17, 16  ;;  %v14832_v18 = vld [vmem:[#allocation9 + $0x140] sm:$0xff]  }
 0x535   :  { %11347 = vmatmul.mubr.bf16.gmra.mrb[24].mxu0 %v10246_v53  ;;  %v7507_v53 = vshll.u32 %v14586_v0, 16  ;;  %v7479_v0 = vsel %vm13217_vm4, %v7470_v19, %v7478_v7  ;;  %v7506_v15 = vrot.slane %v7504_v47, 5  ;;  %v7446_v21 = vsel %vm13217_vm4, %v7442_v52, %v7445_v26  ;;  %v15858_v52 = vld [vmem:[#allocation30_spill] sm:$0xff]  ;;  %v14840_v47 = vld [vmem:[#allocation2 + $0xb0] sm:$0x3] }
 0x536   :  { %11350 = vmatprep.mubr.bf16.mxu0 %v10247_v20  ;;  %11379 = vmatpush3.bf16.msra.mxu0 %v12071_v13  ;;  %v7447_v13 = vrot.slane %v7445_v26, 4  ;;  %v7486_v20 = vrot.slane %v7484_v12, 6  ;;  %v7469_v9 = vsel %vm13217_vm4, %v7465_v30, %v7468_v14  ;;  %v7493_v22 = vrot.slane %v7491_v49, 4  ;;  %v15859_v30 = vld [vmem:[#allocation31_spill] sm:$0xff] }
 0x537   :  { %11380 = vmatprep.subr.bf16.mxu0 %v12072_v62  ;;  %v7509_v3 = vrot.slane %v7507_v53, 6  ;;  %v7501_v5 = vor.u32 %v7500_v24, %v7497_v39  ;;  %v7514_v43 = vor.u32 %v7513_v45, %v7512_v58  ;;  %v10251_v19 = vcombine.low %v7469_v9, %v7479_v0 }
 0x538   :  { %v7487_v12 = vor.u32 %v7486_v20, %v7483_v25  ;;  %v7530_v26 = vshll.u32 %v14598_v55, 16  ;;  %v7535_v14 = vrot.slane %v15858_v52, 5  ;;  %v7536_v25 = vrot.slane %v15859_v30, 6 }
 0x539   :  { %v7510_v7 = vor.u32 %v7509_v3, %v7506_v15  ;;  %v7550_v53 = vshrl.u32 %v14613_v34, 16  ;;  %v7553_v20 = vshll.u32 %v14613_v34, 16  ;;  %v7516_v45 = vrot.slane %v7514_v43, 4 }
 0x53a   :  { %11381 = vmatpush3.bf16.msra.mxu0 %v12072_v62  ;;  %v7456_v62 = vsel %vm13217_vm4, %v7447_v13, %v7455_v28  ;;  %v14834_v13 = vld [vmem:[#allocation2 + $0xa4] sm:$0x3]  ;;  %v7488_v58 = vrot.slane %v7487_v12, 4  ;;  %v7564_v15 = vshrl.u32 %v14840_v47, 16  ;;  %v7567_v3 = vshll.u32 %v14840_v47, 16 }
 0x53b   :  { %11382 = vmatprep.subr.bf16.mxu0 %v12073_v36  ;;  %v10250_v28 = vcombine.low %v7446_v21, %v7456_v62  ;;  %v7541_v24 = vshrl.u32 %v14834_v13, 16  ;;  %v7544_v39 = vshll.u32 %v14834_v13, 16  ;;  %v7511_v21 = vrot.slane %v7510_v7, 4 }
 0x53c   :  { %v7532_v9 = vrot.slane %v7530_v26, 6  ;;  %v7537_v30 = vor.u32 %v7536_v25, %v7535_v14  ;;  %v7552_v35 = vrot.slane %v7550_v53, 5  ;;  %v7573_v7 = vshrl.u32 %v14619_v32, 16 }
 0x53d   :  { %11351 = vmatmul.mubr.bf16.gmra.mrb[28].mxu0 %v10248_v8  ;;  %v7520_v8 = vrot.slane %v7518_v48, 5  ;;  %v7543_v12 = vrot.slane %v7541_v24, 5  ;;  %v7546_v52 = vrot.slane %v7544_v39, 6  ;;  %v7576_v26 = vshll.u32 %v14619_v32, 16 }
 0x53e   :  { %11354 = vmatprep.mubr.bf16.mxu0 %v10249_v50  ;;  %11383 = vmatpush3.bf16.msra.mxu0 %v12073_v36  ;;  %v7523_v50 = vrot.slane %v7521_v10, 6  ;;  %v7527_v36 = vshrl.u32 %v14598_v55, 16  ;;  %v7502_v55 = vsel %vm13217_vm4, %v7493_v22, %v7501_v5  ;;  %v15860_v10 = vld [vmem:[#allocation42_spill] sm:$0xff]  ;;  %v7555_v22 = vrot.slane %v7553_v20, 6 }
 0x53f   :  { %11384 = vmatprep.subr.bf16.mxu0 %v12074_v1  ;;  %v7558_v62 = vrot.slane %v15860_v10, 5  ;;  %v7492_v5 = vsel %vm13217_vm4, %v7488_v58, %v7491_v49  ;;  %v7569_v10 = vrot.slane %v7567_v3, 6  ;;  %v7539_v25 = vrot.slane %v7537_v30, 4 }
 0x540   :  { %v7524_v48 = vor.u32 %v7523_v50, %v7520_v8  ;;  %v7529_v34 = vrot.slane %v7527_v36, 5  ;;  %v10252_v50 = vcombine.low %v7492_v5, %v7502_v55  ;;  %v7547_v49 = vor.u32 %v7546_v52, %v7543_v12 }
 0x541   :  { %v7556_v24 = vor.u32 %v7555_v22, %v7552_v35  ;;  %v7581_v39 = vrot.slane %v14445_v61, 5  ;;  %v7582_v53 = vrot.slane %v14440_v4, 6  ;;  %v7587_v20 = vshrl.u32 %v14857_v57, 16 }
 0x542   :  { %11385 = vmatpush3.bf16.msra.mxu0 %v12074_v1  ;;  %v15861_v1 = vld [vmem:[#allocation38_spill] sm:$0xff]  ;;  %v7525_v8 = vsel %vm13217_vm4, %v7516_v45, %v7524_v48  ;;  %v7533_v36 = vor.u32 %v7532_v9, %v7529_v34  ;;  %v7590_v58 = vshll.u32 %v14857_v57, 16  ;;  %v7575_v48 = vrot.slane %v7573_v7, 5 }
 0x543   :  { %11418 = vmatprep.subr.bf16.mxu0 %v14832_v18  ;;  %v7559_v0 = vrot.slane %v15861_v1, 6  ;;  %v7566_v1 = vrot.slane %v7564_v15, 5  ;;  %v7557_v32 = vrot.slane %v7556_v24, 4  ;;  %v7548_v52 = vsel %vm13217_vm4, %v7539_v25, %v7547_v49  ;;  %v14879_v7 = vld [vmem:[#allocation2] sm:$0xc] }
 0x544   :  { %v7534_v45 = vrot.slane %v7533_v36, 4  ;;  %v7583_v35 = vor.u32 %v7582_v53, %v7581_v39  ;;  %v7592_v15 = vrot.slane %v7590_v58, 6  ;;  %v14889_v24 = vld [vmem:[#allocation2 + $0x1c] sm:$0xf] }
 0x545   :  { %11355 = vmatmul.mubr.bf16.gmra.mrb[32].mxu0 %v10250_v28  ;;  %v7560_v28 = vor.u32 %v7559_v0, %v7558_v62  ;;  %v7578_v62 = vrot.slane %v7576_v26, 6  ;;  %v7589_v0 = vrot.slane %v7587_v20, 5  ;;  %15864 = vst [vmem:[#allocation17_spill] sm:$0xff] %v14889_v24 }
 0x546   :  { %11358 = vmatprep.mubr.bf16.mxu0 %v10251_v19  ;;  %v7515_v19 = vsel %vm13217_vm4, %v7511_v21, %v7514_v43  ;;  %v7570_v43 = vor.u32 %v7569_v10, %v7566_v1  ;;  %v14871_v21 = vld [vmem:[#allocation2 + $0x4] sm:$0xf]  ;;  %v7538_v10 = vsel %vm13217_vm4, %v7534_v45, %v7537_v30  ;;  %v7585_v5 = vrot.slane %v7583_v35, 4  ;;  %v14883_v30 = vld [vmem:[#allocation2 + $0x10] sm:$0xf] }
 0x547   :  { %v10253_v14 = vcombine.low %v7515_v19, %v7525_v8  ;;  %v7562_v55 = vrot.slane %v7560_v28, 4  ;;  %v7967_v34 = vrot.slane %v14871_v21, 6  ;;  %v7579_v1 = vor.u32 %v7578_v62, %v7575_v48  ;;  %15862 = vst [vmem:[#allocation41_spill] sm:$0xff] %v14883_v30  ;;  %v14897_v45 = vld [vmem:[#allocation2 + $0xc] sm:$0xc] }
 0x548   :  { %v10254_v9 = vcombine.low %v7538_v10, %v7548_v52  ;;  %v7561_v12 = vsel %vm13217_vm4, %v7557_v32, %v7560_v28  ;;  %v7593_v8 = vor.u32 %v7592_v15, %v7589_v0  ;;  %v7970_v19 = vrot.slane %v14635_v41, 6  ;;  %v14900_v32 = vld [vmem:[#allocation2 + $0x18] sm:$0xc] }
 0x549   :  { %v7571_v3 = vsel %vm13217_vm4, %v7562_v55, %v7570_v43  ;;  %v7580_v36 = vrot.slane %v7579_v1, 4  ;;  %v10265_v28 = vrot.slane %v14879_v7, 10  ;;  %v7981_v41 = vrot.slane %v14889_v24, 6 }
 0x54a   :  { %v10255_v22 = vcombine.low %v7561_v12, %v7571_v3  ;;  %v7594_v26 = vsel %vm13217_vm4, %v7585_v5, %v7593_v8  ;;  %v7977_v43 = vrot.slane %v14655_v42, 6  ;;  %v7984_v62 = vrot.slane %v14664_v16, 6  ;;  %v14911_v3 = vld [vmem:[#allocation2 + $0x34] sm:$0xf]  ;;  %v14919_v8 = vld [vmem:[#allocation2 + $0x24] sm:$0xc] }
 0x54b   :  { %v7584_v39 = vsel %vm13217_vm4, %v7580_v36, %v7583_v35  ;;  %v7968_v20 = vsel %vm13448_vm6, %v10265_v28, %v7967_v34  ;;  %v7983_v48 = vrot.slane %v7981_v41, 4  ;;  %v10266_v23 = vrot.slane %v14897_v45, 10  ;;  %v14905_v35 = vld [vmem:[#allocation2 + $0x28] sm:$0xf]  ;;  %15866 = vst [vmem:[#allocation21_spill] sm:$0xff] %v14911_v3 }
 0x54c   :  { %v10256_v53 = vcombine.low %v7584_v39, %v7594_v26  ;;  %15865 = vst [vmem:[#allocation16_spill] sm:$0xff] %v14905_v35  ;;  %v7988_v0 = vrot.slane %v14905_v35, 6  ;;  %v10267_v42 = vrot.slane %v14900_v32, 10  ;;  %v7995_v16 = vrot.slane %v14911_v3, 6  ;;  %v14923_v36 = vld [vmem:[#allocation2 + $0x30] sm:$0xc] }
 0x54d   :  { %11359 = vmatmul.mubr.bf16.gmra.mrb[36].mxu0 %v10252_v50  ;;  %v7969_v50 = vrot.slane %v7967_v34, 4  ;;  %v7985_v15 = vsel %vm13448_vm6, %v7983_v48, %v7984_v62  ;;  %v7991_v5 = vrot.slane %v14678_v31, 6  ;;  %v12077_v26 = vld [vmem:[#allocation9 + $0x150] sm:$0xff]   ;;  %v8005_v62 = vrot.slane %v14713_v59, 6 }
 0x54e   :  { %11362 = vmatprep.mubr.bf16.mxu0 %v10253_v14  ;;  %v7974_v14 = vrot.slane %v14883_v30, 6  ;;  %v7982_v1 = vsel %vm13448_vm6, %v10267_v42, %v7981_v41  ;;  %v10269_v41 = vrot.slane %v14923_v36, 10  ;;  %v8012_v42 = vrot.slane %v14725_v29, 6 }
 0x54f   :  { %v7971_v49 = vsel %vm13448_vm6, %v7969_v50, %v7970_v19  ;;  %v10283_v12 = vcombine.low %v7982_v1, %v7985_v15  ;;  %v7997_v50 = vrot.slane %v7995_v16, 4  ;;  %v7998_v19 = vrot.slane %v14689_v6, 6  ;;  %v12079_v15 = vld [vmem:[#allocation9 + $0x160] sm:$0xff]  }
 0x550   :  { %v10281_v58 = vcombine.low %v7968_v20, %v7971_v49  ;;  %v7976_v55 = vrot.slane %v7974_v14, 4  ;;  %v7975_v34 = vsel %vm13448_vm6, %v10266_v23, %v7974_v14  ;;  %v10268_v14 = vrot.slane %v14919_v8, 10  ;;  %v14928_v49 = vld [vmem:[#allocation2 + $0x40] sm:$0xf]  ;;  %v14942_v23 = vld [vmem:[#allocation2 + $0x3c] sm:$0xc] }
 0x551   :  { %15867 = vst [vmem:[#allocation56_spill] sm:$0xff] %v14928_v49  ;;  %v8002_v31 = vrot.slane %v14928_v49, 6  ;;  %v7999_v6 = vsel %vm13448_vm6, %v7997_v50, %v7998_v19  ;;  %v12080_v19 = vld [vmem:[#allocation9 + $0x168] sm:$0xff]  }
 0x552   :  { %v7978_v52 = vsel %vm13448_vm6, %v7976_v55, %v7977_v43  ;;  %v12078_v55 = vld [vmem:[#allocation9 + $0x158] sm:$0xff]  }
 0x553   :  { %v10282_v10 = vcombine.low %v7975_v34, %v7978_v52  ;;  %v8004_v48 = vrot.slane %v8002_v31, 4 }
 0x555   :  { %11363 = vmatmul.mubr.bf16.gmra.mrb[40].mxu0 %v10254_v9  ;;  %v12076_v9 = vld [vmem:[#allocation9 + $0x148] sm:$0xff]   ;;  %v8006_v34 = vsel %vm13448_vm6, %v8004_v48, %v8005_v62 }
 0x556   :  { %11366 = vmatprep.mubr.bf16.mxu0 %v10255_v22  ;;  %v7990_v22 = vrot.slane %v7988_v0, 4 }
 0x558   :  { %v7992_v28 = vsel %vm13448_vm6, %v7990_v22, %v7991_v5 }
 0x55d   :  { %11367 = vmatmul.mubr.bf16.gmra.mrb[44].mxu0 %v10256_v53  ;;  %v7989_v53 = vsel %vm13448_vm6, %v10268_v14, %v7988_v0  ;;  %v14945_v0 = vld [vmem:[#allocation2 + $0x48] sm:$0xc] }
 0x55e   :  { %11386 = vmatprep.mubr.bf16.mxu0 %v10281_v58  ;;  %v10284_v20 = vcombine.low %v7989_v53, %v7992_v28  ;;  %v7996_v58 = vsel %vm13448_vm6, %v10269_v41, %v7995_v16  ;;  %v10270_v16 = vrot.slane %v14942_v23, 10  ;;  %v10271_v1 = vrot.slane %v14945_v0, 10  ;;  %v14964_v41 = vld [vmem:[#allocation2 + $0x54] sm:$0xc] }
 0x55f   :  { %v10285_v43 = vcombine.low %v7996_v58, %v7999_v6  ;;  %v8019_v28 = vrot.slane %v14747_v27, 6  ;;  %v8026_v53 = vrot.slane %v14753_v63, 6  ;;  %v12081_v58 = vld [vmem:[#allocation9 + $0x170] sm:$0xff]  }
 0x560   :  { %v8003_v22 = vsel %vm13448_vm6, %v10270_v16, %v8002_v31  ;;  %v14969_v31 = vld [vmem:[#allocation2 + $0x70] sm:$0xf] }
 0x561   :  { %v10286_v5 = vcombine.low %v8003_v22, %v8006_v34  ;;  %15871 = vst [vmem:[#allocation24_spill] sm:$0xff] %v14969_v31  ;;  %v14988_v34 = vld [vmem:[#allocation2 + $0x94] sm:$0xf] }
 0x562   :  { %15874 = vst [vmem:[#allocation37_spill] sm:$0xff] %v14988_v34 }
 0x565   :  { %11387 = vmatmul.mubr.bf16.vlgmr.msra.gmra.mrb[16].mxu0 %v10282_v10  ;;  %v14950_v10 = vld [vmem:[#allocation2 + $0x58] sm:$0xf] }
 0x566   :  { %11419 = vmatpush3.bf16.msra.mxu0 %v14832_v18  ;;  %11390 = vmatprep.mubr.bf16.mxu0 %v10283_v12  ;;  %v14934_v18 = vld [vmem:[#allocation2 + $0x4c] sm:$0xf]  ;;  %15869 = vst [vmem:[#allocation33_spill] sm:$0xff] %v14950_v10  ;;  %v8016_v59 = vrot.slane %v14950_v10, 6 }
 0x567   :  { %11420 = vmatprep.subr.bf16.mxu0 %v12076_v9  ;;  %15868 = vst [vmem:[#allocation52_spill] sm:$0xff] %v14934_v18  ;;  %v8009_v39 = vrot.slane %v14934_v18, 6 }
 0x568   :  { %v8018_v14 = vrot.slane %v8016_v59, 4 }
 0x569   :  { %v8011_v52 = vrot.slane %v8009_v39, 4  ;;  %v8010_v50 = vsel %vm13448_vm6, %v10271_v1, %v8009_v39  ;;  %v8030_v39 = vrot.slane %v14969_v31, 6  ;;  %v8051_v1 = vrot.slane %v14988_v34, 6 }
 0x56a   :  { %11421 = vmatpush3.bf16.msra.mxu0 %v12076_v9  ;;  %v14956_v9 = vld [vmem:[#allocation2 + $0x64] sm:$0xf]  ;;  %v8020_v27 = vsel %vm13448_vm6, %v8018_v14, %v8019_v28  ;;  %v14996_v28 = vld [vmem:[#allocation2 + $0x78] sm:$0xc] }
 0x56b   :  { %11422 = vmatprep.subr.bf16.mxu0 %v12077_v26  ;;  %v8013_v29 = vsel %vm13448_vm6, %v8011_v52, %v8012_v42  ;;  %15870 = vst [vmem:[#allocation27_spill] sm:$0xff] %v14956_v9  ;;  %v8023_v12 = vrot.slane %v14956_v9, 6  ;;  %v14983_v42 = vld [vmem:[#allocation2 + $0x6c] sm:$0xc]  ;;  %v15032_v9 = vld [vmem:[#allocation2 + $0xa8] sm:$0xc] }
 0x56d   :  { %11391 = vmatmul.mubr.bf16.gmra.mrb[20].mxu0 %v10284_v20  ;;  %v8025_v6 = vrot.slane %v8023_v12, 4  ;;  %v14967_v20 = vld [vmem:[#allocation2 + $0x60] sm:$0xc] }
 0x56e   :  { %11394 = vmatprep.mubr.bf16.mxu0 %v10285_v43  ;;  %11423 = vmatpush3.bf16.msra.mxu0 %v12077_v26  ;;  %v10287_v26 = vcombine.low %v8010_v50, %v8013_v29  ;;  %v14975_v43 = vld [vmem:[#allocation2 + $0x7c] sm:$0xf]  ;;  %v10273_v63 = vrot.slane %v14967_v20, 10  ;;  %v8033_v50 = vrot.slane %v14776_v40, 6  ;;  %v15003_v40 = vld [vmem:[#allocation2 + $0x90] sm:$0xc] }
 0x56f   :  { %11424 = vmatprep.subr.bf16.mxu0 %v12078_v55  ;;  %15872 = vst [vmem:[#allocation29_spill] sm:$0xff] %v14975_v43  ;;  %v8037_v48 = vrot.slane %v14975_v43, 6  ;;  %v8027_v62 = vsel %vm13448_vm6, %v8025_v6, %v8026_v53  ;;  %v14999_v53 = vld [vmem:[#allocation2 + $0xa0] sm:$0xf]  ;;  %v10277_v43 = vrot.slane %v15003_v40, 10 }
 0x570   :  { %v8024_v22 = vsel %vm13448_vm6, %v10273_v63, %v8023_v12  ;;  %15875 = vst [vmem:[#allocation40_spill] sm:$0xff] %v14999_v53  ;;  %v8053_v63 = vrot.slane %v8051_v1, 4 }
 0x571   :  { %v10289_v14 = vcombine.low %v8024_v22, %v8027_v62  ;;  %v8039_v6 = vrot.slane %v8037_v48, 4  ;;  %v10274_v62 = vrot.slane %v14983_v42, 10  ;;  %v10275_v22 = vrot.slane %v14996_v28, 10 }
 0x572   :  { %11425 = vmatpush3.bf16.msra.mxu0 %v12078_v55  ;;  %v10272_v55 = vrot.slane %v14964_v41, 10 }
 0x573   :  { %11426 = vmatprep.subr.bf16.mxu0 %v12079_v15 }
 0x574   :  { %v8017_v52 = vsel %vm13448_vm6, %v10272_v55, %v8016_v59  ;;  %v12082_v59 = vld [vmem:[#allocation9 + $0x178] sm:$0xff]   ;;  %v8058_v55 = vrot.slane %v14999_v53, 6 }
 0x575   :  { %11395 = vmatmul.mubr.bf16.gmra.mrb[24].mxu0 %v10286_v5  ;;  %v10288_v29 = vcombine.low %v8017_v52, %v8020_v27  ;;  %v8032_v5 = vrot.slane %v8030_v39, 4  ;;  %v8047_v27 = vrot.slane %v14808_v51, 6  ;;  %v8054_v52 = vrot.slane %v14816_v17, 6 }
 0x576   :  { %11398 = vmatprep.mubr.bf16.mxu0 %v10287_v26  ;;  %11427 = vmatpush3.bf16.msra.mxu0 %v12079_v15  ;;  %v14985_v15 = vld [vmem:[#allocation2 + $0x88] sm:$0xf]  ;;  %v14994_v26 = vld [vmem:[#allocation2 + $0x84] sm:$0xc]  ;;  %v8060_v34 = vrot.slane %v8058_v55, 4  ;;  %v8061_v17 = vrot.slane %v14834_v13, 6 }
 0x577   :  { %11428 = vmatprep.subr.bf16.mxu0 %v12080_v19  ;;  %15873 = vst [vmem:[#allocation36_spill] sm:$0xff] %v14985_v15  ;;  %v8044_v16 = vrot.slane %v14985_v15, 6  ;;  %v10276_v53 = vrot.slane %v14994_v26, 10  ;;  %v8055_v13 = vsel %vm13448_vm6, %v8053_v63, %v8054_v52  ;;  %v8419_v63 = vshll.u32 %v14879_v7, 16 }
 0x579   :  { %v8046_v12 = vrot.slane %v8044_v16, 4 }
 0x57a   :  { %11429 = vmatpush3.bf16.msra.mxu0 %v12080_v19  ;;  %v8040_v19 = vrot.slane %v14783_v56, 6  ;;  %v8034_v56 = vsel %vm13448_vm6, %v8032_v5, %v8033_v50  ;;  %v8031_v5 = vsel %vm13448_vm6, %v10274_v62, %v8030_v39  ;;  %v8038_v50 = vsel %vm13448_vm6, %v10275_v22, %v8037_v48  ;;  %v15056_v22 = vld [vmem:[#allocation2 + $0x8] sm:$0x7] }
 0x57b   :  { %11430 = vmatprep.subr.bf16.mxu0 %v12081_v58  ;;  %v10290_v31 = vcombine.low %v8031_v5, %v8034_v56  ;;  %v8052_v39 = vsel %vm13448_vm6, %v10277_v43, %v8051_v1  ;;  %v8068_v62 = vrot.slane %v14840_v47, 6  ;;  %v15038_v56 = vld [vmem:[#allocation2 + $0xb4] sm:$0xc]  ;;  %v10279_v47 = vrot.slane %v15032_v9, 10  ;;  %15878 = vst [vmem:[#allocation51_spill] sm:$0xff] %v15056_v22 }
 0x57c   :  { %v8041_v51 = vsel %vm13448_vm6, %v8039_v6, %v8040_v19  ;;  %v8045_v6 = vsel %vm13448_vm6, %v10276_v53, %v8044_v16  ;;  %v8048_v19 = vsel %vm13448_vm6, %v8046_v12, %v8047_v27  ;;  %v15043_v16 = vsel %vm13448_vm6, %v8060_v34, %v8061_v17  ;;  %v15045_v12 = vld [vmem:[#allocation2 + $0xb8] sm:$0xf] }
 0x57d   :  { %11399 = vmatmul.mubr.bf16.gmra.mrb[28].mxu0 %v10288_v29  ;;  %v15011_v29 = vld [vmem:[#allocation9 + $0x180] sm:$0xff]   ;;  %15877 = vst [vmem:[#allocation50_spill] sm:$0xff] %v15045_v12  ;;  %v8416_v27 = vshrl.u32 %v14879_v7, 16  ;;  %v10292_v43 = vcombine.low %v8045_v6, %v8048_v19  ;;  %v10293_v1 = vcombine.low %v8052_v39, %v8055_v13  ;;  %v10280_v34 = vrot.slane %v15038_v56, 10  ;;  %v15076_v19 = vld [vmem:[#allocation2 + $0x14] sm:$0x7] }
 0x57e   :  { %11402 = vmatprep.mubr.bf16.mxu0 %v10289_v14  ;;  %11431 = vmatpush3.bf16.msra.mxu0 %v12081_v58  ;;  %v15015_v14 = vld [vmem:[#allocation2 + $0x9c] sm:$0xc]  ;;  %v15018_v58 = vld [vmem:[#allocation2 + $0xac] sm:$0xf]  ;;  %v8442_v17 = vshll.u32 %v14897_v45, 16  ;;  %v8075_v7 = vrot.slane %v14857_v57, 6 }
 0x57f   :  { %11432 = vmatprep.subr.bf16.mxu0 %v12082_v59  ;;  %15876 = vst [vmem:[#allocation44_spill] sm:$0xff] %v15018_v58  ;;  %v8065_v15 = vrot.slane %v15018_v58, 6  ;;  %v10291_v58 = vcombine.low %v8038_v50, %v8041_v51  ;;  %v10278_v48 = vrot.slane %v15015_v14, 10  ;;  %v8439_v51 = vshrl.u32 %v14897_v45, 16  ;;  %15879 = vst [vmem:[#allocation22_spill] sm:$0xff] %v15076_v19 }
 0x580   :  { %v8418_v6 = vrot.slane %v8416_v27, 6  ;;  %v8421_v13 = vrot.slane %v8419_v63, 7  ;;  %v8430_v39 = vshrl.u32 %v15056_v22, 16  ;;  %v8433_v57 = vshll.u32 %v15056_v22, 16  ;;  %v15085_v27 = vld [vmem:[#allocation2 + $0x20] sm:$0x7] }
 0x581   :  { %v8067_v53 = vrot.slane %v8065_v15, 4  ;;  %v15053_v52 = vsel %vm13448_vm6, %v10278_v48, %v8058_v55  ;;  %v15064_v5 = vsel %vm13448_vm6, %v10279_v47, %v8065_v15  ;;  %v8424_v55 = vrot.slane %v15831_v33, 6 }
 0x582   :  { %11433 = vmatpush3.bf16.msra.mxu0 %v12082_v59  ;;  %v8072_v59 = vrot.slane %v15045_v12, 6  ;;  %v8425_v15 = vrot.slane %v15832_v2, 7  ;;  %v8441_v33 = vrot.slane %v8439_v51, 6  ;;  %v8444_v48 = vrot.slane %v8442_v17, 7  ;;  %v15882_v12 = vld [vmem:[#allocation28_spill] sm:$0xff] }
 0x583   :  { %11466 = vmatprep.subr.bf16.mxu0 %v15011_v29  ;;  %v8453_v47 = vshrl.u32 %v15076_v19, 16  ;;  %v8462_v63 = vshrl.u32 %v14900_v32, 16  ;;  %v8465_v2 = vshll.u32 %v14900_v32, 16  ;;  %v8471_v10 = vrot.slane %v15882_v12, 7  ;;  %v15099_v12 = vld [vmem:[#allocation2 + $0x2c] sm:$0x7] }
 0x584   :  { %v15074_v50 = vsel %vm13448_vm6, %v10280_v34, %v8072_v59  ;;  %v8074_v45 = vrot.slane %v8072_v59, 4  ;;  %v8456_v59 = vshll.u32 %v15076_v19, 16  ;;  %v8485_v51 = vshrl.u32 %v14919_v8, 16  ;;  %15883 = vst [vmem:[#allocation43_spill] sm:$0xff] %v15099_v12 }
 0x585   :  { %11403 = vmatmul.mubr.bf16.gmra.mrb[32].mxu0 %v10290_v31  ;;  %v10294_v31 = vcombine.low %v15053_v52, %v15043_v16  ;;  %v15880_v16 = vld [vmem:[#allocation26_spill] sm:$0xff]  ;;  %v15881_v52 = vld [vmem:[#allocation32_spill] sm:$0xff]  ;;  %v15095_v18 = vor.u32 %v8425_v15, %v8424_v55  ;;  %v8432_v49 = vrot.slane %v8430_v39, 6  ;;  %v8435_v3 = vrot.slane %v8433_v57, 7 }
 0x586   :  { %11406 = vmatprep.mubr.bf16.mxu0 %v10291_v58  ;;  %v15070_v58 = vsel %vm13448_vm6, %v8067_v53, %v8068_v62  ;;  %v8447_v62 = vrot.slane %v15833_v44, 6  ;;  %v8448_v53 = vrot.slane %v15880_v16, 7  ;;  %v8470_v34 = vrot.slane %v15881_v52, 6  ;;  %v15884_v55 = vld [vmem:[#allocation34_spill] sm:$0xff] }
 0x587   :  { %v8488_v44 = vshll.u32 %v14919_v8, 16  ;;  %v10295_v17 = vcombine.low %v15064_v5, %v15070_v58  ;;  %v8422_v16 = vor.u32 %v8421_v13, %v8418_v6  ;;  %v8445_v35 = vor.u32 %v8444_v48, %v8441_v33  ;;  %v15885_v13 = vld [vmem:[#allocation35_spill] sm:$0xff] }
 0x588   :  { %v8476_v32 = vshrl.u32 %v15085_v27, 16  ;;  %v8479_v52 = vshll.u32 %v15085_v27, 16  ;;  %v8449_v19 = vor.u32 %v8448_v53, %v8447_v62  ;;  %v8455_v24 = vrot.slane %v8453_v47, 6 }
 0x589   :  { %v8458_v8 = vrot.slane %v8456_v59, 7  ;;  %v8467_v30 = vrot.slane %v8465_v2, 7  ;;  %v8472_v22 = vor.u32 %v8471_v10, %v8470_v34  ;;  %v8487_v5 = vrot.slane %v8485_v51, 6 }
 0x58a   :  { %v8490_v58 = vrot.slane %v8488_v44, 7  ;;  %v8493_v6 = vrot.slane %v15884_v55, 6  ;;  %v8499_v15 = vshrl.u32 %v15099_v12, 16  ;;  %v8502_v39 = vshll.u32 %v15099_v12, 16  ;;  %v15110_v44 = vld [vmem:[#allocation2 + $0x38] sm:$0x7] }
 0x58b   :  { %v8478_v57 = vrot.slane %v8476_v32, 6  ;;  %v8481_v33 = vrot.slane %v8479_v52, 7  ;;  %v8508_v48 = vshrl.u32 %v14923_v36, 16  ;;  %v8511_v62 = vshll.u32 %v14923_v36, 16 }
 0x58c   :  { %v8076_v53 = vsel %vm13448_vm6, %v8074_v45, %v8075_v7  ;;  %v8423_v10 = vrot.slane %v8422_v16, 4  ;;  %v8428_v47 = vrot.slane %v15095_v18, 4  ;;  %v8436_v59 = vor.u32 %v8435_v3, %v8432_v49 }
 0x58d   :  { %11407 = vmatmul.mubr.bf16.gmra.mrb[36].mxu0 %v10292_v43  ;;  %v8464_v43 = vrot.slane %v8462_v63, 6  ;;  %v8446_v63 = vrot.slane %v8445_v35, 4  ;;  %v8451_v2 = vrot.slane %v8449_v19, 4  ;;  %v8459_v34 = vor.u32 %v8458_v8, %v8455_v24 }
 0x58e   :  { %11410 = vmatprep.mubr.bf16.mxu0 %v10293_v1  ;;  %v8494_v1 = vrot.slane %v15885_v13, 7  ;;  %v8491_v32 = vor.u32 %v8490_v58, %v8487_v5  ;;  %v8501_v55 = vrot.slane %v8499_v15, 6  ;;  %v8504_v13 = vrot.slane %v8502_v39, 7 }
 0x58f   :  { %v8468_v51 = vor.u32 %v8467_v30, %v8464_v43  ;;  %v8474_v36 = vrot.slane %v8472_v22, 4  ;;  %v8482_v12 = vor.u32 %v8481_v33, %v8478_v57  ;;  %v8510_v25 = vrot.slane %v8508_v48, 6 }
 0x590   :  { %v8495_v52 = vor.u32 %v8494_v1, %v8493_v6  ;;  %v8513_v7 = vrot.slane %v8511_v62, 7  ;;  %v8516_v45 = vrot.slane %v15839_v37, 6  ;;  %v8517_v3 = vrot.slane %v15840_v46, 7 }
 0x591   :  { %v8522_v35 = vshrl.u32 %v15110_v44, 16  ;;  %v8525_v30 = vshll.u32 %v15110_v44, 16  ;;  %v10296_v24 = vcombine.low %v15074_v50, %v8076_v53  ;;  %v8469_v16 = vrot.slane %v8468_v51, 4  ;;  %v15134_v53 = vld [vmem:[#allocation2 + $0x44] sm:$0x7] }
 0x592   :  { %v8492_v8 = vrot.slane %v8491_v32, 4  ;;  %v8497_v43 = vrot.slane %v8495_v52, 4  ;;  %v8505_v5 = vor.u32 %v8504_v13, %v8501_v55  ;;  %v8531_v37 = vshrl.u32 %v14942_v23, 16 }
 0x593   :  { %v8427_v46 = vsel %vm12502_vm9, %v8423_v10, %v15095_v18  ;;  %v8483_v58 = vsel %vm12502_vm9, %v8474_v36, %v8482_v12  ;;  %v8514_v50 = vor.u32 %v8513_v7, %v8510_v25  ;;  %v8534_v6 = vshll.u32 %v14942_v23, 16  ;;  %v15888_v36 = vld [vmem:[#allocation47_spill] sm:$0xff]  ;;  %v15889_v7 = vld [vmem:[#allocation48_spill] sm:$0xff] }
 0x594   :  { %v8450_v1 = vsel %vm12502_vm9, %v8446_v63, %v8449_v19  ;;  %v15130_v15 = vor.u32 %v8517_v3, %v8516_v45  ;;  %v8524_v39 = vrot.slane %v8522_v35, 6  ;;  %v8527_v57 = vrot.slane %v8525_v30, 7  ;;  %v15887_v63 = vld [vmem:[#allocation45_spill] sm:$0xff] }
 0x595   :  { %11411 = vmatmul.mubr.bf16.gmra.mrb[40].mxu0 %v10294_v31  ;;  %v8437_v31 = vsel %vm12502_vm9, %v8428_v47, %v8436_v59  ;;  %v8473_v62 = vsel %vm12502_vm9, %v8469_v16, %v8472_v22  ;;  %v8496_v12 = vsel %vm12502_vm9, %v8492_v8, %v8495_v52  ;;  %v8506_v23 = vsel %vm12502_vm9, %v8497_v43, %v8505_v5  ;;  %v12084_v16 = vld [vmem:[#allocation9 + $0x188] sm:$0xff]   ;;  %v15168_v5 = vld [vmem:[#allocation2 + $0x5c] sm:$0x7] }
 0x596   :  { %11414 = vmatprep.mubr.bf16.mxu0 %v10295_v17  ;;  %v8460_v17 = vsel %vm12502_vm9, %v8451_v2, %v8459_v34  ;;  %v10305_v33 = vcombine.low %v8427_v46, %v8437_v31  ;;  %v10307_v18 = vcombine.low %v8473_v62, %v8483_v58  ;;  %v15140_v19 = vrot.slane %v8531_v37, 6  ;;  %v15146_v2 = vld [vmem:[#allocation2 + $0x50] sm:$0x7]  ;;  %v15890_v62 = vld [vmem:[#allocation55_spill] sm:$0xff] }
 0x597   :  { %v10306_v48 = vcombine.low %v8450_v1, %v8460_v17  ;;  %v15142_v10 = vrot.slane %v8514_v50, 4  ;;  %v8536_v47 = vrot.slane %v8534_v6, 7  ;;  %v8539_v59 = vrot.slane %v15842_v11, 6 }
 0x598   :  { %v8540_v22 = vrot.slane %v15887_v63, 7  ;;  %v8520_v34 = vrot.slane %v15130_v15, 4  ;;  %v8528_v51 = vor.u32 %v8527_v57, %v8524_v39  ;;  %v8545_v32 = vshrl.u32 %v15134_v53, 16  ;;  %v15892_v63 = vld [vmem:[#allocation39_spill] sm:$0xff] }
 0x599   :  { %v8548_v52 = vshll.u32 %v15134_v53, 16  ;;  %v8554_v55 = vshrl.u32 %v14945_v0, 16  ;;  %v8557_v13 = vshll.u32 %v14945_v0, 16  ;;  %v8562_v25 = vrot.slane %v15888_v36, 6 }
 0x59a   :  { %v8563_v45 = vrot.slane %v15889_v7, 7  ;;  %v8568_v11 = vshrl.u32 %v15146_v2, 16  ;;  %v8571_v3 = vshll.u32 %v15146_v2, 16  ;;  %v8577_v35 = vshrl.u32 %v14964_v41, 16 }
 0x59b   :  { %v8580_v30 = vshll.u32 %v14964_v41, 16  ;;  %v8519_v31 = vsel %vm12502_vm9, %v15142_v10, %v15130_v15  ;;  %v8537_v0 = vor.u32 %v8536_v47, %v15140_v19  ;;  %v15164_v17 = vor.u32 %v8540_v22, %v8539_v59  ;;  %v12085_v47 = vld [vmem:[#allocation9 + $0x190] sm:$0xff]  }
 0x59c   :  { %v8529_v8 = vsel %vm12502_vm9, %v8520_v34, %v8528_v51  ;;  %v8547_v43 = vrot.slane %v8545_v32, 6  ;;  %v8600_v37 = vshrl.u32 %v14967_v20, 16  ;;  %v8603_v41 = vshll.u32 %v14967_v20, 16  ;;  %v15893_v34 = vld [vmem:[#allocation54_spill] sm:$0xff] }
 0x59d   :  { %11415 = vmatmul.mubr.bf16.gmra.mrb[44].mxu0 %v10296_v24  ;;  %v10308_v24 = vcombine.low %v8496_v12, %v8506_v23  ;;  %v8550_v46 = vrot.slane %v8548_v52, 7  ;;  %v8556_v58 = vrot.slane %v8554_v55, 6  ;;  %v8559_v50 = vrot.slane %v8557_v13, 7  ;;  %v15891_v23 = vld [vmem:[#allocation53_spill] sm:$0xff] }
 0x59e   :  { %11434 = vmatprep.mubr.bf16.mxu0 %v10305_v33  ;;  %v15172_v6 = vor.u32 %v8563_v45, %v8562_v25  ;;  %v8570_v1 = vrot.slane %v8568_v11, 6  ;;  %v8573_v15 = vrot.slane %v8571_v3, 7  ;;  %v8579_v39 = vrot.slane %v8577_v35, 6  ;;  %v15174_v33 = vld [vmem:[#allocation2 + $0x68] sm:$0x7] }
 0x59f   :  { %v8582_v57 = vrot.slane %v8580_v30, 7  ;;  %v8585_v12 = vrot.slane %v15890_v62, 6  ;;  %v8586_v19 = vrot.slane %v15891_v23, 7  ;;  %v8591_v20 = vshrl.u32 %v15168_v5, 16  ;;  %v12086_v30 = vld [vmem:[#allocation9 + $0x198] sm:$0xff]  }
 0x5a0   :  { %v8594_v10 = vshll.u32 %v15168_v5, 16  ;;  %v8605_v59 = vrot.slane %v8603_v41, 7  ;;  %v8608_v22 = vrot.slane %v15892_v63, 6  ;;  %v8609_v51 = vrot.slane %v15893_v34, 7 }
 0x5a1   :  { %v8543_v32 = vrot.slane %v15164_v17, 4  ;;  %v8617_v52 = vshll.u32 %v15174_v33, 16  ;;  %v8560_v55 = vor.u32 %v8559_v50, %v8556_v58  ;;  %v8566_v13 = vrot.slane %v15172_v6, 4 }
 0x5a2   :  { %v8574_v36 = vor.u32 %v8573_v15, %v8570_v1  ;;  %v8583_v25 = vor.u32 %v8582_v57, %v8579_v39  ;;  %v15187_v7 = vor.u32 %v8586_v19, %v8585_v12  ;;  %v8593_v45 = vrot.slane %v8591_v20, 6  ;;  %v15197_v39 = vld [vmem:[#allocation2 + $0x74] sm:$0x7]  ;;  %v15202_v12 = vld [vmem:[#allocation2 + $0x80] sm:$0x7] }
 0x5a3   :  { %v8596_v11 = vrot.slane %v8594_v10, 7  ;;  %v8623_v3 = vshrl.u32 %v14983_v42, 16  ;;  %v8538_v35 = vrot.slane %v8537_v0, 4  ;;  %v8626_v41 = vshll.u32 %v14983_v42, 16  ;;  %v12087_v19 = vld [vmem:[#allocation9 + $0x1a0] sm:$0xff]  }
 0x5a4   :  { %v8561_v1 = vrot.slane %v8560_v55, 4  ;;  %v8575_v15 = vsel %vm12502_vm9, %v8566_v13, %v8574_v36  ;;  %v8646_v0 = vshrl.u32 %v14996_v28, 16  ;;  %v8649_v57 = vshll.u32 %v14996_v28, 16 }
 0x5a5   :  { %11435 = vmatmul.mubr.bf16.vlgmr.msra.gmra.mrb[16].mxu0 %v10306_v48  ;;  %v8602_v48 = vrot.slane %v8600_v37, 6  ;;  %v15190_v37 = vor.u32 %v8609_v51, %v8608_v22  ;;  %v8584_v42 = vrot.slane %v8583_v25, 4  ;;  %v8625_v62 = vrot.slane %v8623_v3, 6  ;;  %v15894_v51 = vld [vmem:[#allocation23_spill] sm:$0xff] }
 0x5a6   :  { %11467 = vmatpush3.bf16.msra.mxu0 %v15011_v29  ;;  %11438 = vmatprep.mubr.bf16.mxu0 %v10307_v18  ;;  %v8551_v29 = vor.u32 %v8550_v46, %v8547_v43  ;;  %v8614_v18 = vshrl.u32 %v15174_v33, 16  ;;  %v10309_v46 = vcombine.low %v8519_v31, %v8529_v8  ;;  %v8589_v31 = vrot.slane %v15187_v7, 4 }
 0x5a7   :  { %11468 = vmatprep.subr.bf16.mxu0 %v12084_v16  ;;  %v8606_v43 = vor.u32 %v8605_v59, %v8602_v48  ;;  %v8597_v8 = vor.u32 %v8596_v11, %v8593_v45  ;;  %v8612_v23 = vrot.slane %v15190_v37, 4  ;;  %v8628_v20 = vrot.slane %v8626_v41, 7  ;;  %v15229_v11 = vld [vmem:[#allocation2 + $0x8c] sm:$0x7] }
 0x5a8   :  { %v8552_v58 = vsel %vm12502_vm9, %v8543_v32, %v8551_v29  ;;  %v8616_v50 = vrot.slane %v8614_v18, 6  ;;  %v8631_v10 = vrot.slane %v15850_v60, 6  ;;  %v8632_v28 = vrot.slane %v15851_v54, 7 }
 0x5a9   :  { %v8640_v59 = vshll.u32 %v15197_v39, 16  ;;  %v8648_v63 = vrot.slane %v8646_v0, 6  ;;  %v8651_v22 = vrot.slane %v8649_v57, 7  ;;  %v8654_v34 = vrot.slane %v15852_v38, 6  ;;  %v12089_v57 = vld [vmem:[#allocation9 + $0x1b0] sm:$0xff]  }
 0x5aa   :  { %11469 = vmatpush3.bf16.msra.mxu0 %v12084_v16  ;;  %v8619_v16 = vrot.slane %v8617_v52, 7  ;;  %v8655_v32 = vrot.slane %v15894_v51, 7  ;;  %v8542_v29 = vsel %vm12502_vm9, %v8538_v35, %v15164_v17  ;;  %v8565_v60 = vsel %vm12502_vm9, %v8561_v1, %v15172_v6  ;;  %v12088_v17 = vld [vmem:[#allocation9 + $0x1a8] sm:$0xff]   ;;  %v15897_v51 = vld [vmem:[#allocation49_spill] sm:$0xff] }
 0x5ab   :  { %11470 = vmatprep.subr.bf16.mxu0 %v12085_v47  ;;  %v8660_v54 = vshrl.u32 %v15202_v12, 16  ;;  %v8663_v18 = vshll.u32 %v15202_v12, 16  ;;  %v10310_v52 = vcombine.low %v8542_v29, %v8552_v58  ;;  %v10311_v55 = vcombine.low %v8565_v60, %v8575_v15  ;;  %v15895_v58 = vld [vmem:[#allocation20_spill] sm:$0xff]  ;;  %v15898_v29 = vld [vmem:[#allocation19_spill] sm:$0xff] }
 0x5ac   :  { %v8620_v48 = vor.u32 %v8619_v16, %v8616_v50  ;;  %v8588_v38 = vsel %vm12502_vm9, %v8584_v42, %v15187_v7  ;;  %v8598_v13 = vsel %vm12502_vm9, %v8589_v31, %v8597_v8  ;;  %v8629_v25 = vor.u32 %v8628_v20, %v8625_v62  ;;  %v15896_v16 = vld [vmem:[#allocation46_spill] sm:$0xff]  ;;  %v15237_v20 = vld [vmem:[#allocation2 + $0x98] sm:$0x7] }
 0x5ad   :  { %11439 = vmatmul.mubr.bf16.gmra.mrb[20].mxu0 %v10308_v24  ;;  %v8607_v24 = vrot.slane %v8606_v43, 4  ;;  %v8633_v45 = vor.u32 %v8632_v28, %v8631_v10  ;;  %v8642_v35 = vrot.slane %v8640_v59, 7  ;;  %v8652_v7 = vor.u32 %v8651_v22, %v8648_v63 }
 0x5ae   :  { %11442 = vmatprep.mubr.bf16.mxu0 %v10309_v46  ;;  %11471 = vmatpush3.bf16.msra.mxu0 %v12085_v47  ;;  %v8637_v47 = vshrl.u32 %v15197_v39, 16  ;;  %v8621_v36 = vsel %vm12502_vm9, %v8612_v23, %v8620_v48  ;;  %v8662_v43 = vrot.slane %v8660_v54, 6  ;;  %v8665_v41 = vrot.slane %v8663_v18, 7 }
 0x5af   :  { %11472 = vmatprep.subr.bf16.mxu0 %v12086_v30  ;;  %v8611_v6 = vsel %vm12502_vm9, %v8607_v24, %v15190_v37  ;;  %v8669_v46 = vshrl.u32 %v14994_v26, 16  ;;  %v8672_v37 = vshll.u32 %v14994_v26, 16  ;;  %v8677_v50 = vrot.slane %v15895_v58, 6 }
 0x5b0   :  { %v8639_v3 = vrot.slane %v8637_v47, 6  ;;  %v8678_v1 = vrot.slane %v15896_v16, 7  ;;  %v8683_v15 = vshrl.u32 %v15229_v11, 16  ;;  %v8686_v0 = vshll.u32 %v15229_v11, 16 }
 0x5b1   :  { %v10312_v42 = vcombine.low %v8588_v38, %v8598_v13  ;;  %v10313_v31 = vcombine.low %v8611_v6, %v8621_v36  ;;  %v8630_v8 = vrot.slane %v8629_v25, 4  ;;  %v8635_v62 = vrot.slane %v8633_v45, 4 }
 0x5b2   :  { %11473 = vmatpush3.bf16.msra.mxu0 %v12086_v30  ;;  %v8656_v30 = vor.u32 %v8655_v32, %v8654_v34  ;;  %v8643_v24 = vor.u32 %v8642_v35, %v8639_v3  ;;  %v8653_v23 = vrot.slane %v8652_v7, 4  ;;  %v8666_v26 = vor.u32 %v8665_v41, %v8662_v43  ;;  %v12090_v34 = vld [vmem:[#allocation9 + $0x1b8] sm:$0xff]   ;;  %v15253_v43 = vld [vmem:[#allocation2 + $0xa4] sm:$0x7] }
 0x5b3   :  { %11474 = vmatprep.subr.bf16.mxu0 %v12087_v19  ;;  %v8671_v10 = vrot.slane %v8669_v46, 6  ;;  %v8692_v48 = vshrl.u32 %v15003_v40, 16  ;;  %v8695_v28 = vshll.u32 %v15003_v40, 16  ;;  %v8674_v47 = vrot.slane %v8672_v37, 7 }
 0x5b4   :  { %v8679_v59 = vor.u32 %v8678_v1, %v8677_v50  ;;  %v8685_v63 = vrot.slane %v8683_v15, 6  ;;  %v8688_v22 = vrot.slane %v8686_v0, 7  ;;  %v8700_v32 = vrot.slane %v15897_v51, 6  ;;  %v15900_v1 = vld [vmem:[#allocation31_spill] sm:$0xff]  ;;  %v15259_v15 = vld [vmem:[#allocation2 + $0xb0] sm:$0x7] }
 0x5b5   :  { %11443 = vmatmul.mubr.bf16.gmra.mrb[24].mxu0 %v10310_v52  ;;  %v8701_v60 = vrot.slane %v15898_v29, 7  ;;  %v8706_v54 = vshrl.u32 %v15237_v20, 16  ;;  %v8709_v18 = vshll.u32 %v15237_v20, 16  ;;  %v8644_v52 = vsel %vm12502_vm9, %v8635_v62, %v8643_v24 }
 0x5b6   :  { %11446 = vmatprep.mubr.bf16.mxu0 %v10311_v55  ;;  %11475 = vmatpush3.bf16.msra.mxu0 %v12087_v19  ;;  %v8658_v19 = vrot.slane %v8656_v30, 4  ;;  %v8694_v55 = vrot.slane %v8692_v48, 6  ;;  %v8697_v38 = vrot.slane %v8695_v28, 7  ;;  %v8634_v13 = vsel %vm12502_vm9, %v8630_v8, %v8633_v45  ;;  %v15899_v45 = vld [vmem:[#allocation30_spill] sm:$0xff] }
 0x5b7   :  { %11476 = vmatprep.subr.bf16.mxu0 %v12088_v17  ;;  %v8675_v6 = vor.u32 %v8674_v47, %v8671_v10  ;;  %v8681_v36 = vrot.slane %v8679_v59, 4  ;;  %v8689_v25 = vor.u32 %v8688_v22, %v8685_v63  ;;  %v8702_v3 = vor.u32 %v8701_v60, %v8700_v32 }
 0x5b8   :  { %v8667_v40 = vsel %vm12502_vm9, %v8658_v19, %v8666_v26  ;;  %v8708_v35 = vrot.slane %v8706_v54, 6  ;;  %v8711_v7 = vrot.slane %v8709_v18, 7  ;;  %v10314_v41 = vcombine.low %v8634_v13, %v8644_v52  ;;  %v15902_v26 = vld [vmem:[#allocation38_spill] sm:$0xff] }
 0x5b9   :  { %v8715_v37 = vshrl.u32 %v15015_v14, 16  ;;  %v8698_v58 = vor.u32 %v8697_v38, %v8694_v55  ;;  %v8718_v50 = vshll.u32 %v15015_v14, 16  ;;  %v8723_v16 = vrot.slane %v15899_v45, 6  ;;  %v15275_v38 = vld [vmem:[#allocation2 + $0xbc] sm:$0x7] }
 0x5ba   :  { %11477 = vmatpush3.bf16.msra.mxu0 %v12088_v17  ;;  %v8657_v17 = vsel %vm12502_vm9, %v8653_v23, %v8656_v30  ;;  %v8724_v30 = vrot.slane %v15900_v1, 7  ;;  %v8729_v0 = vshrl.u32 %v15253_v43, 16  ;;  %v8676_v8 = vrot.slane %v8675_v6, 4  ;;  %v15901_v23 = vld [vmem:[#allocation42_spill] sm:$0xff] }
 0x5bb   :  { %11478 = vmatprep.subr.bf16.mxu0 %v12089_v57  ;;  %v10315_v46 = vcombine.low %v8657_v17, %v8667_v40  ;;  %v8690_v62 = vsel %vm12502_vm9, %v8681_v36, %v8689_v25  ;;  %v8704_v14 = vrot.slane %v8702_v3, 4  ;;  %v8712_v24 = vor.u32 %v8711_v7, %v8708_v35 }
 0x5bc   :  { %v8746_v19 = vrot.slane %v15901_v23, 6  ;;  %v8747_v10 = vrot.slane %v15902_v26, 7  ;;  %v8752_v48 = vshrl.u32 %v15259_v15, 16  ;;  %v8755_v28 = vshll.u32 %v15259_v15, 16 }
 0x5bd   :  { %11447 = vmatmul.mubr.bf16.gmra.mrb[28].mxu0 %v10312_v42  ;;  %v8738_v42 = vshrl.u32 %v15032_v9, 16  ;;  %v8699_v47 = vrot.slane %v8698_v58, 4  ;;  %v8717_v63 = vrot.slane %v8715_v37, 6  ;;  %v8720_v22 = vrot.slane %v8718_v50, 7 }
 0x5be   :  { %11450 = vmatprep.mubr.bf16.mxu0 %v10313_v31  ;;  %11479 = vmatpush3.bf16.msra.mxu0 %v12089_v57  ;;  %v8732_v57 = vshll.u32 %v15253_v43, 16  ;;  %v8741_v31 = vshll.u32 %v15032_v9, 16  ;;  %v8725_v9 = vor.u32 %v8724_v30, %v8723_v16  ;;  %v8680_v60 = vsel %vm12502_vm9, %v8676_v8, %v8679_v59 }
 0x5bf   :  { %11480 = vmatprep.subr.bf16.mxu0 %v12090_v34  ;;  %v8740_v32 = vrot.slane %v8738_v42, 6  ;;  %v8713_v54 = vsel %vm12502_vm9, %v8704_v14, %v8712_v24  ;;  %v10316_v18 = vcombine.low %v8680_v60, %v8690_v62  ;;  %v8748_v52 = vor.u32 %v8747_v10, %v8746_v19  ;;  %v15903_v10 = vld [vmem:[#allocation51_spill] sm:$0xff] }
 0x5c0   :  { %v8734_v51 = vrot.slane %v8732_v57, 7  ;;  %v8743_v29 = vrot.slane %v8741_v31, 7  ;;  %v8754_v40 = vrot.slane %v8752_v48, 6  ;;  %v8757_v55 = vrot.slane %v8755_v28, 7 }
 0x5c1   :  { %v8703_v13 = vsel %vm12502_vm9, %v8699_v47, %v8702_v3  ;;  %v8721_v17 = vor.u32 %v8720_v22, %v8717_v63  ;;  %v8761_v6 = vshrl.u32 %v15038_v56, 16  ;;  %v8764_v36 = vshll.u32 %v15038_v56, 16  ;;  %v9105_v47 = vld [vmem:[#allocation2] sm:$0x8]  ;;  %v15904_v63 = vld [vmem:[#allocation41_spill] sm:$0xff] }
 0x5c2   :  { %11481 = vmatpush3.bf16.msra.mxu0 %v12090_v34  ;;  %v8731_v34 = vrot.slane %v8729_v0, 6  ;;  %v10317_v25 = vcombine.low %v8703_v13, %v8713_v54  ;;  %v8727_v35 = vrot.slane %v8725_v9, 4  ;;  %v8744_v7 = vor.u32 %v8743_v29, %v8740_v32  ;;  %v15906_v32 = vld [vmem:[#allocation17_spill] sm:$0xff] }
 0x5c3   :  { %v8775_v37 = vshrl.u32 %v15275_v38, 16  ;;  %v8778_v58 = vshll.u32 %v15275_v38, 16  ;;  %v8750_v50 = vrot.slane %v8748_v52, 4  ;;  %v8758_v3 = vor.u32 %v8757_v55, %v8754_v40  ;;  %v15907_v55 = vld [vmem:[#allocation22_spill] sm:$0xff] }
 0x5c4   :  { %v8735_v59 = vor.u32 %v8734_v51, %v8731_v34  ;;  %v8722_v45 = vrot.slane %v8721_v17, 4  ;;  %v8763_v16 = vrot.slane %v8761_v6, 6  ;;  %v8766_v1 = vrot.slane %v8764_v36, 7  ;;  %v9106_v17 = vld [vmem:[#allocation2 + $0xc] sm:$0x8] }
 0x5c5   :  { %11451 = vmatmul.mubr.bf16.gmra.mrb[32].mxu0 %v10314_v41  ;;  %v8769_v41 = vrot.slane %v14445_v61, 6  ;;  %v8745_v56 = vrot.slane %v8744_v7, 4  ;;  %v8777_v57 = vrot.slane %v8775_v37, 6  ;;  %v8780_v61 = vrot.slane %v8778_v58, 7  ;;  %v15909_v37 = vld [vmem:[#allocation21_spill] sm:$0xff] }
 0x5c6   :  { %11454 = vmatprep.mubr.bf16.mxu0 %v10315_v46  ;;  %v8770_v46 = vrot.slane %v14440_v4, 7  ;;  %v8736_v30 = vsel %vm12502_vm9, %v8727_v35, %v8735_v59  ;;  %v8759_v4 = vsel %vm12502_vm9, %v8750_v50, %v8758_v3  ;;  %v9155_v42 = vrot.slane %v14871_v21, 7  ;;  %v15908_v59 = vld [vmem:[#allocation16_spill] sm:$0xff] }
 0x5c7   :  { %v8726_v31 = vsel %vm12502_vm9, %v8722_v45, %v8725_v9  ;;  %v8767_v8 = vor.u32 %v8766_v1, %v8763_v16  ;;  %v8749_v14 = vsel %vm12502_vm9, %v8745_v56, %v8748_v52  ;;  %v8781_v19 = vor.u32 %v8780_v61, %v8777_v57  ;;  %v15910_v1 = vld [vmem:[#allocation43_spill] sm:$0xff]  ;;  %v9109_v61 = vld [vmem:[#allocation2 + $0x30] sm:$0x8] }
 0x5c8   :  { %v8771_v0 = vor.u32 %v8770_v46, %v8769_v41  ;;  %v10318_v62 = vcombine.low %v8726_v31, %v8736_v30  ;;  %v10319_v24 = vcombine.low %v8749_v14, %v8759_v4  ;;  %v9157_v26 = vrot.slane %v9155_v42, 4  ;;  %v9108_v30 = vld [vmem:[#allocation2 + $0x24] sm:$0x8]  ;;  %v15911_v31 = vld [vmem:[#allocation56_spill] sm:$0xff] }
 0x5c9   :  { %v9158_v48 = vrot.slane %v15903_v10, 7  ;;  %v8768_v28 = vrot.slane %v8767_v8, 4  ;;  %v9162_v22 = vrot.slane %v15904_v63, 7  ;;  %v10329_v9 = vrot.slane %v9105_v47, 11  ;;  %v9110_v47 = vld [vmem:[#allocation2 + $0x3c] sm:$0x8] }
 0x5ca   :  { %v8773_v23 = vrot.slane %v8771_v0, 4  ;;  %v9169_v29 = vrot.slane %v15906_v32, 7  ;;  %v9165_v13 = vrot.slane %v15907_v55, 7  ;;  %v9172_v36 = vrot.slane %v15085_v27, 7  ;;  %v15913_v32 = vld [vmem:[#allocation33_spill] sm:$0xff] }
 0x5cb   :  { %v9159_v51 = vsel %vm13869_vm10, %v9157_v26, %v9158_v48  ;;  %v8772_v60 = vsel %vm12502_vm9, %v8768_v28, %v8771_v0  ;;  %v9164_v40 = vrot.slane %v9162_v22, 4  ;;  %v10330_v35 = vrot.slane %v9106_v17, 11 }
 0x5cc   :  { %v8782_v21 = vsel %vm12502_vm9, %v8773_v23, %v8781_v19  ;;  %v9171_v6 = vrot.slane %v9169_v29, 4  ;;  %v9176_v7 = vrot.slane %v15908_v59, 7  ;;  %v9183_v58 = vrot.slane %v15909_v37, 7 }
 0x5cd   :  { %11455 = vmatmul.mubr.bf16.gmra.mrb[36].mxu0 %v10316_v18  ;;  %v10320_v54 = vcombine.low %v8772_v60, %v8782_v21  ;;  %v9156_v18 = vsel %vm13869_vm10, %v10329_v9, %v9155_v42  ;;  %v9166_v49 = vsel %vm13869_vm10, %v9164_v40, %v9165_v13  ;;  %v9163_v50 = vsel %vm13869_vm10, %v10330_v35, %v9162_v22  ;;  %v9111_v22 = vld [vmem:[#allocation2 + $0x48] sm:$0x8]  ;;  %v9113_v35 = vld [vmem:[#allocation2 + $0x60] sm:$0x8] }
 0x5ce   :  { %11458 = vmatprep.mubr.bf16.mxu0 %v10317_v25  ;;  %v10345_v52 = vcombine.low %v9156_v18, %v9159_v51  ;;  %v9107_v25 = vld [vmem:[#allocation2 + $0x18] sm:$0x8]  ;;  %v9173_v46 = vsel %vm13869_vm10, %v9171_v6, %v9172_v36  ;;  %v10346_v3 = vcombine.low %v9163_v50, %v9166_v49  ;;  %v9178_v16 = vrot.slane %v9176_v7, 4  ;;  %v15914_v18 = vld [vmem:[#allocation27_spill] sm:$0xff]  ;;  %v9112_v6 = vld [vmem:[#allocation2 + $0x54] sm:$0x8] }
 0x5cf   :  { %v10331_v41 = vrot.slane %v9107_v25, 11  ;;  %v9179_v56 = vrot.slane %v15910_v1, 7  ;;  %v9185_v0 = vrot.slane %v9183_v58, 4  ;;  %v9186_v57 = vrot.slane %v15110_v44, 7  ;;  %v9114_v1 = vld [vmem:[#allocation2 + $0x6c] sm:$0x8] }
 0x5d0   :  { %v10332_v4 = vrot.slane %v9108_v30, 11  ;;  %v9190_v8 = vrot.slane %v15911_v31, 7  ;;  %v9193_v28 = vrot.slane %v15134_v53, 7  ;;  %v9200_v63 = vrot.slane %v15146_v2, 7 }
 0x5d1   :  { %v9170_v27 = vsel %vm13869_vm10, %v10331_v41, %v9169_v29  ;;  %v9180_v42 = vsel %vm13869_vm10, %v9178_v16, %v9179_v56  ;;  %v9187_v14 = vsel %vm13869_vm10, %v9185_v0, %v9186_v57  ;;  %v10334_v9 = vrot.slane %v9110_v47, 11  ;;  %v9115_v0 = vld [vmem:[#allocation2 + $0x78] sm:$0x8] }
 0x5d2   :  { %v10347_v45 = vcombine.low %v9170_v27, %v9173_v46  ;;  %v9177_v19 = vsel %vm13869_vm10, %v10332_v4, %v9176_v7  ;;  %v9192_v48 = vrot.slane %v9190_v8, 4  ;;  %v9204_v29 = vrot.slane %v15913_v32, 7  ;;  %v15915_v7 = vld [vmem:[#allocation24_spill] sm:$0xff] }
 0x5d3   :  { %v10348_v26 = vcombine.low %v9177_v19, %v9180_v42  ;;  %v10335_v60 = vrot.slane %v9111_v22, 11  ;;  %v9191_v53 = vsel %vm13869_vm10, %v10334_v9, %v9190_v8  ;;  %v9207_v17 = vrot.slane %v15168_v5, 7  ;;  %v15917_v4 = vld [vmem:[#allocation36_spill] sm:$0xff] }
 0x5d4   :  { %v9194_v51 = vsel %vm13869_vm10, %v9192_v48, %v9193_v28  ;;  %v9206_v13 = vrot.slane %v9204_v29, 4  ;;  %v9214_v25 = vrot.slane %v15174_v33, 7  ;;  %v10336_v49 = vrot.slane %v9112_v6, 11  ;;  %v9117_v28 = vld [vmem:[#allocation2 + $0x90] sm:$0x8]  ;;  %v15921_v6 = vld [vmem:[#allocation50_spill] sm:$0xff] }
 0x5d5   :  { %11459 = vmatmul.mubr.bf16.gmra.mrb[40].mxu0 %v10318_v62  ;;  %v10333_v62 = vrot.slane %v9109_v61, 11  ;;  %v10350_v40 = vcombine.low %v9191_v53, %v9194_v51  ;;  %v9218_v41 = vrot.slane %v15915_v7, 7  ;;  %v10337_v46 = vrot.slane %v9113_v35, 11  ;;  %v15920_v32 = vld [vmem:[#allocation44_spill] sm:$0xff]  ;;  %v9118_v53 = vld [vmem:[#allocation2 + $0x9c] sm:$0x8] }
 0x5d6   :  { %11462 = vmatprep.mubr.bf16.mxu0 %v10319_v24  ;;  %v15912_v24 = vld [vmem:[#allocation52_spill] sm:$0xff]  ;;  %v9208_v59 = vsel %vm13869_vm10, %v9206_v13, %v9207_v17  ;;  %v9205_v5 = vsel %vm13869_vm10, %v10336_v49, %v9204_v29  ;;  %v9221_v16 = vrot.slane %v15197_v39, 7  ;;  %v9228_v30 = vrot.slane %v15202_v12, 7 }
 0x5d7   :  { %v9197_v23 = vrot.slane %v15912_v24, 7  ;;  %v9184_v44 = vsel %vm13869_vm10, %v10333_v62, %v9183_v58  ;;  %v15916_v58 = vld [vmem:[#allocation29_spill] sm:$0xff]  ;;  %v10338_v57 = vrot.slane %v9114_v1, 11  ;;  %v9232_v42 = vrot.slane %v15917_v4, 7 }
 0x5d8   :  { %v10349_v10 = vcombine.low %v9184_v44, %v9187_v14  ;;  %v9225_v50 = vrot.slane %v15916_v58, 7  ;;  %v10339_v31 = vrot.slane %v9115_v0, 11  ;;  %v15918_v62 = vld [vmem:[#allocation37_spill] sm:$0xff]  ;;  %v9116_v44 = vld [vmem:[#allocation2 + $0x84] sm:$0x8]  ;;  %v9242_v48 = vrot.slane %v15237_v20, 7 }
 0x5d9   :  { %v9199_v21 = vrot.slane %v9197_v23, 4  ;;  %v9198_v2 = vsel %vm13869_vm10, %v10335_v60, %v9197_v23  ;;  %v9239_v14 = vrot.slane %v15918_v62, 7  ;;  %v9219_v39 = vsel %vm13869_vm10, %v10338_v57, %v9218_v41 }
 0x5da   :  { %v9227_v56 = vrot.slane %v9225_v50, 4  ;;  %v9226_v12 = vsel %vm13869_vm10, %v10339_v31, %v9225_v50  ;;  %v9234_v19 = vrot.slane %v9232_v42, 4  ;;  %v10340_v47 = vrot.slane %v9116_v44, 11 }
 0x5db   :  { %v10341_v9 = vrot.slane %v9117_v28, 11  ;;  %v9253_v29 = vrot.slane %v15920_v32, 7  ;;  %v10342_v13 = vrot.slane %v9118_v53, 11  ;;  %vm9807_vm9 = vcmask 1043459  }
 0x5dc   :  { %v9229_v8 = vsel %vm13869_vm10, %v9227_v56, %v9228_v30 }
 0x5dd   :  { %11463 = vmatmul.mubr.bf16.gmra.mrb[44].mxu0 %v10320_v54  ;;  %v9201_v54 = vsel %vm13869_vm10, %v9199_v21, %v9200_v63  ;;  %v10355_v23 = vcombine.low %v9226_v12, %v9229_v8  ;;  %v15919_v63 = vld [vmem:[#allocation40_spill] sm:$0xff]  ;;  %v9240_v20 = vsel %vm13869_vm10, %v10341_v9, %v9239_v14 }
 0x5de   :  { %11482 = vmatprep.mubr.bf16.mxu0 %v10345_v52  ;;  %v9211_v52 = vrot.slane %v15914_v18, 7  ;;  %v10351_v55 = vcombine.low %v9198_v2, %v9201_v54  ;;  %v9246_v22 = vrot.slane %v15919_v63, 7  ;;  %v9256_v2 = vrot.slane %v15259_v15, 7 }
 0x5e0   :  { %v9213_v36 = vrot.slane %v9211_v52, 4  ;;  %v9212_v33 = vsel %vm13869_vm10, %v10337_v46, %v9211_v52  ;;  %v9248_v18 = vrot.slane %v9246_v22, 4  ;;  %v9249_v52 = vrot.slane %v15253_v43, 7  ;;  %v9120_v46 = vld [vmem:[#allocation2 + $0xb4] sm:$0x8] }
 0x5e1   :  { %v9247_v43 = vsel %vm13869_vm10, %v10342_v13, %v9246_v22 }
 0x5e2   :  { %v9215_v37 = vsel %vm13869_vm10, %v9213_v36, %v9214_v25  ;;  %v9250_v17 = vsel %vm13869_vm10, %v9248_v18, %v9249_v52  ;;  %v9260_v36 = vrot.slane %v15921_v6, 7 }
 0x5e3   :  { %v10353_v27 = vcombine.low %v9212_v33, %v9215_v37  ;;  %v10358_v49 = vcombine.low %v9247_v43, %v9250_v17  ;;  %v10344_v37 = vrot.slane %v9120_v46, 11 }
 0x5e4   :  { %v9262_v7 = vrot.slane %v9260_v36, 4 }
 0x5e5   :  { %11483 = vmatmul.mubr.bf16.vlgmr.msra.gmra.mrb[16].mxu0 %v10346_v3  ;;  %v10352_v3 = vcombine.low %v9205_v5, %v9208_v59  ;;  %v9261_v50 = vsel %vm13869_vm10, %v10344_v37, %v9260_v36 }
 0x5e6   :  { %11486 = vmatprep.mubr.bf16.mxu0 %v10347_v45  ;;  %v9220_v45 = vrot.slane %v9218_v41, 4  ;;  %v9263_v41 = vrot.slane %v15275_v38, 7 }
 0x5e8   :  { %v9222_v61 = vsel %vm13869_vm10, %v9220_v45, %v9221_v16  ;;  %v9264_v58 = vsel %vm13869_vm10, %v9262_v7, %v9263_v41 }
 0x5e9   :  { %v10354_v24 = vcombine.low %v9219_v39, %v9222_v61  ;;  %v10360_v5 = vcombine.low %v9261_v50, %v9264_v58 }
 0x5ed   :  { %11487 = vmatmul.mubr.bf16.gmra.mrb[20].mxu0 %v10348_v26  ;;  %v9235_v26 = vrot.slane %v15229_v11, 7  ;;  %v9233_v11 = vsel %vm13869_vm10, %v10340_v47, %v9232_v42 }
 0x5ee   :  { %11490 = vmatprep.mubr.bf16.mxu0 %v10349_v10  ;;  %v9241_v10 = vrot.slane %v9239_v14, 4 }
 0x5ef   :  { %v9236_v21 = vsel %vm13869_vm10, %v9234_v19, %v9235_v26 }
 0x5f0   :  { %v9243_v51 = vsel %vm13869_vm10, %v9241_v10, %v9242_v48  ;;  %v10356_v60 = vcombine.low %v9233_v11, %v9236_v21 }
 0x5f1   :  { %v10357_v54 = vcombine.low %v9240_v20, %v9243_v51 }
 0x5f5   :  { %11491 = vmatmul.mubr.bf16.gmra.mrb[24].mxu0 %v10350_v40  ;;  %v9255_v40 = vrot.slane %v9253_v29, 4 }
 0x5f6   :  { %11494 = vmatprep.mubr.bf16.mxu0 %v10351_v55  ;;  %v9119_v55 = vld [vmem:[#allocation2 + $0xa8] sm:$0x8] }
 0x5f7   :  { %v10343_v25 = vrot.slane %v9119_v55, 11  ;;  %v9257_v35 = vsel %vm13869_vm10, %v9255_v40, %v9256_v2 }
 0x5f9   :  { %v9254_v59 = vsel %vm13869_vm10, %v10343_v25, %v9253_v29 }
 0x5fa   :  { %v10359_v15 = vcombine.low %v9254_v59, %v9257_v35 }
 0x5fd   :  { %11495 = vmatmul.mubr.bf16.gmra.mrb[28].mxu0 %v10352_v3  ;;  %v15396_v3 = vld [vmem:[%s15462_s6] ss:$0 sm:$0xff]  ;;  %s12265_s6 = smov [#allocation11]  }
 0x5fe   :  { %11498 = vmatprep.mubr.bf16.mxu0 %v10353_v27  ;;  %s9833_s30 = sshll.u32 %s12265_s6, 4  ;;  %s9834_s30 = int_to_ptr.vmem [resolvable:$true] %s9833_s30 }
 0x5ff   :  { %s12229_s8 = scalar_lea.vmem %s9834_s30, 256  ;;  %p12234_p5 = scmp.lt.s32.totalorder %s9834_s30, %s9834_s30 }
 0x600   :  { %p12230_p4 = scmp.ne.s32.totalorder %s9834_s30, %s12229_s8  ;;  %p12235_p6 = scmp.lt.s32.totalorder %s12229_s8, %s12229_s8 }
 0x602   :  { %p12236_p7 = por %p12235_p6, %p12234_p5 }
 0x604   :  { %p12237_p8 = pnand %p12236_p7, %p12230_p4 }
 0x605   :  { %11499 = vmatmul.mubr.bf16.gmra.mrb[32].mxu0 %v10354_v24 }
 0x606   :  { %11502 = vmatprep.mubr.bf16.mxu0 %v10355_v23 }
 0x60d   :  { %11503 = vmatmul.mubr.bf16.gmra.mrb[36].mxu0 %v10356_v60 }
 0x60e   :  { %11506 = vmatprep.mubr.bf16.mxu0 %v10357_v54 }
 0x615   :  { %11507 = vmatmul.mubr.bf16.gmra.mrb[40].mxu0 %v10358_v49 }
 0x616   :  { %11510 = vmatprep.mubr.bf16.mxu0 %v10359_v15 }
 0x61d   :  { %11511 = vmatmul.mubr.bf16.gmra.mrb[44].mxu0 %v10360_v5 }
 0x6b8   :  { %v11484_v33 = vpop.f32.mrb[16].mxu0 }
 0x6b9   :  { %v9596_v38 = vadd.f32 %v11484_v33, %v15396_v3  ;;  %v9428_v27 = vpop.f32.mrb[17].mxu0 }
 0x6ba   :  { %v9594_v45 = vadd.f32 %v15396_v3, %v9428_v27  ;;  %v11485_v16 = vpop.f32.mrb[18].mxu0 }
 0x6bb   :  { %v9597_v1 = vadd.f32 %v11485_v16, %v15396_v3  ;;  %v9431_v56 = vpop.f32.mrb[19].mxu0  ;;  %v9628_v30 = vmax.f32 %v9596_v38, 0.0 }
 0x6bc   :  { %v9595_v34 = vadd.f32 %v15396_v3, %v9431_v56  ;;  %v9626_v57 = vmax.f32 %v9594_v45, 0.0 }
 0x6bd   :  { %v9629_v0 = vmax.f32 %v9597_v1, 0.0 }
 0x6be   :  { %v9627_v61 = vmax.f32 %v9595_v34, 0.0 }
 0x6bf   :  { %v9665_v4 = vadd.f32 %v9629_v0, %v9628_v30 }
 0x6c0   :  { %v9658_v42 = vadd.f32 %v9627_v61, %v9626_v57  ;;  %v11488_v31 = vpop.f32.mrb[20].mxu0 }
 0x6c1   :  { %v9666_v8 = vrot.slane %v9665_v4, 4  ;;  %v9600_v62 = vadd.f32 %v11488_v31, %v15396_v3  ;;  %v9444_v14 = vpop.f32.mrb[21].mxu0 }
 0x6c2   :  { %v9659_v39 = vrot.slane %v9658_v42, 4  ;;  %v9598_v24 = vadd.f32 %v15396_v3, %v9444_v14  ;;  %v11489_v12 = vpop.f32.mrb[22].mxu0 }
 0x6c3   :  { %v9667_v23 = vadd.f32 %v9666_v8, %v9665_v4  ;;  %v9601_v19 = vadd.f32 %v11489_v12, %v15396_v3  ;;  %v9447_v26 = vpop.f32.mrb[23].mxu0  ;;  %v9632_v28 = vmax.f32 %v9600_v62, 0.0 }
 0x6c4   :  { %v9660_v44 = vadd.f32 %v9659_v39, %v9658_v42  ;;  %v9599_v10 = vadd.f32 %v15396_v3, %v9447_v26  ;;  %v9630_v63 = vmax.f32 %v9598_v24, 0.0 }
 0x6c5   :  { %v9668_v48 = vrot.slane %v9667_v23, 2  ;;  %v9633_v47 = vmax.f32 %v9601_v19, 0.0 }
 0x6c6   :  { %v9661_v21 = vrot.slane %v9660_v44, 2  ;;  %v9631_v22 = vmax.f32 %v9599_v10, 0.0 }
 0x6c7   :  { %v9669_v9 = vadd.f32 %v9668_v48, %v9667_v23  ;;  %v9679_v51 = vadd.f32 %v9633_v47, %v9632_v28 }
 0x6c8   :  { %v9662_v32 = vadd.f32 %v9661_v21, %v9660_v44  ;;  %v9672_v29 = vadd.f32 %v9631_v22, %v9630_v63  ;;  %v11492_v11 = vpop.f32.mrb[24].mxu0 }
 0x6c9   :  { %v9670_v60 = vrot.slane %v9669_v9, 1  ;;  %v9680_v20 = vrot.slane %v9679_v51, 4  ;;  %v9604_v54 = vadd.f32 %v11492_v11, %v15396_v3  ;;  %v9460_v18 = vpop.f32.mrb[25].mxu0 }
 0x6ca   :  { %v9663_v52 = vrot.slane %v9662_v32, 1  ;;  %v9673_v53 = vrot.slane %v9672_v29, 4  ;;  %v9602_v40 = vadd.f32 %v15396_v3, %v9460_v18  ;;  %v11493_v2 = vpop.f32.mrb[26].mxu0 }
 0x6cb   :  { %v9671_v55 = vadd.f32 %v9670_v60, %v9669_v9  ;;  %v9681_v13 = vadd.f32 %v9680_v20, %v9679_v51  ;;  %v9605_v17 = vadd.f32 %v11493_v2, %v15396_v3  ;;  %v9463_v6 = vpop.f32.mrb[27].mxu0  ;;  %v9636_v59 = vmax.f32 %v9604_v54, 0.0 }
 0x6cc   :  { %v9664_v36 = vadd.f32 %v9663_v52, %v9662_v32  ;;  %v9674_v25 = vadd.f32 %v9673_v53, %v9672_v29  ;;  %v9603_v35 = vadd.f32 %v15396_v3, %v9463_v6  ;;  %v9634_v46 = vmax.f32 %v9602_v40, 0.0 }
 0x6cd   :  { %v9772_v43 = vmul.f32 0.0625, %v9671_v55  ;;  %v9682_v49 = vrot.slane %v9681_v13, 2  ;;  %v9637_v15 = vmax.f32 %v9605_v17, 0.0 }
 0x6ce   :  { %v9771_v7 = vmul.f32 0.0625, %v9664_v36  ;;  %v9675_v41 = vrot.slane %v9674_v25, 2  ;;  %v9635_v37 = vmax.f32 %v9603_v35, 0.0 }
 0x6cf   :  { %v9683_v58 = vadd.f32 %v9682_v49, %v9681_v13  ;;  %v9693_v50 = vadd.f32 %v9637_v15, %v9636_v59 }
 0x6d0   :  { %v9804_v5 = vsel %vm9803_vm2, %v9772_v43, %v9771_v7  ;;  %v9676_v33 = vadd.f32 %v9675_v41, %v9674_v25  ;;  %v9686_v38 = vadd.f32 %v9635_v37, %v9634_v46  ;;  %v11496_v27 = vpop.f32.mrb[28].mxu0 }
 0x6d1   :  { %v9684_v45 = vrot.slane %v9683_v58, 1  ;;  %v9694_v16 = vrot.slane %v9693_v50, 4  ;;  %v9608_v1 = vadd.f32 %v11496_v27, %v15396_v3  ;;  %v9476_v56 = vpop.f32.mrb[29].mxu0 }
 0x6d2   :  { %v9677_v34 = vrot.slane %v9676_v33, 1  ;;  %v9687_v30 = vrot.slane %v9686_v38, 4  ;;  %v9606_v0 = vadd.f32 %v15396_v3, %v9476_v56  ;;  %v11497_v57 = vpop.f32.mrb[30].mxu0 }
 0x6d3   :  { %v9685_v61 = vadd.f32 %v9684_v45, %v9683_v58  ;;  %v9695_v4 = vadd.f32 %v9694_v16, %v9693_v50  ;;  %v9609_v42 = vadd.f32 %v11497_v57, %v15396_v3  ;;  %v9479_v31 = vpop.f32.mrb[31].mxu0  ;;  %v9640_v24 = vmax.f32 %v9608_v1, 0.0 }
 0x6d4   :  { %v9678_v8 = vadd.f32 %v9677_v34, %v9676_v33  ;;  %v9688_v62 = vadd.f32 %v9687_v30, %v9686_v38  ;;  %v9607_v14 = vadd.f32 %v15396_v3, %v9479_v31  ;;  %v9638_v26 = vmax.f32 %v9606_v0, 0.0 }
 0x6d5   :  { %v9696_v39 = vrot.slane %v9695_v4, 2  ;;  %v9641_v12 = vmax.f32 %v9609_v42, 0.0  ;;  %v9774_v10 = vmul.f32 0.0625, %v9685_v61 }
 0x6d6   :  { %v9773_v23 = vmul.f32 0.0625, %v9678_v8  ;;  %v9689_v19 = vrot.slane %v9688_v62, 2  ;;  %v9639_v44 = vmax.f32 %v9607_v14, 0.0 }
 0x6d7   :  { %v9697_v48 = vadd.f32 %v9696_v39, %v9695_v4  ;;  %v9707_v28 = vadd.f32 %v9641_v12, %v9640_v24 }
 0x6d8   :  { %v9806_v47 = vsel %vm9805_vm8, %v9773_v23, %v9804_v5  ;;  %v9690_v21 = vadd.f32 %v9689_v19, %v9688_v62  ;;  %v9700_v63 = vadd.f32 %v9639_v44, %v9638_v26  ;;  %v11500_v22 = vpop.f32.mrb[32].mxu0 }
 0x6d9   :  { %v9698_v9 = vrot.slane %v9697_v48, 1  ;;  %v9808_v51 = vsel %vm9807_vm9, %v9774_v10, %v9806_v47  ;;  %v9708_v32 = vrot.slane %v9707_v28, 4  ;;  %v9612_v29 = vadd.f32 %v11500_v22, %v15396_v3  ;;  %v9492_v11 = vpop.f32.mrb[33].mxu0 }
 0x6da   :  { %v9691_v60 = vrot.slane %v9690_v21, 1  ;;  %v9701_v20 = vrot.slane %v9700_v63, 4  ;;  %v9610_v54 = vadd.f32 %v15396_v3, %v9492_v11  ;;  %v11501_v18 = vpop.f32.mrb[34].mxu0 }
 0x6db   :  { %v9699_v52 = vadd.f32 %v9698_v9, %v9697_v48  ;;  %v9709_v53 = vadd.f32 %v9708_v32, %v9707_v28  ;;  %v9613_v40 = vadd.f32 %v11501_v18, %v15396_v3  ;;  %v9495_v2 = vpop.f32.mrb[35].mxu0  ;;  %v9644_v36 = vmax.f32 %v9612_v29, 0.0 }
 0x6dc   :  { %v9692_v55 = vadd.f32 %v9691_v60, %v9690_v21  ;;  %v9702_v13 = vadd.f32 %v9701_v20, %v9700_v63  ;;  %v9611_v17 = vadd.f32 %v15396_v3, %v9495_v2  ;;  %v9642_v49 = vmax.f32 %v9610_v54, 0.0 }
 0x6dd   :  { %v9710_v6 = vrot.slane %v9709_v53, 2  ;;  %v9645_v25 = vmax.f32 %v9613_v40, 0.0  ;;  %v9776_v15 = vmul.f32 0.0625, %v9699_v52 }
 0x6de   :  { %v9775_v35 = vmul.f32 0.0625, %v9692_v55  ;;  %v9703_v43 = vrot.slane %v9702_v13, 2  ;;  %v9643_v59 = vmax.f32 %v9611_v17, 0.0 }
 0x6df   :  { %v9711_v7 = vadd.f32 %v9710_v6, %v9709_v53  ;;  %v9721_v41 = vadd.f32 %v9645_v25, %v9644_v36 }
 0x6e0   :  { %v9810_v46 = vsel %vm4620_vm7, %v9775_v35, %v9808_v51  ;;  %v9704_v37 = vadd.f32 %v9703_v43, %v9702_v13  ;;  %v9714_v58 = vadd.f32 %v9643_v59, %v9642_v49  ;;  %v11504_v50 = vpop.f32.mrb[36].mxu0 }
 0x6e1   :  { %v9712_v5 = vrot.slane %v9711_v7, 1  ;;  %v9722_v33 = vrot.slane %v9721_v41, 4  ;;  %v9616_v38 = vadd.f32 %v11504_v50, %v15396_v3  ;;  %v9508_v27 = vpop.f32.mrb[37].mxu0  ;;  %v9812_v45 = vsel %vm9811_vm11, %v9776_v15, %v9810_v46 }
 0x6e2   :  { %v9705_v16 = vrot.slane %v9704_v37, 1  ;;  %v9715_v1 = vrot.slane %v9714_v58, 4  ;;  %v9614_v56 = vadd.f32 %v15396_v3, %v9508_v27  ;;  %v11505_v34 = vpop.f32.mrb[38].mxu0 }
 0x6e3   :  { %v9713_v30 = vadd.f32 %v9712_v5, %v9711_v7  ;;  %v9723_v0 = vadd.f32 %v9722_v33, %v9721_v41  ;;  %v9617_v57 = vadd.f32 %v11505_v34, %v15396_v3  ;;  %v9511_v61 = vpop.f32.mrb[39].mxu0  ;;  %v9648_v62 = vmax.f32 %v9616_v38, 0.0 }
 0x6e4   :  { %v9706_v4 = vadd.f32 %v9705_v16, %v9704_v37  ;;  %v9716_v42 = vadd.f32 %v9715_v1, %v9714_v58  ;;  %v9615_v31 = vadd.f32 %v15396_v3, %v9511_v61  ;;  %v9646_v12 = vmax.f32 %v9614_v56, 0.0 }
 0x6e5   :  { %v9724_v8 = vrot.slane %v9723_v0, 2  ;;  %v9649_v14 = vmax.f32 %v9617_v57, 0.0  ;;  %v9778_v19 = vmul.f32 0.0625, %v9713_v30 }
 0x6e6   :  { %v9777_v39 = vmul.f32 0.0625, %v9706_v4  ;;  %v9717_v24 = vrot.slane %v9716_v42, 2  ;;  %v9647_v23 = vmax.f32 %v9615_v31, 0.0 }
 0x6e7   :  { %v9725_v26 = vadd.f32 %v9724_v8, %v9723_v0  ;;  %v9735_v44 = vadd.f32 %v9649_v14, %v9648_v62 }
 0x6e8   :  { %v9718_v10 = vadd.f32 %v9717_v24, %v9716_v42  ;;  %v9728_v48 = vadd.f32 %v9647_v23, %v9646_v12  ;;  %v11508_v28 = vpop.f32.mrb[40].mxu0  ;;  %v9814_v47 = vsel %vm9813_vm12, %v9777_v39, %v9812_v45 }
 0x6e9   :  { %v9726_v21 = vrot.slane %v9725_v26, 1  ;;  %v9736_v63 = vrot.slane %v9735_v44, 4  ;;  %v9620_v22 = vadd.f32 %v11508_v28, %v15396_v3  ;;  %v9524_v9 = vpop.f32.mrb[41].mxu0  ;;  %v9816_v51 = vsel %vm9815_vm13, %v9778_v19, %v9814_v47 }
 0x6ea   :  { %v9719_v32 = vrot.slane %v9718_v10, 1  ;;  %v9729_v29 = vrot.slane %v9728_v48, 4  ;;  %v9618_v11 = vadd.f32 %v15396_v3, %v9524_v9  ;;  %v11509_v60 = vpop.f32.mrb[42].mxu0  ;;  %9826 = vst [vmem:[#allocation11] sm:$0xff] %v9816_v51 }
 0x6eb   :  { %v9727_v20 = vadd.f32 %v9726_v21, %v9725_v26  ;;  %v9737_v54 = vadd.f32 %v9736_v63, %v9735_v44  ;;  %v9621_v18 = vadd.f32 %v11509_v60, %v15396_v3  ;;  %v9527_v52 = vpop.f32.mrb[43].mxu0  ;;  %v9652_v17 = vmax.f32 %v9620_v22, 0.0 }
 0x6ec   :  { %v9720_v53 = vadd.f32 %v9719_v32, %v9718_v10  ;;  %v9730_v40 = vadd.f32 %v9729_v29, %v9728_v48  ;;  %v9619_v2 = vadd.f32 %v15396_v3, %v9527_v52  ;;  %v9650_v35 = vmax.f32 %v9618_v11, 0.0 }
 0x6ed   :  { %v9780_v55 = vmul.f32 0.0625, %v9727_v20  ;;  %v9738_v13 = vrot.slane %v9737_v54, 2  ;;  %v9653_v6 = vmax.f32 %v9621_v18, 0.0 }
 0x6ee   :  { %v9779_v36 = vmul.f32 0.0625, %v9720_v53  ;;  %v9731_v25 = vrot.slane %v9730_v40, 2  ;;  %v9651_v43 = vmax.f32 %v9619_v2, 0.0 }
 0x6ef   :  { %v9739_v49 = vadd.f32 %v9738_v13, %v9737_v54  ;;  %v9749_v59 = vadd.f32 %v9653_v6, %v9652_v17 }
 0x6f0   :  { %v9817_v15 = vsel %vm9803_vm2, %v9780_v55, %v9779_v36  ;;  %v9732_v7 = vadd.f32 %v9731_v25, %v9730_v40  ;;  %v9742_v41 = vadd.f32 %v9651_v43, %v9650_v35  ;;  %v11512_v46 = vpop.f32.mrb[44].mxu0 }
 0x6f1   :  { %v9740_v37 = vrot.slane %v9739_v49, 1  ;;  %v9750_v58 = vrot.slane %v9749_v59, 4  ;;  %v9624_v50 = vadd.f32 %v11512_v46, %v15396_v3  ;;  %v9540_v5 = vpop.f32.mrb[45].mxu0 }
 0x6f2   :  { %v9733_v33 = vrot.slane %v9732_v7, 1  ;;  %v9743_v38 = vrot.slane %v9742_v41, 4  ;;  %v9622_v27 = vadd.f32 %v15396_v3, %v9540_v5  ;;  %v11513_v45 = vpop.f32.mrb[46].mxu0 }
 0x6f3   :  { %v9741_v16 = vadd.f32 %v9740_v37, %v9739_v49  ;;  %v9751_v1 = vadd.f32 %v9750_v58, %v9749_v59  ;;  %v9625_v56 = vadd.f32 %v11513_v45, %v15396_v3  ;;  %v9543_v34 = vpop.f32.mrb[47].mxu0  ;;  %v9656_v4 = vmax.f32 %v9624_v50, 0.0 }
 0x6f4   :  { %v9734_v30 = vadd.f32 %v9733_v33, %v9732_v7  ;;  %v9744_v0 = vadd.f32 %v9743_v38, %v9742_v41  ;;  %v9623_v57 = vadd.f32 %v15396_v3, %v9543_v34  ;;  %v9654_v62 = vmax.f32 %v9622_v27, 0.0 }
 0x6f5   :  { %v9752_v61 = vrot.slane %v9751_v1, 2  ;;  %v9657_v42 = vmax.f32 %v9625_v56, 0.0  ;;  %v9782_v39 = vmul.f32 0.0625, %v9741_v16 }
 0x6f6   :  { %v9781_v31 = vmul.f32 0.0625, %v9734_v30  ;;  %v9745_v8 = vrot.slane %v9744_v0, 2  ;;  %v9655_v14 = vmax.f32 %v9623_v57, 0.0 }
 0x6f7   :  { %v9753_v24 = vadd.f32 %v9752_v61, %v9751_v1  ;;  %v9763_v12 = vadd.f32 %v9657_v42, %v9656_v4 }
 0x6f8   :  { %v9818_v23 = vsel %vm9805_vm8, %v9781_v31, %v9817_v15  ;;  %v9746_v19 = vadd.f32 %v9745_v8, %v9744_v0  ;;  %v9756_v26 = vadd.f32 %v9655_v14, %v9654_v62 }
 0x6f9   :  { %v9754_v44 = vrot.slane %v9753_v24, 1  ;;  %v9819_v10 = vsel %vm9807_vm9, %v9782_v39, %v9818_v23  ;;  %v9764_v48 = vrot.slane %v9763_v12, 4 }
 0x6fa   :  { %v9747_v28 = vrot.slane %v9746_v19, 1  ;;  %v9757_v3 = vrot.slane %v9756_v26, 4 }
 0x6fb   :  { %v9755_v47 = vadd.f32 %v9754_v44, %v9753_v24  ;;  %v9765_v21 = vadd.f32 %v9764_v48, %v9763_v12 }
 0x6fc   :  { %v9748_v63 = vadd.f32 %v9747_v28, %v9746_v19  ;;  %v9758_v22 = vadd.f32 %v9757_v3, %v9756_v26 }
 0x6fd   :  { %v9766_v9 = vrot.slane %v9765_v21, 2  ;;  %v9784_v29 = vmul.f32 0.0625, %v9755_v47 }
 0x6fe   :  { %v9783_v51 = vmul.f32 0.0625, %v9748_v63  ;;  %v9759_v32 = vrot.slane %v9758_v22, 2 }
 0x6ff   :  { %v9767_v11 = vadd.f32 %v9766_v9, %v9765_v21 }
 0x700   :  { %v9820_v60 = vsel %vm4620_vm7, %v9783_v51, %v9819_v10  ;;  %v9760_v20 = vadd.f32 %v9759_v32, %v9758_v22 }
 0x701   :  { %v9768_v54 = vrot.slane %v9767_v11, 1  ;;  %v9821_v18 = vsel %vm9811_vm11, %v9784_v29, %v9820_v60 }
 0x702   :  { %v9761_v52 = vrot.slane %v9760_v20, 1 }
 0x703   :  { %v9769_v53 = vadd.f32 %v9768_v54, %v9767_v11 }
 0x704   :  { %v9762_v40 = vadd.f32 %v9761_v52, %v9760_v20 }
 0x705   :  { %v9786_v55 = vmul.f32 0.0625, %v9769_v53 }
 0x706   :  { %v9785_v2 = vmul.f32 0.0625, %v9762_v40 }
 0x708   :  { %v9822_v13 = vsel %vm9813_vm12, %v9785_v2, %v9821_v18 }
 0x709   :  { %v9823_v17 = vsel %vm9815_vm13, %v9786_v55, %v9822_v13 }
 0x70a   :  { %9827 = vst [vmem:[#allocation11 + $0x8] sm:$0xff] %v9823_v17 }
 0x70b   :  { %12240 = shalt.err (!%p12237_p8)
}
 0x70c   :  { %s12241_s11 = scalar_lea.hbm %s15463_s7, 256 }
 0x70d   :  { %p12242_p9 = scmp.ne.s32.totalorder %s15463_s7, %s12241_s11  ;;  %p12245_p10 = scmp.lt.u32.totalorder %s12241_s11, %s15463_s7 }
 0x70f   :  { %p12247_p11 = pnand %p12245_p10, %p12242_p9 }
 0x711   :  { %12250 = shalt.err (!%p12247_p11)
}
 0x712   :  { %s12266_s27 = smov 128   ;;  %s12267_s17 = smov 8  }
 0x713   :  { %9839 = dma.vmem_to_hbm [thread:$0]  %s9834_s30, 256, %s15463_s7, [#allocation5], %s12266_s27, %s12266_s27, %s12267_s17  }
 0x714   :  { %12257 = dma.done.wait [#allocation5], 256  }
 0x715   :  { %12258 = vsyncadd [#allocation5], 4294967040 }
 0x716   :  { %9843 = vsyncpa [#allocation4], 1 }
 0x717   :  { %9844 = vsyncpa [#allocation7], 1 }
 0x718   :  { %9845 = vsyncpa [#allocation10], 1 }
 0x719   :  { %9846 = vsyncpa [#allocation5], 1 }

</bundles_post_ra>
